<compile_context>
chip_gen: v5e
topology: v5e:2x2
jax: 0.10.0
libtpu: 0.0.40
codegen_flags: <defaults>
</compile_context>

<pallas_src>
from dataclasses import dataclass

import numpy as np
import jax
import jax.numpy as jnp
from jax.experimental import pallas as pl
from jax.experimental.pallas import tpu as pltpu


# ----------------------------- configuration --------------------------------
D_IN = 3
D_OUT = 1
FEATURE_VECTOR_SIZE = 15
HIDDEN = [32, 32, 32, 32]
SKIP_IN = (2,)
BIAS_INIT = 1.0
MULTIRES = 0                      # embed_fn is None in this configuration
BETA = 100.0                      # nn.Softplus(beta=100)
INV_SQRT2 = float(1.0 / np.sqrt(2.0))

ALIGN_SUB = 8                     # f32 sublane alignment
D0_PAD = 8                        # d_in (3) padded to one full sublane group
ONES_ROW = D_IN                   # padded input row that carries the constant 1.0
OUT_WIDTH = D_OUT + FEATURE_VECTOR_SIZE   # 16

TILE_N = 2048                     # points per grid step (tunable; sweep 1024-4096)
N_POINTS = 4096                   # test size -> grid (2,): even, both v7x TCs busy


def _full_dims():
    return [D_IN] + HIDDEN + [D_OUT + FEATURE_VECTOR_SIZE]


def _round_up(v, m):
    return (v + m - 1) // m * m


# ------------------------- parameter initialization -------------------------
def init_params(key):
    """Replicates the geometric init + weight_norm of ImplicitNetwork.__init__.

    Returns a list of (W, b) with W of shape (out_dim, in_dim) (PyTorch layout)
    and b of shape (out_dim,).  weight_norm with g = ||v|| is the identity at
    init; a trained, separately-stored g would have to be multiplied in here.
    """
    dims = _full_dims()
    num_layers = len(dims)
    params = []
    for l in range(num_layers - 1):
        in_dim = dims[l]
        out_dim = dims[l + 1] - dims[0] if (l + 1) in SKIP_IN else dims[l + 1]
        key, wk = jax.random.split(key)
        if l == num_layers - 2:
            mean = np.sqrt(np.pi) / np.sqrt(dims[l])
            v = mean + 1e-4 * jax.random.normal(wk, (out_dim, in_dim), jnp.float32)
            b = jnp.full((out_dim,), -BIAS_INIT, dtype=jnp.float32)
        else:
            # multires == 0, so the multires-specific init branches never trigger
            std = np.sqrt(2.0) / np.sqrt(out_dim)
            v = std * jax.random.normal(wk, (out_dim, in_dim), jnp.float32)
            b = jnp.zeros((out_dim,), dtype=jnp.float32)
        row_norm = jnp.linalg.norm(v, axis=1, keepdims=True)
        w_eff = row_norm * v / row_norm          # weight_norm (identity at init)
        params.append((w_eff, b))
    return params


# ------------------------------ softplus helpers ------------------------------
def _softplus_beta100(x):
    """PyTorch nn.Softplus(beta=100): (1/100)*log1p(exp(100*x)), linear above 20."""
    z = x * 100.0
    safe = jnp.minimum(z, 20.0)
    return jnp.where(z > 20.0, x, jnp.log1p(jnp.exp(safe)) * 0.01)


def _softplus_folded(z):
    """Softplus with beta folded into the weights: z = beta * pre-activation.

    Returns beta * softplus_beta(pre) (the 1/beta is folded into the next layer's
    h-consuming weight columns), with PyTorch's linear region for z > 20.
    """
    zc = jnp.minimum(z, jnp.asarray(20.0, z.dtype))
    return jnp.where(z > 20.0, z, jnp.log1p(jnp.exp(zc)))


# ---------------------------- static layer plan -------------------------------
@dataclass(frozen=True)
class _LayerPlan:
    row: int          # slab row offset of the main weight block
    out_dim: int      # true output width of the layer
    out_pad: int      # sublane-padded output width carried through the kernel
    k_main: int       # sublane-padded input width of the main matmul
    skip_row: int     # slab row offset of the skip (raw-input) weight block, or -1
    k_skip: int       # sublane-padded width of the raw input block
    bias_folded: bool # bias folded into the matmul via the constant-1.0 input row
    is_last: bool


def _build_plan():
    dims = _full_dims()
    num_layers = len(dims) - 1
    plan = []
    row = 0
    k_in = D0_PAD
    for l in range(num_layers):
        out_dim = dims[l + 1] - dims[0] if (l + 1) in SKIP_IN else dims[l + 1]
        out_pad = _round_up(out_dim, ALIGN_SUB)
        has_skip = l in SKIP_IN
        main_row = row                       # offsets stay multiples of 16 (bf16-safe)
        row += out_pad
        skip_row = -1
        if has_skip:
            skip_row = row
            row += out_pad
        plan.append(_LayerPlan(
            row=main_row, out_dim=out_dim, out_pad=out_pad, k_main=k_in,
            skip_row=skip_row, k_skip=D0_PAD,
            bias_folded=(l == 0) or has_skip,
            is_last=(l == num_layers - 1)))
        k_in = out_pad
    slab_w = max(st.k_main for st in plan)   # 32 here (>= the 8-wide skip blocks)
    return plan, row, slab_w


def pack_implicit_network(params, compute_dtype=jnp.bfloat16):
    """Packs all layers into one zero-padded weight slab + one bias slab, folding
    softplus beta, the skip 1/sqrt(2), and the input-consuming layers' biases.

    Padded-activation hazard: weight columns over padded activation rows (e.g.
    cols 29-31 of the skip layer) stay exactly zero so the softplus_folded(0)
    values carried in those rows never contribute.
    """
    plan, slab_rows, slab_w = _build_plan()
    dims = _full_dims()
    d0 = dims[0]
    b_rows = max(st.out_pad for st in plan)
    b_cols = _round_up(len(plan), ALIGN_SUB)
    w = np.zeros((slab_rows, slab_w), np.float32)
    bb = np.zeros((b_rows, b_cols), np.float32)
    for l, (W, bias) in enumerate(params):
        st = plan[l]
        W = np.asarray(W, np.float32)
        bias = np.asarray(bias, np.float32)
        beta_out = 1.0 if st.is_last else BETA     # fold this layer's softplus beta
        in_scale = 1.0 if l == 0 else 1.0 / BETA   # undo previous layer's beta on h
        if st.skip_row >= 0:
            split = dims[l] - d0                   # width of h before torch.cat
            w[st.row:st.row + st.out_dim, :split] = \
                (beta_out * in_scale * INV_SQRT2) * W[:, :split]
            w[st.skip_row:st.skip_row + st.out_dim, :d0] = \
                (beta_out * INV_SQRT2) * W[:, split:]      # raw-input cols: no 1/beta
            # bias rides the constant-1.0 input row (added after the cat -> no 1/sqrt2)
            w[st.skip_row:st.skip_row + st.out_dim, ONES_ROW] = beta_out * bias
        elif l == 0:
            w[st.row:st.row + st.out_dim, :d0] = (beta_out * in_scale) * W
            w[st.row:st.row + st.out_dim, ONES_ROW] = beta_out * bias
        else:
            w[st.row:st.row + st.out_dim, :W.shape[1]] = (beta_out * in_scale) * W
            bb[:st.out_dim, l] = beta_out * bias
    return (jnp.asarray(w, dtype=compute_dtype),
            jnp.asarray(bb, dtype=jnp.float32),
            plan)


# --------------------------- shared folded-MLP math ---------------------------
def _mlp_apply(x_in, w, b, plan, *, compute_dtype, epilogue_dtype, precision=None):
    """Folded MLP math shared by the Pallas kernel body and the host reference.

    x_in : (D0_PAD, T) compute_dtype; rows 0..2 = points^T, row ONES_ROW = 1.0.
    w    : indexable (Ref or array) packed weight slab in compute_dtype.
    b    : indexable (Ref or array) f32 bias slab (only non-folded layers).
    Returns (OUT_WIDTH, T) float32.
    """
    h = x_in
    for l, st in enumerate(plan):
        w_main = w[st.row:st.row + st.out_pad, :st.k_main]
        acc = jnp.dot(w_main, h.astype(compute_dtype),
                      preferred_element_type=jnp.float32, precision=precision)
        if st.skip_row >= 0:
            # Linear(cat([h, input], -1) / sqrt(2)) as a split matmul; 1/sqrt(2)
            # and this layer's bias are already folded into the packed weights.
            w_skip = w[st.skip_row:st.skip_row + st.out_pad, :st.k_skip]
            acc = acc + jnp.dot(w_skip, x_in,
                                preferred_element_type=jnp.float32,
                                precision=precision)
        if not st.is_last:
            z = acc.astype(epilogue_dtype)
            if not st.bias_folded:
                z = z + b[:st.out_pad, l:l + 1].astype(epilogue_dtype)
            h = _softplus_folded(z)          # carries beta * softplus(pre)
        else:
            if not st.bias_folded:
                acc = acc + b[:st.out_pad, l:l + 1]
            h = acc
    return h[:OUT_WIDTH, :]


def _make_kernel(plan, compute_dtype, epilogue_dtype):
    def kernel(x_ref, w_ref, b_ref, o_ref):
        y = _mlp_apply(x_ref[...], w_ref, b_ref, plan,
                       compute_dtype=compute_dtype, epilogue_dtype=epilogue_dtype)
        o_ref[...] = y.astype(o_ref.dtype)
    return kernel


# ------------------------------- tiling / layout ------------------------------
def _choose_tiling(n, tile_n):
    """Lane-dense tile; keep the 'parallel' grid even (>=2) when possible so both
    v7x TensorCores get work (grid=1 is fine on single-core v5e/v6e)."""
    tile = max(128, min(_round_up(tile_n, 128), _round_up(n, 128)))
    grid_len = -(-n // tile)
    if grid_len == 1 and n > 128:
        tile = _round_up(-(-n // 2), 128)
        grid_len = 2
    return tile, grid_len, grid_len * tile


def prepare_points(x, *, tile_n=TILE_N, compute_dtype=jnp.bfloat16):
    """(N, 3) points -> lane-dense feature-major (D0_PAD, n_pad) slab in the
    compute dtype, with row ONES_ROW = 1.0 carrying the folded biases."""
    n = x.shape[0]
    tile, _, n_pad = _choose_tiling(n, tile_n)
    xt = jnp.zeros((D0_PAD, n_pad), compute_dtype)
    xt = xt.at[:D_IN, :n].set(x.T.astype(compute_dtype))
    xt = xt.at[ONES_ROW, :].set(1.0)
    return xt, tile


# ------------------------------ Pallas entry points ---------------------------
def implicit_forward_feature_major(xt, w_slab, b_slab, plan, *, tile_n,
                                   epilogue_dtype=jnp.float32):
    """Preferred entry point: feature-major in, feature-major out (no transpose)."""
    d0_pad, n_pad = xt.shape
    assert d0_pad == D0_PAD
    assert tile_n % 128 == 0 and n_pad % tile_n == 0
    compute_dtype = w_slab.dtype
    kernel = _make_kernel(plan, compute_dtype, epilogue_dtype)
    grid = (n_pad // tile_n,)
    return pl.pallas_call(
        kernel,
        out_shape=jax.ShapeDtypeStruct((OUT_WIDTH, n_pad), jnp.float32),
        grid_spec=pltpu.PrefetchScalarGridSpec(
            num_scalar_prefetch=0,
            grid=grid,
            in_specs=[
                # streamed, lane-dense points tile (if DMA is still exposed after
                # raising TILE_N, add pipeline_mode=pl.Buffered(3) here)
                pl.BlockSpec((D0_PAD, tile_n), lambda i: (0, i)),
                # resident packed weight / bias slabs (one DMA each, constant index)
                pl.BlockSpec(w_slab.shape, lambda i: (0, 0)),
                pl.BlockSpec(b_slab.shape, lambda i: (0, 0)),
            ],
            out_specs=pl.BlockSpec((OUT_WIDTH, tile_n), lambda i: (0, i)),
        ),
        compiler_params=pltpu.CompilerParams(dimension_semantics=("parallel",)),
    )(xt, w_slab, b_slab)


def implicit_network_forward(x, params, *, tile_n=TILE_N,
                             compute_dtype=jnp.bfloat16, epilogue_dtype=None):
    """Point-major convenience wrapper ((N,3) -> (N,16)).  It adds a pad/transpose
    on both sides; real pipelines should use the feature-major entry point above.
    epilogue_dtype defaults to compute_dtype (use float32 epilogue on v5e)."""
    if epilogue_dtype is None:
        epilogue_dtype = jnp.float32 if compute_dtype == jnp.float32 else compute_dtype
    w_slab, b_slab, plan = pack_implicit_network(params, compute_dtype)
    xt, tile = prepare_points(x, tile_n=tile_n, compute_dtype=compute_dtype)
    out_fm = implicit_forward_feature_major(xt, w_slab, b_slab, plan,
                                            tile_n=tile, epilogue_dtype=epilogue_dtype)
    return out_fm[:, :x.shape[0]].T


# ---------------------------- pure-JAX module reference ----------------------
def reference_forward(x, params, *, precision=None):
    """Faithful float32 replay of ImplicitNetwork.forward (multires=0)."""
    dims = _full_dims()
    d0 = dims[0]
    num_layers = len(dims)
    x32 = x.astype(jnp.float32)
    h = x32
    for l in range(num_layers - 1):
        W, b = params[l]
        if l in SKIP_IN:
            split = dims[l] - d0
            y = (jnp.dot(h, W[:, :split].T, precision=precision)
                 + jnp.dot(x32, W[:, split:].T, precision=precision)) * INV_SQRT2 + b
        else:
            y = jnp.dot(h, W.T, precision=precision) + b
        h = _softplus_beta100(y) if l < num_layers - 2 else y
    return h


# ----------------------------------- main ------------------------------------
if __name__ == "__main__":
    key = jax.random.PRNGKey(0)
    key, xk, pk = jax.random.split(key, 3)

    x = jax.random.normal(xk, (N_POINTS, D_IN), dtype=jnp.float32)
    params = init_params(pk)
    n = N_POINTS

    # Faithful module math at true-f32 matmul precision.
    ref = reference_forward(x, params, precision=jax.lax.Precision.HIGHEST)

    # ------------------ exact-precision path (f32 everywhere) ----------------
    w32, b32, plan = pack_implicit_network(params, jnp.float32)
    xt32, tile32 = prepare_points(x, tile_n=TILE_N, compute_dtype=jnp.float32)

    # (a) pack-time folding (beta, 1/sqrt(2), bias-in-matmul) is exact math:
    host32_hi = _mlp_apply(xt32, w32, b32, plan, compute_dtype=jnp.float32,
                           epilogue_dtype=jnp.float32,
                           precision=jax.lax.Precision.HIGHEST)
    assert jnp.allclose(host32_hi[:, :n].T, ref, atol=1e-4, rtol=1e-4), \
        "folded math mismatch vs module reference"

    # (b) the Pallas kernel reproduces the same folded math (identical operands):
    out32 = jax.block_until_ready(
        implicit_forward_feature_major(xt32, w32, b32, plan, tile_n=tile32,
                                       epilogue_dtype=jnp.float32))
    host32 = _mlp_apply(xt32, w32, b32, plan, compute_dtype=jnp.float32,
                        epilogue_dtype=jnp.float32)
    assert out32.shape == (OUT_WIDTH, xt32.shape[1])
    assert jnp.allclose(out32, host32, atol=2e-3, rtol=2e-3), "f32 kernel mismatch"

    # (c) end-to-end sanity of the point-major wrapper vs the module reference
    #     (tolerance covers backend-default matmul precision differences)
    out_pm = jax.block_until_ready(
        implicit_network_forward(x, params, compute_dtype=jnp.float32))
    assert out_pm.shape == (n, OUT_WIDTH)
    assert jnp.allclose(out_pm, ref, atol=1e-1, rtol=5e-2), "end-to-end sanity failed"

    # --------- performance path (bf16 MXU operands + bf16 epilogue) ----------
    wbf, bbf, planbf = pack_implicit_network(params, jnp.bfloat16)
    xtbf, tilebf = prepare_points(x, tile_n=TILE_N, compute_dtype=jnp.bfloat16)
    outbf = jax.block_until_ready(
        implicit_forward_feature_major(xtbf, wbf, bbf, planbf, tile_n=tilebf,
                                       epilogue_dtype=jnp.bfloat16))
    hostbf = _mlp_apply(xtbf, wbf, bbf, planbf, compute_dtype=jnp.bfloat16,
                        epilogue_dtype=jnp.bfloat16)
    assert outbf.shape == (OUT_WIDTH, xtbf.shape[1])
    # tolerance covers Mosaic-vs-XLA bf16 exp/log1p approximation differences
    assert jnp.allclose(outbf, hostbf, atol=2e-1, rtol=5e-2), "bf16 kernel mismatch"

    print("KERNEL_OK")
</pallas_src>

<mosaic_0001>
module attributes {stable_mosaic.version = 11 : i64} {
  func.func @kernel(%arg0: i32, %arg1: memref<8x2048xf32, #tpu.memory_space<vmem>>, %arg2: memref<176x32xf32, #tpu.memory_space<vmem>>, %arg3: memref<32x8xf32, #tpu.memory_space<vmem>>, %arg4: memref<16x2048xf32, #tpu.memory_space<vmem>>) attributes {dimension_semantics = [#tpu.dimension_semantics<parallel>], iteration_bounds = array<i64: 2>, scalar_prefetch = 0 : i64, scratch_operands = 0 : i64, tpu.core_type = #tpu.core_type<tc>, window_params = [{transform_indices = @transform_0, window_bounds = array<i64: 8, 2048>}, {pipeline_mode = #tpu.pipeline_mode<synchronous>, transform_indices = @transform_1, window_bounds = array<i64: 176, 32>}, {pipeline_mode = #tpu.pipeline_mode<synchronous>, transform_indices = @transform_2, window_bounds = array<i64: 32, 8>}, {transform_indices = @transform_3, window_bounds = array<i64: 16, 2048>}]} {
    %c0 = arith.constant 0 : index
    %c0_0 = arith.constant 0 : index
    %0 = vector.load %arg1[%c0, %c0_0] : memref<8x2048xf32, #tpu.memory_space<vmem>>, vector<8x2048xf32>
    %c0_1 = arith.constant 0 : index
    %c0_2 = arith.constant 0 : index
    %1 = vector.load %arg2[%c0_1, %c0_2] : memref<176x32xf32, #tpu.memory_space<vmem>>, vector<32x8xf32>
    %cst = arith.constant dense<0.000000e+00> : vector<32x2048xf32>
    %2 = tpu.matmul %1, %0, %cst {dimension_numbers = #tpu.dot_dimension_numbers<[1], [0], [0], [1], [0, 0, 1, 1], [], []>} : vector<32x8xf32>, vector<8x2048xf32>, vector<32x2048xf32> -> vector<32x2048xf32>
    %cst_3 = arith.constant 2.000000e+01 : f32
    %3 = vector.broadcast %cst_3 : f32 to vector<32x2048xf32>
    %4 = arith.minimumf %2, %3 : vector<32x2048xf32>
    %cst_4 = arith.constant 2.000000e+01 : f32
    %5 = vector.broadcast %cst_4 : f32 to vector<32x2048xf32>
    %6 = arith.cmpf ogt, %2, %5 : vector<32x2048xf32>
    %7 = math.exp %4 : vector<32x2048xf32>
    %8 = math.log1p %7 : vector<32x2048xf32>
    %9 = arith.select %6, %2, %8 : vector<32x2048xi1>, vector<32x2048xf32>
    %c32 = arith.constant 32 : index
    %c0_5 = arith.constant 0 : index
    %10 = vector.load %arg2[%c32, %c0_5] : memref<176x32xf32, #tpu.memory_space<vmem>>, vector<32x32xf32>
    %cst_6 = arith.constant dense<0.000000e+00> : vector<32x2048xf32>
    %11 = tpu.matmul %10, %9, %cst_6 {dimension_numbers = #tpu.dot_dimension_numbers<[1], [0], [0], [1], [0, 0, 1, 1], [], []>} : vector<32x32xf32>, vector<32x2048xf32>, vector<32x2048xf32> -> vector<32x2048xf32>
    %c0_7 = arith.constant 0 : index
    %c1 = arith.constant 1 : index
    %12 = vector.load %arg3[%c0_7, %c1] : memref<32x8xf32, #tpu.memory_space<vmem>>, vector<32x1xf32>
    %13 = vector.broadcast %12 : vector<32x1xf32> to vector<32x2048xf32>
    %14 = arith.addf %11, %13 : vector<32x2048xf32>
    %cst_8 = arith.constant 2.000000e+01 : f32
    %15 = vector.broadcast %cst_8 : f32 to vector<32x2048xf32>
    %16 = arith.minimumf %14, %15 : vector<32x2048xf32>
    %cst_9 = arith.constant 2.000000e+01 : f32
    %17 = vector.broadcast %cst_9 : f32 to vector<32x2048xf32>
    %18 = arith.cmpf ogt, %14, %17 : vector<32x2048xf32>
    %19 = math.exp %16 : vector<32x2048xf32>
    %20 = math.log1p %19 : vector<32x2048xf32>
    %21 = arith.select %18, %14, %20 : vector<32x2048xi1>, vector<32x2048xf32>
    %c64 = arith.constant 64 : index
    %c0_10 = arith.constant 0 : index
    %22 = vector.load %arg2[%c64, %c0_10] : memref<176x32xf32, #tpu.memory_space<vmem>>, vector<32x32xf32>
    %cst_11 = arith.constant dense<0.000000e+00> : vector<32x2048xf32>
    %23 = tpu.matmul %22, %21, %cst_11 {dimension_numbers = #tpu.dot_dimension_numbers<[1], [0], [0], [1], [0, 0, 1, 1], [], []>} : vector<32x32xf32>, vector<32x2048xf32>, vector<32x2048xf32> -> vector<32x2048xf32>
    %c96 = arith.constant 96 : index
    %c0_12 = arith.constant 0 : index
    %24 = vector.load %arg2[%c96, %c0_12] : memref<176x32xf32, #tpu.memory_space<vmem>>, vector<32x8xf32>
    %cst_13 = arith.constant dense<0.000000e+00> : vector<32x2048xf32>
    %25 = tpu.matmul %24, %0, %cst_13 {dimension_numbers = #tpu.dot_dimension_numbers<[1], [0], [0], [1], [0, 0, 1, 1], [], []>} : vector<32x8xf32>, vector<8x2048xf32>, vector<32x2048xf32> -> vector<32x2048xf32>
    %26 = arith.addf %23, %25 : vector<32x2048xf32>
    %cst_14 = arith.constant 2.000000e+01 : f32
    %27 = vector.broadcast %cst_14 : f32 to vector<32x2048xf32>
    %28 = arith.minimumf %26, %27 : vector<32x2048xf32>
    %cst_15 = arith.constant 2.000000e+01 : f32
    %29 = vector.broadcast %cst_15 : f32 to vector<32x2048xf32>
    %30 = arith.cmpf ogt, %26, %29 : vector<32x2048xf32>
    %31 = math.exp %28 : vector<32x2048xf32>
    %32 = math.log1p %31 : vector<32x2048xf32>
    %33 = arith.select %30, %26, %32 : vector<32x2048xi1>, vector<32x2048xf32>
    %c128 = arith.constant 128 : index
    %c0_16 = arith.constant 0 : index
    %34 = vector.load %arg2[%c128, %c0_16] : memref<176x32xf32, #tpu.memory_space<vmem>>, vector<32x32xf32>
    %cst_17 = arith.constant dense<0.000000e+00> : vector<32x2048xf32>
    %35 = tpu.matmul %34, %33, %cst_17 {dimension_numbers = #tpu.dot_dimension_numbers<[1], [0], [0], [1], [0, 0, 1, 1], [], []>} : vector<32x32xf32>, vector<32x2048xf32>, vector<32x2048xf32> -> vector<32x2048xf32>
    %c0_18 = arith.constant 0 : index
    %c3 = arith.constant 3 : index
    %36 = vector.load %arg3[%c0_18, %c3] : memref<32x8xf32, #tpu.memory_space<vmem>>, vector<32x1xf32>
    %37 = vector.broadcast %36 : vector<32x1xf32> to vector<32x2048xf32>
    %38 = arith.addf %35, %37 : vector<32x2048xf32>
    %cst_19 = arith.constant 2.000000e+01 : f32
    %39 = vector.broadcast %cst_19 : f32 to vector<32x2048xf32>
    %40 = arith.minimumf %38, %39 : vector<32x2048xf32>
    %cst_20 = arith.constant 2.000000e+01 : f32
    %41 = vector.broadcast %cst_20 : f32 to vector<32x2048xf32>
    %42 = arith.cmpf ogt, %38, %41 : vector<32x2048xf32>
    %43 = math.exp %40 : vector<32x2048xf32>
    %44 = math.log1p %43 : vector<32x2048xf32>
    %45 = arith.select %42, %38, %44 : vector<32x2048xi1>, vector<32x2048xf32>
    %c160 = arith.constant 160 : index
    %c0_21 = arith.constant 0 : index
    %46 = vector.load %arg2[%c160, %c0_21] : memref<176x32xf32, #tpu.memory_space<vmem>>, vector<16x32xf32>
    %cst_22 = arith.constant dense<0.000000e+00> : vector<16x2048xf32>
    %47 = tpu.matmul %46, %45, %cst_22 {dimension_numbers = #tpu.dot_dimension_numbers<[1], [0], [0], [1], [0, 0, 1, 1], [], []>} : vector<16x32xf32>, vector<32x2048xf32>, vector<16x2048xf32> -> vector<16x2048xf32>
    %c0_23 = arith.constant 0 : index
    %c4 = arith.constant 4 : index
    %48 = vector.load %arg3[%c0_23, %c4] : memref<32x8xf32, #tpu.memory_space<vmem>>, vector<16x1xf32>
    %49 = vector.broadcast %48 : vector<16x1xf32> to vector<16x2048xf32>
    %50 = arith.addf %47, %49 : vector<16x2048xf32>
    %c0_24 = arith.constant 0 : index
    %c0_25 = arith.constant 0 : index
    %51 = vector.load %arg4[%c0_24, %c0_25] : memref<16x2048xf32, #tpu.memory_space<vmem>>, vector<16x2048xf32>
    tpu.vector_store %arg4[%c0_24, %c0_25], %50 {strides = array<i32>} : memref<16x2048xf32, #tpu.memory_space<vmem>>, vector<16x2048xf32>,
    return
  }
  func.func @transform_0(%arg0: i32) -> (i32, i32) {
    %c0_i32 = arith.constant 0 : i32
    %c0_i32_0 = arith.constant 0 : i32
    return %c0_i32, %arg0 : i32, i32
  }
  func.func @transform_1(%arg0: i32) -> (i32, i32) {
    %c0_i32 = arith.constant 0 : i32
    %c0_i32_0 = arith.constant 0 : i32
    %c0_i32_1 = arith.constant 0 : i32
    return %c0_i32, %c0_i32_0 : i32, i32
  }
  func.func @transform_2(%arg0: i32) -> (i32, i32) {
    %c0_i32 = arith.constant 0 : i32
    %c0_i32_0 = arith.constant 0 : i32
    %c0_i32_1 = arith.constant 0 : i32
    return %c0_i32, %c0_i32_0 : i32, i32
  }
  func.func @transform_3(%arg0: i32) -> (i32, i32) {
    %c0_i32 = arith.constant 0 : i32
    %c0_i32_0 = arith.constant 0 : i32
    return %c0_i32, %arg0 : i32, i32
  }
}

</mosaic_0001>

<bundles_post_ra>
// kernel: tpu_custom_call.1
= control target key start
LH: loop header
LB: loop body
LE: loop exit
PB: predicated region body
PF: predicated region fallthrough
CT: control target
= control target key end

     0   :  { %8 = vsyncpa [#allocation3], 0  ;;  %s13958_s0 = inlined_call_operand.vmem [shape: f32[8,4096], index: 0, kind: input, shape index: {}]   ;;  %s13959_s1 = inlined_call_operand.vmem [shape: f32[176,32], index: 1, kind: input, shape index: {}]   ;;  %s13960_s2 = inlined_call_operand.vmem [shape: f32[32,8], index: 2, kind: input, shape index: {}]   ;;  %s13961_s3 = inlined_call_operand.hbm [shape: f32[16,4096], index: 3, kind: output, shape index: {}]  }
   0x1   :  { %10 = vsyncpa [#allocation3 + $0x1], 0  ;;  %s8279_s12 = smov 0   ;;  %s8281_s13 = smov 0  }
   0x2   :  { %s8283_s14 = smov 0   ;;  %s8285_s15 = smov 0  }
   0x3 LB: > { %s8300_s16 = sadd.s32 4294967295, %s8251_s15   ;;  %s6712_s17 = sadd.s32 4294967294, %s8251_s15   ;;  %s8251_s15 = sphi %s8285_s15, %s14748_s15   ;;  %s8247_s14 = sphi %s8283_s14, %s14747_s14   ;;  %s8243_s13 = sphi %s8281_s13, %s14746_s13   ;;  %s8239_s12 = sphi %s8279_s12, %s14745_s12  }
   0x4   : > { %s8304_s18 = sadd.s32 1, %s8251_s15   ;;  %s91_s19 = sadd.s32 1, %s8247_s14 }
   0x5   : > { %s88_s20 = ssub.s32 %s8251_s15, %s8304_s18  ;;  %p101_p0 = scmp.ne.s32.totalorder %s8247_s14, %s8243_s13 }
   0x6   : > { %p89_p1 = scmp.eq.s32.totalorder %s88_s20, 0  ;;  %p102_p2 = scmp.eq.s32.totalorder %s8300_s16, 1 }
   0x7   : > { %p107_p3 = scmp.ne.s32.totalorder %s8243_s13, %s8239_s12  ;;  %p108_p4 = scmp.eq.s32.totalorder %s6712_s17, 1 }
   0x8   : > { %s8315_s21 = scalar_select %p89_p1, %s8247_s14, %s91_s19  }
   0x9   : > { %p8317_p5 = por %p102_p2, %p101_p0  ;;  %p8321_p6 = por %p108_p4, %p107_p3 }
   0xa   : > { %p6715_p7 = scmp.ge.s32.totalorder %s8251_s15, 1  ;;  %p141_p8 = scmp.lt.s32.totalorder %s8251_s15, 3 }
   0xc   : > { %p142_p9 = pnand %p6715_p7, %p141_p8 }
   0xe   : > { %145 = sbr.rel (%p142_p9) target bundleno = 1363 (0x553), region = 32 }
  0x13   : > { %s6717_s24 = sshll.u32 %s8300_s16, 4  ;;  %v8336_v0 = vld [vmem:[%s13959_s1] sm:$0xff]  ;;  %vm192_vm0 = vcmask 64512   ;;  %v8357_v9 = vld [vmem:[%s13959_s1 + $0x8] sm:$0xff]  ;;  %v8370_v10 = vld [vmem:[%s13959_s1 + $0x10] sm:$0xff]  ;;  %s7076_s10 = sshll.u32 %s8300_s16, 7 }
  0x14   : > { %p166_p10 = scmp.lt.s32.totalorder %s6717_s24, 31  ;;  %v8383_v11 = vld [vmem:[%s13959_s1 + $0x18] sm:$0xff]  ;;  %s6646_s19 = scalar_lea.hbm %s13961_s3, %s7076_s10 }
  0x15   : > { %s8209_s30 = scalar_lea.hbm %s13961_s3, 512 }
  0x16   : > { %s14750_s24 = smov (!%p166_p10, %s6717_s24), 31 }
  0x17   : > { %s6718_s25 = sshll.u32 %s14750_s24, 3  ;;  %s6649_s24 = sshll.u32 %s6646_s19, 4  ;;  %s6650_s24 = int_to_ptr.hbm [resolvable:$true] %s6649_s24 }
  0x18   : > { %s8331_s28 = scalar_lea.vmem %s13958_s0, %s6718_s25  ;;  %s8203_s25 = sshra.s32 %s6650_s24, 4  ;;  %s8204_s25 = int_to_ptr.hbm [resolvable:$true] %s8203_s25 }
  0x19   : > { %v172_v1 = vld [vmem:[%s8331_s28] sm:$0xff]  ;;  %v173_v2 = vld [vmem:[%s8331_s28 + $0x8] sm:$0xff]  ;;  %v174_v3 = vld [vmem:[%s8331_s28 + $0x10] sm:$0xff]  ;;  %s8205_s26 = scalar_lea.hbm %s8204_s25, 256  ;;  %p8210_p0 = scmp.lt.s32.totalorder %s8204_s25, %s13961_s3 }
  0x1a   : > { %220 = vmatpush.msra.mxu0 %v172_v1  ;;  %249 = vmatpush.msra.mxu1 %v173_v2  ;;  %v175_v4 = vld [vmem:[%s8331_s28 + $0x18] sm:$0xff]  ;;  %v178_v5 = vld [vmem:[%s8331_s28 + $0x30] sm:$0xff]  ;;  %v176_v7 = vld [vmem:[%s8331_s28 + $0x20] sm:$0xff]  ;;  %p8206_p11 = scmp.ne.s32.totalorder %s8204_s25, %s8205_s26  ;;  %p8211_p1 = scmp.lt.s32.totalorder %s8209_s30, %s8205_s26 }
  0x1b   : > { %278 = vmatpush.msra.mxu2 %v174_v3  ;;  %307 = vmatpush.msra.mxu3 %v175_v4  ;;  %v179_v6 = vld [vmem:[%s8331_s28 + $0x38] sm:$0xff]  ;;  %v177_v8 = vld [vmem:[%s8331_s28 + $0x28] sm:$0xff]  ;;  %v182_v12 = vld [vmem:[%s8331_s28 + $0x50] sm:$0xff] }
  0x1c   : > { %6719 = vmatmul.msk.f32.vlgmr.msra.gmra.mxu0 %vm192_vm0, %v8336_v0  ;;  %6723 = vmatmul.msk.f32.vlgmr.msra.gmra.mxu1 %vm192_vm0, %v8336_v0  ;;  %v183_v13 = vld [vmem:[%s8331_s28 + $0x58] sm:$0xff]  ;;  %v180_v14 = vld [vmem:[%s8331_s28 + $0x40] sm:$0xff]  ;;  %v181_v15 = vld [vmem:[%s8331_s28 + $0x48] sm:$0xff]  ;;  %p8207_p12 = pnand %p8206_p11, %p8317_p5  ;;  %p8212_p2 = por %p8211_p1, %p8210_p0 }
  0x1d   : > { %6727 = vmatmul.msk.f32.vlgmr.msra.gmra.mxu2 %vm192_vm0, %v8336_v0  ;;  %6731 = vmatmul.msk.f32.vlgmr.msra.gmra.mxu3 %vm192_vm0, %v8336_v0  ;;  %v186_v16 = vld [vmem:[%s8331_s28 + $0x70] sm:$0xff]  ;;  %v187_v17 = vld [vmem:[%s8331_s28 + $0x78] sm:$0xff]  ;;  %v184_v18 = vld [vmem:[%s8331_s28 + $0x60] sm:$0xff] }
  0x1e   : > { %394 = vmatpush.msrb.mxu2 %v178_v5  ;;  %423 = vmatpush.msrb.mxu3 %v179_v6  ;;  %v185_v19 = vld [vmem:[%s8331_s28 + $0x68] sm:$0xff]  ;;  %p8208_p13 = pneg %p8207_p12 }
  0x1f   : > { %336 = vmatpush.msrb.mxu0 %v176_v7  ;;  %365 = vmatpush.msrb.mxu1 %v177_v8 }
  0x20   : > { %510 = vmatpush.msra.mxu2 %v182_v12  ;;  %539 = vmatpush.msra.mxu3 %v183_v13  ;;  %p8213_p3 = pnand %p8212_p2, %p8208_p13 }
  0x21   : > { %452 = vmatpush.msra.mxu0 %v180_v14  ;;  %481 = vmatpush.msra.mxu1 %v181_v15 }
  0x24   : > { %6720 = vmatmul.msk.f32.gmra.mxu0 %vm192_vm0, %v8357_v9  ;;  %6724 = vmatmul.msk.f32.gmra.mxu1 %vm192_vm0, %v8357_v9 }
  0x25   : > { %6728 = vmatmul.msk.f32.gmra.mxu2 %vm192_vm0, %v8357_v9  ;;  %6732 = vmatmul.msk.f32.gmra.mxu3 %vm192_vm0, %v8357_v9 }
  0x2c   : > { %6721 = vmatmul.msk.f32.gmra.mxu0 %vm192_vm0, %v8370_v10  ;;  %6725 = vmatmul.msk.f32.gmra.mxu1 %vm192_vm0, %v8370_v10 }
  0x2d   : > { %6729 = vmatmul.msk.f32.gmra.mxu2 %vm192_vm0, %v8370_v10  ;;  %6733 = vmatmul.msk.f32.gmra.mxu3 %vm192_vm0, %v8370_v10 }
  0x34   : > { %6722 = vmatmul.msk.f32.gmra.mxu0 %vm192_vm0, %v8383_v11  ;;  %6726 = vmatmul.msk.f32.gmra.mxu1 %vm192_vm0, %v8383_v11 }
  0x35   : > { %6730 = vmatmul.msk.f32.gmra.mxu2 %vm192_vm0, %v8383_v11  ;;  %6734 = vmatmul.msk.f32.gmra.mxu3 %vm192_vm0, %v8383_v11 }
  0x3c   : > { %6735 = vmatmul.msk.f32.vlgmr.msrb.gmra.mxu0 %vm192_vm0, %v8336_v0  ;;  %6739 = vmatmul.msk.f32.vlgmr.msrb.gmra.mxu1 %vm192_vm0, %v8336_v0 }
  0x3d   : > { %6743 = vmatmul.msk.f32.vlgmr.msrb.gmra.mxu2 %vm192_vm0, %v8336_v0  ;;  %6747 = vmatmul.msk.f32.vlgmr.msrb.gmra.mxu3 %vm192_vm0, %v8336_v0 }
  0x3e   : > { %626 = vmatpush.msrb.mxu2 %v186_v16  ;;  %655 = vmatpush.msrb.mxu3 %v187_v17 }
  0x3f   : > { %568 = vmatpush.msrb.mxu0 %v184_v18  ;;  %597 = vmatpush.msrb.mxu1 %v185_v19 }
  0x44   : > { %6736 = vmatmul.msk.f32.gmra.mxu0 %vm192_vm0, %v8357_v9  ;;  %6740 = vmatmul.msk.f32.gmra.mxu1 %vm192_vm0, %v8357_v9 }
  0x45   : > { %6744 = vmatmul.msk.f32.gmra.mxu2 %vm192_vm0, %v8357_v9  ;;  %6748 = vmatmul.msk.f32.gmra.mxu3 %vm192_vm0, %v8357_v9 }
  0x4c   : > { %6737 = vmatmul.msk.f32.gmra.mxu0 %vm192_vm0, %v8370_v10  ;;  %6741 = vmatmul.msk.f32.gmra.mxu1 %vm192_vm0, %v8370_v10 }
  0x4d   : > { %6745 = vmatmul.msk.f32.gmra.mxu2 %vm192_vm0, %v8370_v10  ;;  %6749 = vmatmul.msk.f32.gmra.mxu3 %vm192_vm0, %v8370_v10 }
  0x54   : > { %6738 = vmatmul.msk.f32.gmra.mxu0 %vm192_vm0, %v8383_v11  ;;  %6742 = vmatmul.msk.f32.gmra.mxu1 %vm192_vm0, %v8383_v11 }
  0x55   : > { %6746 = vmatmul.msk.f32.gmra.mxu2 %vm192_vm0, %v8383_v11  ;;  %6750 = vmatmul.msk.f32.gmra.mxu3 %vm192_vm0, %v8383_v11 }
  0x5c   : > { %6751 = vmatmul.msk.f32.vlgmr.msra.gmra.mxu0 %vm192_vm0, %v8336_v0  ;;  %6755 = vmatmul.msk.f32.vlgmr.msra.gmra.mxu1 %vm192_vm0, %v8336_v0 }
  0x5d   : > { %6759 = vmatmul.msk.f32.vlgmr.msra.gmra.mxu2 %vm192_vm0, %v8336_v0  ;;  %6763 = vmatmul.msk.f32.vlgmr.msra.gmra.mxu3 %vm192_vm0, %v8336_v0 }
  0x64   : > { %6752 = vmatmul.msk.f32.gmra.mxu0 %vm192_vm0, %v8357_v9  ;;  %6756 = vmatmul.msk.f32.gmra.mxu1 %vm192_vm0, %v8357_v9 }
  0x65   : > { %6760 = vmatmul.msk.f32.gmra.mxu2 %vm192_vm0, %v8357_v9  ;;  %6764 = vmatmul.msk.f32.gmra.mxu3 %vm192_vm0, %v8357_v9 }
  0x6c   : > { %6753 = vmatmul.msk.f32.gmra.mxu0 %vm192_vm0, %v8370_v10  ;;  %6757 = vmatmul.msk.f32.gmra.mxu1 %vm192_vm0, %v8370_v10 }
  0x6d   : > { %6761 = vmatmul.msk.f32.gmra.mxu2 %vm192_vm0, %v8370_v10  ;;  %6765 = vmatmul.msk.f32.gmra.mxu3 %vm192_vm0, %v8370_v10 }
  0x74   : > { %6754 = vmatmul.msk.f32.gmra.mxu0 %vm192_vm0, %v8383_v11  ;;  %6758 = vmatmul.msk.f32.gmra.mxu1 %vm192_vm0, %v8383_v11 }
  0x75   : > { %6762 = vmatmul.msk.f32.gmra.mxu2 %vm192_vm0, %v8383_v11  ;;  %6766 = vmatmul.msk.f32.gmra.mxu3 %vm192_vm0, %v8383_v11 }
  0x7c   : > { %6767 = vmatmul.msk.f32.vlgmr.msrb.gmra.mxu0 %vm192_vm0, %v8336_v0  ;;  %6771 = vmatmul.msk.f32.vlgmr.msrb.gmra.mxu1 %vm192_vm0, %v8336_v0 }
  0x7d   : > { %6775 = vmatmul.msk.f32.vlgmr.msrb.gmra.mxu2 %vm192_vm0, %v8336_v0  ;;  %6779 = vmatmul.msk.f32.vlgmr.msrb.gmra.mxu3 %vm192_vm0, %v8336_v0 }
  0x84   : > { %6768 = vmatmul.msk.f32.gmra.mxu0 %vm192_vm0, %v8357_v9  ;;  %6772 = vmatmul.msk.f32.gmra.mxu1 %vm192_vm0, %v8357_v9 }
  0x85   : > { %6776 = vmatmul.msk.f32.gmra.mxu2 %vm192_vm0, %v8357_v9  ;;  %6780 = vmatmul.msk.f32.gmra.mxu3 %vm192_vm0, %v8357_v9 }
  0x8c   : > { %6769 = vmatmul.msk.f32.gmra.mxu0 %vm192_vm0, %v8370_v10  ;;  %6773 = vmatmul.msk.f32.gmra.mxu1 %vm192_vm0, %v8370_v10 }
  0x8d   : > { %6777 = vmatmul.msk.f32.gmra.mxu2 %vm192_vm0, %v8370_v10  ;;  %6781 = vmatmul.msk.f32.gmra.mxu3 %vm192_vm0, %v8370_v10 }
  0x94   : > { %6770 = vmatmul.msk.f32.gmra.mxu0 %vm192_vm0, %v8383_v11  ;;  %6774 = vmatmul.msk.f32.gmra.mxu1 %vm192_vm0, %v8383_v11 }
  0x95   : > { %6778 = vmatmul.msk.f32.gmra.mxu2 %vm192_vm0, %v8383_v11  ;;  %6782 = vmatmul.msk.f32.gmra.mxu3 %vm192_vm0, %v8383_v11 }
  0x99   : > { %v8497_v20 = vpop.f32.mrf.mxu0  ;;  %v8499_v21 = vpop.f32.mrf.mxu1 }
  0x9a   : > { %v669_v22 = vmin.f32 %v8497_v20, 20.0  ;;  %v670_v23 = vmin.f32 %v8499_v21, 20.0  ;;  %vm733_vm4 = vcmp.gt.f32.partialorder %v8497_v20, 20.0  ;;  %vm734_vm8 = vcmp.gt.f32.partialorder %v8499_v21, 20.0 }
  0x9c   : > { %v797_v24 = vmul.f32 1.442695, %v669_v22  ;;  %v799_v25 = vmul.f32 1.442695, %v670_v23 }
  0x9e   : > { %7130 = vpow2.f32 %v797_v24 }
  0x9f   : > { %7132 = vpow2.f32 %v799_v25 }
  0xa0   : > { %v8503_v26 = vpop.f32.mrf.mxu2  ;;  %v8505_v27 = vpop.f32.mrf.mxu3 }
  0xa1   : > { %v8507_v28 = vpop.f32.mrf.mxu0  ;;  %v8509_v29 = vpop.f32.mrf.mxu1  ;;  %v671_v32 = vmin.f32 %v8503_v26, 20.0  ;;  %v672_v36 = vmin.f32 %v8505_v27, 20.0 }
  0xa2   : > { %v685_v30 = vmin.f32 %v8507_v28, 20.0  ;;  %v686_v31 = vmin.f32 %v8509_v29, 20.0  ;;  %vm749_vm2 = vcmp.gt.f32.partialorder %v8507_v28, 20.0  ;;  %vm750_vm11 = vcmp.gt.f32.partialorder %v8509_v29, 20.0 }
  0xa3   : > { %v801_v38 = vmul.f32 1.442695, %v671_v32  ;;  %v803_v42 = vmul.f32 1.442695, %v672_v36 }
  0xa4   : > { %v829_v33 = vmul.f32 1.442695, %v685_v30  ;;  %v831_v34 = vmul.f32 1.442695, %v686_v31  ;;  %v7131_v35 = vpop.eup %7130 }
  0xa5   : > { %v8515_v37 = vpop.eup %7132  ;;  %v925_v41 = vadd.f32 1.0, %v7131_v35  ;;  %v928_v45 = vmul.f32 -0.5, %v7131_v35  ;;  %v931_v54 = vand.u32 2147483647, %v7131_v35 }
  0xa6   : > { %7134 = vpow2.f32 %v829_v33  ;;  %v934_v49 = vadd.f32 1.0, %v8515_v37  ;;  %v937_v51 = vmul.f32 -0.5, %v8515_v37  ;;  %v940_v57 = vand.u32 2147483647, %v8515_v37 }
  0xa7   : > { %7136 = vpow2.f32 %v831_v34  ;;  %v929_v56 = vadd.f32 1.0, %v928_v45  ;;  %vm8540_vm1 = vcmp.lt.f32.partialorder %v931_v54, 0.0004427343 }
  0xa8   : > { %v8517_v39 = vpop.f32.mrf.mxu2  ;;  %v8519_v40 = vpop.f32.mrf.mxu3  ;;  %7138 = vpow2.f32 %v801_v38  ;;  %v938_v0 = vadd.f32 1.0, %v937_v51  ;;  %vm8579_vm5 = vcmp.lt.f32.partialorder %v940_v57, 0.0004427343 }
  0xa9   : > { %v8521_v43 = vpop.f32.mrf.mxu0  ;;  %v8523_v44 = vpop.f32.mrf.mxu1  ;;  %v687_v46 = vmin.f32 %v8517_v39, 20.0  ;;  %v688_v50 = vmin.f32 %v8519_v40, 20.0  ;;  %7140 = vlog2.f32 %v925_v41  ;;  %v8557_v18 = vmul.f32 %v7131_v35, %v929_v56 }
  0xaa   : > { %v701_v47 = vmin.f32 %v8521_v43, 20.0  ;;  %v702_v48 = vmin.f32 %v8523_v44, 20.0  ;;  %7142 = vpow2.f32 %v803_v42  ;;  %v8560_v19 = vmul.f32 %v8515_v37, %v938_v0 }
  0xab   : > { %v833_v59 = vmul.f32 1.442695, %v687_v46  ;;  %7144 = vlog2.f32 %v934_v49  ;;  %v835_v62 = vmul.f32 1.442695, %v688_v50  ;;  %vm765_vm7 = vcmp.gt.f32.partialorder %v8521_v43, 20.0 }
  0xac   : > { %v861_v52 = vmul.f32 1.442695, %v701_v47  ;;  %v863_v53 = vmul.f32 1.442695, %v702_v48  ;;  %v7135_v55 = vpop.eup %7134  ;;  %vm766_vm14 = vcmp.gt.f32.partialorder %v8523_v44, 20.0 }
  0xad   : > { %v8532_v58 = vpop.eup %7136  ;;  %v1069_v60 = vadd.f32 1.0, %v7135_v55  ;;  %v1072_v61 = vmul.f32 -0.5, %v7135_v55  ;;  %v1075_v3 = vand.u32 2147483647, %v7135_v55 }
  0xae   : > { %7146 = vpow2.f32 %v861_v52  ;;  %v1081_v63 = vmul.f32 -0.5, %v8532_v58  ;;  %v1078_v4 = vadd.f32 1.0, %v8532_v58  ;;  %v8544_v6 = vpop.eup %7138  ;;  %v1084_v25 = vand.u32 2147483647, %v8532_v58 }
  0xaf   : > { %7148 = vpow2.f32 %v863_v53  ;;  %v1073_v11 = vadd.f32 1.0, %v1072_v61  ;;  %v7141_v12 = vpop.eup %7140  ;;  %vm8563_vm3 = vcmp.lt.f32.partialorder %v1075_v3, 0.0004427343 }
  0xb0   : > { %v8535_v1 = vpop.f32.mrf.mxu2  ;;  %v8537_v2 = vpop.f32.mrf.mxu3  ;;  %7150 = vlog2.f32 %v1069_v60  ;;  %v1082_v15 = vadd.f32 1.0, %v1081_v63  ;;  %v8567_v34 = vmul.f32 0.6931472, %v7141_v12  ;;  %vm8593_vm6 = vcmp.lt.f32.partialorder %v1084_v25, 0.0004427343 }
  0xb1   : > { %v703_v7 = vmin.f32 %v8535_v1, 20.0  ;;  %v704_v8 = vmin.f32 %v8537_v2, 20.0  ;;  %v8548_v9 = vpop.f32.mrf.mxu0  ;;  %v8550_v10 = vpop.f32.mrf.mxu1  ;;  %7152 = vpow2.f32 %v833_v59  ;;  %v1074_v32 = vmul.f32 %v7135_v55, %v1073_v11 }
  0xb2   : > { %v717_v13 = vmin.f32 %v8548_v9, 20.0  ;;  %v718_v14 = vmin.f32 %v8550_v10, 20.0  ;;  %v8554_v16 = vpop.eup %7142  ;;  %7154 = vpow2.f32 %v835_v62  ;;  %v8570_v38 = vmul.f32 %v8532_v58, %v1082_v15 }
  0xb3   : > { %v865_v17 = vmul.f32 1.442695, %v703_v7  ;;  %v7145_v22 = vpop.eup %7144  ;;  %7156 = vlog2.f32 %v1078_v4  ;;  %v867_v31 = vmul.f32 1.442695, %v704_v8  ;;  %v933_v0 = vsel %vm8540_vm1, %v8557_v18, %v8567_v34 }
  0xb4   : > { %v893_v23 = vmul.f32 1.442695, %v717_v13  ;;  %v895_v24 = vmul.f32 1.442695, %v718_v14  ;;  %v7147_v30 = vpop.eup %7146  ;;  %v8603_v7 = vmul.f32 0.6931472, %v7145_v22 }
  0xb5   : > { %v7149_v35 = vpop.eup %7148  ;;  %7158 = vpow2.f32 %v865_v17  ;;  %v1213_v36 = vadd.f32 1.0, %v7147_v30  ;;  %v1216_v37 = vmul.f32 -0.5, %v7147_v30  ;;  %v1219_v42 = vand.u32 2147483647, %v7147_v30 }
  0xb6   : > { %v7151_v41 = vpop.eup %7150  ;;  %7160 = vpow2.f32 %v893_v23  ;;  %v1222_v45 = vadd.f32 1.0, %v7149_v35  ;;  %v1225_v46 = vmul.f32 -0.5, %v7149_v35  ;;  %v1228_v51 = vand.u32 2147483647, %v7149_v35 }
  0xb7   : > { %v8573_v47 = vpop.eup %7152  ;;  %7162 = vpow2.f32 %v895_v24  ;;  %v1217_v50 = vadd.f32 1.0, %v1216_v37  ;;  %v1071_v52 = vmul.f32 0.6931472, %v7151_v41  ;;  %vm8607_vm9 = vcmp.lt.f32.partialorder %v1219_v42, 0.0004427343 }
  0xb8   : > { %v8575_v48 = vpop.f32.mrf.mxu2  ;;  %v8577_v49 = vpop.f32.mrf.mxu3  ;;  %7164 = vlog2.f32 %v1213_v36  ;;  %v1226_v60 = vadd.f32 1.0, %v1225_v46  ;;  %vm8615_vm10 = vcmp.lt.f32.partialorder %v1228_v51, 0.0004427343  ;;  %vm781_vm12 = vcmp.gt.f32.partialorder %v8548_v9, 20.0 }
  0xb9   : > { %v8583_v54 = vpop.eup %7154  ;;  %v719_v55 = vmin.f32 %v8575_v48, 20.0  ;;  %v720_v56 = vmin.f32 %v8577_v49, 20.0  ;;  %v8587_v58 = vpop.f32.mrf.mxu0  ;;  %7166 = vpow2.f32 %v867_v31  ;;  %v1218_v12 = vmul.f32 %v7147_v30, %v1217_v50 }
  0xba   : > { %v8589_v59 = vpop.f32.mrf.mxu1  ;;  %v7157_v61 = vpop.eup %7156  ;;  %v673_v62 = vmin.f32 %v8587_v58, 20.0  ;;  %7168 = vlog2.f32 %v1222_v45  ;;  %v1077_v5 = vsel %vm8563_vm3, %v1074_v32, %v1071_v52  ;;  %v8613_v17 = vmul.f32 %v7149_v35, %v1226_v60 }
  0xbb   : > { %v674_v57 = vmin.f32 %v8589_v59, 20.0  ;;  %v897_v3 = vmul.f32 1.442695, %v719_v55  ;;  %v899_v4 = vmul.f32 1.442695, %v720_v56  ;;  %v8605_v8 = vpop.eup %7158  ;;  %v8625_v30 = vsel %vm749_vm2, %v8507_v28, %v1077_v5 }
  0xbc   : > { %v805_v11 = vmul.f32 1.442695, %v673_v62  ;;  %v7161_v14 = vpop.eup %7160  ;;  %v8620_v22 = vmul.f32 0.6931472, %v7157_v61  ;;  %vm782_vm13 = vcmp.gt.f32.partialorder %v8550_v10, 20.0  ;;  %v8646_v61 = vsel %vm733_vm4, %v8497_v20, %v933_v0 }
  0xbd   : > { %v807_v15 = vmul.f32 1.442695, %v674_v57  ;;  %v7163_v23 = vpop.eup %7162  ;;  %7170 = vpow2.f32 %v897_v3  ;;  %v1357_v24 = vadd.f32 1.0, %v7161_v14  ;;  %v1360_v25 = vmul.f32 -0.5, %v7161_v14 }
  0xbe   : > { %v7165_v31 = vpop.eup %7164  ;;  %7172 = vpow2.f32 %v899_v4  ;;  %v1363_v32 = vand.u32 2147483647, %v7161_v14  ;;  %v1366_v33 = vadd.f32 1.0, %v7163_v23  ;;  %v1369_v34 = vmul.f32 -0.5, %v7163_v23 }
  0xbf   : > { %v8627_v35 = vpop.eup %7166  ;;  %7174 = vpow2.f32 %v805_v11  ;;  %v1361_v41 = vadd.f32 1.0, %v1360_v25  ;;  %v1372_v42 = vand.u32 2147483647, %v7163_v23  ;;  %v1215_v45 = vmul.f32 0.6931472, %v7165_v31 }
  0xc0   : > { %v8629_v36 = vpop.f32.mrf.mxu2  ;;  %v8631_v37 = vpop.f32.mrf.mxu3  ;;  %7176 = vlog2.f32 %v1357_v24  ;;  %v1370_v55 = vadd.f32 1.0, %v1369_v34  ;;  %v942_v3 = vsel %vm8579_vm5, %v8560_v19, %v8603_v7  ;;  %vm8655_vm15 = vcmp.lt.f32.partialorder %v1363_v32, 0.0004427343 }
  0xc1   : > { %14145 = vst [vmem:[#allocation5_spill] sm:$0xff] %v8629_v36  ;;  %v7169_v46 = vpop.eup %7168  ;;  %v675_v28 = vmin.f32 %v8629_v36, 20.0  ;;  %v676_v50 = vmin.f32 %v8631_v37, 20.0  ;;  %v8636_v51 = vpop.f32.mrf.mxu0  ;;  %7178 = vlog2.f32 %v1366_v33  ;;  %v1221_v20 = vsel %vm8607_vm9, %v1218_v12, %v1215_v45 }
  0xc2   : > { %14146 = vst [vmem:[#allocation6_spill] sm:$0xff] %v8631_v37  ;;  %v8638_v52 = vpop.f32.mrf.mxu1  ;;  %v689_v56 = vmin.f32 %v8636_v51, 20.0  ;;  %7180 = vpow2.f32 %v807_v15  ;;  %v1224_v0 = vmul.f32 0.6931472, %v7169_v46  ;;  %v1362_v24 = vmul.f32 %v7161_v14, %v1361_v41 }
  0xc3   : > { %v690_v60 = vmin.f32 %v8638_v52, 20.0  ;;  %v809_v62 = vmul.f32 1.442695, %v675_v28  ;;  %v811_v57 = vmul.f32 1.442695, %v676_v50  ;;  %v8653_v4 = vpop.eup %7170  ;;  %v1371_v25 = vmul.f32 %v7163_v23, %v1370_v55 }
  0xc4   : > { %v837_v11 = vmul.f32 1.442695, %v689_v56  ;;  %v8661_v15 = vpop.eup %7172  ;;  %vm8663_vm1 = vcmp.lt.f32.partialorder %v1372_v42, 0.0004427343  ;;  %v1086_v19 = vsel %vm8593_vm6, %v8570_v38, %v8620_v22  ;;  %v1533_v12 = vsel %vm765_vm7, %v8521_v43, %v1221_v20 }
  0xc5   : > { %v8671_v53 = vpop.eup %7174  ;;  %7182 = vpow2.f32 %v809_v62  ;;  %v839_v7 = vmul.f32 1.442695, %v690_v60  ;;  %v8679_v13 = vsel %vm734_vm8, %v8499_v21, %v942_v3  ;;  %v1230_v63 = vsel %vm8615_vm10, %v8613_v17, %v1224_v0 }
  0xc6   : > { %v7177_v14 = vpop.eup %7176  ;;  %7184 = vpow2.f32 %v811_v57  ;;  %v1375_v38 = vadd.f32 1.0, %v8653_v4  ;;  %v1378_v22 = vmul.f32 -0.5, %v8653_v4  ;;  %v1518_v21 = vsel %vm750_vm11, %v8509_v29, %v1086_v19 }
  0xc7   : > { %v7179_v23 = vpop.eup %7178  ;;  %7186 = vpow2.f32 %v837_v11  ;;  %v1359_v33 = vmul.f32 0.6931472, %v7177_v14  ;;  %v1381_v34 = vand.u32 2147483647, %v8653_v4  ;;  %vm783_vm2 = vcmp.gt.f32.partialorder %v8575_v48, 20.0 }
  0xc8   : > { %v8686_v32 = vpop.f32.mrf.mxu2  ;;  %v8688_v43 = vpop.f32.mrf.mxu3  ;;  %v1368_v46 = vmul.f32 0.6931472, %v7179_v23  ;;  %7188 = vlog2.f32 %v1375_v38  ;;  %v1379_v55 = vadd.f32 1.0, %v1378_v22  ;;  %v1534_v31 = vsel %vm766_vm14, %v8523_v44, %v1230_v63  ;;  %v8741_v22 = vld [vmem:[%s13959_s1 + $0x20] sm:$0xff] }
  0xc9   : > { %14151 = vst [vmem:[#allocation7_spill] sm:$0xff] %v8688_v43  ;;  %v8694_v41 = vpop.eup %7180  ;;  %v691_v17 = vmin.f32 %v8686_v32, 20.0  ;;  %v692_v18 = vmin.f32 %v8688_v43, 20.0  ;;  %v8698_v42 = vpop.f32.mrf.mxu0  ;;  %v1365_v29 = vsel %vm8655_vm15, %v1362_v24, %v1359_v33  ;;  %7190 = vpow2.f32 %v839_v7 }
  0xca   : > { %v8700_v45 = vpop.f32.mrf.mxu1  ;;  %v705_v28 = vmin.f32 %v8698_v42, 20.0  ;;  %v1549_v62 = vsel %vm781_vm12, %v8548_v9, %v1365_v29  ;;  %v1374_v57 = vsel %vm8663_vm1, %v1371_v25, %v1368_v46  ;;  %v1384_v9 = vadd.f32 1.0, %v8661_v15 }
  0xcb   : > { %v706_v50 = vmin.f32 %v8700_v45, 20.0  ;;  %v841_v56 = vmul.f32 1.442695, %v691_v17  ;;  %v843_v60 = vmul.f32 1.442695, %v692_v18  ;;  %v8711_v3 = vpop.eup %7182  ;;  %1618 = vmatpush.msra.mxu0 %v1549_v62  ;;  %v1550_v5 = vsel %vm782_vm13, %v8550_v10, %v1374_v57 }
  0xcc   : > { %14152 = vst [vmem:[#allocation8_spill] sm:$0xff] %v8711_v3  ;;  %v869_v11 = vmul.f32 1.442695, %v705_v28  ;;  %v8716_v0 = vpop.eup %7184  ;;  %1647 = vmatpush.msra.mxu1 %v1550_v5  ;;  %v1387_v24 = vmul.f32 -0.5, %v8661_v15  ;;  %v1380_v10 = vmul.f32 %v8653_v4, %v1379_v55  ;;  %v1231_v19 = vadd.f32 1.0, %v8605_v8 }
  0xcd   : > { %v871_v20 = vmul.f32 1.442695, %v706_v50  ;;  %14153 = vst [vmem:[#allocation9_spill] sm:$0xff] %v8716_v0  ;;  %7192 = vpow2.f32 %v841_v56  ;;  %v8721_v25 = vpop.eup %7186  ;;  %1619 = vmatpush.msra.mxu0 %v1533_v12  ;;  %vm8728_vm3 = vcmp.lt.f32.partialorder %v1381_v34, 0.0004427343  ;;  %vm1593_vm4 = vcmask 261120  }
  0xce   : > { %7194 = vpow2.f32 %v843_v60  ;;  %v7189_v7 = vpop.eup %7188  ;;  %1648 = vmatpush.msra.mxu1 %v1534_v31  ;;  %v1390_v38 = vand.u32 2147483647, %v8661_v15  ;;  %v1388_v63 = vadd.f32 1.0, %v1387_v24  ;;  %v1234_v23 = vmul.f32 -0.5, %v8605_v8  ;;  %v1572_v31 = vld [vmem:[%s13960_s2 + $0x18] sm:$0xff] }
  0xcf   : > { %7196 = vpow2.f32 %v869_v11  ;;  %1620 = vmatpush.msra.mxu0 %v8625_v30  ;;  %v1377_v4 = vmul.f32 0.6931472, %v7189_v7  ;;  %v1237_v18 = vand.u32 2147483647, %v8605_v8  ;;  %v8751_v46 = vpop.eup %7190  ;;  %vm784_vm5 = vcmp.gt.f32.partialorder %v8577_v49, 20.0 }
  0xd0   : > { %7198 = vpow2.f32 %v871_v20  ;;  %v8734_v12 = vpop.f32.mrf.mxu2  ;;  %v8736_v44 = vpop.f32.mrf.mxu3  ;;  %1649 = vmatpush.msra.mxu1 %v1518_v21  ;;  %vm8765_vm6 = vcmp.lt.f32.partialorder %v1390_v38, 0.0004427343  ;;  %vm767_vm7 = vcmp.gt.f32.partialorder %v8535_v1, 20.0  ;;  %v1389_v57 = vmul.f32 %v8661_v15, %v1388_v63  ;;  %v1570_v15 = vld [vmem:[%s13960_s2 + $0x8] sm:$0xff] }
  0xd1   : > { %v707_v33 = vmin.f32 %v8734_v12, 20.0  ;;  %v708_v34 = vmin.f32 %v8736_v44, 20.0  ;;  %7200 = vlog2.f32 %v1384_v9  ;;  %v8746_v30 = vpop.f32.mrf.mxu0  ;;  %1621 = vmatpush.msra.mxu0 %v8646_v61  ;;  %v1383_v28 = vsel %vm8728_vm3, %v1380_v10, %v1377_v4 }
  0xd2   : > { %v8748_v17 = vpop.f32.mrf.mxu1  ;;  %v721_v21 = vmin.f32 %v8746_v30, 20.0  ;;  %7202 = vlog2.f32 %v1231_v19  ;;  %1650 = vmatpush.msra.mxu1 %v8679_v13  ;;  %v1551_v61 = vsel %vm783_vm2, %v8575_v48, %v1383_v28  ;;  %6783 = vmatmul.msk.f32.vlgmr.msra.gmra.mxu0 %vm1593_vm4, %v8741_v22  ;;  %v1235_v48 = vadd.f32 1.0, %v1234_v23 }
  0xd3   : > { %v722_v50 = vmin.f32 %v8748_v17, 20.0  ;;  %v8759_v29 = vpop.eup %7192  ;;  %v873_v55 = vmul.f32 1.442695, %v707_v33  ;;  %v875_v56 = vmul.f32 1.442695, %v708_v34  ;;  %1676 = vmatpush.msra.mxu2 %v1551_v61  ;;  %6787 = vmatmul.msk.f32.vlgmr.msra.gmra.mxu1 %vm1593_vm4, %v8741_v22  ;;  %v1240_v9 = vadd.f32 1.0, %v8627_v35 }
  0xd4   : > { %v8772_v62 = vpop.eup %7194  ;;  %v901_v11 = vmul.f32 1.442695, %v721_v21  ;;  %vm8779_vm8 = vcmp.lt.f32.partialorder %v1237_v18, 0.0004427343  ;;  %v1243_v24 = vmul.f32 -0.5, %v8627_v35  ;;  %v1087_v7 = vadd.f32 1.0, %v8573_v47 }
  0xd5   : > { %v903_v13 = vmul.f32 1.442695, %v722_v50  ;;  %v8777_v20 = vpop.eup %7196  ;;  %7204 = vpow2.f32 %v873_v55  ;;  %v1246_v19 = vand.u32 2147483647, %v8627_v35  ;;  %v8253_v4 = vmov 1   ;;  %v8806_v55 = vld [vmem:[%s13959_s1 + $0x28] sm:$0xff] }
  0xd6   : > { %v8791_v10 = vpop.eup %7198  ;;  %7206 = vpow2.f32 %v875_v56  ;;  %v1244_v38 = vadd.f32 1.0, %v1243_v24  ;;  %7123 = vset.pattern.permute.xlu1 %v8253_v4  ;;  %v1090_v63 = vmul.f32 -0.5, %v8573_v47  ;;  %v1093_v23 = vand.u32 2147483647, %v8573_v47  ;;  %7122 = vset.pattern.permute.xlu0 %v8253_v4 }
  0xd7   : > { %v7201_v14 = vpop.eup %7200  ;;  %7208 = vpow2.f32 %v901_v11  ;;  %v1236_v18 = vmul.f32 %v8605_v8, %v1235_v48  ;;  %v1096_v28 = vadd.f32 1.0, %v8583_v54  ;;  %1580 = vperm.xlu1 %7123, %v1570_v15   ;;  %1590 = vperm.xlu0 %7122, %v1572_v31   ;;  %vm8808_vm9 = vcmp.lt.f32.partialorder %v1246_v19, 0.0004427343 }
  0xd8   : > { %v7203_v33 = vpop.eup %7202  ;;  %v1386_v34 = vmul.f32 0.6931472, %v7201_v14  ;;  %7210 = vpow2.f32 %v903_v13  ;;  %v8799_v21 = vpop.f32.mrf.mxu2  ;;  %v1091_v8 = vadd.f32 1.0, %v1090_v63  ;;  %vm768_vm10 = vcmp.gt.f32.partialorder %v8537_v2, 20.0 }
  0xd9   : > { %v8801_v50 = vpop.f32.mrf.mxu3  ;;  %v1233_v56 = vmul.f32 0.6931472, %v7203_v33  ;;  %7212 = vlog2.f32 %v1240_v9  ;;  %v8812_v11 = vpop.f32.mrf.mxu0  ;;  %v1245_v24 = vmul.f32 %v8627_v35, %v1244_v38  ;;  %v1099_v15 = vmul.f32 -0.5, %v8583_v54 }
  0xda   : > { %14162 = vst [vmem:[#allocation10_spill] sm:$0xff] %v8812_v11  ;;  %v8814_v13 = vpop.f32.mrf.mxu1  ;;  %v1392_v48 = vsel %vm8765_vm6, %v1389_v57, %v1386_v34  ;;  %7214 = vlog2.f32 %v1087_v7  ;;  %vm751_vm11 = vcmp.gt.f32.partialorder %v8517_v39, 20.0  ;;  %vm8829_vm12 = vcmp.lt.f32.partialorder %v1093_v23, 0.0004427343  ;;  %6784 = vmatmul.msk.f32.gmra.mxu0 %vm1593_vm4, %v8806_v55  ;;  %v1569_v23 = vld [vmem:[%s13960_s2] sm:$0xff] }
  0xdb   : > { %v8821_v9 = vpop.eup %7204  ;;  %v1552_v31 = vsel %vm784_vm5, %v8577_v49, %v1392_v48  ;;  %v1239_v19 = vsel %vm8779_vm8, %v1236_v18, %v1233_v56  ;;  %7216 = vlog2.f32 %v1096_v28  ;;  %vm752_vm13 = vcmp.gt.f32.partialorder %v8519_v40, 20.0  ;;  %6788 = vmatmul.msk.f32.gmra.mxu1 %vm1593_vm4, %v8806_v55 }
  0xdc   : > { %v8835_v35 = vpop.eup %7206  ;;  %1705 = vmatpush.msra.mxu3 %v1552_v31  ;;  %v1535_v49 = vsel %vm767_vm7, %v8535_v1, %v1239_v19  ;;  %v1100_v57 = vadd.f32 1.0, %v1099_v15  ;;  %v1102_v5 = vand.u32 2147483647, %v8583_v54  ;;  %v943_v7 = vadd.f32 1.0, %v8544_v6 }
  0xdd   : > { %v8845_v14 = vpop.eup %7208  ;;  %1677 = vmatpush.msra.mxu2 %v1535_v49  ;;  %v1092_v38 = vmul.f32 %v8573_v47, %v1091_v8  ;;  %v946_v4 = vmul.f32 -0.5, %v8544_v6  ;;  %v949_v63 = vand.u32 2147483647, %v8544_v6  ;;  %v952_v1 = vadd.f32 1.0, %v8554_v16  ;;  %v8932_v8 = vld [vmem:[%s13959_s1 + $0x38] sm:$0xff] }
  0xde   : > { %v8854_v33 = vpop.eup %7210  ;;  %v1101_v34 = vmul.f32 %v8583_v54, %v1100_v57  ;;  %vm8857_vm14 = vcmp.lt.f32.partialorder %v1102_v5, 0.0004427343  ;;  %7218 = vlog2.f32 %v943_v7  ;;  %v955_v47 = vmul.f32 -0.5, %v8554_v16  ;;  %v8871_v54 = vld [vmem:[%s13959_s1 + $0x30] sm:$0xff] }
  0xdf   : > { %v7213_v28 = vpop.eup %7212  ;;  %vm735_vm15 = vcmp.gt.f32.partialorder %v8503_v26, 20.0  ;;  %v947_v56 = vadd.f32 1.0, %v946_v4  ;;  %vm8863_vm1 = vcmp.lt.f32.partialorder %v949_v63, 0.0004427343  ;;  %7220 = vlog2.f32 %v952_v1  ;;  %1575 = vperm.xlu1 %7123, %v1569_v23   ;;  %v1571_v4 = vld [vmem:[%s13960_s2 + $0x10] sm:$0xff] }
  0xe0   : > { %v958_v48 = vand.u32 2147483647, %v8554_v16  ;;  %v7215_v15 = vpop.eup %7214  ;;  %v1242_v31 = vmul.f32 0.6931472, %v7213_v28  ;;  %vm736_vm2 = vcmp.gt.f32.partialorder %v8505_v27, 20.0  ;;  %v956_v19 = vadd.f32 1.0, %v955_v47  ;;  %v8876_v5 = vpop.f32.mrf.mxu2  ;;  %1585 = vperm.xlu0 %7122, %v1571_v4  }
  0xe1   : > { %v723_v49 = vmin.f32 %v8799_v21, 20.0  ;;  %v724_v57 = vmin.f32 %v8801_v50, 20.0  ;;  %14169 = vst [vmem:[#allocation11_spill] sm:$0xff] %v8876_v5  ;;  %v8878_v7 = vpop.f32.mrf.mxu3  ;;  %v7217_v63 = vpop.eup %7216  ;;  %v1089_v1 = vmul.f32 0.6931472, %v7215_v15  ;;  %v948_v28 = vmul.f32 %v8544_v6, %v947_v56 }
  0xe2   : > { %14170 = vst [vmem:[#allocation12_spill] sm:$0xff] %v8878_v7  ;;  %vm8884_vm3 = vcmp.lt.f32.partialorder %v958_v48, 0.0004427343  ;;  %v677_v47 = vmin.f32 %v8812_v11, 20.0  ;;  %v8889_v0 = vpop.f32.mrf.mxu0  ;;  %v8891_v23 = vpop.f32.mrf.mxu1  ;;  %v1248_v36 = vsel %vm8808_vm9, %v1245_v24, %v1242_v31  ;;  %v1098_v43 = vmul.f32 0.6931472, %v7217_v63  ;;  %6785 = vmatmul.msk.f32.gmra.mxu0 %vm1593_vm4, %v8871_v54 }
  0xe3   : > { %v957_v3 = vmul.f32 %v8554_v16, %v956_v19  ;;  %v905_v15 = vmul.f32 1.442695, %v723_v49  ;;  %v1536_v6 = vsel %vm768_vm10, %v8537_v2, %v1248_v36  ;;  %v1095_v56 = vsel %vm8829_vm12, %v1092_v38, %v1089_v1  ;;  %6789 = vmatmul.msk.f32.gmra.mxu1 %vm1593_vm4, %v8871_v54 }
  0xe4   : > { %v907_v48 = vmul.f32 1.442695, %v724_v57  ;;  %v813_v11 = vmul.f32 1.442695, %v677_v47  ;;  %v7219_v4 = vpop.eup %7218  ;;  %1706 = vmatpush.msra.mxu3 %v1536_v6  ;;  %v1519_v61 = vsel %vm751_vm11, %v8517_v39, %v1095_v56  ;;  %v1104_v16 = vsel %vm8857_vm14, %v1101_v34, %v1098_v43 }
  0xe5   : > { %7222 = vpow2.f32 %v905_v15  ;;  %v678_v2 = vmin.f32 %v8814_v13, 20.0  ;;  %v7221_v36 = vpop.eup %7220  ;;  %1678 = vmatpush.msra.mxu2 %v1519_v61  ;;  %v1520_v24 = vsel %vm752_vm13, %v8519_v40, %v1104_v16  ;;  %v945_v60 = vmul.f32 0.6931472, %v7219_v4 }
  0xe6   : > { %7224 = vpow2.f32 %v907_v48  ;;  %v679_v38 = vmin.f32 %v8876_v5, 20.0  ;;  %1707 = vmatpush.msra.mxu3 %v1520_v24  ;;  %v954_v39 = vmul.f32 0.6931472, %v7221_v36  ;;  %v680_v34 = vmin.f32 %v8878_v7, 20.0 }
  0xe7   : > { %7226 = vpow2.f32 %v813_v11  ;;  %v815_v43 = vmul.f32 1.442695, %v678_v2  ;;  %v951_v18 = vsel %vm8863_vm1, %v948_v28, %v945_v60  ;;  %v693_v19 = vmin.f32 %v8889_v0, 20.0 }
  0xe8   : > { %v817_v31 = vmul.f32 1.442695, %v679_v38  ;;  %v694_v49 = vmin.f32 %v8891_v23, 20.0  ;;  %v1503_v40 = vsel %vm735_vm15, %v8503_v26, %v951_v18  ;;  %v960_v57 = vsel %vm8884_vm3, %v957_v3, %v954_v39  ;;  %v8925_v63 = vpop.f32.mrf.mxu2 }
  0xe9   : > { %7228 = vpow2.f32 %v815_v43  ;;  %v819_v11 = vmul.f32 1.442695, %v680_v34  ;;  %v8927_v1 = vpop.f32.mrf.mxu3  ;;  %1679 = vmatpush.msra.mxu2 %v1503_v40  ;;  %v1504_v28 = vsel %vm736_vm2, %v8505_v27, %v960_v57  ;;  %v845_v26 = vmul.f32 1.442695, %v693_v19 }
  0xea   : > { %7230 = vpow2.f32 %v817_v31  ;;  %v8937_v37 = vpop.f32.mrf.mxu0  ;;  %v8939_v3 = vpop.f32.mrf.mxu1  ;;  %1708 = vmatpush.msra.mxu3 %v1504_v28  ;;  %6791 = vmatmul.msk.f32.vlgmr.msra.gmra.mxu2 %vm1593_vm4, %v8741_v22  ;;  %v847_v15 = vmul.f32 1.442695, %v694_v49  ;;  %v695_v6 = vmin.f32 %v8925_v63, 20.0  ;;  %v696_v56 = vmin.f32 %v8927_v1, 20.0 }
  0xeb   : > { %v8941_v47 = vpop.eup %7222  ;;  %v709_v48 = vmin.f32 %v8937_v37, 20.0  ;;  %6795 = vmatmul.msk.f32.vlgmr.msra.gmra.mxu3 %vm1593_vm4, %v8741_v22  ;;  %7232 = vpow2.f32 %v819_v11  ;;  %6786 = vmatmul.msk.f32.gmra.mxu0 %vm1593_vm4, %v8932_v8  ;;  %v1393_v4 = vadd.f32 1.0, %v8845_v14  ;;  %v710_v36 = vmin.f32 %v8939_v3, 20.0 }
  0xec   : > { %v8948_v27 = vpop.eup %7224  ;;  %7234 = vpow2.f32 %v845_v26  ;;  %v849_v16 = vmul.f32 1.442695, %v695_v6  ;;  %v851_v2 = vmul.f32 1.442695, %v696_v56  ;;  %6790 = vmatmul.msk.f32.gmra.mxu1 %vm1593_vm4, %v8932_v8  ;;  %v1396_v60 = vmul.f32 -0.5, %v8845_v14 }
  0xed   : > { %v8955_v61 = vpop.eup %7226  ;;  %v877_v24 = vmul.f32 1.442695, %v709_v48  ;;  %7236 = vlog2.f32 %v1393_v4  ;;  %v1399_v39 = vand.u32 2147483647, %v8845_v14  ;;  %v1402_v43 = vadd.f32 1.0, %v8854_v33 }
  0xee   : > { %7238 = vpow2.f32 %v847_v15  ;;  %v1405_v34 = vmul.f32 -0.5, %v8854_v33  ;;  %v1397_v31 = vadd.f32 1.0, %v1396_v60  ;;  %v879_v19 = vmul.f32 1.442695, %v710_v36 }
  0xef   : > { %v8961_v38 = vpop.eup %7228  ;;  %7240 = vpow2.f32 %v849_v16  ;;  %v1249_v49 = vadd.f32 1.0, %v8777_v20  ;;  %v1408_v57 = vand.u32 2147483647, %v8854_v33  ;;  %v1252_v11 = vmul.f32 -0.5, %v8777_v20 }
  0xf0   : > { %v8966_v18 = vpop.eup %7230  ;;  %7242 = vpow2.f32 %v851_v2  ;;  %v1398_v26 = vmul.f32 %v8845_v14, %v1397_v31  ;;  %vm8978_vm5 = vcmp.lt.f32.partialorder %v1399_v39, 0.0004427343  ;;  %v1406_v6 = vadd.f32 1.0, %v1405_v34 }
  0xf1   : > { %v8969_v40 = vpop.eup %7232  ;;  %7244 = vpow2.f32 %v877_v24  ;;  %v1255_v48 = vand.u32 2147483647, %v8777_v20  ;;  %v1258_v4 = vadd.f32 1.0, %v8791_v10  ;;  %v1261_v16 = vmul.f32 -0.5, %v8791_v10 }
  0xf2   : > { %v8973_v28 = vpop.eup %7234  ;;  %6792 = vmatmul.msk.f32.gmra.mxu2 %vm1593_vm4, %v8806_v55  ;;  %7246 = vlog2.f32 %v1402_v43  ;;  %vm785_vm6 = vcmp.gt.f32.partialorder %v8746_v30, 20.0  ;;  %v1253_v36 = vadd.f32 1.0, %v1252_v11  ;;  %vm786_vm7 = vcmp.gt.f32.partialorder %v8748_v17, 20.0 }
  0xf3   : > { %v7237_v56 = vpop.eup %7236  ;;  %6796 = vmatmul.msk.f32.gmra.mxu3 %vm1593_vm4, %v8806_v55  ;;  %7248 = vlog2.f32 %v1249_v49  ;;  %vm8993_vm8 = vcmp.lt.f32.partialorder %v1408_v57, 0.0004427343  ;;  %vm769_vm9 = vcmp.gt.f32.partialorder %v8698_v42, 20.0  ;;  %v1262_v34 = vadd.f32 1.0, %v1261_v16 }
  0xf4   : > { %v8987_v2 = vpop.eup %7238  ;;  %7250 = vpow2.f32 %v879_v19  ;;  %v1395_v14 = vmul.f32 0.6931472, %v7237_v56  ;;  %v1105_v31 = vadd.f32 1.0, %v8721_v25  ;;  %v1108_v19 = vmul.f32 -0.5, %v8721_v25 }
  0xf5   : > { %v8990_v24 = vpop.eup %7240  ;;  %7252 = vlog2.f32 %v1258_v4  ;;  %v1407_v11 = vmul.f32 %v8854_v33, %v1406_v6  ;;  %vm9008_vm10 = vcmp.lt.f32.partialorder %v1255_v48, 0.0004427343  ;;  %v1264_v4 = vand.u32 2147483647, %v8791_v10  ;;  %v9018_v6 = vpop.f32.mrf.mxu2 }
  0xf6   : > { %v8998_v39 = vpop.eup %7242  ;;  %v1401_v43 = vsel %vm8978_vm5, %v1398_v26, %v1395_v14  ;;  %v1254_v26 = vmul.f32 %v8777_v20, %v1253_v36  ;;  %7254 = vlog2.f32 %v1105_v31  ;;  %v1114_v15 = vadd.f32 1.0, %v8751_v46 }
  0xf7   : > { %v9004_v49 = vpop.eup %7244  ;;  %v1553_v57 = vsel %vm785_vm6, %v8746_v30, %v1401_v43  ;;  %v1117_v16 = vmul.f32 -0.5, %v8751_v46  ;;  %vm770_vm11 = vcmp.gt.f32.partialorder %v8700_v45, 20.0  ;;  %v1109_v30 = vadd.f32 1.0, %v1108_v19 }
  0xf8   : > { %v7247_v7 = vpop.eup %7246  ;;  %1734 = vmatpush.msrb.mxu0 %v1553_v57  ;;  %v1111_v33 = vand.u32 2147483647, %v8721_v25  ;;  %v1263_v36 = vmul.f32 %v8791_v10, %v1262_v34  ;;  %vm753_vm12 = vcmp.gt.f32.partialorder %v8636_v51, 20.0  ;;  %7256 = vlog2.f32 %v1114_v15 }
  0xf9   : > { %v7249_v14 = vpop.eup %7248  ;;  %v1404_v5 = vmul.f32 0.6931472, %v7247_v7  ;;  %vm9030_vm13 = vcmp.lt.f32.partialorder %v1264_v4, 0.0004427343  ;;  %v1118_v19 = vadd.f32 1.0, %v1117_v16  ;;  %v711_v60 = vmin.f32 %v9018_v6, 20.0 }
  0xfa   : > { %v9020_v48 = vpop.eup %7250  ;;  %6793 = vmatmul.msk.f32.gmra.mxu2 %vm1593_vm4, %v8871_v54  ;;  %v1251_v20 = vmul.f32 0.6931472, %v7249_v14  ;;  %v1120_v57 = vand.u32 2147483647, %v8751_v46  ;;  %v9035_v14 = vpop.f32.mrf.mxu3  ;;  %vm9047_vm14 = vcmp.lt.f32.partialorder %v1111_v33, 0.0004427343 }
  0xfb   : > { %v7253_v43 = vpop.eup %7252  ;;  %6797 = vmatmul.msk.f32.gmra.mxu3 %vm1593_vm4, %v8871_v54  ;;  %v1410_v7 = vsel %vm8993_vm8, %v1407_v11, %v1404_v5  ;;  %v1110_v11 = vmul.f32 %v8721_v25, %v1109_v30  ;;  %vm754_vm15 = vcmp.gt.f32.partialorder %v8638_v52, 20.0  ;;  %v961_v16 = vadd.f32 1.0, %v8671_v53 }
  0xfc   : > { %v1554_v10 = vsel %vm786_vm7, %v8748_v17, %v1410_v7  ;;  %v1257_v34 = vsel %vm9008_vm10, %v1254_v26, %v1251_v20  ;;  %v1260_v15 = vmul.f32 0.6931472, %v7253_v43  ;;  %v7255_v17 = vpop.eup %7254  ;;  %v712_v26 = vmin.f32 %v9035_v14, 20.0 }
  0xfd   : > { %1763 = vmatpush.msrb.mxu1 %v1554_v10  ;;  %v1537_v5 = vsel %vm769_vm9, %v8698_v42, %v1257_v34  ;;  %v964_v20 = vmul.f32 -0.5, %v8671_v53  ;;  %v1107_v25 = vmul.f32 0.6931472, %v7255_v17  ;;  %v1119_v30 = vmul.f32 %v8751_v46, %v1118_v19 }
  0xfe   : > { %1735 = vmatpush.msrb.mxu0 %v1537_v5  ;;  %v1266_v56 = vsel %vm9030_vm13, %v1263_v36, %v1260_v15  ;;  %vm9061_vm1 = vcmp.lt.f32.partialorder %v1120_v57, 0.0004427343  ;;  %v7257_v43 = vpop.eup %7256  ;;  %v881_v36 = vmul.f32 1.442695, %v711_v60  ;;  %v967_v31 = vand.u32 2147483647, %v8671_v53  ;;  %v9076_v60 = vpop.f32.mrf.mxu0 }
  0xff   : > { %v1538_v42 = vsel %vm770_vm11, %v8700_v45, %v1266_v56  ;;  %v965_v7 = vadd.f32 1.0, %v964_v20  ;;  %v970_v10 = vadd.f32 1.0, %v8694_v41  ;;  %v1113_v34 = vsel %vm9047_vm14, %v1110_v11, %v1107_v25  ;;  %v9078_v5 = vpop.f32.mrf.mxu1 }
 0x100   : > { %1764 = vmatpush.msrb.mxu1 %v1538_v42  ;;  %v1116_v15 = vmul.f32 0.6931472, %v7257_v43  ;;  %7258 = vlog2.f32 %v961_v16  ;;  %v973_v45 = vmul.f32 -0.5, %v8694_v41  ;;  %v1521_v46 = vsel %vm753_vm12, %v8636_v51, %v1113_v34 }
 0x101   : > { %v883_v19 = vmul.f32 1.442695, %v712_v26  ;;  %7260 = vlog2.f32 %v970_v10  ;;  %v976_v57 = vand.u32 2147483647, %v8694_v41  ;;  %1736 = vmatpush.msrb.mxu0 %v1521_v46  ;;  %vm737_vm2 = vcmp.gt.f32.partialorder %v8587_v58, 20.0 }
 0x102   : > { %6794 = vmatmul.msk.f32.gmra.mxu2 %vm1593_vm4, %v8932_v8  ;;  %v1122_v11 = vsel %vm9061_vm1, %v1119_v30, %v1116_v15  ;;  %v974_v51 = vadd.f32 1.0, %v973_v45  ;;  %v1411_v4 = vadd.f32 1.0, %v8941_v47  ;;  %7262 = vpow2.f32 %v881_v36  ;;  %v9126_v16 = vpop.f32.mrf.mxu3 }
 0x103   : > { %6798 = vmatmul.msk.f32.gmra.mxu3 %vm1593_vm4, %v8932_v8  ;;  %v1522_v17 = vsel %vm754_vm15, %v8638_v52, %v1122_v11  ;;  %vm738_vm3 = vcmp.gt.f32.partialorder %v8589_v59, 20.0  ;;  %v1414_v56 = vmul.f32 -0.5, %v8941_v47  ;;  %v966_v26 = vmul.f32 %v8671_v53, %v965_v7 }
 0x104   : > { %1765 = vmatpush.msrb.mxu1 %v1522_v17  ;;  %vm9092_vm5 = vcmp.lt.f32.partialorder %v967_v31, 0.0004427343  ;;  %7264 = vlog2.f32 %v1411_v4  ;;  %v1420_v20 = vadd.f32 1.0, %v8948_v27  ;;  %vm9097_vm6 = vcmp.lt.f32.partialorder %v976_v57, 0.0004427343 }
 0x105   : > { %vm787_vm7 = vcmp.gt.f32.partialorder %v8799_v21, 20.0  ;;  %v1417_v52 = vand.u32 2147483647, %v8941_v47  ;;  %v1423_v25 = vmul.f32 -0.5, %v8948_v27  ;;  %v975_v53 = vmul.f32 %v8694_v41, %v974_v51 }
 0x106   : > { %v7259_v30 = vpop.eup %7258  ;;  %7266 = vlog2.f32 %v1420_v20  ;;  %v725_v33 = vmin.f32 %v9076_v60, 20.0  ;;  %v726_v43 = vmin.f32 %v9078_v5, 20.0  ;;  %v1415_v31 = vadd.f32 1.0, %v1414_v56 }
 0x107   : > { %v7261_v36 = vpop.eup %7260  ;;  %v963_v7 = vmul.f32 0.6931472, %v7259_v30  ;;  %vm788_vm8 = vcmp.gt.f32.partialorder %v8801_v50, 20.0  ;;  %v1424_v10 = vadd.f32 1.0, %v1423_v25  ;;  %7268 = vpow2.f32 %v883_v19  ;;  %v9134_v42 = vpop.f32.mrf.mxu1 }
 0x108   : > { %v972_v34 = vmul.f32 0.6931472, %v7261_v36  ;;  %v909_v15 = vmul.f32 1.442695, %v725_v33  ;;  %v911_v45 = vmul.f32 1.442695, %v726_v43  ;;  %v9108_v46 = vpop.eup %7262  ;;  %v1416_v25 = vmul.f32 %v8941_v47, %v1415_v31 }
 0x109   : > { %v969_v41 = vsel %vm9092_vm5, %v966_v26, %v963_v7  ;;  %vm9112_vm9 = vcmp.lt.f32.partialorder %v1417_v52, 0.0004427343  ;;  %v1267_v11 = vadd.f32 1.0, %v8821_v9  ;;  %v1270_v51 = vmul.f32 -0.5, %v8821_v9  ;;  %v9124_v26 = vpop.f32.mrf.mxu2  ;;  %14192 = vst [vmem:[#allocation14_spill] sm:$0xff] %v9134_v42 }
 0x10a   : > { %v7265_v4 = vpop.eup %7264  ;;  %v1505_v19 = vsel %vm737_vm2, %v8587_v58, %v969_v41  ;;  %v978_v17 = vsel %vm9097_vm6, %v975_v53, %v972_v34  ;;  %v1426_v56 = vand.u32 2147483647, %v8948_v27  ;;  %7270 = vpow2.f32 %v909_v15  ;;  %v9132_v58 = vpop.f32.mrf.mxu0 }
 0x10b   : > { %1737 = vmatpush.msrb.mxu0 %v1505_v19  ;;  %v1506_v20 = vsel %vm738_vm3, %v8589_v59, %v978_v17  ;;  %v1413_v52 = vmul.f32 0.6931472, %v7265_v4  ;;  %7272 = vpow2.f32 %v911_v45  ;;  %14191 = vst [vmem:[#allocation13_spill] sm:$0xff] %v9132_v58  ;;  %v1425_v53 = vmul.f32 %v8948_v27, %v1424_v10 }
 0x10c   : > { %v7267_v30 = vpop.eup %7266  ;;  %1766 = vmatpush.msrb.mxu1 %v1506_v20  ;;  %6799 = vmatmul.msk.f32.vlgmr.msrb.gmra.mxu0 %vm1593_vm4, %v8741_v22  ;;  %7274 = vlog2.f32 %v1267_v11  ;;  %v1273_v33 = vand.u32 2147483647, %v8821_v9  ;;  %v1276_v59 = vadd.f32 1.0, %v8835_v35  ;;  %v1271_v36 = vadd.f32 1.0, %v1270_v51 }
 0x10d   : > { %v1419_v47 = vsel %vm9112_vm9, %v1416_v25, %v1413_v52  ;;  %v1422_v43 = vmul.f32 0.6931472, %v7267_v30  ;;  %6803 = vmatmul.msk.f32.vlgmr.msrb.gmra.mxu1 %vm1593_vm4, %v8741_v22  ;;  %v1279_v7 = vmul.f32 -0.5, %v8835_v35  ;;  %v9146_v31 = vpop.eup %7268  ;;  %vm1427_vm10 = vcmp.lt.f32.partialorder %v1426_v56, 0.0004427343 }
 0x10e   : > { %v1555_v27 = vsel %vm787_vm7, %v8799_v21, %v1419_v47  ;;  %vm771_vm11 = vcmp.gt.f32.partialorder %v8734_v12, 20.0  ;;  %7276 = vlog2.f32 %v1276_v59  ;;  %v1282_v34 = vand.u32 2147483647, %v8835_v35  ;;  %v14204_v21 = vld [vmem:[#allocation5_spill] sm:$0xff] }
 0x10f   : > { %1792 = vmatpush.msrb.mxu2 %v1555_v27  ;;  %v1428_v10 = vsel %vm1427_vm10, %v1425_v53, %v1422_v43  ;;  %v1123_v15 = vadd.f32 1.0, %v8759_v29  ;;  %v1126_v45 = vmul.f32 -0.5, %v8759_v29  ;;  %vm9160_vm12 = vcmp.lt.f32.partialorder %v1273_v33, 0.0004427343  ;;  %v14200_v43 = vld [vmem:[#allocation7_spill] sm:$0xff]  ;;  %v9189_v27 = vpop.f32.mrf.mxu3 }
 0x110   : > { %v9155_v41 = vpop.eup %7270  ;;  %v1556_v57 = vsel %vm788_vm8, %v8801_v50, %v1428_v10  ;;  %v1280_v11 = vadd.f32 1.0, %v1279_v7  ;;  %v1129_v51 = vand.u32 2147483647, %v8759_v29  ;;  %v1272_v19 = vmul.f32 %v8821_v9, %v1271_v36  ;;  %v14197_v9 = vld [vmem:[#allocation8_spill] sm:$0xff] }
 0x111   : > { %v9165_v4 = vpop.eup %7272  ;;  %1821 = vmatpush.msrb.mxu3 %v1556_v57  ;;  %vm772_vm13 = vcmp.gt.f32.partialorder %v8736_v44, 20.0  ;;  %7278 = vlog2.f32 %v1123_v15  ;;  %v1132_v17 = vadd.f32 1.0, %v8772_v62  ;;  %vm755_vm14 = vcmp.gt.f32.partialorder %v8686_v32, 20.0  ;;  %v9187_v7 = vpop.f32.mrf.mxu2 }
 0x112   : > { %v7275_v56 = vpop.eup %7274  ;;  %v1127_v50 = vadd.f32 1.0, %v1126_v45  ;;  %v1135_v20 = vmul.f32 -0.5, %v8772_v62  ;;  %v1138_v52 = vand.u32 2147483647, %v8772_v62  ;;  %vm9173_vm15 = vcmp.lt.f32.partialorder %v1282_v34, 0.0004427343  ;;  %v9195_v15 = vpop.f32.mrf.mxu0 }
 0x113   : > { %v1269_v25 = vmul.f32 0.6931472, %v7275_v56  ;;  %7280 = vlog2.f32 %v1132_v17  ;;  %v979_v53 = vadd.f32 1.0, %v14197_v9  ;;  %v1281_v59 = vmul.f32 %v8835_v35, %v1280_v11  ;;  %14201 = vst [vmem:[#allocation8_spill] sm:$0xff] %v9187_v7  ;;  %v9197_v45 = vpop.f32.mrf.mxu1 }
 0x114   : > { %v7277_v33 = vpop.eup %7276  ;;  %vm9179_vm1 = vcmp.lt.f32.partialorder %v1129_v51, 0.0004427343  ;;  %vm756_vm2 = vcmp.gt.f32.partialorder %v14200_v43, 20.0  ;;  %v982_v36 = vmul.f32 -0.5, %v14197_v9  ;;  %6800 = vmatmul.msk.f32.gmra.mxu0 %vm1593_vm4, %v8806_v55  ;;  %v1136_v35 = vadd.f32 1.0, %v1135_v20 }
 0x115   : > { %v1275_v10 = vsel %vm9160_vm12, %v1272_v19, %v1269_v25  ;;  %v1278_v34 = vmul.f32 0.6931472, %v7277_v33  ;;  %7282 = vlog2.f32 %v979_v53  ;;  %6804 = vmatmul.msk.f32.gmra.mxu1 %vm1593_vm4, %v8806_v55  ;;  %v1128_v11 = vmul.f32 %v8759_v29, %v1127_v50  ;;  %v14205_v25 = vld [vmem:[#allocation9_spill] sm:$0xff] }
 0x116   : > { %v1539_v57 = vsel %vm771_vm11, %v8734_v12, %v1275_v10  ;;  %vm9203_vm3 = vcmp.lt.f32.partialorder %v1138_v52, 0.0004427343  ;;  %vm739_vm5 = vcmp.gt.f32.partialorder %v14204_v21, 20.0  ;;  %v983_v56 = vadd.f32 1.0, %v982_v36 }
 0x117   : > { %v7279_v19 = vpop.eup %7278  ;;  %1793 = vmatpush.msrb.mxu2 %v1539_v57  ;;  %v1284_v17 = vsel %vm9173_vm15, %v1281_v59, %v1278_v34  ;;  %v985_v20 = vand.u32 2147483647, %v14197_v9  ;;  %v988_v53 = vadd.f32 1.0, %v14205_v25  ;;  %v991_v50 = vmul.f32 -0.5, %v14205_v25  ;;  %v14206_v57 = vld [vmem:[#allocation6_spill] sm:$0xff] }
 0x118   : > { %v1540_v12 = vsel %vm772_vm13, %v8736_v44, %v1284_v17  ;;  %v1125_v29 = vmul.f32 0.6931472, %v7279_v19  ;;  %v727_v52 = vmin.f32 %v9124_v26, 20.0  ;;  %v1137_v10 = vmul.f32 %v8772_v62, %v1136_v35 }
 0x119   : > { %v7281_v33 = vpop.eup %7280  ;;  %1822 = vmatpush.msrb.mxu3 %v1540_v12  ;;  %7284 = vlog2.f32 %v988_v53  ;;  %v994_v30 = vand.u32 2147483647, %v14205_v25  ;;  %v728_v59 = vmin.f32 %v9126_v16, 20.0  ;;  %vm740_vm6 = vcmp.gt.f32.partialorder %v14206_v57, 20.0 }
 0x11a   : > { %v1131_v36 = vsel %vm9179_vm1, %v1128_v11, %v1125_v29  ;;  %v1134_v34 = vmul.f32 0.6931472, %v7281_v33  ;;  %v913_v44 = vmul.f32 1.442695, %v727_v52  ;;  %v681_v19 = vmin.f32 %v9132_v58, 20.0 }
 0x11b   : > { %v7283_v17 = vpop.eup %7282  ;;  %v1523_v12 = vsel %vm755_vm14, %v8686_v32, %v1131_v36  ;;  %v984_v62 = vmul.f32 %v14197_v9, %v983_v56  ;;  %v915_v35 = vmul.f32 1.442695, %v728_v59  ;;  %v682_v53 = vmin.f32 %v9134_v42, 20.0  ;;  %v9246_v59 = vpop.f32.mrf.mxu3 }
 0x11c   : > { %1794 = vmatpush.msrb.mxu2 %v1523_v12  ;;  %v1140_v47 = vsel %vm9203_vm3, %v1137_v10, %v1134_v34  ;;  %v981_v11 = vmul.f32 0.6931472, %v7283_v17  ;;  %v992_v29 = vadd.f32 1.0, %v991_v50  ;;  %v821_v33 = vmul.f32 1.442695, %v681_v19  ;;  %6801 = vmatmul.msk.f32.gmra.mxu0 %vm1593_vm4, %v8871_v54  ;;  %v9244_v10 = vpop.f32.mrf.mxu2  ;;  %14210 = vst [vmem:[#allocation5_spill] sm:$0xff] %v9246_v59  ;;  %v9254_v19 = vpop.f32.mrf.mxu1 }
 0x11d   : > { %v1524_v52 = vsel %vm756_vm2, %v14200_v43, %v1140_v47  ;;  %vm986_vm7 = vcmp.lt.f32.partialorder %v985_v20, 0.0004427343  ;;  %v823_v32 = vmul.f32 1.442695, %v682_v53  ;;  %v683_v9 = vmin.f32 %v9187_v7, 20.0  ;;  %6805 = vmatmul.msk.f32.gmra.mxu1 %vm1593_vm4, %v8871_v54  ;;  %14209 = vst [vmem:[#allocation7_spill] sm:$0xff] %v9244_v10 }
 0x11e   : > { %1823 = vmatpush.msrb.mxu3 %v1524_v52  ;;  %v987_v51 = vsel %vm986_vm7, %v984_v62, %v981_v11  ;;  %vm9239_vm8 = vcmp.lt.f32.partialorder %v994_v30, 0.0004427343  ;;  %7286 = vpow2.f32 %v913_v44  ;;  %v697_v50 = vmin.f32 %v9195_v15, 20.0  ;;  %v9252_v30 = vpop.f32.mrf.mxu0 }
 0x11f   : > { %v7285_v43 = vpop.eup %7284  ;;  %v1507_v20 = vsel %vm739_vm5, %v14204_v21, %v987_v51  ;;  %7288 = vpow2.f32 %v915_v35  ;;  %v825_v36 = vmul.f32 1.442695, %v683_v9  ;;  %v698_v34 = vmin.f32 %v9197_v45, 20.0 }
 0x120   : > { %1795 = vmatpush.msrb.mxu2 %v1507_v20  ;;  %v990_v44 = vmul.f32 0.6931472, %v7285_v43  ;;  %v993_v17 = vmul.f32 %v14205_v25, %v992_v29  ;;  %7290 = vpow2.f32 %v821_v33  ;;  %v853_v12 = vmul.f32 1.442695, %v697_v50 }
 0x121   : > { %6807 = vmatmul.msk.f32.vlgmr.msrb.gmra.mxu2 %vm1593_vm4, %v8741_v22  ;;  %7292 = vpow2.f32 %v823_v32  ;;  %v855_v62 = vmul.f32 1.442695, %v698_v34  ;;  %v699_v21 = vmin.f32 %v9244_v10, 20.0  ;;  %v700_v35 = vmin.f32 %v9246_v59, 20.0 }
 0x122   : > { %v996_v53 = vsel %vm9239_vm8, %v993_v17, %v990_v44  ;;  %7294 = vpow2.f32 %v825_v36  ;;  %v713_v47 = vmin.f32 %v9252_v30, 20.0  ;;  %v714_v11 = vmin.f32 %v9254_v19, 20.0 }
 0x123   : > { %v1508_v25 = vsel %vm740_vm6, %v14206_v57, %v996_v53  ;;  %7296 = vpow2.f32 %v853_v12  ;;  %v857_v29 = vmul.f32 1.442695, %v699_v21  ;;  %v859_v33 = vmul.f32 1.442695, %v700_v35 }
 0x124   : > { %v9268_v52 = vpop.eup %7286  ;;  %1824 = vmatpush.msrb.mxu3 %v1508_v25  ;;  %7298 = vpow2.f32 %v855_v62  ;;  %v885_v32 = vmul.f32 1.442695, %v713_v47  ;;  %v887_v9 = vmul.f32 1.442695, %v714_v11  ;;  %6802 = vmatmul.msk.f32.gmra.mxu0 %vm1593_vm4, %v8932_v8  ;;  %v1429_v57 = vadd.f32 1.0, %v9155_v41 }
 0x125   : > { %v9272_v51 = vpop.eup %7288  ;;  %6811 = vmatmul.msk.f32.vlgmr.msrb.gmra.mxu3 %vm1593_vm4, %v8741_v22  ;;  %7300 = vpow2.f32 %v857_v29  ;;  %6806 = vmatmul.msk.f32.gmra.mxu1 %vm1593_vm4, %v8932_v8  ;;  %v1432_v56 = vmul.f32 -0.5, %v9155_v41  ;;  %v1435_v43 = vand.u32 2147483647, %v9155_v41  ;;  %v1438_v20 = vadd.f32 1.0, %v9165_v4 }
 0x126   : > { %v9280_v50 = vpop.eup %7290  ;;  %7302 = vpow2.f32 %v859_v33  ;;  %v1441_v36 = vmul.f32 -0.5, %v9165_v4  ;;  %vm789_vm9 = vcmp.gt.f32.partialorder %v9076_v60, 20.0  ;;  %v1285_v17 = vadd.f32 1.0, %v9004_v49 }
 0x127   : > { %v9285_v34 = vpop.eup %7292  ;;  %7304 = vpow2.f32 %v885_v32  ;;  %v1433_v44 = vadd.f32 1.0, %v1432_v56  ;;  %vm790_vm10 = vcmp.gt.f32.partialorder %v9078_v5, 20.0  ;;  %v1444_v62 = vand.u32 2147483647, %v9165_v4 }
 0x128   : > { %14211 = vst [vmem:[#allocation9_spill] sm:$0xff] %v9285_v34  ;;  %v9287_v22 = vpop.eup %7294  ;;  %7306 = vpow2.f32 %v887_v9  ;;  %v1288_v21 = vmul.f32 -0.5, %v9004_v49  ;;  %vm9300_vm11 = vcmp.lt.f32.partialorder %v1435_v43, 0.0004427343  ;;  %v1442_v47 = vadd.f32 1.0, %v1441_v36 }
 0x129   : > { %14212 = vst [vmem:[#allocation6_spill] sm:$0xff] %v9287_v22  ;;  %v9291_v12 = vpop.eup %7296  ;;  %6808 = vmatmul.msk.f32.gmra.mxu2 %vm1593_vm4, %v8806_v55  ;;  %7308 = vlog2.f32 %v1429_v57  ;;  %v1291_v11 = vand.u32 2147483647, %v9004_v49  ;;  %vm773_vm12 = vcmp.gt.f32.partialorder %v8937_v37, 20.0  ;;  %v1294_v29 = vadd.f32 1.0, %v9020_v48 }
 0x12a   : > { %v9298_v35 = vpop.eup %7298  ;;  %7310 = vlog2.f32 %v1438_v20  ;;  %v1297_v33 = vmul.f32 -0.5, %v9020_v48  ;;  %v1434_v9 = vmul.f32 %v9155_v41, %v1433_v44  ;;  %v1289_v57 = vadd.f32 1.0, %v1288_v21 }
 0x12b   : > { %v9305_v25 = vpop.eup %7300  ;;  %7312 = vlog2.f32 %v1285_v17  ;;  %v1300_v56 = vand.u32 2147483647, %v9020_v48  ;;  %v1141_v43 = vadd.f32 1.0, %v8973_v28  ;;  %vm9319_vm13 = vcmp.lt.f32.partialorder %v1444_v62, 0.0004427343 }
 0x12c   : > { %14215 = vst [vmem:[#allocation15_spill] sm:$0xff] %v9305_v25  ;;  %v9310_v32 = vpop.eup %7302  ;;  %7314 = vlog2.f32 %v1294_v29  ;;  %v1298_v17 = vadd.f32 1.0, %v1297_v33  ;;  %v1144_v7 = vmul.f32 -0.5, %v8973_v28  ;;  %v1443_v41 = vmul.f32 %v9165_v4, %v1442_v47  ;;  %v9335_v33 = vpop.f32.mrf.mxu2 }
 0x12d   : > { %14216 = vst [vmem:[#allocation16_spill] sm:$0xff] %v9310_v32  ;;  %v9315_v20 = vpop.eup %7304  ;;  %6812 = vmatmul.msk.f32.gmra.mxu3 %vm1593_vm4, %v8806_v55  ;;  %vm9327_vm14 = vcmp.lt.f32.partialorder %v1291_v11, 0.0004427343  ;;  %vm774_vm15 = vcmp.gt.f32.partialorder %v8939_v3, 20.0  ;;  %7316 = vlog2.f32 %v1141_v43  ;;  %vm757_vm1 = vcmp.gt.f32.partialorder %v8889_v0, 20.0  ;;  %v9343_v43 = vpop.f32.mrf.mxu3 }
 0x12e   : > { %v9324_v59 = vpop.eup %7306  ;;  %v1145_v62 = vadd.f32 1.0, %v1144_v7  ;;  %v1150_v21 = vadd.f32 1.0, %v8987_v2  ;;  %v1153_v29 = vmul.f32 -0.5, %v8987_v2  ;;  %v1290_v4 = vmul.f32 %v9004_v49, %v1289_v57 }
 0x12f   : > { %v7309_v55 = vpop.eup %7308  ;;  %vm9338_vm2 = vcmp.lt.f32.partialorder %v1300_v56, 0.0004427343  ;;  %v1147_v11 = vand.u32 2147483647, %v8973_v28  ;;  %v1299_v25 = vmul.f32 %v9020_v48, %v1298_v17  ;;  %v1156_v56 = vand.u32 2147483647, %v8987_v2 }
 0x130   : > { %v7311_v10 = vpop.eup %7310  ;;  %v1431_v22 = vmul.f32 0.6931472, %v7309_v55  ;;  %7318 = vlog2.f32 %v1150_v21  ;;  %v1154_v42 = vadd.f32 1.0, %v1153_v29  ;;  %v715_v55 = vmin.f32 %v9335_v33, 20.0 }
 0x131   : > { %v7313_v32 = vpop.eup %7312  ;;  %6809 = vmatmul.msk.f32.gmra.mxu2 %vm1593_vm4, %v8871_v54  ;;  %v1440_v7 = vmul.f32 0.6931472, %v7311_v10  ;;  %v1146_v48 = vmul.f32 %v8973_v28, %v1145_v62  ;;  %v716_v17 = vmin.f32 %v9343_v43, 20.0  ;;  %vm9364_vm3 = vcmp.lt.f32.partialorder %v1147_v11, 0.0004427343 }
 0x132   : > { %v1437_v49 = vsel %vm9300_vm11, %v1434_v9, %v1431_v22  ;;  %v1287_v57 = vmul.f32 0.6931472, %v7313_v32  ;;  %v7315_v58 = vpop.eup %7314  ;;  %v1000_v44 = vmul.f32 -0.5, %v8955_v61  ;;  %vm758_vm5 = vcmp.gt.f32.partialorder %v8891_v23, 20.0 }
 0x133   : > { %v1557_v34 = vsel %vm789_vm9, %v9076_v60, %v1437_v49  ;;  %v1446_v10 = vsel %vm9319_vm13, %v1443_v41, %v1440_v7  ;;  %v7317_v21 = vpop.eup %7316  ;;  %v1296_v32 = vmul.f32 0.6931472, %v7315_v58  ;;  %v891_v36 = vmul.f32 1.442695, %v716_v17  ;;  %v14227_v49 = vld [vmem:[#allocation10_spill] sm:$0xff]  ;;  %v9407_v17 = vpop.f32.mrf.mxu0 }
 0x134   : > { %1850 = vmatpush.msra.mxu0 %v1557_v34  ;;  %v1558_v22 = vsel %vm790_vm10, %v9078_v5, %v1446_v10  ;;  %v1293_v53 = vsel %vm9327_vm14, %v1290_v4, %v1287_v57  ;;  %v1143_v60 = vmul.f32 0.6931472, %v7317_v21  ;;  %v1155_v34 = vmul.f32 %v8987_v2, %v1154_v42 }
 0x135   : > { %6813 = vmatmul.msk.f32.gmra.mxu3 %vm1593_vm4, %v8871_v54  ;;  %1879 = vmatpush.msra.mxu1 %v1558_v22  ;;  %v1541_v28 = vsel %vm773_vm12, %v8937_v37, %v1293_v53  ;;  %v889_v5 = vmul.f32 1.442695, %v715_v55  ;;  %v1302_v58 = vsel %vm9338_vm2, %v1299_v25, %v1296_v32  ;;  %v997_v41 = vadd.f32 1.0, %v8955_v61  ;;  %v9414_v53 = vpop.f32.mrf.mxu1 }
 0x136   : > { %1851 = vmatpush.msra.mxu0 %v1541_v28  ;;  %v7319_v62 = vpop.eup %7318  ;;  %v1542_v54 = vsel %vm774_vm15, %v8939_v3, %v1302_v58  ;;  %v1149_v37 = vsel %vm9364_vm3, %v1146_v48, %v1143_v60  ;;  %vm9384_vm6 = vcmp.lt.f32.partialorder %v1156_v56, 0.0004427343  ;;  %v1001_v29 = vadd.f32 1.0, %v1000_v44 }
 0x137   : > { %1880 = vmatpush.msra.mxu1 %v1542_v54  ;;  %v1525_v42 = vsel %vm757_vm1, %v8889_v0, %v1149_v37  ;;  %v1152_v25 = vmul.f32 0.6931472, %v7319_v62  ;;  %7320 = vlog2.f32 %v997_v41  ;;  %v1006_v3 = vadd.f32 1.0, %v8961_v38 }
 0x138   : > { %1852 = vmatpush.msra.mxu0 %v1525_v42  ;;  %7322 = vpow2.f32 %v889_v5  ;;  %v1009_v4 = vmul.f32 -0.5, %v8961_v38  ;;  %v684_v47 = vmin.f32 %v9189_v27, 20.0  ;;  %v1003_v0 = vand.u32 2147483647, %v8955_v61 }
 0x139   : > { %6810 = vmatmul.msk.f32.gmra.mxu2 %vm1593_vm4, %v8932_v8  ;;  %v1158_v11 = vsel %vm9384_vm6, %v1155_v34, %v1152_v25  ;;  %7324 = vpow2.f32 %v891_v36  ;;  %vm741_vm7 = vcmp.gt.f32.partialorder %v14227_v49, 20.0  ;;  %v1447_v57 = vadd.f32 1.0, %v9268_v52 }
 0x13a   : > { %v1526_v7 = vsel %vm758_vm5, %v8891_v23, %v1158_v11  ;;  %7326 = vlog2.f32 %v1006_v3  ;;  %v1002_v56 = vmul.f32 %v8955_v61, %v1001_v29  ;;  %v1010_v55 = vadd.f32 1.0, %v1009_v4 }
 0x13b   : > { %1881 = vmatpush.msra.mxu1 %v1526_v7  ;;  %v1012_v10 = vand.u32 2147483647, %v8961_v38  ;;  %v1450_v48 = vmul.f32 -0.5, %v9268_v52  ;;  %7328 = vlog2.f32 %v1447_v57  ;;  %v1453_v23 = vand.u32 2147483647, %v9268_v52 }
 0x13c   : > { %v1456_v21 = vadd.f32 1.0, %v9272_v51  ;;  %v1459_v22 = vmul.f32 -0.5, %v9272_v51  ;;  %vm9416_vm8 = vcmp.lt.f32.partialorder %v1003_v0, 0.0004427343  ;;  %vm742_vm9 = vcmp.gt.f32.partialorder %v8814_v13, 20.0 }
 0x13d   : > { %6814 = vmatmul.msk.f32.gmra.mxu3 %vm1593_vm4, %v8932_v8  ;;  %v7321_v61 = vpop.eup %7320  ;;  %v1451_v9 = vadd.f32 1.0, %v1450_v48  ;;  %v1462_v28 = vand.u32 2147483647, %v9272_v51  ;;  %v729_v5 = vmin.f32 %v9407_v17, 20.0  ;;  %v1011_v36 = vmul.f32 %v8961_v38, %v1010_v55 }
 0x13e   : > { %v9422_v8 = vpop.eup %7322  ;;  %v999_v60 = vmul.f32 0.6931472, %v7321_v61  ;;  %7330 = vlog2.f32 %v1456_v21  ;;  %v1460_v34 = vadd.f32 1.0, %v1459_v22  ;;  %vm9428_vm10 = vcmp.lt.f32.partialorder %v1012_v10, 0.0004427343 }
 0x13f   : > { %v9425_v58 = vpop.eup %7324  ;;  %vm791_vm11 = vcmp.gt.f32.partialorder %v9124_v26, 20.0  ;;  %v730_v44 = vmin.f32 %v9414_v53, 20.0  ;;  %vm9436_vm12 = vcmp.lt.f32.partialorder %v1453_v23, 0.0004427343  ;;  %vm792_vm13 = vcmp.gt.f32.partialorder %v9126_v16, 20.0 }
 0x140   : > { %v7327_v62 = vpop.eup %7326  ;;  %v1005_v54 = vsel %vm9416_vm8, %v1002_v56, %v999_v60  ;;  %v1303_v38 = vadd.f32 1.0, %v9108_v46  ;;  %v1452_v25 = vmul.f32 %v9268_v52, %v1451_v9  ;;  %v1306_v29 = vmul.f32 -0.5, %v9108_v46  ;;  %v9458_v52 = vld [vmem:[%s13959_s1 + $0x20] sm:$0xff] }
 0x141   : > { %v1509_v2 = vsel %vm741_vm7, %v14227_v49, %v1005_v54  ;;  %v1008_v42 = vmul.f32 0.6931472, %v7327_v62  ;;  %v7329_v3 = vpop.eup %7328  ;;  %v1461_v4 = vmul.f32 %v9272_v51, %v1460_v34  ;;  %vm9448_vm14 = vcmp.lt.f32.partialorder %v1462_v28, 0.0004427343 }
 0x142   : > { %1853 = vmatpush.msra.mxu0 %v1509_v2  ;;  %v917_v0 = vmul.f32 1.442695, %v729_v5  ;;  %v1312_v7 = vadd.f32 1.0, %v9146_v31  ;;  %v1449_v49 = vmul.f32 0.6931472, %v7329_v3  ;;  %7332 = vlog2.f32 %v1303_v38 }
 0x143   : > { %v1014_v57 = vsel %vm9428_vm10, %v1011_v36, %v1008_v42  ;;  %v919_v56 = vmul.f32 1.442695, %v730_v44  ;;  %6815 = vmatmul.msk.f32.vlgmr.msra.gmra.mxu0 %vm1593_vm4, %v9458_v52  ;;  %v1309_v10 = vand.u32 2147483647, %v9108_v46  ;;  %v1315_v48 = vmul.f32 -0.5, %v9146_v31 }
 0x144   : > { %v7331_v51 = vpop.eup %7330  ;;  %v1510_v55 = vsel %vm742_vm9, %v8814_v13, %v1014_v57  ;;  %7334 = vlog2.f32 %v1312_v7  ;;  %v1455_v23 = vsel %vm9436_vm12, %v1452_v25, %v1449_v49  ;;  %v1307_v22 = vadd.f32 1.0, %v1306_v29  ;;  %v9502_v25 = vld [vmem:[%s13959_s1 + $0x28] sm:$0xff]  ;;  %v9520_v49 = vpop.f32.mrf.mxu2 }
 0x145   : > { %1882 = vmatpush.msra.mxu1 %v1510_v55  ;;  %v1458_v21 = vmul.f32 0.6931472, %v7331_v51  ;;  %v1318_v61 = vand.u32 2147483647, %v9146_v31  ;;  %v1559_v32 = vsel %vm791_vm11, %v9124_v26, %v1455_v23  ;;  %7336 = vpow2.f32 %v917_v0 }
 0x146   : > { %6819 = vmatmul.msk.f32.vlgmr.msra.gmra.mxu1 %vm1593_vm4, %v9458_v52  ;;  %vm775_vm15 = vcmp.gt.f32.partialorder %v9018_v6, 20.0  ;;  %v1159_v13 = vadd.f32 1.0, %v8990_v24  ;;  %1908 = vmatpush.msra.mxu2 %v1559_v32  ;;  %7338 = vpow2.f32 %v919_v56  ;;  %v1316_v28 = vadd.f32 1.0, %v1315_v48  ;;  %v9537_v32 = vpop.f32.mrf.mxu3 }
 0x147   : > { %v1464_v9 = vsel %vm9448_vm14, %v1461_v4, %v1458_v21  ;;  %v1162_v60 = vmul.f32 -0.5, %v8990_v24  ;;  %vm9483_vm1 = vcmp.lt.f32.partialorder %v1309_v10, 0.0004427343  ;;  %vm776_vm2 = vcmp.gt.f32.partialorder %v9035_v14, 20.0 }
 0x148   : > { %v1560_v26 = vsel %vm792_vm13, %v9126_v16, %v1464_v9  ;;  %7340 = vlog2.f32 %v1159_v13  ;;  %v7333_v5 = vpop.eup %7332  ;;  %v1308_v36 = vmul.f32 %v9108_v46, %v1307_v22  ;;  %vm9489_vm3 = vcmp.lt.f32.partialorder %v1318_v61, 0.0004427343 }
 0x149   : > { %1937 = vmatpush.msra.mxu3 %v1560_v26  ;;  %v1168_v44 = vadd.f32 1.0, %v8998_v39  ;;  %v1171_v62 = vmul.f32 -0.5, %v8998_v39  ;;  %v1305_v54 = vmul.f32 0.6931472, %v7333_v5  ;;  %vm759_vm5 = vcmp.gt.f32.partialorder %v8925_v63, 20.0 }
 0x14a   : > { %v7335_v16 = vpop.eup %7334  ;;  %v1165_v37 = vand.u32 2147483647, %v8990_v24  ;;  %v1015_v38 = vadd.f32 1.0, %v8966_v18  ;;  %v1317_v42 = vmul.f32 %v9146_v31, %v1316_v28  ;;  %v1163_v46 = vadd.f32 1.0, %v1162_v60  ;;  %v14243_v60 = vld [vmem:[#allocation12_spill] sm:$0xff] }
 0x14b   : > { %v1314_v2 = vmul.f32 0.6931472, %v7335_v16  ;;  %7342 = vlog2.f32 %v1168_v44  ;;  %6816 = vmatmul.msk.f32.gmra.mxu0 %vm1593_vm4, %v9502_v25  ;;  %v9506_v29 = vpop.eup %7336  ;;  %v1311_v3 = vsel %vm9483_vm1, %v1308_v36, %v1305_v54  ;;  %v1174_v4 = vand.u32 2147483647, %v8998_v39  ;;  %v9554_v16 = vld [vmem:[%s13959_s1 + $0x30] sm:$0xff] }
 0x14c   : > { %7344 = vlog2.f32 %v1015_v38  ;;  %v1018_v31 = vmul.f32 -0.5, %v8966_v18  ;;  %v9512_v11 = vpop.eup %7338  ;;  %v1543_v0 = vsel %vm775_vm15, %v9018_v6, %v1311_v3  ;;  %vm760_vm6 = vcmp.gt.f32.partialorder %v8927_v1, 20.0 }
 0x14d   : > { %v1320_v7 = vsel %vm9489_vm3, %v1317_v42, %v1314_v2  ;;  %v1172_v57 = vadd.f32 1.0, %v1171_v62  ;;  %1909 = vmatpush.msra.mxu2 %v1543_v0  ;;  %v1021_v10 = vand.u32 2147483647, %v8966_v18  ;;  %v1024_v48 = vadd.f32 1.0, %v8969_v40 }
 0x14e   : > { %v7341_v56 = vpop.eup %7340  ;;  %v1544_v51 = vsel %vm776_vm2, %v9035_v14, %v1320_v7  ;;  %v1019_v55 = vadd.f32 1.0, %v1018_v31  ;;  %6820 = vmatmul.msk.f32.gmra.mxu1 %vm1593_vm4, %v9502_v25  ;;  %v1164_v23 = vmul.f32 %v8990_v24, %v1163_v46  ;;  %vm1166_vm7 = vcmp.lt.f32.partialorder %v1165_v37, 0.0004427343  ;;  %v14242_v14 = vld [vmem:[#allocation11_spill] sm:$0xff] }
 0x14f   : > { %1938 = vmatpush.msra.mxu3 %v1544_v51  ;;  %v1161_v6 = vmul.f32 0.6931472, %v7341_v56  ;;  %v1027_v21 = vmul.f32 -0.5, %v8969_v40  ;;  %vm9531_vm8 = vcmp.lt.f32.partialorder %v1174_v4, 0.0004427343  ;;  %vm743_vm9 = vcmp.gt.f32.partialorder %v14242_v14, 20.0 }
 0x150   : > { %7346 = vlog2.f32 %v1024_v48  ;;  %v731_v61 = vmin.f32 %v9520_v49, 20.0  ;;  %v1173_v28 = vmul.f32 %v8998_v39, %v1172_v57  ;;  %vm744_vm10 = vcmp.gt.f32.partialorder %v14243_v60, 20.0 }
 0x151   : > { %v7343_v13 = vpop.eup %7342  ;;  %v1167_v9 = vsel %vm1166_vm7, %v1164_v23, %v1161_v6  ;;  %v1030_v24 = vand.u32 2147483647, %v8969_v40  ;;  %v1020_v36 = vmul.f32 %v8966_v18, %v1019_v55  ;;  %vm9546_vm11 = vcmp.lt.f32.partialorder %v1021_v10, 0.0004427343 }
 0x152   : > { %v7345_v26 = vpop.eup %7344  ;;  %v1527_v34 = vsel %vm759_vm5, %v8925_v63, %v1167_v9  ;;  %v1170_v5 = vmul.f32 0.6931472, %v7343_v13  ;;  %v1028_v62 = vadd.f32 1.0, %v1027_v21  ;;  %v732_v39 = vmin.f32 %v9537_v32, 20.0 }
 0x153   : > { %1910 = vmatpush.msra.mxu2 %v1527_v34  ;;  %v1017_v44 = vmul.f32 0.6931472, %v7345_v26  ;;  %6817 = vmatmul.msk.f32.gmra.mxu0 %vm1593_vm4, %v9554_v16  ;;  %v1465_v63 = vadd.f32 1.0, %v9506_v29  ;;  %v921_v54 = vmul.f32 1.442695, %v731_v61  ;;  %vm793_vm12 = vcmp.gt.f32.partialorder %v9407_v17, 20.0 }
 0x154   : > { %v1176_v18 = vsel %vm9531_vm8, %v1173_v28, %v1170_v5  ;;  %v1468_v37 = vmul.f32 -0.5, %v9506_v29  ;;  %vm9568_vm13 = vcmp.lt.f32.partialorder %v1030_v24, 0.0004427343  ;;  %v1474_v31 = vadd.f32 1.0, %v9512_v11 }
 0x155   : > { %v1528_v38 = vsel %vm760_vm6, %v8927_v1, %v1176_v18  ;;  %v1023_v2 = vsel %vm9546_vm11, %v1020_v36, %v1017_v44  ;;  %7348 = vlog2.f32 %v1465_v63  ;;  %v1471_v1 = vand.u32 2147483647, %v9506_v29 }
 0x156   : > { %v7347_v46 = vpop.eup %7346  ;;  %1939 = vmatpush.msra.mxu3 %v1528_v38  ;;  %v1511_v3 = vsel %vm743_vm9, %v14242_v14, %v1023_v2  ;;  %6821 = vmatmul.msk.f32.gmra.mxu1 %vm1593_vm4, %v9554_v16  ;;  %v1469_v4 = vadd.f32 1.0, %v1468_v37  ;;  %v1029_v7 = vmul.f32 %v8969_v40, %v1028_v62  ;;  %v923_v57 = vmul.f32 1.442695, %v732_v39  ;;  %v9600_v14 = vld [vmem:[%s13959_s1 + $0x38] sm:$0xff] }
 0x157   : > { %1911 = vmatpush.msra.mxu2 %v1511_v3  ;;  %v1026_v0 = vmul.f32 0.6931472, %v7347_v46  ;;  %v1477_v56 = vmul.f32 -0.5, %v9512_v11  ;;  %7350 = vlog2.f32 %v1474_v31  ;;  %v1480_v51 = vand.u32 2147483647, %v9512_v11 }
 0x158   : > { %6823 = vmatmul.msk.f32.vlgmr.msra.gmra.mxu2 %vm1593_vm4, %v9458_v52  ;;  %v1321_v55 = vadd.f32 1.0, %v9315_v20  ;;  %v1324_v10 = vmul.f32 -0.5, %v9315_v20  ;;  %7352 = vpow2.f32 %v921_v54  ;;  %vm794_vm14 = vcmp.gt.f32.partialorder %v9414_v53, 20.0 }
 0x159   : > { %v1032_v48 = vsel %vm9568_vm13, %v1029_v7, %v1026_v0  ;;  %v1478_v40 = vadd.f32 1.0, %v1477_v56  ;;  %v1470_v23 = vmul.f32 %v9506_v29, %v1469_v4  ;;  %vm9593_vm15 = vcmp.lt.f32.partialorder %v1471_v1, 0.0004427343 }
 0x15a   : > { %v1512_v6 = vsel %vm744_vm10, %v14243_v60, %v1032_v48  ;;  %7354 = vlog2.f32 %v1321_v55  ;;  %vm777_vm1 = vcmp.gt.f32.partialorder %v9252_v30, 20.0  ;;  %v1325_v61 = vadd.f32 1.0, %v1324_v10  ;;  %v8158_v48 = vld [vmem:[%s8331_s28] sm:$0xff] }
 0x15b   : > { %v7349_v22 = vpop.eup %7348  ;;  %1940 = vmatpush.msra.mxu3 %v1512_v6  ;;  %6818 = vmatmul.msk.f32.gmra.mxu0 %vm1593_vm4, %v9600_v14  ;;  %v1330_v29 = vadd.f32 1.0, %v9324_v59  ;;  %v1333_v13 = vmul.f32 -0.5, %v9324_v59  ;;  %7356 = vpow2.f32 %v923_v57  ;;  %vm9609_vm2 = vcmp.lt.f32.partialorder %v1480_v51, 0.0004427343 }
 0x15c   : > { %6827 = vmatmul.msk.f32.vlgmr.msra.gmra.mxu3 %vm1593_vm4, %v9458_v52  ;;  %v1467_v9 = vmul.f32 0.6931472, %v7349_v22  ;;  %v1327_v60 = vand.u32 2147483647, %v9315_v20  ;;  %v1479_v24 = vmul.f32 %v9512_v11, %v1478_v40  ;;  %v1177_v26 = vadd.f32 1.0, %v9291_v12  ;;  %v14258_v40 = vld [vmem:[#allocation9_spill] sm:$0xff] }
 0x15d   : > { %7358 = vlog2.f32 %v1330_v29  ;;  %v1180_v34 = vmul.f32 -0.5, %v9291_v12  ;;  %v7351_v5 = vpop.eup %7350  ;;  %vm778_vm3 = vcmp.gt.f32.partialorder %v9254_v19, 20.0  ;;  %v1334_v41 = vadd.f32 1.0, %v1333_v13 }
 0x15e   : > { %6822 = vmatmul.msk.f32.gmra.mxu1 %vm1593_vm4, %v9600_v14  ;;  %v1473_v36 = vsel %vm9593_vm15, %v1470_v23, %v1467_v9  ;;  %v1336_v44 = vand.u32 2147483647, %v9324_v59  ;;  %v9623_v62 = vpop.eup %7352  ;;  %v1476_v39 = vmul.f32 0.6931472, %v7351_v5  ;;  %v1326_v63 = vmul.f32 %v9315_v20, %v1325_v61 }
 0x15f   : > { %v1561_v11 = vsel %vm793_vm12, %v9407_v17, %v1473_v36  ;;  %7360 = vlog2.f32 %v1177_v26  ;;  %vm9631_vm5 = vcmp.lt.f32.partialorder %v1327_v60, 0.0004427343  ;;  %v1181_v37 = vadd.f32 1.0, %v1180_v34 }
 0x160   : > { %v7355_v18 = vpop.eup %7354  ;;  %6824 = vmatmul.msk.f32.gmra.mxu2 %vm1593_vm4, %v9502_v25  ;;  %1966 = vmatpush.msrb.mxu0 %v1561_v11  ;;  %v1186_v38 = vadd.f32 1.0, %v9298_v35  ;;  %v1189_v2 = vmul.f32 -0.5, %v9298_v35  ;;  %v1482_v17 = vsel %vm9609_vm2, %v1479_v24, %v1476_v39  ;;  %vm761_vm6 = vcmp.gt.f32.partialorder %v9195_v15, 20.0  ;;  %v14261_v11 = vld [vmem:[#allocation13_spill] sm:$0xff] }
 0x161   : > { %v1323_v42 = vmul.f32 0.6931472, %v7355_v18  ;;  %v1183_v20 = vand.u32 2147483647, %v9291_v12  ;;  %v9641_v46 = vpop.eup %7356  ;;  %v1562_v3 = vsel %vm794_vm14, %v9414_v53, %v1482_v17  ;;  %v1335_v4 = vmul.f32 %v9324_v59, %v1334_v41 }
 0x162   : > { %vm9647_vm7 = vcmp.lt.f32.partialorder %v1336_v44, 0.0004427343  ;;  %7362 = vlog2.f32 %v1186_v38  ;;  %1995 = vmatpush.msrb.mxu1 %v1562_v3  ;;  %v1190_v7 = vadd.f32 1.0, %v1189_v2  ;;  %v1033_v57 = vadd.f32 1.0, %v9280_v50 }
 0x163   : > { %v7359_v31 = vpop.eup %7358  ;;  %v1329_v0 = vsel %vm9631_vm5, %v1326_v63, %v1323_v42  ;;  %v1036_v56 = vmul.f32 -0.5, %v9280_v50  ;;  %v1182_v51 = vmul.f32 %v9291_v12, %v1181_v37  ;;  %v1192_v55 = vand.u32 2147483647, %v9298_v35  ;;  %v14264_v37 = vld [vmem:[#allocation14_spill] sm:$0xff] }
 0x164   : > { %6828 = vmatmul.msk.f32.gmra.mxu3 %vm1593_vm4, %v9502_v25  ;;  %v1545_v59 = vsel %vm777_vm1, %v9252_v30, %v1329_v0  ;;  %v1332_v53 = vmul.f32 0.6931472, %v7359_v31  ;;  %vm9662_vm8 = vcmp.lt.f32.partialorder %v1183_v20, 0.0004427343  ;;  %vm762_vm9 = vcmp.gt.f32.partialorder %v9197_v45, 20.0 }
 0x165   : > { %v7361_v10 = vpop.eup %7360  ;;  %1967 = vmatpush.msrb.mxu0 %v1545_v59  ;;  %7364 = vlog2.f32 %v1033_v57  ;;  %v1042_v6 = vadd.f32 1.0, %v14258_v40  ;;  %v1037_v21 = vadd.f32 1.0, %v1036_v56  ;;  %v1045_v12 = vmul.f32 -0.5, %v14258_v40 }
 0x166   : > { %v1338_v23 = vsel %vm9647_vm7, %v1335_v4, %v1332_v53  ;;  %v1179_v30 = vmul.f32 0.6931472, %v7361_v10  ;;  %v1191_v61 = vmul.f32 %v9298_v35, %v1190_v7  ;;  %v1039_v29 = vand.u32 2147483647, %v9280_v50 }
 0x167   : > { %v1546_v22 = vsel %vm778_vm3, %v9254_v19, %v1338_v23  ;;  %7366 = vlog2.f32 %v1042_v6  ;;  %vm9680_vm10 = vcmp.lt.f32.partialorder %v1192_v55, 0.0004427343  ;;  %v1046_v60 = vadd.f32 1.0, %v1045_v12  ;;  %v14269_v6 = vld [vmem:[#allocation15_spill] sm:$0xff] }
 0x168   : > { %v7363_v13 = vpop.eup %7362  ;;  %6825 = vmatmul.msk.f32.gmra.mxu2 %vm1593_vm4, %v9554_v16  ;;  %1996 = vmatpush.msrb.mxu1 %v1546_v22  ;;  %v1185_v9 = vsel %vm9662_vm8, %v1182_v51, %v1179_v30  ;;  %v1483_v19 = vadd.f32 1.0, %v9623_v62  ;;  %v1048_v26 = vand.u32 2147483647, %v14258_v40  ;;  %v1486_v34 = vmul.f32 -0.5, %v9623_v62 }
 0x169   : > { %v1529_v35 = vsel %vm761_vm6, %v9195_v15, %v1185_v9  ;;  %v1188_v24 = vmul.f32 0.6931472, %v7363_v13  ;;  %v827_v5 = vmul.f32 1.442695, %v684_v47  ;;  %v1038_v36 = vmul.f32 %v9280_v50, %v1037_v21  ;;  %v8159_v21 = vld [vmem:[%s8331_s28 + $0x20] sm:$0xff]  ;;  %v8160_v13 = vld [vmem:[%s8331_s28 + $0x8] sm:$0xff] }
 0x16a   : > { %1968 = vmatpush.msrb.mxu0 %v1529_v35  ;;  %7368 = vlog2.f32 %v1483_v19  ;;  %vm745_vm11 = vcmp.gt.f32.partialorder %v14261_v11, 20.0  ;;  %vm9696_vm12 = vcmp.lt.f32.partialorder %v1039_v29, 0.0004427343  ;;  %v1492_v39 = vadd.f32 1.0, %v9641_v46 }
 0x16b   : > { %v7365_v41 = vpop.eup %7364  ;;  %v1194_v44 = vsel %vm9680_vm10, %v1191_v61, %v1188_v24  ;;  %v1047_v63 = vmul.f32 %v14258_v40, %v1046_v60  ;;  %v1495_v18 = vmul.f32 -0.5, %v9641_v46  ;;  %vm746_vm13 = vcmp.gt.f32.partialorder %v14264_v37, 20.0  ;;  %v8161_v60 = vld [vmem:[%s8331_s28 + $0x28] sm:$0xff]  ;;  %v14270_v24 = vld [vmem:[#allocation16_spill] sm:$0xff] }
 0x16c   : > { %6829 = vmatmul.msk.f32.gmra.mxu3 %vm1593_vm4, %v9554_v16  ;;  %v1530_v50 = vsel %vm762_vm9, %v9197_v45, %v1194_v44  ;;  %v1035_v47 = vmul.f32 0.6931472, %v7365_v41  ;;  %vm9709_vm14 = vcmp.lt.f32.partialorder %v1048_v26, 0.0004427343  ;;  %v1487_v2 = vadd.f32 1.0, %v1486_v34 }
 0x16d   : > { %v7367_v54 = vpop.eup %7366  ;;  %1997 = vmatpush.msrb.mxu1 %v1530_v50  ;;  %7370 = vlog2.f32 %v1492_v39  ;;  %v1489_v45 = vand.u32 2147483647, %v9623_v62  ;;  %v1339_v20 = vadd.f32 1.0, %v9422_v8  ;;  %v1342_v4 = vmul.f32 -0.5, %v9422_v8  ;;  %v14271_v50 = vld [vmem:[#allocation6_spill] sm:$0xff] }
 0x16e   : > { %v1041_v17 = vsel %vm9696_vm12, %v1038_v36, %v1035_v47  ;;  %v1044_v42 = vmul.f32 0.6931472, %v7367_v54  ;;  %7372 = vpow2.f32 %v827_v5  ;;  %v1496_v0 = vadd.f32 1.0, %v1495_v18  ;;  %v9771_v18 = vpop.f32.mrf.mxu0  ;;  %v9773_v54 = vpop.f32.mrf.mxu1 }
 0x16f   : > { %v1513_v3 = vsel %vm745_vm11, %v14261_v11, %v1041_v17  ;;  %7374 = vlog2.f32 %v1339_v20  ;;  %v1348_v7 = vadd.f32 1.0, %v9425_v58  ;;  %v1488_v59 = vmul.f32 %v9623_v62, %v1487_v2 }
 0x170   : > { %v7369_v1 = vpop.eup %7368  ;;  %6826 = vmatmul.msk.f32.gmra.mxu2 %vm1593_vm4, %v9600_v14  ;;  %1969 = vmatpush.msrb.mxu0 %v1513_v3  ;;  %v1050_v31 = vsel %vm9709_vm14, %v1047_v63, %v1044_v42  ;;  %v1498_v53 = vand.u32 2147483647, %v9641_v46  ;;  %vm9733_vm15 = vcmp.lt.f32.partialorder %v1489_v45, 0.0004427343  ;;  %v1343_v55 = vadd.f32 1.0, %v1342_v4  ;;  %v14272_v4 = vld [vmem:[#allocation7_spill] sm:$0xff] }
 0x171   : > { %v1514_v57 = vsel %vm746_vm13, %v14264_v37, %v1050_v31  ;;  %v1485_v56 = vmul.f32 0.6931472, %v7369_v1  ;;  %6831 = vmatmul.msk.f32.vlgmr.msrb.gmra.mxu0 %vm1593_vm4, %v9458_v52  ;;  %7376 = vlog2.f32 %v1348_v7  ;;  %v1351_v10 = vmul.f32 -0.5, %v9425_v58 }
 0x172   : > { %1998 = vmatpush.msrb.mxu1 %v1514_v57  ;;  %3001 = vmatpush.msra.mxu0 %v8158_v48  ;;  %vm795_vm1 = vcmp.gt.f32.partialorder %v9520_v49, 20.0  ;;  %v1195_v23 = vadd.f32 1.0, %v14269_v6  ;;  %v1198_v30 = vmul.f32 -0.5, %v14269_v6  ;;  %v1497_v61 = vmul.f32 %v9641_v46, %v1496_v0 }
 0x173   : > { %v7371_v40 = vpop.eup %7370  ;;  %v1491_v62 = vsel %vm9733_vm15, %v1488_v59, %v1485_v56  ;;  %6835 = vmatmul.msk.f32.vlgmr.msrb.gmra.mxu1 %vm1593_vm4, %v9458_v52  ;;  %v1345_v29 = vand.u32 2147483647, %v9422_v8  ;;  %vm796_vm2 = vcmp.gt.f32.partialorder %v9537_v32, 20.0  ;;  %vm1499_vm3 = vcmp.lt.f32.partialorder %v1498_v53, 0.0004427343  ;;  %v14273_v59 = vld [vmem:[#allocation5_spill] sm:$0xff] }
 0x174   : > { %3117 = vmatpush.msrb.mxu0 %v8159_v21  ;;  %6830 = vmatmul.msk.f32.gmra.mxu3 %vm1593_vm4, %v9600_v14  ;;  %v1563_v12 = vsel %vm795_vm1, %v9520_v49, %v1491_v62  ;;  %v1494_v22 = vmul.f32 0.6931472, %v7371_v40  ;;  %v9753_v9 = vpop.eup %7372  ;;  %v1352_v28 = vadd.f32 1.0, %v1351_v10  ;;  %7378 = vlog2.f32 %v1195_v23 }
 0x175   : > { %3030 = vmatpush.msra.mxu1 %v8160_v13  ;;  %2024 = vmatpush.msrb.mxu2 %v1563_v12  ;;  %v7375_v19 = vpop.eup %7374  ;;  %v1344_v49 = vmul.f32 %v9422_v8, %v1343_v55  ;;  %v1354_v46 = vand.u32 2147483647, %v9425_v58  ;;  %v1204_v26 = vadd.f32 1.0, %v14270_v24  ;;  %v1199_v36 = vadd.f32 1.0, %v1198_v30  ;;  %v14274_v30 = vld [vmem:[#allocation8_spill] sm:$0xff] }
 0x176   : > { %v1500_v35 = vsel %vm1499_vm3, %v1497_v61, %v1494_v22  ;;  %v1341_v5 = vmul.f32 0.6931472, %v7375_v19  ;;  %v1207_v41 = vmul.f32 -0.5, %v14270_v24  ;;  %vm779_vm5 = vcmp.gt.f32.partialorder %v9335_v33, 20.0  ;;  %v1626_v62 = vpop.f32.mrf.mxu0  ;;  %v8163_v19 = vld [vmem:[%s8331_s28 + $0x30] sm:$0xff] }
 0x177   : > { %3146 = vmatpush.msrb.mxu1 %v8161_v60  ;;  %v1564_v34 = vsel %vm796_vm2, %v9537_v32, %v1500_v35  ;;  %v7377_v44 = vpop.eup %7376  ;;  %vm1346_vm6 = vcmp.lt.f32.partialorder %v1345_v29, 0.0004427343  ;;  %v1201_v11 = vand.u32 2147483647, %v14269_v6  ;;  %7380 = vlog2.f32 %v1204_v26  ;;  %v1710_v60 = vpop.f32.mrf.mxu3  ;;  %v8164_v35 = vld [vmem:[%s8331_s28 + $0x18] sm:$0xff] }
 0x178   : > { %2053 = vmatpush.msrb.mxu3 %v1564_v34  ;;  %v1347_v15 = vsel %vm1346_vm6, %v1344_v49, %v1341_v5  ;;  %v1350_v8 = vmul.f32 0.6931472, %v7377_v44  ;;  %v1353_v39 = vmul.f32 %v9425_v58, %v1352_v28  ;;  %v1051_v47 = vadd.f32 1.0, %v14271_v50  ;;  %v8162_v28 = vld [vmem:[%s8331_s28 + $0x10] sm:$0xff]  ;;  %v8166_v5 = vld [vmem:[%s8331_s28 + $0x40] sm:$0xff]  ;;  %v8167_v44 = vld [vmem:[%s8331_s28 + $0x48] sm:$0xff] }
 0x179   : > { %6832 = vmatmul.msk.f32.gmra.mxu0 %vm1593_vm4, %v9502_v25  ;;  %v1547_v32 = vsel %vm779_vm5, %v9335_v33, %v1347_v15  ;;  %vm780_vm7 = vcmp.gt.f32.partialorder %v9343_v43, 20.0  ;;  %vm1355_vm8 = vcmp.lt.f32.partialorder %v1354_v46, 0.0004427343  ;;  %v1054_v63 = vmul.f32 -0.5, %v14271_v50  ;;  %v8165_v46 = vld [vmem:[%s8331_s28 + $0x38] sm:$0xff]  ;;  %v9837_v15 = vld [vmem:[%s13959_s1 + $0x68] sm:$0xff] }
 0x17a   : > { %v7379_v37 = vpop.eup %7378  ;;  %2025 = vmatpush.msrb.mxu2 %v1547_v32  ;;  %v1356_v38 = vsel %vm1355_vm8, %v1353_v39, %v1350_v8  ;;  %v1200_v58 = vmul.f32 %v14269_v6, %v1199_v36  ;;  %v1208_v2 = vadd.f32 1.0, %v1207_v41  ;;  %7382 = vlog2.f32 %v1051_v47  ;;  %v1655_v6 = vpop.f32.mrf.mxu1 }
 0x17b   : > { %6836 = vmatmul.msk.f32.gmra.mxu1 %vm1593_vm4, %v9502_v25  ;;  %v1548_v33 = vsel %vm780_vm7, %v9343_v43, %v1356_v38  ;;  %v1197_v17 = vmul.f32 0.6931472, %v7379_v37  ;;  %v1210_v42 = vand.u32 2147483647, %v14270_v24  ;;  %v1060_v45 = vadd.f32 1.0, %v9753_v9 }
 0x17c   : > { %2054 = vmatpush.msrb.mxu3 %v1548_v33  ;;  %vm1202_vm9 = vcmp.lt.f32.partialorder %v1201_v11, 0.0004427343  ;;  %v1063_v20 = vmul.f32 -0.5, %v9753_v9  ;;  %vm763_vm10 = vcmp.gt.f32.partialorder %v14272_v4, 20.0  ;;  %v1055_v31 = vadd.f32 1.0, %v1054_v63  ;;  %v9832_v11 = vpop.permute.xlu0 %1590 }
 0x17d   : > { %v7381_v3 = vpop.eup %7380  ;;  %v1203_v1 = vsel %vm1202_vm9, %v1200_v58, %v1197_v17  ;;  %7384 = vlog2.f32 %v1060_v45  ;;  %v1209_v43 = vmul.f32 %v14270_v24, %v1208_v2  ;;  %v1057_v57 = vand.u32 2147483647, %v14271_v50  ;;  %v9822_v24 = vpop.permute.xlu1 %1580 }
 0x17e   : > { %v1531_v0 = vsel %vm763_vm10, %v14272_v4, %v1203_v1  ;;  %v1206_v7 = vmul.f32 0.6931472, %v7381_v3  ;;  %vm1211_vm11 = vcmp.lt.f32.partialorder %v1210_v42, 0.0004427343  ;;  %vm764_vm12 = vcmp.gt.f32.partialorder %v14273_v59, 20.0  ;;  %v9873_v42 = vld [vmem:[%s13959_s1 + $0x70] sm:$0xff] }
 0x17f   : > { %2026 = vmatpush.msrb.mxu2 %v1531_v0  ;;  %v1064_v51 = vadd.f32 1.0, %v1063_v20  ;;  %v1056_v48 = vmul.f32 %v14271_v50, %v1055_v31  ;;  %v1066_v40 = vand.u32 2147483647, %v9753_v9  ;;  %vm1058_vm13 = vcmp.lt.f32.partialorder %v1057_v57, 0.0004427343  ;;  %v1713_v34 = vpop.f32.mrf.mxu3 }
 0x180   : > { %v7383_v56 = vpop.eup %7382  ;;  %v1212_v53 = vsel %vm1211_vm11, %v1209_v43, %v1206_v7  ;;  %vm747_vm14 = vcmp.gt.f32.partialorder %v14274_v30, 20.0  ;;  %vm748_vm1 = vcmp.gt.f32.partialorder %v9189_v27, 20.0  ;;  %v9847_v39 = vadd.f32 %v1655_v6, %v9822_v24 }
 0x181   : > { %6833 = vmatmul.msk.f32.gmra.mxu0 %vm1593_vm4, %v9554_v16  ;;  %v1532_v55 = vsel %vm764_vm12, %v14273_v59, %v1212_v53  ;;  %v1053_v10 = vmul.f32 0.6931472, %v7383_v56  ;;  %v1065_v61 = vmul.f32 %v9753_v9, %v1064_v51  ;;  %vm1067_vm15 = vcmp.lt.f32.partialorder %v1066_v40, 0.0004427343  ;;  %v1681_v9 = vpop.f32.mrf.mxu2 }
 0x182   : > { %2055 = vmatpush.msrb.mxu3 %v1532_v55  ;;  %v9812_v49 = vpop.f32.mrf.mxu1  ;;  %v9867_v33 = vadd.f32 %v1713_v34, %v9822_v24  ;;  %vm2151_vm8 = vcmp.gt.f32.partialorder %v9847_v39, 20.0 }
 0x183   : > { %6837 = vmatmul.msk.f32.gmra.mxu1 %vm1593_vm4, %v9554_v16  ;;  %v7385_v23 = vpop.eup %7384  ;;  %v1059_v21 = vsel %vm1058_vm13, %v1056_v48, %v1053_v10 }
 0x184   : > { %v1515_v12 = vsel %vm747_vm14, %v14274_v30, %v1059_v21  ;;  %v1062_v22 = vmul.f32 0.6931472, %v7385_v23  ;;  %v9881_v4 = vpop.permute.xlu0 %1585  ;;  %v2089_v7 = vmin.f32 %v9867_v33, 20.0 }
 0x185   : > { %2027 = vmatpush.msrb.mxu2 %v1515_v12  ;;  %v9844_v8 = vpop.permute.xlu1 %1575 }
 0x186   : > { %v1068_v29 = vsel %vm1067_vm15, %v1065_v61, %v1062_v22  ;;  %6839 = vmatmul.msk.f32.vlgmr.msrb.gmra.mxu2 %vm1593_vm4, %v9458_v52  ;;  %v9854_v50 = vadd.f32 %v1681_v9, %v9844_v8  ;;  %v9859_v63 = vadd.f32 %v1710_v60, %v9844_v8  ;;  %v2236_v23 = vmul.f32 1.442695, %v2089_v7  ;;  %v9915_v22 = vld [vmem:[%s13959_s1 + $0x78] sm:$0xff] }
 0x187   : > { %v1516_v13 = vsel %vm748_vm1, %v9189_v27, %v1068_v29  ;;  %3059 = vmatpush.msra.mxu2 %v8162_v28  ;;  %v9810_v27 = vpop.f32.mrf.mxu0  ;;  %v1716_v32 = vpop.f32.mrf.mxu3 }
 0x188   : > { %2056 = vmatpush.msrb.mxu3 %v1516_v13  ;;  %v2072_v17 = vmin.f32 %v9854_v50, 20.0  ;;  %v2073_v20 = vmin.f32 %v9859_v63, 20.0  ;;  %v9897_v59 = vadd.f32 %v1716_v32, %v9881_v4 }
 0x189   : > { %6834 = vmatmul.msk.f32.gmra.mxu0 %vm1593_vm4, %v9600_v14  ;;  %6843 = vmatmul.msk.f32.vlgmr.msrb.gmra.mxu3 %vm1593_vm4, %v9458_v52  ;;  %v9818_v52 = vld [vmem:[%s13959_s1 + $0x60] sm:$0xff]  ;;  %v1684_v26 = vpop.f32.mrf.mxu2 }
 0x18a   : > { %3175 = vmatpush.msrb.mxu2 %v8163_v19  ;;  %3088 = vmatpush.msra.mxu3 %v8164_v35  ;;  %v1661_v41 = vpop.f32.mrf.mxu1  ;;  %v9863_v2 = vadd.f32 %v1684_v26, %v9822_v24  ;;  %v2202_v57 = vmul.f32 1.442695, %v2072_v17  ;;  %v2204_v55 = vmul.f32 1.442695, %v2073_v20  ;;  %v2105_v61 = vmin.f32 %v9897_v59, 20.0  ;;  %v8168_v19 = vld [vmem:[%s8331_s28 + $0x50] sm:$0xff] }
 0x18b   : > { %6838 = vmatmul.msk.f32.gmra.mxu1 %vm1593_vm4, %v9600_v14  ;;  %v9885_v31 = vadd.f32 %v1661_v41, %v9832_v11  ;;  %v8169_v17 = vld [vmem:[%s8331_s28 + $0x58] sm:$0xff]  ;;  %v9951_v20 = vadd.f32 %v9771_v18, %v9844_v8 }
 0x18c   : > { %3204 = vmatpush.msrb.mxu3 %v8165_v46  ;;  %v2088_v1 = vmin.f32 %v9863_v2, 20.0  ;;  %v2268_v34 = vmul.f32 1.442695, %v2105_v61 }
 0x18d   : > { %vm2183_vm5 = vcmp.gt.f32.partialorder %v9885_v31, 20.0  ;;  %vm2134_vm1 = vcmp.gt.f32.partialorder %v9951_v20, 20.0 }
 0x18e   : > { %6840 = vmatmul.msk.f32.gmra.mxu2 %vm1593_vm4, %v9502_v25 }
 0x18f   : > { %v1632_v36 = vpop.f32.mrf.mxu0  ;;  %v1719_v51 = vpop.f32.mrf.mxu3 }
 0x190   : > { %v9876_v45 = vadd.f32 %v1632_v36, %v9832_v11  ;;  %v9919_v29 = vadd.f32 %v1719_v51, %v9832_v11 }
 0x191   : > { %6847 = vmatmul.msk.f32.vlgmr.msra.gmra.mxu0 %vm192_vm0, %v9818_v52  ;;  %6844 = vmatmul.msk.f32.gmra.mxu3 %vm1593_vm4, %v9502_v25  ;;  %v9842_v25 = vadd.f32 %v1626_v62, %v9822_v24  ;;  %v1687_v47 = vpop.f32.mrf.mxu2  ;;  %v2234_v62 = vmul.f32 1.442695, %v2088_v1 }
 0x192   : > { %3233 = vmatpush.msra.mxu0 %v8166_v5  ;;  %v1768_v38 = vpop.f32.mrf.mxu1  ;;  %v9891_v43 = vadd.f32 %v1687_v47, %v9881_v4  ;;  %v2118_v56 = vmin.f32 %v9876_v45, 20.0  ;;  %v2121_v5 = vmin.f32 %v9919_v29, 20.0  ;;  %vm2182_vm2 = vcmp.gt.f32.partialorder %v9876_v45, 20.0 }
 0x193   : > { %6851 = vmatmul.msk.f32.vlgmr.msra.gmra.mxu1 %vm192_vm0, %v9818_v52  ;;  %v2086_v58 = vmin.f32 %v9842_v25, 20.0  ;;  %v9906_v6 = vadd.f32 %v1768_v38, %v9844_v8  ;;  %vm2150_vm7 = vcmp.gt.f32.partialorder %v9842_v25, 20.0 }
 0x194   : > { %3262 = vmatpush.msra.mxu1 %v8167_v44  ;;  %v2104_v30 = vmin.f32 %v9891_v43, 20.0  ;;  %v2294_v12 = vmul.f32 1.442695, %v2118_v56  ;;  %v2300_v18 = vmul.f32 1.442695, %v2121_v5 }
 0x195   : > { %v2230_v3 = vmul.f32 1.442695, %v2086_v58  ;;  %14276 = vst [vmem:[#allocation11_spill] sm:$0xff] %v9906_v6  ;;  %v2075_v60 = vmin.f32 %v9906_v6, 20.0 }
 0x196   : > { %6841 = vmatmul.msk.f32.gmra.mxu2 %vm1593_vm4, %v9554_v16  ;;  %v2266_v35 = vmul.f32 1.442695, %v2104_v30 }
 0x197   : > { %v1739_v37 = vpop.f32.mrf.mxu0  ;;  %7386 = vpow2.f32 %v2230_v3  ;;  %v2208_v1 = vmul.f32 1.442695, %v2075_v60 }
 0x198   : > { %v9902_v10 = vadd.f32 %v1739_v37, %v9844_v8 }
 0x199   : > { %6848 = vmatmul.msk.f32.gmra.mxu0 %vm192_vm0, %v9837_v15  ;;  %6845 = vmatmul.msk.f32.gmra.mxu3 %vm1593_vm4, %v9554_v16  ;;  %v2087_v16 = vmin.f32 %v9847_v39, 20.0  ;;  %v1690_v53 = vpop.f32.mrf.mxu2 }
 0x19a   : > { %14275 = vst [vmem:[#allocation10_spill] sm:$0xff] %v9902_v10  ;;  %v1771_v40 = vpop.f32.mrf.mxu1  ;;  %v9910_v21 = vadd.f32 %v1690_v53, %v9832_v11  ;;  %v2074_v13 = vmin.f32 %v9902_v10, 20.0  ;;  %v2070_v53 = vmin.f32 %v9951_v20, 20.0 }
 0x19b   : > { %6852 = vmatmul.msk.f32.gmra.mxu1 %vm192_vm0, %v9837_v15  ;;  %v2232_v0 = vmul.f32 1.442695, %v2087_v16  ;;  %v9938_v36 = vadd.f32 %v1771_v40, %v9822_v24 }
 0x19c   : > { %v2120_v46 = vmin.f32 %v9910_v21, 20.0  ;;  %v2206_v32 = vmul.f32 1.442695, %v2074_v13  ;;  %v2198_v61 = vmul.f32 1.442695, %v2070_v53 }
 0x19d   : > { %7388 = vpow2.f32 %v2232_v0  ;;  %v9932_v26 = vpop.eup %7386  ;;  %14278 = vst [vmem:[#allocation9_spill] sm:$0xff] %v9938_v36  ;;  %v9957_v0 = vadd.f32 %v9773_v54, %v9844_v8 }
 0x19e   : > { %6842 = vmatmul.msk.f32.gmra.mxu2 %vm1593_vm4, %v9600_v14  ;;  %7390 = vpow2.f32 %v2202_v57  ;;  %v2298_v57 = vmul.f32 1.442695, %v2120_v46  ;;  %v8170_v46 = vld [vmem:[%s8331_s28 + $0x60] sm:$0xff] }
 0x19f   : > { %v1742_v48 = vpop.f32.mrf.mxu0  ;;  %7392 = vpow2.f32 %v2204_v55  ;;  %v2091_v55 = vmin.f32 %v9938_v36, 20.0  ;;  %v2071_v30 = vmin.f32 %v9957_v0, 20.0 }
 0x1a0   : > { %v9925_v28 = vadd.f32 %v1742_v48, %v9822_v24  ;;  %7394 = vpow2.f32 %v2234_v62 }
 0x1a1   : > { %6849 = vmatmul.msk.f32.gmra.mxu0 %vm192_vm0, %v9873_v42  ;;  %6846 = vmatmul.msk.f32.gmra.mxu3 %vm1593_vm4, %v9600_v14  ;;  %v2119_v14 = vmin.f32 %v9885_v31, 20.0  ;;  %7396 = vpow2.f32 %v2236_v23  ;;  %v2200_v53 = vmul.f32 1.442695, %v2071_v30 }
 0x1a2   : > { %14277 = vst [vmem:[#allocation12_spill] sm:$0xff] %v9925_v28  ;;  %7398 = vpow2.f32 %v2294_v12  ;;  %v2090_v37 = vmin.f32 %v9925_v28, 20.0  ;;  %v1774_v16 = vpop.f32.mrf.mxu1 }
 0x1a3   : > { %6853 = vmatmul.msk.f32.gmra.mxu1 %vm192_vm0, %v9873_v42  ;;  %v2296_v9 = vmul.f32 1.442695, %v2119_v14  ;;  %v9940_v47 = vpop.eup %7388  ;;  %v9979_v23 = vadd.f32 %v1774_v16, %v9881_v4 }
 0x1a4   : > { %v1797_v41 = vpop.f32.mrf.mxu2  ;;  %v9953_v3 = vpop.eup %7390  ;;  %v2238_v40 = vmul.f32 1.442695, %v2090_v37 }
 0x1a5   : > { %v9946_v38 = vadd.f32 %v1797_v41, %v9844_v8  ;;  %7400 = vpow2.f32 %v2296_v9  ;;  %v9959_v7 = vpop.eup %7392  ;;  %14282 = vst [vmem:[#allocation16_spill] sm:$0xff] %v9979_v23  ;;  %v2240_v9 = vmul.f32 1.442695, %v2091_v55  ;;  %v2107_v16 = vmin.f32 %v9979_v23, 20.0 }
 0x1a6   : > { %6855 = vmatmul.msk.f32.vlgmr.msra.gmra.mxu2 %vm192_vm0, %v9818_v52  ;;  %7402 = vpow2.f32 %v2266_v35  ;;  %v9965_v51 = vpop.eup %7394 }
 0x1a7   : > { %3291 = vmatpush.msra.mxu2 %v8168_v19  ;;  %14279 = vst [vmem:[#allocation13_spill] sm:$0xff] %v9946_v38  ;;  %v1745_v58 = vpop.f32.mrf.mxu0  ;;  %7404 = vpow2.f32 %v2268_v34  ;;  %v9971_v54 = vpop.eup %7396  ;;  %v2076_v62 = vmin.f32 %v9946_v38, 20.0 }
 0x1a8   : > { %v1826_v44 = vpop.f32.mrf.mxu3  ;;  %v9969_v48 = vadd.f32 %v1745_v58, %v9881_v4  ;;  %7406 = vpow2.f32 %v2206_v32  ;;  %v9976_v14 = vpop.eup %7398 }
 0x1a9   : > { %6850 = vmatmul.msk.f32.gmra.mxu0 %vm192_vm0, %v9915_v22  ;;  %6859 = vmatmul.msk.f32.vlgmr.msra.gmra.mxu3 %vm192_vm0, %v9818_v52  ;;  %v9962_v56 = vadd.f32 %v1826_v44, %v9844_v8  ;;  %7408 = vpow2.f32 %v2208_v1  ;;  %v2210_v5 = vmul.f32 1.442695, %v2076_v62  ;;  %v2761_v6 = vmul.f32 -0.5, %v9976_v14 }
 0x1aa   : > { %3320 = vmatpush.msra.mxu3 %v8169_v17  ;;  %14281 = vst [vmem:[#allocation15_spill] sm:$0xff] %v9969_v48  ;;  %7410 = vpow2.f32 %v2298_v57  ;;  %v2106_v60 = vmin.f32 %v9969_v48, 20.0  ;;  %v1777_v37 = vpop.f32.mrf.mxu1  ;;  %v8171_v57 = vld [vmem:[%s8331_s28 + $0x68] sm:$0xff] }
 0x1ab   : > { %6854 = vmatmul.msk.f32.gmra.mxu1 %vm192_vm0, %v9915_v22  ;;  %14280 = vst [vmem:[#allocation14_spill] sm:$0xff] %v9962_v56  ;;  %v2077_v12 = vmin.f32 %v9962_v56, 20.0  ;;  %v9985_v13 = vpop.eup %7400  ;;  %7412 = vpow2.f32 %v2300_v18  ;;  %v10008_v1 = vadd.f32 %v1777_v37, %v9832_v11 }
 0x1ac   : > { %v1800_v19 = vpop.f32.mrf.mxu2  ;;  %v9991_v34 = vpop.eup %7402  ;;  %7414 = vpow2.f32 %v2238_v40  ;;  %v2767_v36 = vadd.f32 1.0, %v9985_v13 }
 0x1ad   : > { %v9996_v41 = vadd.f32 %v1800_v19, %v9822_v24  ;;  %v10001_v58 = vpop.eup %7404  ;;  %14286 = vst [vmem:[#allocation8_spill] sm:$0xff] %v10008_v1  ;;  %v2212_v55 = vmul.f32 1.442695, %v2077_v12  ;;  %7416 = vpow2.f32 %v2198_v61  ;;  %v2270_v19 = vmul.f32 1.442695, %v2106_v60 }
 0x1ae   : > { %6856 = vmatmul.msk.f32.gmra.mxu2 %vm192_vm0, %v9837_v15  ;;  %v10011_v18 = vpop.eup %7406  ;;  %7418 = vpow2.f32 %v2240_v9  ;;  %v2272_v12 = vmul.f32 1.442695, %v2107_v16  ;;  %v2123_v37 = vmin.f32 %v10008_v1, 20.0  ;;  %v8172_v1 = vld [vmem:[%s8331_s28 + $0x70] sm:$0xff] }
 0x1af   : > { %14283 = vst [vmem:[#allocation6_spill] sm:$0xff] %v9996_v41  ;;  %v1748_v32 = vpop.f32.mrf.mxu0  ;;  %v2092_v40 = vmin.f32 %v9996_v41, 20.0  ;;  %v10014_v62 = vpop.eup %7408  ;;  %7420 = vpow2.f32 %v2210_v5 }
 0x1b0   : > { %v1829_v35 = vpop.f32.mrf.mxu3  ;;  %v10005_v17 = vadd.f32 %v1748_v32, %v9832_v11  ;;  %14287 = vst [vmem:[#allocation17_spill] sm:$0xff] %v10011_v18  ;;  %7422 = vpow2.f32 %v2200_v53 }
 0x1b1   : > { %6863 = vmatmul.msk.f32.vlgmr.msrb.gmra.mxu0 %vm192_vm0, %v9818_v52  ;;  %6860 = vmatmul.msk.f32.gmra.mxu3 %vm192_vm0, %v9837_v15  ;;  %v9999_v44 = vadd.f32 %v1829_v35, %v9822_v24  ;;  %14288 = vst [vmem:[#allocation18_spill] sm:$0xff] %v10014_v62  ;;  %7424 = vpow2.f32 %v2212_v55  ;;  %v2242_v9 = vmul.f32 1.442695, %v2092_v40  ;;  %v10043_v55 = vadd.f32 %v9810_v27, %v9881_v4 }
 0x1b2   : > { %3349 = vmatpush.msrb.mxu0 %v8170_v46  ;;  %14285 = vst [vmem:[#allocation5_spill] sm:$0xff] %v10005_v17  ;;  %v10017_v46 = vpop.eup %7410  ;;  %v2122_v30 = vmin.f32 %v10005_v17, 20.0  ;;  %7426 = vpow2.f32 %v2270_v19  ;;  %v2304_v19 = vmul.f32 1.442695, %v2123_v37 }
 0x1b3   : > { %6867 = vmatmul.msk.f32.vlgmr.msrb.gmra.mxu1 %vm192_vm0, %v9818_v52  ;;  %14284 = vst [vmem:[#allocation7_spill] sm:$0xff] %v9999_v44  ;;  %v2093_v35 = vmin.f32 %v9999_v44, 20.0  ;;  %v10022_v32 = vpop.eup %7412  ;;  %7428 = vpow2.f32 %v2272_v12  ;;  %v2102_v41 = vmin.f32 %v10043_v55, 20.0  ;;  %vm2166_vm9 = vcmp.gt.f32.partialorder %v10043_v55, 20.0 }
 0x1b4   : > { %3378 = vmatpush.msrb.mxu1 %v8171_v57  ;;  %v10025_v61 = vpop.eup %7414  ;;  %v1803_v5 = vpop.f32.mrf.mxu2  ;;  %v2302_v16 = vmul.f32 1.442695, %v2122_v30  ;;  %7430 = vpow2.f32 %v2242_v9 }
 0x1b5   : > { %14289 = vst [vmem:[#allocation19_spill] sm:$0xff] %v10025_v61  ;;  %v2244_v60 = vmul.f32 1.442695, %v2093_v35  ;;  %v10031_v56 = vpop.eup %7416  ;;  %v10036_v53 = vadd.f32 %v1803_v5, %v9881_v4  ;;  %v10049_v35 = vadd.f32 %v9812_v49, %v9881_v4  ;;  %v2262_v10 = vmul.f32 1.442695, %v2102_v41 }
 0x1b6   : > { %6857 = vmatmul.msk.f32.gmra.mxu2 %vm192_vm0, %v9873_v42  ;;  %v10045_v40 = vpop.eup %7418  ;;  %v2326_v5 = vadd.f32 1.0, %v10031_v56  ;;  %v2770_v41 = vmul.f32 -0.5, %v9985_v13  ;;  %v2470_v61 = vadd.f32 1.0, %v9932_v26 }
 0x1b7   : > { %14290 = vst [vmem:[#allocation20_spill] sm:$0xff] %v10036_v53  ;;  %v10051_v44 = vpop.eup %7420  ;;  %v2108_v30 = vmin.f32 %v10036_v53, 20.0  ;;  %7432 = vpow2.f32 %v2244_v60  ;;  %v2103_v37 = vmin.f32 %v10049_v35, 20.0  ;;  %v2329_v53 = vmul.f32 -0.5, %v10031_v56 }
 0x1b8   : > { %v1832_v57 = vpop.f32.mrf.mxu3  ;;  %14292 = vst [vmem:[#allocation22_spill] sm:$0xff] %v10045_v40  ;;  %7434 = vpow2.f32 %v2302_v16  ;;  %vm2167_vm10 = vcmp.gt.f32.partialorder %v10049_v35, 20.0 }
 0x1b9   : > { %6864 = vmatmul.msk.f32.gmra.mxu0 %vm192_vm0, %v9837_v15  ;;  %6861 = vmatmul.msk.f32.gmra.mxu3 %vm192_vm0, %v9873_v42  ;;  %v10039_v38 = vadd.f32 %v1832_v57, %v9881_v4  ;;  %14293 = vst [vmem:[#allocation23_spill] sm:$0xff] %v10051_v44  ;;  %v10055_v57 = vpop.eup %7422  ;;  %v2274_v49 = vmul.f32 1.442695, %v2108_v30  ;;  %7436 = vpow2.f32 %v2304_v19  ;;  %v2264_v40 = vmul.f32 1.442695, %v2103_v37 }
 0x1ba   : > { %v10059_v12 = vpop.eup %7424  ;;  %7438 = vlog2.f32 %v2326_v5  ;;  %v2338_v16 = vmul.f32 -0.5, %v10055_v57  ;;  %v10098_v48 = vadd.f32 1.0, %v2329_v53 }
 0x1bb   : > { %6868 = vmatmul.msk.f32.gmra.mxu1 %vm192_vm0, %v9837_v15  ;;  %14291 = vst [vmem:[#allocation21_spill] sm:$0xff] %v10039_v38  ;;  %v2109_v27 = vmin.f32 %v10039_v38, 20.0  ;;  %v10064_v9 = vpop.eup %7426  ;;  %v2758_v38 = vadd.f32 1.0, %v9976_v14  ;;  %7440 = vpow2.f32 %v2274_v49  ;;  %v2762_v49 = vadd.f32 1.0, %v2761_v6 }
 0x1bc   : > { %14294 = vst [vmem:[#allocation24_spill] sm:$0xff] %v10059_v12  ;;  %v10073_v12 = vadd.f32 1.0, %v10055_v57  ;;  %v10076_v30 = vpop.eup %7428  ;;  %v1806_v18 = vpop.f32.mrf.mxu2  ;;  %v2764_v6 = vand.u32 2147483647, %v9976_v14 }
 0x1bd   : > { %14295 = vst [vmem:[#allocation25_spill] sm:$0xff] %v10064_v9  ;;  %v2276_v19 = vmul.f32 1.442695, %v2109_v27  ;;  %v10082_v62 = vpop.eup %7430  ;;  %7442 = vlog2.f32 %v2758_v38  ;;  %v10104_v38 = vadd.f32 %v1806_v18, %v9832_v11 }
 0x1be   : > { %6858 = vmatmul.msk.f32.gmra.mxu2 %vm192_vm0, %v9915_v22  ;;  %14297 = vst [vmem:[#allocation27_spill] sm:$0xff] %v10076_v30  ;;  %v10088_v28 = vpop.eup %7432  ;;  %7444 = vlog2.f32 %v2767_v36  ;;  %v2771_v36 = vadd.f32 1.0, %v2770_v41  ;;  %vm10132_vm3 = vcmp.lt.f32.partialorder %v2764_v6, 0.0004427343 }
 0x1bf   : > { %14298 = vst [vmem:[#allocation28_spill] sm:$0xff] %v10082_v62  ;;  %v10095_v23 = vpop.eup %7434  ;;  %7446 = vpow2.f32 %v2276_v19  ;;  %v2124_v18 = vmin.f32 %v10104_v38, 20.0  ;;  %v2763_v19 = vmul.f32 %v9976_v14, %v2762_v49 }
 0x1c0   : > { %v1855_v44 = vpop.f32.mrf.mxu0  ;;  %14299 = vst [vmem:[#allocation29_spill] sm:$0xff] %v10088_v28  ;;  %v1835_v62 = vpop.f32.mrf.mxu3  ;;  %7448 = vpow2.f32 %v2262_v10 }
 0x1c1   : > { %6865 = vmatmul.msk.f32.gmra.mxu0 %vm192_vm0, %v9873_v42  ;;  %v10070_v60 = vadd.f32 %v1855_v44, %v9844_v8  ;;  %6862 = vmatmul.msk.f32.gmra.mxu3 %vm192_vm0, %v9915_v22  ;;  %v10100_v37 = vpop.eup %7436  ;;  %14302 = vst [vmem:[#allocation32_spill] sm:$0xff] %v10104_v38  ;;  %v10113_v53 = vadd.f32 %v1835_v62, %v9832_v11  ;;  %7450 = vpow2.f32 %v2264_v40  ;;  %v10124_v62 = vadd.f32 1.0, %v2338_v16  ;;  %v8173_v16 = vld [vmem:[%s8331_s28 + $0x78] sm:$0xff]  ;;  %s162_s28 = sand.u32 1, %s8243_s13  }
 0x1c2   : > { %14301 = vst [vmem:[#allocation31_spill] sm:$0xff] %v10100_v37  ;;  %v10107_v9 = vpop.eup %7438  ;;  %v2306_v10 = vmul.f32 1.442695, %v2124_v18  ;;  %v2772_v40 = vmul.f32 %v9985_v13, %v2771_v36  ;;  %s6716_s8 = sshll.u32 %s162_s28, 8  ;;  %s6635_s16 = scalar_lea.sflag [#allocation3], %s162_s28 }
 0x1c3   : > { %14296 = vst [vmem:[#allocation26_spill] sm:$0xff] %v10070_v60  ;;  %6869 = vmatmul.msk.f32.gmra.mxu1 %vm192_vm0, %v9873_v42  ;;  %v2078_v44 = vmin.f32 %v10070_v60, 20.0  ;;  %v1884_v5 = vpop.f32.mrf.mxu1  ;;  %v2479_v60 = vadd.f32 1.0, %v9940_v47  ;;  %v10118_v30 = vpop.eup %7440  ;;  %s13878_s9 = scalar_lea.vmem [#allocation2], %s6716_s8 }
 0x1c4   : > { %v10091_v27 = vadd.f32 %v1884_v5, %v9844_v8  ;;  %14303 = vst [vmem:[#allocation33_spill] sm:$0xff] %v10113_v53  ;;  %v7443_v41 = vpop.eup %7442  ;;  %s6647_s20 = sshll.u32 %s13878_s9, 4  ;;  %s6648_s20 = int_to_ptr.vmem [resolvable:$true] %s6647_s20 }
 0x1c5   : > { %v2214_v28 = vmul.f32 1.442695, %v2078_v44  ;;  %14304 = vst [vmem:[#allocation34_spill] sm:$0xff] %v10118_v30  ;;  %v7445_v30 = vpop.eup %7444  ;;  %v2760_v38 = vmul.f32 0.6931472, %v7443_v41 }
 0x1c6   : > { %14300 = vst [vmem:[#allocation30_spill] sm:$0xff] %v10091_v27  ;;  %v2079_v5 = vmin.f32 %v10091_v27, 20.0  ;;  %6871 = vmatmul.msk.f32.vlgmr.msrb.gmra.mxu2 %vm192_vm0, %v9818_v52  ;;  %v2773_v27 = vand.u32 2147483647, %v9985_v13  ;;  %v10143_v18 = vpop.eup %7446  ;;  %v2476_v41 = vand.u32 2147483647, %v9932_v26 }
 0x1c7   : > { %3407 = vmatpush.msrb.mxu2 %v8172_v1  ;;  %7452 = vpow2.f32 %v2214_v28  ;;  %v2125_v1 = vmin.f32 %v10113_v53, 20.0  ;;  %v2769_v28 = vmul.f32 0.6931472, %v7445_v30  ;;  %14309 = vst [vmem:[#allocation35_spill] sm:$0xff] %v10143_v18  ;;  %v2482_v13 = vmul.f32 -0.5, %v9940_v47 }
 0x1c8   : > { %v2216_v44 = vmul.f32 1.442695, %v2079_v5  ;;  %v2473_v5 = vmul.f32 -0.5, %v9932_v26  ;;  %7454 = vlog2.f32 %v2470_v61  ;;  %vm10139_vm6 = vcmp.lt.f32.partialorder %v2773_v27, 0.0004427343  ;;  %v7449_v61 = vpop.eup %7448  ;;  %v1858_v14 = vpop.f32.mrf.mxu0 }
 0x1c9   : > { %6866 = vmatmul.msk.f32.gmra.mxu0 %vm192_vm0, %v9915_v22  ;;  %6875 = vmatmul.msk.f32.vlgmr.msrb.gmra.mxu3 %vm192_vm0, %v9818_v52  ;;  %v2766_v36 = vsel %vm10132_vm3, %v2763_v19, %v2760_v38  ;;  %v2485_v30 = vand.u32 2147483647, %v9940_v47  ;;  %v7451_v27 = vpop.eup %7450  ;;  %v2620_v18 = vand.u32 2147483647, %v7449_v61  ;;  %vm10166_vm11 = vcmp.lt.f32.partialorder %v2476_v41, 0.0004427343 }
 0x1ca   : > { %3436 = vmatpush.msrb.mxu3 %v8173_v16  ;;  %7456 = vpow2.f32 %v2216_v44  ;;  %v2474_v6 = vadd.f32 1.0, %v2473_v5  ;;  %v2308_v44 = vmul.f32 1.442695, %v2125_v1  ;;  %v2614_v5 = vadd.f32 1.0, %v7449_v61 }
 0x1cb   : > { %6870 = vmatmul.msk.f32.gmra.mxu1 %vm192_vm0, %v9915_v22  ;;  %7458 = vpow2.f32 %v2306_v10  ;;  %v2775_v10 = vsel %vm10139_vm6, %v2772_v40, %v2769_v28  ;;  %v2617_v16 = vmul.f32 -0.5, %v7449_v61  ;;  %v2623_v38 = vadd.f32 1.0, %v7451_v27  ;;  %v1887_v37 = vpop.f32.mrf.mxu1 }
 0x1cc   : > { %7460 = vlog2.f32 %v2479_v60  ;;  %v2626_v60 = vmul.f32 -0.5, %v7451_v27  ;;  %v2629_v19 = vand.u32 2147483647, %v7451_v27  ;;  %v2483_v1 = vadd.f32 1.0, %v2482_v13 }
 0x1cd   : > { %v10156_v53 = vpop.eup %7452  ;;  %v2950_v40 = vsel %vm2182_vm2, %v9876_v45, %v2766_v36  ;;  %7462 = vlog2.f32 %v2614_v5  ;;  %v2475_v28 = vmul.f32 %v9932_v26, %v2474_v6  ;;  %v2618_v45 = vadd.f32 1.0, %v2617_v16 }
 0x1ce   : > { %6872 = vmatmul.msk.f32.gmra.mxu2 %vm192_vm0, %v9837_v15  ;;  %14310 = vst [vmem:[#allocation36_spill] sm:$0xff] %v10156_v53  ;;  %v7455_v17 = vpop.eup %7454  ;;  %v2951_v53 = vsel %vm2183_vm5, %v9885_v31, %v2775_v10  ;;  %7464 = vlog2.f32 %v2623_v38  ;;  %v2627_v26 = vadd.f32 1.0, %v2626_v60  ;;  %v2484_v6 = vmul.f32 %v9940_v47, %v2483_v1 }
 0x1cf   : > { %v2472_v36 = vmul.f32 0.6931472, %v7455_v17  ;;  %v10183_v41 = vadd.f32 %v1858_v14, %v9822_v24  ;;  %7466 = vpow2.f32 %v2308_v44  ;;  %vm10188_vm12 = vcmp.lt.f32.partialorder %v2620_v18, 0.0004427343 }
 0x1d0   : > { %v10170_v13 = vpop.eup %7456  ;;  %vm10192_vm13 = vcmp.lt.f32.partialorder %v2629_v19, 0.0004427343  ;;  %vm10196_vm14 = vcmp.lt.f32.partialorder %v2485_v30, 0.0004427343  ;;  %v2619_v18 = vmul.f32 %v7449_v61, %v2618_v45  ;;  %v2328_v44 = vmul.f32 0.6931472, %v10107_v9 }
 0x1d1   : > { %6879 = vmatmul.msk.f32.vlgmr.msra.gmra.mxu0 %vm192_vm0, %v9818_v52  ;;  %14313 = vst [vmem:[#allocation37_spill] sm:$0xff] %v10170_v13  ;;  %6876 = vmatmul.msk.f32.gmra.mxu3 %vm192_vm0, %v9837_v15  ;;  %v10177_v5 = vpop.eup %7458  ;;  %v2478_v47 = vsel %vm10166_vm11, %v2475_v28, %v2472_v36  ;;  %v2094_v16 = vmin.f32 %v10183_v41, 20.0  ;;  %v2331_v38 = vmul.f32 %v10031_v56, %v10098_v48  ;;  %7468 = vlog2.f32 %v10073_v12 }
 0x1d2   : > { %3474 = vmatpush.msra.mxu0 %v2950_v40  ;;  %v10186_v40 = vadd.f32 %v1887_v37, %v9822_v24  ;;  %v7461_v13 = vpop.eup %7460  ;;  %v2628_v60 = vmul.f32 %v7451_v27, %v2627_v26  ;;  %v14320_v14 = vand.u32 2147483647, %v10031_v56  ;;  %v2918_v48 = vsel %vm2150_vm7, %v9842_v25, %v2478_v47 }
 0x1d3   : > { %6883 = vmatmul.msk.f32.vlgmr.msra.gmra.mxu1 %vm192_vm0, %v9818_v52  ;;  %v2481_v37 = vmul.f32 0.6931472, %v7461_v13  ;;  %v7463_v30 = vpop.eup %7462  ;;  %v2246_v1 = vmul.f32 1.442695, %v2094_v16  ;;  %v2341_v12 = vand.u32 2147483647, %v10055_v57  ;;  %v2340_v56 = vmul.f32 %v10055_v57, %v10124_v62 }
 0x1d4   : > { %3503 = vmatpush.msra.mxu1 %v2951_v53  ;;  %v2095_v53 = vmin.f32 %v10186_v40, 20.0  ;;  %vm10214_vm15 = vcmp.lt.f32.partialorder %v14320_v14, 0.0004427343  ;;  %v7465_v9 = vpop.eup %7464  ;;  %v2616_v28 = vmul.f32 0.6931472, %v7463_v30  ;;  %vm2135_vm2 = vcmp.gt.f32.partialorder %v9957_v0, 20.0 }
 0x1d5   : > { %v2487_v19 = vsel %vm10196_vm14, %v2484_v6, %v2481_v37  ;;  %v2625_v27 = vmul.f32 0.6931472, %v7465_v9  ;;  %v10228_v13 = vpop.eup %7466  ;;  %v2334_v36 = vsel %vm10214_vm15, %v2331_v38, %v2328_v44  ;;  %v2776_v57 = vadd.f32 1.0, %v10017_v46 }
 0x1d6   : > { %6873 = vmatmul.msk.f32.gmra.mxu2 %vm192_vm0, %v9873_v42  ;;  %v2248_v49 = vmul.f32 1.442695, %v2095_v53  ;;  %v2622_v25 = vsel %vm10188_vm12, %v2619_v18, %v2616_v28  ;;  %v2919_v45 = vsel %vm2151_vm8, %v9847_v39, %v2487_v19  ;;  %7470 = vpow2.f32 %v2246_v1 }
 0x1d7   : > { %v2934_v62 = vsel %vm2166_vm9, %v10043_v55, %v2622_v25  ;;  %v2631_v26 = vsel %vm10192_vm13, %v2628_v60, %v2625_v27  ;;  %v2779_v6 = vmul.f32 -0.5, %v10017_v46  ;;  %v7469_v31 = vpop.eup %7468  ;;  %vm10251_vm3 = vcmp.lt.f32.partialorder %v2341_v12, 0.0004427343  ;;  %v10294_v27 = vpop.f32.mrf.mxu0 }
 0x1d8   : > { %3475 = vmatpush.msra.mxu0 %v2934_v62  ;;  %v2935_v39 = vsel %vm2167_vm10, %v10049_v35, %v2631_v26  ;;  %7472 = vlog2.f32 %v2776_v57  ;;  %v2785_v55 = vadd.f32 1.0, %v10022_v32  ;;  %v2337_v17 = vmul.f32 0.6931472, %v7469_v31 }
 0x1d9   : > { %6880 = vmatmul.msk.f32.gmra.mxu0 %vm192_vm0, %v9837_v15  ;;  %6877 = vmatmul.msk.f32.gmra.mxu3 %vm192_vm0, %v9873_v42  ;;  %v2780_v47 = vadd.f32 1.0, %v2779_v6  ;;  %v2782_v37 = vand.u32 2147483647, %v10017_v46  ;;  %v2788_v16 = vmul.f32 -0.5, %v10022_v32  ;;  %v2902_v53 = vsel %vm2134_vm1, %v9951_v20, %v2334_v36 }
 0x1da   : > { %3504 = vmatpush.msra.mxu1 %v2935_v39  ;;  %3476 = vmatpush.msra.mxu0 %v2918_v48  ;;  %7474 = vlog2.f32 %v2785_v55  ;;  %v2791_v35 = vand.u32 2147483647, %v10022_v32  ;;  %v2632_v18 = vadd.f32 1.0, %v9991_v34  ;;  %v2343_v44 = vsel %vm10251_vm3, %v2340_v56, %v2337_v17 }
 0x1db   : > { %6884 = vmatmul.msk.f32.gmra.mxu1 %vm192_vm0, %v9837_v15  ;;  %7476 = vpow2.f32 %v2248_v49  ;;  %vm2184_vm5 = vcmp.gt.f32.partialorder %v9910_v21, 20.0  ;;  %v2635_v38 = vmul.f32 -0.5, %v9991_v34  ;;  %v1913_v30 = vpop.f32.mrf.mxu2  ;;  %v2903_v20 = vsel %vm2135_vm2, %v9957_v0, %v2343_v44 }
 0x1dc   : > { %3505 = vmatpush.msra.mxu1 %v2919_v45  ;;  %3477 = vmatpush.msra.mxu0 %v2902_v53  ;;  %vm2185_vm6 = vcmp.gt.f32.partialorder %v9919_v29, 20.0  ;;  %v2789_v60 = vadd.f32 1.0, %v2788_v16  ;;  %7478 = vlog2.f32 %v2632_v18  ;;  %v10273_v1 = vpop.eup %7470  ;;  %v2781_v14 = vmul.f32 %v10017_v46, %v2780_v47  ;;  %v10300_v45 = vpop.f32.mrf.mxu1 }
 0x1dd   : > { %vm10276_vm7 = vcmp.lt.f32.partialorder %v2782_v37, 0.0004427343  ;;  %vm2168_vm8 = vcmp.gt.f32.partialorder %v9891_v43, 20.0  ;;  %v2641_v9 = vadd.f32 1.0, %v10001_v58  ;;  %vm10286_vm9 = vcmp.lt.f32.partialorder %v2791_v35, 0.0004427343 }
 0x1de   : > { %6874 = vmatmul.msk.f32.gmra.mxu2 %vm192_vm0, %v9915_v22  ;;  %3506 = vmatpush.msra.mxu1 %v2903_v20  ;;  %v7473_v0 = vpop.eup %7472  ;;  %v2636_v46 = vadd.f32 1.0, %v2635_v38  ;;  %v2644_v48 = vmul.f32 -0.5, %v10001_v58  ;;  %v10292_v12 = vadd.f32 %v1913_v30, %v9844_v8  ;;  %v2638_v56 = vand.u32 2147483647, %v9991_v34 }
 0x1df   : > { %v1942_v19 = vpop.f32.mrf.mxu3  ;;  %v2778_v49 = vmul.f32 0.6931472, %v7473_v0  ;;  %7480 = vlog2.f32 %v2641_v9  ;;  %v2790_v57 = vmul.f32 %v10022_v32, %v2789_v60  ;;  %v2647_v26 = vand.u32 2147483647, %v10001_v58 }
 0x1e0   : > { %v10298_v25 = vadd.f32 %v1942_v19, %v9844_v8  ;;  %v7475_v36 = vpop.eup %7474  ;;  %v2645_v62 = vadd.f32 1.0, %v2644_v48  ;;  %v2080_v6 = vmin.f32 %v10292_v12, 20.0  ;;  %v2488_v17 = vadd.f32 1.0, %v9965_v51 }
 0x1e1   : > { %6881 = vmatmul.msk.f32.gmra.mxu0 %vm192_vm0, %v9873_v42  ;;  %6878 = vmatmul.msk.f32.gmra.mxu3 %vm192_vm0, %v9915_v22  ;;  %v10307_v31 = vpop.eup %7476  ;;  %v2784_v39 = vsel %vm10276_vm7, %v2781_v14, %v2778_v49  ;;  %v2787_v10 = vmul.f32 0.6931472, %v7475_v36  ;;  %v2637_v37 = vmul.f32 %v9991_v34, %v2636_v46  ;;  %vm2169_vm10 = vcmp.gt.f32.partialorder %v9897_v59, 20.0  ;;  %v1864_v49 = vpop.f32.mrf.mxu0 }
 0x1e2   : > { %v2081_v55 = vmin.f32 %v10298_v25, 20.0  ;;  %v7479_v47 = vpop.eup %7478  ;;  %v2218_v32 = vmul.f32 1.442695, %v2080_v6  ;;  %v2491_v16 = vmul.f32 -0.5, %v9965_v51  ;;  %v2952_v53 = vsel %vm2184_vm5, %v9910_v21, %v2784_v39 }
 0x1e3   : > { %6885 = vmatmul.msk.f32.gmra.mxu1 %vm192_vm0, %v9873_v42  ;;  %v2793_v35 = vsel %vm10286_vm9, %v2790_v57, %v2787_v10  ;;  %v2634_v18 = vmul.f32 0.6931472, %v7479_v47  ;;  %7482 = vlog2.f32 %v2488_v17  ;;  %vm2639_vm11 = vcmp.lt.f32.partialorder %v2638_v56, 0.0004427343  ;;  %v1916_v14 = vpop.f32.mrf.mxu2 }
 0x1e4   : > { %v2646_v34 = vmul.f32 %v10001_v58, %v2645_v62  ;;  %vm10324_vm12 = vcmp.lt.f32.partialorder %v2647_v26, 0.0004427343  ;;  %v2220_v38 = vmul.f32 1.442695, %v2081_v55  ;;  %v2953_v20 = vsel %vm2185_vm6, %v9919_v29, %v2793_v35  ;;  %v1893_v26 = vpop.f32.mrf.mxu1 }
 0x1e5   : > { %v7481_v30 = vpop.eup %7480  ;;  %v2640_v21 = vsel %vm2639_vm11, %v2637_v37, %v2634_v18  ;;  %v2492_v60 = vadd.f32 1.0, %v2491_v16  ;;  %v2497_v19 = vadd.f32 1.0, %v9971_v54  ;;  %7484 = vpow2.f32 %v2218_v32 }
 0x1e6   : > { %6887 = vmatmul.msk.f32.vlgmr.msra.gmra.mxu2 %vm192_vm0, %v9818_v52  ;;  %v2936_v58 = vsel %vm2168_vm8, %v9891_v43, %v2640_v21  ;;  %v2643_v61 = vmul.f32 0.6931472, %v7481_v30  ;;  %v2494_v9 = vand.u32 2147483647, %v9965_v51  ;;  %vm2152_vm13 = vcmp.gt.f32.partialorder %v9863_v2, 20.0 }
 0x1e7   : > { %3532 = vmatpush.msra.mxu2 %v2952_v53  ;;  %v1945_v29 = vpop.f32.mrf.mxu3  ;;  %7486 = vlog2.f32 %v2497_v19  ;;  %v2500_v0 = vmul.f32 -0.5, %v9971_v54  ;;  %v2503_v28 = vand.u32 2147483647, %v9971_v54  ;;  %v2344_v43 = vadd.f32 1.0, %v9953_v3 }
 0x1e8   : > { %v2649_v46 = vsel %vm10324_vm12, %v2646_v34, %v2643_v61  ;;  %7488 = vpow2.f32 %v2220_v38  ;;  %v2347_v48 = vmul.f32 -0.5, %v9953_v3  ;;  %v2493_v57 = vmul.f32 %v9965_v51, %v2492_v60 }
 0x1e9   : > { %6882 = vmatmul.msk.f32.gmra.mxu0 %vm192_vm0, %v9915_v22  ;;  %6891 = vmatmul.msk.f32.vlgmr.msra.gmra.mxu3 %vm192_vm0, %v9818_v52  ;;  %v7483_v56 = vpop.eup %7482  ;;  %v2937_v36 = vsel %vm2169_vm10, %v9897_v59, %v2649_v46  ;;  %vm2153_vm14 = vcmp.gt.f32.partialorder %v9867_v33, 20.0  ;;  %v2501_v62 = vadd.f32 1.0, %v2500_v0  ;;  %vm10354_vm15 = vcmp.lt.f32.partialorder %v2494_v9, 0.0004427343 }
 0x1ea   : > { %3561 = vmatpush.msra.mxu3 %v2953_v20  ;;  %3533 = vmatpush.msra.mxu2 %v2936_v58  ;;  %v2490_v6 = vmul.f32 0.6931472, %v7483_v56  ;;  %7490 = vlog2.f32 %v2344_v43  ;;  %v2348_v10 = vadd.f32 1.0, %v2347_v48  ;;  %vm10358_vm1 = vcmp.lt.f32.partialorder %v2503_v28, 0.0004427343 }
 0x1eb   : > { %6886 = vmatmul.msk.f32.gmra.mxu1 %vm192_vm0, %v9915_v22  ;;  %vm2136_vm2 = vcmp.gt.f32.partialorder %v9854_v50, 20.0  ;;  %v2350_v59 = vand.u32 2147483647, %v9953_v3  ;;  %v2353_v51 = vadd.f32 1.0, %v9959_v7  ;;  %v2356_v17 = vmul.f32 -0.5, %v9959_v7  ;;  %v10368_v47 = vpop.eup %7484  ;;  %v1919_v60 = vpop.f32.mrf.mxu2 }
 0x1ec   : > { %3562 = vmatpush.msra.mxu3 %v2937_v36  ;;  %v2496_v37 = vsel %vm10354_vm15, %v2493_v57, %v2490_v6  ;;  %v2502_v32 = vmul.f32 %v9971_v54, %v2501_v62  ;;  %v10375_v16 = vadd.f32 %v10294_v27, %v9881_v4  ;;  %v10379_v53 = vadd.f32 %v10300_v45, %v9881_v4 }
 0x1ed   : > { %v7487_v35 = vpop.eup %7486  ;;  %v2920_v18 = vsel %vm2152_vm13, %v9863_v2, %v2496_v37  ;;  %v2349_v34 = vmul.f32 %v9953_v3, %v2348_v10  ;;  %7492 = vlog2.f32 %v2353_v51  ;;  %v2359_v44 = vand.u32 2147483647, %v9959_v7 }
 0x1ee   : > { %6888 = vmatmul.msk.f32.gmra.mxu2 %vm192_vm0, %v9837_v15  ;;  %v10388_v54 = vpop.eup %7488  ;;  %v2499_v27 = vmul.f32 0.6931472, %v7487_v35  ;;  %v2110_v45 = vmin.f32 %v10375_v16, 20.0  ;;  %v2111_v38 = vmin.f32 %v10379_v53, 20.0  ;;  %v10395_v2 = vadd.f32 %v1916_v14, %v9822_v24 }
 0x1ef   : > { %3534 = vmatpush.msra.mxu2 %v2920_v18  ;;  %v2357_v3 = vadd.f32 1.0, %v2356_v17  ;;  %v10398_v30 = vadd.f32 %v1945_v29, %v9822_v24  ;;  %v10401_v20 = vadd.f32 %v1864_v49, %v9832_v11  ;;  %v10404_v21 = vadd.f32 %v1893_v26, %v9832_v11  ;;  %v1948_v9 = vpop.f32.mrf.mxu3  ;;  %v10440_v17 = vld [vmem:[%s13959_s1 + $0x68] sm:$0xff] }
 0x1f0   : > { %v7491_v19 = vpop.eup %7490  ;;  %v2505_v58 = vsel %vm10358_vm1, %v2502_v32, %v2499_v27  ;;  %v2278_v61 = vmul.f32 1.442695, %v2110_v45  ;;  %v2096_v14 = vmin.f32 %v10395_v2, 20.0  ;;  %vm2351_vm3 = vcmp.lt.f32.partialorder %v2350_v59, 0.0004427343  ;;  %v2000_v62 = vpop.f32.mrf.mxu1 }
 0x1f1   : > { %6895 = vmatmul.msk.f32.vlgmr.msrb.gmra.mxu0 %vm192_vm0, %v9818_v52  ;;  %6892 = vmatmul.msk.f32.gmra.mxu3 %vm192_vm0, %v9837_v15  ;;  %v2280_v15 = vmul.f32 1.442695, %v2111_v38  ;;  %v2921_v29 = vsel %vm2153_vm14, %v9867_v33, %v2505_v58  ;;  %v2346_v0 = vmul.f32 0.6931472, %v7491_v19  ;;  %v2097_v28 = vmin.f32 %v10398_v30, 20.0 }
 0x1f2   : > { %v2126_v46 = vmin.f32 %v10401_v20, 20.0  ;;  %3563 = vmatpush.msra.mxu3 %v2921_v29  ;;  %vm10416_vm5 = vcmp.lt.f32.partialorder %v2359_v44, 0.0004427343  ;;  %v2250_v48 = vmul.f32 1.442695, %v2096_v14  ;;  %v10421_v49 = vadd.f32 %v1919_v60, %v9881_v4  ;;  %v14339_v60 = vld [vmem:[#allocation5_spill] sm:$0xff] }
 0x1f3   : > { %6899 = vmatmul.msk.f32.vlgmr.msrb.gmra.mxu1 %vm192_vm0, %v9818_v52  ;;  %v1971_v52 = vpop.f32.mrf.mxu0  ;;  %v7493_v56 = vpop.eup %7492  ;;  %v2352_v36 = vsel %vm2351_vm3, %v2349_v34, %v2346_v0  ;;  %7494 = vpow2.f32 %v2278_v61  ;;  %v2252_v33 = vmul.f32 1.442695, %v2097_v28  ;;  %v2127_v57 = vmin.f32 %v10404_v21, 20.0  ;;  %v14340_v61 = vld [vmem:[#allocation31_spill] sm:$0xff] }
 0x1f4   : > { %v2904_v26 = vsel %vm2136_vm2, %v9854_v50, %v2352_v36  ;;  %v2355_v6 = vmul.f32 0.6931472, %v7493_v56  ;;  %v2358_v39 = vmul.f32 %v9959_v7, %v2357_v3  ;;  %7496 = vpow2.f32 %v2280_v15  ;;  %v1922_v38 = vpop.f32.mrf.mxu2  ;;  %v10485_v36 = vld [vmem:[%s13959_s1 + $0x70] sm:$0xff] }
 0x1f5   : > { %3535 = vmatpush.msra.mxu2 %v2904_v26  ;;  %v2310_v10 = vmul.f32 1.442695, %v2126_v46  ;;  %v2112_v55 = vmin.f32 %v10421_v49, 20.0  ;;  %v10432_v59 = vadd.f32 %v1948_v9, %v9881_v4  ;;  %v10435_v51 = vadd.f32 %v1971_v52, %v9844_v8 }
 0x1f6   : > { %6889 = vmatmul.msk.f32.gmra.mxu2 %vm192_vm0, %v9873_v42  ;;  %vm2137_vm6 = vcmp.gt.f32.partialorder %v9859_v63, 20.0  ;;  %v2361_v50 = vsel %vm10416_vm5, %v2358_v39, %v2355_v6  ;;  %7498 = vpow2.f32 %v2250_v48  ;;  %v10450_v7 = vadd.f32 %v2000_v62, %v9844_v8  ;;  %v14341_v48 = vld [vmem:[#allocation8_spill] sm:$0xff]  ;;  %v14342_v62 = vld [vmem:[#allocation25_spill] sm:$0xff] }
 0x1f7   : > { %14337 = vst [vmem:[#allocation38_spill] sm:$0xff] %v10435_v51  ;;  %v2905_v37 = vsel %vm2137_vm6, %v9859_v63, %v2361_v50  ;;  %7500 = vpow2.f32 %v2252_v33  ;;  %v2312_v32 = vmul.f32 1.442695, %v2127_v57  ;;  %v2113_v35 = vmin.f32 %v10432_v59, 20.0  ;;  %v1951_v19 = vpop.f32.mrf.mxu3 }
 0x1f8   : > { %14338 = vst [vmem:[#allocation39_spill] sm:$0xff] %v10450_v7  ;;  %3564 = vmatpush.msra.mxu3 %v2905_v37  ;;  %v2282_v18 = vmul.f32 1.442695, %v2112_v55  ;;  %v2082_v34 = vmin.f32 %v10435_v51, 20.0  ;;  %v2794_v44 = vadd.f32 1.0, %v10095_v23  ;;  %v2797_v27 = vmul.f32 -0.5, %v10095_v23 }
 0x1f9   : > { %6896 = vmatmul.msk.f32.gmra.mxu0 %vm192_vm0, %v10440_v17  ;;  %6893 = vmatmul.msk.f32.gmra.mxu3 %vm192_vm0, %v9873_v42  ;;  %v10459_v42 = vpop.eup %7494  ;;  %7502 = vpow2.f32 %v2310_v10  ;;  %v2284_v45 = vmul.f32 1.442695, %v2113_v35  ;;  %v2083_v63 = vmin.f32 %v10450_v7, 20.0  ;;  %vm2186_vm7 = vcmp.gt.f32.partialorder %v14339_v60, 20.0  ;;  %v14345_v35 = vld [vmem:[#allocation27_spill] sm:$0xff] }
 0x1fa   : > { %v10462_v3 = vpop.eup %7496  ;;  %7504 = vlog2.f32 %v2794_v44  ;;  %v2798_v58 = vadd.f32 1.0, %v2797_v27  ;;  %v2803_v15 = vadd.f32 1.0, %v14340_v61  ;;  %v2806_v14 = vmul.f32 -0.5, %v14340_v61 }
 0x1fb   : > { %6900 = vmatmul.msk.f32.gmra.mxu1 %vm192_vm0, %v10440_v17  ;;  %7506 = vpow2.f32 %v2312_v32  ;;  %v2222_v29 = vmul.f32 1.442695, %v2082_v34  ;;  %v2800_v0 = vand.u32 2147483647, %v10095_v23  ;;  %v10473_v28 = vadd.f32 %v1922_v38, %v9832_v11  ;;  %v14353_v32 = vld [vmem:[#allocation12_spill] sm:$0xff] }
 0x1fc   : > { %v10469_v9 = vpop.eup %7498  ;;  %7508 = vpow2.f32 %v2282_v18  ;;  %v2224_v43 = vmul.f32 1.442695, %v2083_v63  ;;  %vm2187_vm8 = vcmp.gt.f32.partialorder %v14341_v48, 20.0  ;;  %v2809_v52 = vand.u32 2147483647, %v14340_v61 }
 0x1fd   : > { %v10475_v46 = vpop.eup %7500  ;;  %7510 = vpow2.f32 %v2284_v45  ;;  %v10480_v56 = vadd.f32 %v1951_v19, %v9832_v11  ;;  %v2807_v33 = vadd.f32 1.0, %v2806_v14  ;;  %v2128_v57 = vmin.f32 %v10473_v28, 20.0  ;;  %v14348_v19 = vld [vmem:[#allocation15_spill] sm:$0xff] }
 0x1fe   : > { %6890 = vmatmul.msk.f32.gmra.mxu2 %vm192_vm0, %v9915_v22  ;;  %7512 = vlog2.f32 %v2803_v15  ;;  %v2650_v26 = vadd.f32 1.0, %v14342_v62  ;;  %v2799_v39 = vmul.f32 %v10095_v23, %v2798_v58  ;;  %v2653_v55 = vmul.f32 -0.5, %v14342_v62 }
 0x1ff   : > { %v10493_v6 = vpop.eup %7502  ;;  %v2129_v10 = vmin.f32 %v10480_v56, 20.0  ;;  %v2656_v50 = vand.u32 2147483647, %v14342_v62  ;;  %vm10499_vm9 = vcmp.lt.f32.partialorder %v2800_v0, 0.0004427343  ;;  %v2659_v18 = vadd.f32 1.0, %v14345_v35 }
 0x200   : > { %v7505_v37 = vpop.eup %7504  ;;  %7514 = vlog2.f32 %v2650_v26  ;;  %v2654_v44 = vadd.f32 1.0, %v2653_v55  ;;  %v2662_v27 = vmul.f32 -0.5, %v14345_v35  ;;  %v2808_v63 = vmul.f32 %v14340_v61, %v2807_v33  ;;  %v14351_v0 = vld [vmem:[#allocation16_spill] sm:$0xff]  ;;  %v8176_v61 = vld [vmem:[%s13959_s1 + $0x60] sm:$0xff] }
 0x201   : > { %6897 = vmatmul.msk.f32.gmra.mxu0 %vm192_vm0, %v10485_v36  ;;  %6894 = vmatmul.msk.f32.gmra.mxu3 %vm192_vm0, %v9915_v22  ;;  %v2314_v22 = vmul.f32 1.442695, %v2128_v57  ;;  %v10506_v34 = vpop.eup %7506  ;;  %7516 = vpow2.f32 %v2222_v29  ;;  %v2796_v23 = vmul.f32 0.6931472, %v7505_v37  ;;  %vm10512_vm10 = vcmp.lt.f32.partialorder %v2809_v52, 0.0004427343 }
 0x202   : > { %v10509_v45 = vpop.eup %7508  ;;  %7518 = vpow2.f32 %v2224_v43  ;;  %vm2170_vm11 = vcmp.gt.f32.partialorder %v14348_v19, 20.0  ;;  %v2316_v14 = vmul.f32 1.442695, %v2129_v10  ;;  %vm10521_vm12 = vcmp.lt.f32.partialorder %v2656_v50, 0.0004427343  ;;  %v14352_v57 = vld [vmem:[#allocation19_spill] sm:$0xff] }
 0x203   : > { %6901 = vmatmul.msk.f32.gmra.mxu1 %vm192_vm0, %v10485_v36  ;;  %v10517_v58 = vpop.eup %7510  ;;  %v2802_v15 = vsel %vm10499_vm9, %v2799_v39, %v2796_v23  ;;  %7520 = vpow2.f32 %v2314_v22  ;;  %vm2171_vm13 = vcmp.gt.f32.partialorder %v14351_v0, 20.0  ;;  %v2665_v33 = vand.u32 2147483647, %v14345_v35  ;;  %v14354_v22 = vld [vmem:[#allocation22_spill] sm:$0xff] }
 0x204   : > { %v7513_v43 = vpop.eup %7512  ;;  %v2954_v52 = vsel %vm2186_vm7, %v14339_v60, %v2802_v15  ;;  %7522 = vlog2.f32 %v2659_v18  ;;  %v2506_v26 = vadd.f32 1.0, %v14352_v57  ;;  %v2655_v10 = vmul.f32 %v14342_v62, %v2654_v44  ;;  %v1974_v18 = vpop.f32.mrf.mxu0 }
 0x205   : > { %3590 = vmatpush.msrb.mxu0 %v2954_v52  ;;  %v2805_v39 = vmul.f32 0.6931472, %v7513_v43  ;;  %v2663_v55 = vadd.f32 1.0, %v2662_v27  ;;  %v2509_v50 = vmul.f32 -0.5, %v14352_v57  ;;  %vm2154_vm14 = vcmp.gt.f32.partialorder %v14353_v32, 20.0  ;;  %v2003_v15 = vpop.f32.mrf.mxu1  ;;  %v10544_v43 = vld [vmem:[%s13959_s1 + $0x78] sm:$0xff] }
 0x206   : > { %6903 = vmatmul.msk.f32.vlgmr.msrb.gmra.mxu2 %vm192_vm0, %v8176_v61  ;;  %v7515_v37 = vpop.eup %7514  ;;  %7524 = vlog2.f32 %v2506_v26  ;;  %v2515_v23 = vadd.f32 1.0, %v14354_v22  ;;  %v2518_v60 = vmul.f32 -0.5, %v14354_v22  ;;  %v2512_v7 = vand.u32 2147483647, %v14352_v57 }
 0x207   : > { %v10548_v62 = vpop.eup %7516  ;;  %v2811_v44 = vsel %vm10512_vm10, %v2808_v63, %v2805_v39  ;;  %7526 = vpow2.f32 %v2316_v14  ;;  %v2652_v27 = vmul.f32 0.6931472, %v7515_v37  ;;  %v2510_v52 = vadd.f32 1.0, %v2509_v50 }
 0x208   : > { %14355 = vst [vmem:[#allocation5_spill] sm:$0xff] %v10548_v62  ;;  %v10552_v26 = vpop.eup %7518  ;;  %7528 = vlog2.f32 %v2515_v23  ;;  %v2519_v51 = vadd.f32 1.0, %v2518_v60  ;;  %v2664_v38 = vmul.f32 %v14345_v35, %v2663_v55  ;;  %v10566_v14 = vadd.f32 %v1974_v18, %v9822_v24  ;;  %v14361_v60 = vld [vmem:[#allocation17_spill] sm:$0xff] }
 0x209   : > { %6907 = vmatmul.msk.f32.vlgmr.msrb.gmra.mxu3 %vm192_vm0, %v8176_v61  ;;  %6898 = vmatmul.msk.f32.gmra.mxu0 %vm192_vm0, %v10544_v43  ;;  %14356 = vst [vmem:[#allocation31_spill] sm:$0xff] %v10552_v26  ;;  %v2955_v61 = vsel %vm2187_vm8, %v14341_v48, %v2811_v44  ;;  %v10560_v62 = vpop.eup %7520  ;;  %v2658_v63 = vsel %vm10521_vm12, %v2655_v10, %v2652_v27  ;;  %vm10574_vm15 = vcmp.lt.f32.partialorder %v2665_v33, 0.0004427343  ;;  %v2521_v10 = vand.u32 2147483647, %v14354_v22 }
 0x20a   : > { %3619 = vmatpush.msrb.mxu1 %v2955_v61  ;;  %14357 = vst [vmem:[#allocation8_spill] sm:$0xff] %v10566_v14  ;;  %v10569_v48 = vadd.f32 %v2003_v15, %v9822_v24  ;;  %v7523_v39 = vpop.eup %7522  ;;  %v2938_v50 = vsel %vm2170_vm11, %v14348_v19, %v2658_v63  ;;  %v2511_v29 = vmul.f32 %v14352_v57, %v2510_v52  ;;  %v2098_v55 = vmin.f32 %v10566_v14, 20.0  ;;  %v14364_v15 = vld [vmem:[#allocation9_spill] sm:$0xff] }
 0x20b   : > { %6902 = vmatmul.msk.f32.gmra.mxu1 %vm192_vm0, %v10544_v43  ;;  %3591 = vmatpush.msrb.mxu0 %v2938_v50  ;;  %v2661_v35 = vmul.f32 0.6931472, %v7523_v39  ;;  %v2362_v18 = vadd.f32 1.0, %v14361_v60  ;;  %vm10585_vm1 = vcmp.lt.f32.partialorder %v2512_v7, 0.0004427343  ;;  %vm2155_vm2 = vcmp.gt.f32.partialorder %v14364_v15, 20.0 }
 0x20c   : > { %14358 = vst [vmem:[#allocation25_spill] sm:$0xff] %v10569_v48  ;;  %v2099_v23 = vmin.f32 %v10569_v48, 20.0  ;;  %v7525_v19 = vpop.eup %7524  ;;  %v2520_v57 = vmul.f32 %v14354_v22, %v2519_v51  ;;  %v2365_v44 = vmul.f32 -0.5, %v14361_v60  ;;  %v2254_v63 = vmul.f32 1.442695, %v2098_v55  ;;  %v14365_v39 = vld [vmem:[#allocation18_spill] sm:$0xff] }
 0x20d   : > { %v10592_v27 = vpop.eup %7526  ;;  %v2667_v52 = vsel %vm10574_vm15, %v2664_v38, %v2661_v35  ;;  %v2508_v61 = vmul.f32 0.6931472, %v7525_v19  ;;  %v2371_v50 = vadd.f32 1.0, %v14365_v39  ;;  %vm10600_vm3 = vcmp.lt.f32.partialorder %v2521_v10, 0.0004427343 }
 0x20e   : > { %6904 = vmatmul.msk.f32.gmra.mxu2 %vm192_vm0, %v10440_v17  ;;  %v7529_v48 = vpop.eup %7528  ;;  %v2939_v7 = vsel %vm2171_vm13, %v14351_v0, %v2667_v52  ;;  %v2256_v51 = vmul.f32 1.442695, %v2099_v23  ;;  %7530 = vlog2.f32 %v2362_v18  ;;  %v2366_v37 = vadd.f32 1.0, %v2365_v44 }
 0x20f   : > { %3620 = vmatpush.msrb.mxu1 %v2939_v7  ;;  %v2514_v22 = vsel %vm10585_vm1, %v2511_v29, %v2508_v61  ;;  %v2517_v38 = vmul.f32 0.6931472, %v7529_v48  ;;  %v2374_v35 = vmul.f32 -0.5, %v14365_v39  ;;  %7532 = vpow2.f32 %v2254_v63  ;;  %v14372_v63 = vld [vmem:[#allocation32_spill] sm:$0xff] }
 0x210   : > { %v2922_v0 = vsel %vm2154_vm14, %v14353_v32, %v2514_v22  ;;  %v2368_v10 = vand.u32 2147483647, %v14361_v60  ;;  %7534 = vlog2.f32 %v2371_v50  ;;  %v2377_v29 = vand.u32 2147483647, %v14365_v39  ;;  %v2029_v50 = vpop.f32.mrf.mxu2 }
 0x211   : > { %6908 = vmatmul.msk.f32.gmra.mxu3 %vm192_vm0, %v10440_v17  ;;  %3592 = vmatpush.msrb.mxu0 %v2922_v0  ;;  %v2523_v55 = vsel %vm10600_vm3, %v2520_v57, %v2517_v38  ;;  %v14368_v17 = vld [vmem:[#allocation10_spill] sm:$0xff]  ;;  %v2375_v23 = vadd.f32 1.0, %v2374_v35  ;;  %v2812_v18 = vadd.f32 1.0, %v10177_v5  ;;  %v2815_v32 = vmul.f32 -0.5, %v10177_v5  ;;  %v14375_v38 = vld [vmem:[#allocation33_spill] sm:$0xff]  ;;  %v2058_v0 = vpop.f32.mrf.mxu3 }
 0x212   : > { %vm2138_vm5 = vcmp.gt.f32.partialorder %v14368_v17, 20.0  ;;  %v2923_v48 = vsel %vm2155_vm2, %v14364_v15, %v2523_v55  ;;  %7536 = vpow2.f32 %v2256_v51  ;;  %v2367_v19 = vmul.f32 %v14361_v60, %v2366_v37  ;;  %v14371_v15 = vld [vmem:[#allocation11_spill] sm:$0xff]  ;;  %v14376_v37 = vld [vmem:[#allocation34_spill] sm:$0xff] }
 0x213   : > { %3621 = vmatpush.msrb.mxu1 %v2923_v48  ;;  %v2818_v26 = vand.u32 2147483647, %v10177_v5  ;;  %v2821_v33 = vadd.f32 1.0, %v10228_v13  ;;  %vm10627_vm6 = vcmp.lt.f32.partialorder %v2368_v10, 0.0004427343  ;;  %vm2139_vm7 = vcmp.gt.f32.partialorder %v14371_v15, 20.0 }
 0x214   : > { %v7531_v57 = vpop.eup %7530  ;;  %7538 = vlog2.f32 %v2812_v18  ;;  %v2824_v52 = vmul.f32 -0.5, %v10228_v13  ;;  %vm2188_vm8 = vcmp.gt.f32.partialorder %v14372_v63, 20.0  ;;  %v2816_v60 = vadd.f32 1.0, %v2815_v32 }
 0x215   : > { %v2364_v61 = vmul.f32 0.6931472, %v7531_v57  ;;  %7540 = vlog2.f32 %v2821_v33  ;;  %v10634_v7 = vpop.eup %7532  ;;  %v2376_v51 = vmul.f32 %v14365_v39, %v2375_v23  ;;  %vm10637_vm9 = vcmp.lt.f32.partialorder %v2377_v29, 0.0004427343  ;;  %v10656_v23 = vld [vmem:[%s13959_s1 + $0x40] sm:$0xff]  ;;  %v14379_v33 = vld [vmem:[#allocation20_spill] sm:$0xff] }
 0x216   : > { %6905 = vmatmul.msk.f32.gmra.mxu2 %vm192_vm0, %v10485_v36  ;;  %vm2189_vm10 = vcmp.gt.f32.partialorder %v14375_v38, 20.0  ;;  %v2668_v35 = vadd.f32 1.0, %v14376_v37  ;;  %v7535_v10 = vpop.eup %7534  ;;  %vm10647_vm11 = vcmp.lt.f32.partialorder %v2818_v26, 0.0004427343  ;;  %v2827_v39 = vand.u32 2147483647, %v10228_v13  ;;  %6911 = vmatmul.msk.f32.vlgmr.msra.gmra.mxu0 %vm1593_vm4, %v10656_v23 }
 0x217   : > { %v2370_v55 = vsel %vm10627_vm6, %v2367_v19, %v2364_v61  ;;  %v2671_v29 = vmul.f32 -0.5, %v14376_v37  ;;  %v2373_v18 = vmul.f32 0.6931472, %v7535_v10  ;;  %v2825_v32 = vadd.f32 1.0, %v2824_v52  ;;  %6915 = vmatmul.msk.f32.vlgmr.msra.gmra.mxu1 %vm1593_vm4, %v10656_v23 }
 0x218   : > { %7542 = vlog2.f32 %v2668_v35  ;;  %v10665_v19 = vpop.eup %7536  ;;  %v2817_v26 = vmul.f32 %v10177_v5, %v2816_v60  ;;  %vm2172_vm12 = vcmp.gt.f32.partialorder %v14379_v33, 20.0  ;;  %v2674_v44 = vand.u32 2147483647, %v14376_v37 }
 0x219   : > { %6909 = vmatmul.msk.f32.gmra.mxu3 %vm192_vm0, %v10485_v36  ;;  %v2906_v36 = vsel %vm2138_vm5, %v14368_v17, %v2370_v55  ;;  %v2672_v57 = vadd.f32 1.0, %v2671_v29  ;;  %v14380_v17 = vld [vmem:[#allocation35_spill] sm:$0xff]  ;;  %v2379_v35 = vsel %vm10637_vm9, %v2376_v51, %v2373_v18  ;;  %v10675_v55 = vadd.f32 %v2029_v50, %v9844_v8 }
 0x21a   : > { %3593 = vmatpush.msrb.mxu0 %v2906_v36  ;;  %v2677_v61 = vadd.f32 1.0, %v14380_v17  ;;  %v7539_v52 = vpop.eup %7538  ;;  %v2680_v10 = vmul.f32 -0.5, %v14380_v17  ;;  %v10678_v36 = vadd.f32 %v2058_v0, %v9844_v8  ;;  %v2907_v60 = vsel %vm2139_vm7, %v14371_v15, %v2379_v35 }
 0x21b   : > { %14381 = vst [vmem:[#allocation27_spill] sm:$0xff] %v10675_v55  ;;  %v7541_v5 = vpop.eup %7540  ;;  %v2814_v29 = vmul.f32 0.6931472, %v7539_v52  ;;  %v2683_v14 = vand.u32 2147483647, %v14380_v17  ;;  %3622 = vmatpush.msrb.mxu1 %v2907_v60  ;;  %v2826_v50 = vmul.f32 %v10228_v13, %v2825_v32  ;;  %v2084_v8 = vmin.f32 %v10675_v55, 20.0 }
 0x21c   : > { %14382 = vst [vmem:[#allocation15_spill] sm:$0xff] %v10678_v36  ;;  %7544 = vlog2.f32 %v2677_v61  ;;  %v2823_v51 = vmul.f32 0.6931472, %v7541_v5  ;;  %vm10687_vm13 = vcmp.lt.f32.partialorder %v2827_v39, 0.0004427343  ;;  %v2085_v18 = vmin.f32 %v10678_v36, 20.0 }
 0x21d   : > { %v2820_v15 = vsel %vm10647_vm11, %v2817_v26, %v2814_v29  ;;  %vm10694_vm14 = vcmp.lt.f32.partialorder %v2674_v44, 0.0004427343  ;;  %v14387_v61 = vld [vmem:[#allocation28_spill] sm:$0xff]  ;;  %v2673_v32 = vmul.f32 %v14376_v37, %v2672_v57  ;;  %v2681_v48 = vadd.f32 1.0, %v2680_v10  ;;  %v1977_v26 = vpop.f32.mrf.mxu0  ;;  %v2006_v44 = vpop.f32.mrf.mxu1  ;;  %v14390_v37 = vld [vmem:[#allocation21_spill] sm:$0xff]  ;;  %v14396_v29 = vld [vmem:[#allocation7_spill] sm:$0xff] }
 0x21e   : > { %6906 = vmatmul.msk.f32.gmra.mxu2 %vm192_vm0, %v10544_v43  ;;  %v2524_v52 = vadd.f32 1.0, %v14387_v61  ;;  %v7543_v35 = vpop.eup %7542  ;;  %v2956_v13 = vsel %vm2188_vm8, %v14372_v63, %v2820_v15  ;;  %v2829_v39 = vsel %vm10687_vm13, %v2826_v50, %v2823_v51  ;;  %vm10711_vm15 = vcmp.lt.f32.partialorder %v2683_v14, 0.0004427343  ;;  %v2032_v63 = vpop.f32.mrf.mxu2  ;;  %v14391_v14 = vld [vmem:[#allocation29_spill] sm:$0xff] }
 0x21f   : > { %3648 = vmatpush.msrb.mxu2 %v2956_v13  ;;  %v2957_v5 = vsel %vm2189_vm10, %v14375_v38, %v2829_v39  ;;  %v2670_v60 = vmul.f32 0.6931472, %v7543_v35  ;;  %vm2173_vm1 = vcmp.gt.f32.partialorder %v14390_v37, 20.0  ;;  %v2226_v57 = vmul.f32 1.442695, %v2084_v8  ;;  %v14392_v39 = vld [vmem:[#allocation6_spill] sm:$0xff] }
 0x220   : > { %7546 = vlog2.f32 %v2524_v52  ;;  %3677 = vmatpush.msrb.mxu3 %v2957_v5  ;;  %v2228_v10 = vmul.f32 1.442695, %v2085_v18  ;;  %v2527_v51 = vmul.f32 -0.5, %v14387_v61  ;;  %v2530_v38 = vand.u32 2147483647, %v14387_v61 }
 0x221   : > { %6910 = vmatmul.msk.f32.gmra.mxu3 %vm192_vm0, %v10544_v43  ;;  %v2061_v43 = vpop.f32.mrf.mxu3  ;;  %v2676_v22 = vsel %vm10694_vm14, %v2673_v32, %v2670_v60  ;;  %v2533_v15 = vadd.f32 1.0, %v14391_v14  ;;  %v2536_v35 = vmul.f32 -0.5, %v14391_v14  ;;  %v2682_v8 = vmul.f32 %v14380_v17, %v2681_v48  ;;  %v14393_v60 = vld [vmem:[#allocation23_spill] sm:$0xff] }
 0x222   : > { %v7545_v50 = vpop.eup %7544  ;;  %v2940_v52 = vsel %vm2172_vm12, %v14379_v33, %v2676_v22  ;;  %v2528_v18 = vadd.f32 1.0, %v2527_v51  ;;  %vm2156_vm0 = vcmp.gt.f32.partialorder %v14392_v39, 20.0  ;;  %v2539_v32 = vand.u32 2147483647, %v14391_v14 }
 0x223   : > { %v2679_v13 = vmul.f32 0.6931472, %v7545_v50  ;;  %3649 = vmatpush.msrb.mxu2 %v2940_v52  ;;  %7548 = vlog2.f32 %v2533_v15  ;;  %v2537_v0 = vadd.f32 1.0, %v2536_v35  ;;  %v2380_v36 = vadd.f32 1.0, %v14393_v60 }
 0x224   : > { %7550 = vpow2.f32 %v2226_v57  ;;  %v2383_v55 = vmul.f32 -0.5, %v14393_v60  ;;  %vm10737_vm2 = vcmp.lt.f32.partialorder %v2530_v38, 0.0004427343  ;;  %vm2157_vm3 = vcmp.gt.f32.partialorder %v14396_v29, 20.0 }
 0x225   : > { %v2685_v5 = vsel %vm10711_vm15, %v2682_v8, %v2679_v13  ;;  %7552 = vpow2.f32 %v2228_v10  ;;  %v2529_v51 = vmul.f32 %v14387_v61, %v2528_v18  ;;  %v2538_v22 = vmul.f32 %v14391_v14, %v2537_v0  ;;  %v14400_v10 = vld [vmem:[#allocation24_spill] sm:$0xff]  ;;  %v1980_v52 = vpop.f32.mrf.mxu0  ;;  %v2009_v13 = vpop.f32.mrf.mxu1 }
 0x226   : > { %6919 = vmatmul.msk.f32.vlgmr.msra.gmra.mxu2 %vm1593_vm4, %v10656_v23  ;;  %v7547_v33 = vpop.eup %7546  ;;  %v2941_v17 = vsel %vm2173_vm1, %v14390_v37, %v2685_v5  ;;  %7554 = vlog2.f32 %v2380_v36  ;;  %v2384_v50 = vadd.f32 1.0, %v2383_v55  ;;  %vm10744_vm5 = vcmp.lt.f32.partialorder %v2539_v32, 0.0004427343  ;;  %v14399_v37 = vld [vmem:[#allocation13_spill] sm:$0xff]  ;;  %v2035_v5 = vpop.f32.mrf.mxu2 }
 0x227   : > { %3678 = vmatpush.msrb.mxu3 %v2941_v17  ;;  %v2526_v57 = vmul.f32 0.6931472, %v7547_v33  ;;  %vm2140_vm6 = vcmp.gt.f32.partialorder %v14399_v37, 20.0  ;;  %v2389_v38 = vadd.f32 1.0, %v14400_v10  ;;  %v2392_v35 = vmul.f32 -0.5, %v14400_v10 }
 0x228   : > { %v2386_v55 = vand.u32 2147483647, %v14393_v60  ;;  %v10757_v36 = vadd.f32 %v1977_v26, %v9881_v4  ;;  %v10760_v14 = vadd.f32 %v2006_v44, %v9881_v4  ;;  %v2385_v0 = vmul.f32 %v14393_v60, %v2384_v50 }
 0x229   : > { %6923 = vmatmul.msk.f32.vlgmr.msra.gmra.mxu3 %vm1593_vm4, %v10656_v23  ;;  %v2532_v61 = vsel %vm10737_vm2, %v2529_v51, %v2526_v57  ;;  %v7549_v8 = vpop.eup %7548  ;;  %7556 = vlog2.f32 %v2389_v38  ;;  %v2395_v32 = vand.u32 2147483647, %v14400_v10  ;;  %v10772_v48 = vadd.f32 %v2032_v63, %v9822_v24  ;;  %v2064_v57 = vpop.f32.mrf.mxu3 }
 0x22a   : > { %v2924_v18 = vsel %vm2156_vm0, %v14392_v39, %v2532_v61  ;;  %v10767_v33 = vpop.eup %7550  ;;  %v2535_v26 = vmul.f32 0.6931472, %v7549_v8  ;;  %v2114_v44 = vmin.f32 %v10757_v36, 20.0  ;;  %v2115_v17 = vmin.f32 %v10760_v14, 20.0 }
 0x22b   : > { %14401 = vst [vmem:[#allocation16_spill] sm:$0xff] %v10767_v33  ;;  %3650 = vmatpush.msrb.mxu2 %v2924_v18  ;;  %v10774_v51 = vpop.eup %7552  ;;  %v2393_v39 = vadd.f32 1.0, %v2392_v35  ;;  %v10777_v60 = vadd.f32 %v2061_v43, %v9822_v24  ;;  %v10780_v50 = vadd.f32 %v1980_v52, %v9832_v11  ;;  %v10783_v38 = vadd.f32 %v2009_v13, %v9832_v11  ;;  %v14405_v13 = vld [vmem:[#allocation14_spill] sm:$0xff] }
 0x22c   : > { %14402 = vst [vmem:[#allocation19_spill] sm:$0xff] %v10772_v48  ;;  %v7555_v61 = vpop.eup %7554  ;;  %v2541_v8 = vsel %vm10744_vm5, %v2538_v22, %v2535_v26  ;;  %v2286_v18 = vmul.f32 1.442695, %v2114_v44  ;;  %v2288_v63 = vmul.f32 1.442695, %v2115_v17  ;;  %v2100_v33 = vmin.f32 %v10772_v48, 20.0 }
 0x22d   : > { %14403 = vst [vmem:[#allocation12_spill] sm:$0xff] %v10774_v51  ;;  %v2925_v35 = vsel %vm2157_vm3, %v14396_v29, %v2541_v8  ;;  %v2382_v24 = vmul.f32 0.6931472, %v7555_v61  ;;  %v2101_v43 = vmin.f32 %v10777_v60, 20.0  ;;  %v2130_v52 = vmin.f32 %v10780_v50, 20.0 }
 0x22e   : > { %14404 = vst [vmem:[#allocation22_spill] sm:$0xff] %v10777_v60  ;;  %3679 = vmatpush.msrb.mxu3 %v2925_v35  ;;  %vm2387_vm7 = vcmp.lt.f32.partialorder %v2386_v55, 0.0004427343  ;;  %vm2141_vm8 = vcmp.gt.f32.partialorder %v14405_v13, 20.0  ;;  %v2258_v51 = vmul.f32 1.442695, %v2100_v33  ;;  %7558 = vpow2.f32 %v2286_v18 }
 0x22f   : > { %v2131_v22 = vmin.f32 %v10783_v38, 20.0  ;;  %v7557_v15 = vpop.eup %7556  ;;  %v2388_v26 = vsel %vm2387_vm7, %v2385_v0, %v2382_v24  ;;  %v2260_v44 = vmul.f32 1.442695, %v2101_v43  ;;  %v10796_v17 = vadd.f32 %v2035_v5, %v9881_v4 }
 0x230   : > { %v2908_v29 = vsel %vm2140_vm6, %v14399_v37, %v2388_v26  ;;  %v2391_v61 = vmul.f32 0.6931472, %v7557_v15  ;;  %v2394_v8 = vmul.f32 %v14400_v10, %v2393_v39  ;;  %7560 = vpow2.f32 %v2288_v63 }
 0x231   : > { %3651 = vmatpush.msrb.mxu2 %v2908_v29  ;;  %vm2396_vm9 = vcmp.lt.f32.partialorder %v2395_v32, 0.0004427343  ;;  %7562 = vpow2.f32 %v2258_v51  ;;  %v2318_v55 = vmul.f32 1.442695, %v2130_v52  ;;  %v10803_v33 = vadd.f32 %v2064_v57, %v9881_v4  ;;  %v2038_v51 = vpop.f32.mrf.mxu2  ;;  %v2067_v57 = vpop.f32.mrf.mxu3 }
 0x232   : > { %v2397_v0 = vsel %vm2396_vm9, %v2394_v8, %v2391_v61  ;;  %v2320_v18 = vmul.f32 1.442695, %v2131_v22  ;;  %v2830_v5 = vadd.f32 1.0, %v10493_v6  ;;  %v2833_v35 = vmul.f32 -0.5, %v10493_v6 }
 0x233   : > { %v2909_v37 = vsel %vm2141_vm8, %v14405_v13, %v2397_v0  ;;  %7564 = vpow2.f32 %v2260_v44  ;;  %v2116_v10 = vmin.f32 %v10796_v17, 20.0  ;;  %v2117_v32 = vmin.f32 %v10803_v33, 20.0  ;;  %v10835_v0 = vld [vmem:[%s13959_s1 + $0x48] sm:$0xff] }
 0x234   : > { %3680 = vmatpush.msrb.mxu3 %v2909_v37  ;;  %7566 = vlog2.f32 %v2830_v5  ;;  %v2834_v4 = vadd.f32 1.0, %v2833_v35  ;;  %v10812_v39 = vpop.eup %7558  ;;  %v2836_v63 = vand.u32 2147483647, %v10493_v6  ;;  %v2839_v24 = vadd.f32 1.0, %v10506_v34  ;;  %v10839_v5 = vpop.f32.mrf.mxu0  ;;  %6912 = vmatmul.msk.f32.gmra.mxu0 %vm1593_vm4, %v10835_v0 }
 0x235   : > { %7568 = vpow2.f32 %v2318_v55  ;;  %v2842_v43 = vmul.f32 -0.5, %v10506_v34  ;;  %vm2190_vm10 = vcmp.gt.f32.partialorder %v10401_v20, 20.0  ;;  %v10821_v13 = vadd.f32 %v2038_v51, %v9832_v11  ;;  %14406 = vst [vmem:[#allocation17_spill] sm:$0xff] %v10839_v5  ;;  %6916 = vmatmul.msk.f32.gmra.mxu1 %vm1593_vm4, %v10835_v0  ;;  %6920 = vmatmul.msk.f32.gmra.mxu2 %vm1593_vm4, %v10835_v0 }
 0x236   : > { %v10817_v52 = vpop.eup %7560  ;;  %7570 = vpow2.f32 %v2320_v18  ;;  %v2290_v15 = vmul.f32 1.442695, %v2116_v10  ;;  %v2292_v26 = vmul.f32 1.442695, %v2117_v32  ;;  %v2835_v44 = vmul.f32 %v10493_v6, %v2834_v4  ;;  %v10841_v6 = vpop.f32.mrf.mxu1  ;;  %6924 = vmatmul.msk.f32.gmra.mxu3 %vm1593_vm4, %v10835_v0 }
 0x237   : > { %v10823_v22 = vpop.eup %7562  ;;  %v10827_v29 = vadd.f32 %v2067_v57, %v9832_v11  ;;  %7572 = vlog2.f32 %v2839_v24  ;;  %v2845_v61 = vand.u32 2147483647, %v10506_v34  ;;  %v2132_v8 = vmin.f32 %v10821_v13, 20.0  ;;  %14407 = vst [vmem:[#allocation9_spill] sm:$0xff] %v10841_v6 }
 0x238   : > { %v2686_v55 = vadd.f32 1.0, %v10459_v42  ;;  %vm10843_vm11 = vcmp.lt.f32.partialorder %v2836_v63, 0.0004427343  ;;  %v2843_v35 = vadd.f32 1.0, %v2842_v43  ;;  %v2689_v10 = vmul.f32 -0.5, %v10459_v42 }
 0x239   : > { %v10837_v18 = vpop.eup %7564  ;;  %v2133_v37 = vmin.f32 %v10827_v29, 20.0  ;;  %v2322_v51 = vmul.f32 1.442695, %v2132_v8  ;;  %v2692_v4 = vand.u32 2147483647, %v10459_v42  ;;  %v2695_v57 = vadd.f32 1.0, %v10462_v3 }
 0x23a   : > { %v7567_v32 = vpop.eup %7566  ;;  %7574 = vlog2.f32 %v2686_v55  ;;  %v2690_v43 = vadd.f32 1.0, %v2689_v10  ;;  %v2698_v6 = vmul.f32 -0.5, %v10462_v3  ;;  %vm2191_vm12 = vcmp.gt.f32.partialorder %v10404_v21, 20.0 }
 0x23b   : > { %v10859_v63 = vpop.eup %7568  ;;  %7576 = vpow2.f32 %v2290_v15  ;;  %v2832_v24 = vmul.f32 0.6931472, %v7567_v32  ;;  %vm10865_vm13 = vcmp.lt.f32.partialorder %v2845_v61, 0.0004427343  ;;  %vm2174_vm14 = vcmp.gt.f32.partialorder %v10375_v16, 20.0 }
 0x23c   : > { %v10862_v5 = vpop.eup %7570  ;;  %7578 = vpow2.f32 %v2292_v26  ;;  %v2844_v15 = vmul.f32 %v10506_v34, %v2843_v35  ;;  %v2324_v10 = vmul.f32 1.442695, %v2133_v37  ;;  %vm10876_vm15 = vcmp.lt.f32.partialorder %v2692_v4, 0.0004427343 }
 0x23d   : > { %v2838_v55 = vsel %vm10843_vm11, %v2835_v44, %v2832_v24  ;;  %7580 = vpow2.f32 %v2322_v51  ;;  %v7573_v32 = vpop.eup %7572  ;;  %v2542_v61 = vadd.f32 1.0, %v10273_v1  ;;  %v2691_v44 = vmul.f32 %v10459_v42, %v2690_v43 }
 0x23e   : > { %v2958_v26 = vsel %vm2190_vm10, %v10401_v20, %v2838_v55  ;;  %7582 = vlog2.f32 %v2695_v57  ;;  %v2841_v48 = vmul.f32 0.6931472, %v7573_v32  ;;  %v2699_v11 = vadd.f32 1.0, %v2698_v6 }
 0x23f   : > { %3706 = vmatpush.msra.mxu0 %v2958_v26  ;;  %v2545_v34 = vmul.f32 -0.5, %v10273_v1  ;;  %v2701_v37 = vand.u32 2147483647, %v10462_v3  ;;  %7584 = vlog2.f32 %v2542_v61  ;;  %v2551_v20 = vadd.f32 1.0, %v10307_v31  ;;  %v10904_v26 = vpop.f32.mrf.mxu1  ;;  %v14415_v61 = vld [vmem:[#allocation36_spill] sm:$0xff] }
 0x240   : > { %v7575_v35 = vpop.eup %7574  ;;  %v2554_v51 = vmul.f32 -0.5, %v10307_v31  ;;  %v2847_v57 = vsel %vm10865_vm13, %v2844_v15, %v2841_v48  ;;  %7586 = vpow2.f32 %v2324_v10  ;;  %vm2175_vm1 = vcmp.gt.f32.partialorder %v10379_v53, 20.0  ;;  %v10902_v10 = vpop.f32.mrf.mxu0  ;;  %14414 = vst [vmem:[#allocation18_spill] sm:$0xff] %v10904_v26 }
 0x241   : > { %v10886_v4 = vpop.eup %7576  ;;  %v2688_v24 = vmul.f32 0.6931472, %v7575_v35  ;;  %v2546_v55 = vadd.f32 1.0, %v2545_v34  ;;  %v2959_v6 = vsel %vm2191_vm12, %v10404_v21, %v2847_v57  ;;  %v2548_v43 = vand.u32 2147483647, %v10273_v1 }
 0x242   : > { %v10890_v42 = vpop.eup %7578  ;;  %7588 = vlog2.f32 %v2551_v20  ;;  %3735 = vmatpush.msra.mxu1 %v2959_v6  ;;  %v2700_v8 = vmul.f32 %v10462_v3, %v2699_v11  ;;  %v2555_v15 = vadd.f32 1.0, %v2554_v51  ;;  %v2398_v21 = vadd.f32 1.0, %v14415_v61  ;;  %v10918_v11 = vpop.f32.mrf.mxu3  ;;  %v14422_v6 = vld [vmem:[#allocation37_spill] sm:$0xff] }
 0x243   : > { %v10897_v32 = vpop.eup %7580  ;;  %v2694_v48 = vsel %vm10876_vm15, %v2691_v44, %v2688_v24  ;;  %vm10910_vm0 = vcmp.lt.f32.partialorder %v2701_v37, 0.0004427343  ;;  %v2557_v60 = vand.u32 2147483647, %v10307_v31  ;;  %v2401_v3 = vmul.f32 -0.5, %v14415_v61  ;;  %v10916_v44 = vpop.f32.mrf.mxu2  ;;  %14419 = vst [vmem:[#allocation11_spill] sm:$0xff] %v10918_v11 }
 0x244   : > { %v7583_v34 = vpop.eup %7582  ;;  %v2942_v35 = vsel %vm2174_vm14, %v10375_v16, %v2694_v48  ;;  %14418 = vst [vmem:[#allocation10_spill] sm:$0xff] %v10916_v44  ;;  %vm2158_vm2 = vcmp.gt.f32.partialorder %v10183_v41, 20.0  ;;  %v2547_v57 = vmul.f32 %v10273_v1, %v2546_v55  ;;  %7590 = vlog2.f32 %v2398_v21 }
 0x245   : > { %3707 = vmatpush.msra.mxu0 %v2942_v35  ;;  %v2697_v51 = vmul.f32 0.6931472, %v7583_v34  ;;  %v7585_v16 = vpop.eup %7584  ;;  %vm10922_vm3 = vcmp.lt.f32.partialorder %v2548_v43, 0.0004427343  ;;  %v2402_v24 = vadd.f32 1.0, %v2401_v3  ;;  %v2407_v48 = vadd.f32 1.0, %v14422_v6 }
 0x246   : > { %v2410_v26 = vmul.f32 -0.5, %v14422_v6  ;;  %v10928_v44 = vpop.eup %7586  ;;  %v2544_v35 = vmul.f32 0.6931472, %v7585_v16  ;;  %v2556_v11 = vmul.f32 %v10307_v31, %v2555_v15  ;;  %v2404_v1 = vand.u32 2147483647, %v14415_v61  ;;  %v10948_v3 = vld [vmem:[%s13959_s1 + $0x50] sm:$0xff] }
 0x247   : > { %v2703_v34 = vsel %vm10910_vm0, %v2700_v8, %v2697_v51  ;;  %vm2159_vm5 = vcmp.gt.f32.partialorder %v10186_v40, 20.0  ;;  %vm10938_vm6 = vcmp.lt.f32.partialorder %v2557_v60, 0.0004427343  ;;  %7592 = vlog2.f32 %v2407_v48  ;;  %6913 = vmatmul.msk.f32.gmra.mxu0 %vm1593_vm4, %v10948_v3  ;;  %6917 = vmatmul.msk.f32.gmra.mxu1 %vm1593_vm4, %v10948_v3 }
 0x248   : > { %v7589_v55 = vpop.eup %7588  ;;  %v2943_v43 = vsel %vm2175_vm1, %v10379_v53, %v2703_v34  ;;  %v2550_v8 = vsel %vm10922_vm3, %v2547_v57, %v2544_v35  ;;  %v2411_v31 = vadd.f32 1.0, %v2410_v26  ;;  %v2848_v15 = vadd.f32 1.0, %v10560_v62  ;;  %6921 = vmatmul.msk.f32.gmra.mxu2 %vm1593_vm4, %v10948_v3  ;;  %v14428_v34 = vld [vmem:[#allocation30_spill] sm:$0xff]  ;;  %6925 = vmatmul.msk.f32.gmra.mxu3 %vm1593_vm4, %v10948_v3 }
 0x249   : > { %3736 = vmatpush.msra.mxu1 %v2943_v43  ;;  %v2553_v20 = vmul.f32 0.6931472, %v7589_v55  ;;  %v2926_v53 = vsel %vm2158_vm2, %v10183_v41, %v2550_v8  ;;  %v2403_v60 = vmul.f32 %v14415_v61, %v2402_v24  ;;  %v2413_v51 = vand.u32 2147483647, %v14422_v6  ;;  %v14427_v24 = vld [vmem:[#allocation26_spill] sm:$0xff]  ;;  %v10978_v55 = vpop.f32.mrf.mxu0  ;;  %v10980_v43 = vpop.f32.mrf.mxu1 }
 0x24a   : > { %v2851_v16 = vmul.f32 -0.5, %v10560_v62  ;;  %v7591_v26 = vpop.eup %7590  ;;  %3708 = vmatpush.msra.mxu0 %v2926_v53  ;;  %vm10962_vm7 = vcmp.lt.f32.partialorder %v2404_v1, 0.0004427343  ;;  %7594 = vlog2.f32 %v2848_v15  ;;  %v2857_v41 = vadd.f32 1.0, %v10592_v27  ;;  %v10992_v15 = vpop.f32.mrf.mxu3 }
 0x24b   : > { %v2559_v57 = vsel %vm10938_vm6, %v2556_v11, %v2553_v20  ;;  %vm2142_vm8 = vcmp.gt.f32.partialorder %v14427_v24, 20.0  ;;  %v2400_v48 = vmul.f32 0.6931472, %v7591_v26  ;;  %vm2143_vm9 = vcmp.gt.f32.partialorder %v14428_v34, 20.0 }
 0x24c   : > { %v2927_v61 = vsel %vm2159_vm5, %v10186_v40, %v2559_v57  ;;  %v2412_v11 = vmul.f32 %v14422_v6, %v2411_v31  ;;  %v2852_v35 = vadd.f32 1.0, %v2851_v16  ;;  %7596 = vlog2.f32 %v2857_v41  ;;  %v10990_v31 = vpop.f32.mrf.mxu2 }
 0x24d   : > { %3737 = vmatpush.msra.mxu1 %v2927_v61  ;;  %v2860_v1 = vmul.f32 -0.5, %v10592_v27  ;;  %v7593_v40 = vpop.eup %7592  ;;  %v2406_v21 = vsel %vm10962_vm7, %v2403_v60, %v2400_v48  ;;  %vm10984_vm10 = vcmp.lt.f32.partialorder %v2413_v51, 0.0004427343  ;;  %v2704_v20 = vadd.f32 1.0, %v10509_v45  ;;  %v11001_v51 = vld [vmem:[%s13959_s1 + $0x58] sm:$0xff] }
 0x24e   : > { %v2707_v6 = vmul.f32 -0.5, %v10509_v45  ;;  %v2910_v53 = vsel %vm2142_vm8, %v14427_v24, %v2406_v21  ;;  %v2409_v16 = vmul.f32 0.6931472, %v7593_v40  ;;  %v2854_v26 = vand.u32 2147483647, %v10560_v62 }
 0x24f   : > { %v2861_v60 = vadd.f32 1.0, %v2860_v1  ;;  %3709 = vmatpush.msra.mxu0 %v2910_v53  ;;  %vm2192_vm11 = vcmp.gt.f32.partialorder %v10473_v28, 20.0  ;;  %7598 = vlog2.f32 %v2704_v20  ;;  %v2853_v41 = vmul.f32 %v10560_v62, %v2852_v35  ;;  %6918 = vmatmul.msk.f32.gmra.mxu1 %vm1593_vm4, %v11001_v51 }
 0x250   : > { %v7595_v57 = vpop.eup %7594  ;;  %v2415_v37 = vsel %vm10984_vm10, %v2412_v11, %v2409_v16  ;;  %v2863_v61 = vand.u32 2147483647, %v10592_v27  ;;  %v2713_v24 = vadd.f32 1.0, %v10517_v58  ;;  %v2708_v40 = vadd.f32 1.0, %v2707_v6  ;;  %6914 = vmatmul.msk.f32.gmra.mxu0 %vm1593_vm4, %v11001_v51  ;;  %6922 = vmatmul.msk.f32.gmra.mxu2 %vm1593_vm4, %v11001_v51 }
 0x251   : > { %v2911_v48 = vsel %vm2143_vm9, %v14428_v34, %v2415_v37  ;;  %v2850_v1 = vmul.f32 0.6931472, %v7595_v57  ;;  %v2716_v21 = vmul.f32 -0.5, %v10517_v58  ;;  %vm2855_vm12 = vcmp.lt.f32.partialorder %v2854_v26, 0.0004427343  ;;  %6926 = vmatmul.msk.f32.gmra.mxu3 %vm1593_vm4, %v11001_v51 }
 0x252   : > { %v7597_v11 = vpop.eup %7596  ;;  %3738 = vmatpush.msra.mxu1 %v2911_v48  ;;  %v2862_v62 = vmul.f32 %v10592_v27, %v2861_v60  ;;  %v2710_v35 = vand.u32 2147483647, %v10509_v45  ;;  %7600 = vlog2.f32 %v2713_v24  ;;  %v2560_v20 = vadd.f32 1.0, %v10469_v9  ;;  %v11036_v48 = vpop.f32.mrf.mxu1 }
 0x253   : > { %v2856_v34 = vsel %vm2855_vm12, %v2853_v41, %v2850_v1  ;;  %v2859_v8 = vmul.f32 0.6931472, %v7597_v11  ;;  %v2563_v6 = vmul.f32 -0.5, %v10469_v9  ;;  %vm2193_vm13 = vcmp.gt.f32.partialorder %v10480_v56, 20.0 }
 0x254   : > { %v2960_v53 = vsel %vm2192_vm11, %v10473_v28, %v2856_v34  ;;  %vm2864_vm14 = vcmp.lt.f32.partialorder %v2863_v61, 0.0004427343  ;;  %vm2176_vm15 = vcmp.gt.f32.partialorder %v10421_v49, 20.0  ;;  %v2709_v26 = vmul.f32 %v10509_v45, %v2708_v40  ;;  %v11034_v28 = vpop.f32.mrf.mxu0  ;;  %v11040_v1 = vpop.f32.mrf.mxu2 }
 0x255   : > { %v7599_v27 = vpop.eup %7598  ;;  %3764 = vmatpush.msra.mxu2 %v2960_v53  ;;  %v2865_v16 = vsel %vm2864_vm14, %v2862_v62, %v2859_v8  ;;  %v2717_v60 = vadd.f32 1.0, %v2716_v21  ;;  %7602 = vlog2.f32 %v2560_v20  ;;  %v2719_v41 = vand.u32 2147483647, %v10517_v58  ;;  %v11042_v40 = vpop.f32.mrf.mxu3 }
 0x256   : > { %v2961_v57 = vsel %vm2193_vm13, %v10480_v56, %v2865_v16  ;;  %v2706_v37 = vmul.f32 0.6931472, %v7599_v27  ;;  %v2569_v24 = vadd.f32 1.0, %v10475_v46  ;;  %vm2711_vm1 = vcmp.lt.f32.partialorder %v2710_v35, 0.0004427343 }
 0x257   : > { %3793 = vmatpush.msra.mxu3 %v2961_v57  ;;  %vm2177_vm0 = vcmp.gt.f32.partialorder %v10432_v59, 20.0  ;;  %v2564_v61 = vadd.f32 1.0, %v2563_v6  ;;  %v2572_v45 = vmul.f32 -0.5, %v10475_v46  ;;  %v2416_v11 = vadd.f32 1.0, %v10368_v47  ;;  %6931 = vmatmul.msk.f32.vlgmr.msrb.gmra.mxu1 %vm1593_vm4, %v10656_v23 }
 0x258   : > { %v7601_v56 = vpop.eup %7600  ;;  %v2712_v21 = vsel %vm2711_vm1, %v2709_v26, %v2706_v37  ;;  %7604 = vlog2.f32 %v2569_v24  ;;  %v2419_v62 = vmul.f32 -0.5, %v10368_v47  ;;  %v2718_v8 = vmul.f32 %v10517_v58, %v2717_v60  ;;  %6927 = vmatmul.msk.f32.vlgmr.msrb.gmra.mxu0 %vm1593_vm4, %v10656_v23  ;;  %6935 = vmatmul.msk.f32.vlgmr.msrb.gmra.mxu2 %vm1593_vm4, %v10656_v23 }
 0x259   : > { %v2944_v35 = vsel %vm2176_vm15, %v10421_v49, %v2712_v21  ;;  %v2715_v34 = vmul.f32 0.6931472, %v7601_v56  ;;  %v2566_v20 = vand.u32 2147483647, %v10469_v9  ;;  %vm2720_vm2 = vcmp.lt.f32.partialorder %v2719_v41, 0.0004427343  ;;  %6939 = vmatmul.msk.f32.vlgmr.msrb.gmra.mxu3 %vm1593_vm4, %v10656_v23 }
 0x25a   : > { %3765 = vmatpush.msra.mxu2 %v2944_v35  ;;  %vm2160_vm3 = vcmp.gt.f32.partialorder %v10395_v2, 20.0  ;;  %v2575_v6 = vand.u32 2147483647, %v10475_v46  ;;  %7606 = vlog2.f32 %v2416_v11  ;;  %v2565_v27 = vmul.f32 %v10469_v9, %v2564_v61 }
 0x25b   : > { %v7603_v53 = vpop.eup %7602  ;;  %v2721_v49 = vsel %vm2720_vm2, %v2718_v8, %v2715_v34  ;;  %v2573_v58 = vadd.f32 1.0, %v2572_v45  ;;  %v2425_v16 = vadd.f32 1.0, %v10388_v54  ;;  %v2420_v57 = vadd.f32 1.0, %v2419_v62 }
 0x25c   : > { %v2945_v26 = vsel %vm2177_vm0, %v10432_v59, %v2721_v49  ;;  %v2562_v60 = vmul.f32 0.6931472, %v7603_v53  ;;  %v2428_v37 = vmul.f32 -0.5, %v10388_v54  ;;  %vm2567_vm5 = vcmp.lt.f32.partialorder %v2566_v20, 0.0004427343  ;;  %v11082_v8 = vpop.f32.mrf.mxu0  ;;  %v11084_v20 = vpop.f32.mrf.mxu1 }
 0x25d   : > { %3794 = vmatpush.msra.mxu3 %v2945_v26  ;;  %vm2161_vm6 = vcmp.gt.f32.partialorder %v10398_v30, 20.0  ;;  %vm2144_vm7 = vcmp.gt.f32.partialorder %v10292_v12, 20.0  ;;  %7608 = vlog2.f32 %v2425_v16  ;;  %vm11069_vm8 = vcmp.lt.f32.partialorder %v2575_v6, 0.0004427343  ;;  %v11090_v49 = vpop.f32.mrf.mxu2 }
 0x25e   : > { %v7605_v9 = vpop.eup %7604  ;;  %v2568_v41 = vsel %vm2567_vm5, %v2565_v27, %v2562_v60  ;;  %v2422_v23 = vand.u32 2147483647, %v10368_v47  ;;  %v2866_v59 = vadd.f32 1.0, %v10859_v63  ;;  %v2574_v56 = vmul.f32 %v10475_v46, %v2573_v58  ;;  %v11092_v27 = vpop.f32.mrf.mxu3 }
 0x25f   : > { %v2928_v61 = vsel %vm2160_vm3, %v10395_v2, %v2568_v41  ;;  %v2571_v45 = vmul.f32 0.6931472, %v7605_v9  ;;  %v2869_v21 = vmul.f32 -0.5, %v10859_v63  ;;  %v2421_v62 = vmul.f32 %v10368_v47, %v2420_v57  ;;  %6932 = vmatmul.msk.f32.gmra.mxu1 %vm1593_vm4, %v10835_v0 }
 0x260   : > { %v7607_v11 = vpop.eup %7606  ;;  %3766 = vmatpush.msra.mxu2 %v2928_v61  ;;  %v2429_v35 = vadd.f32 1.0, %v2428_v37  ;;  %v2431_v34 = vand.u32 2147483647, %v10388_v54  ;;  %7610 = vlog2.f32 %v2866_v59  ;;  %v2872_v46 = vand.u32 2147483647, %v10859_v63  ;;  %6928 = vmatmul.msk.f32.gmra.mxu0 %vm1593_vm4, %v10835_v0 }
 0x261   : > { %v2577_v2 = vsel %vm11069_vm8, %v2574_v56, %v2571_v45  ;;  %v2418_v6 = vmul.f32 0.6931472, %v7607_v11  ;;  %v2875_v53 = vadd.f32 1.0, %v10862_v5  ;;  %vm2423_vm9 = vcmp.lt.f32.partialorder %v2422_v23, 0.0004427343  ;;  %6936 = vmatmul.msk.f32.gmra.mxu2 %vm1593_vm4, %v10835_v0  ;;  %6940 = vmatmul.msk.f32.gmra.mxu3 %vm1593_vm4, %v10835_v0 }
 0x262   : > { %v2929_v47 = vsel %vm2161_vm6, %v10398_v30, %v2577_v2  ;;  %vm2145_vm10 = vcmp.gt.f32.partialorder %v10298_v25, 20.0  ;;  %v2878_v58 = vmul.f32 -0.5, %v10862_v5  ;;  %v2870_v60 = vadd.f32 1.0, %v2869_v21 }
 0x263   : > { %v7609_v16 = vpop.eup %7608  ;;  %3795 = vmatpush.msra.mxu3 %v2929_v47  ;;  %v2424_v26 = vsel %vm2423_vm9, %v2421_v62, %v2418_v6  ;;  %7612 = vlog2.f32 %v2875_v53  ;;  %v2722_v57 = vadd.f32 1.0, %v10812_v39  ;;  %v2430_v9 = vmul.f32 %v10388_v54, %v2429_v35 }
 0x264   : > { %v2912_v37 = vsel %vm2144_vm7, %v10292_v12, %v2424_v26  ;;  %v2427_v30 = vmul.f32 0.6931472, %v7609_v16  ;;  %v2725_v41 = vmul.f32 -0.5, %v10812_v39  ;;  %vm2432_vm11 = vcmp.lt.f32.partialorder %v2431_v34, 0.0004427343  ;;  %v11142_v16 = vpop.f32.mrf.mxu1 }
 0x265   : > { %3767 = vmatpush.msra.mxu2 %v2912_v37  ;;  %vm2194_vm12 = vcmp.gt.f32.partialorder %v10780_v50, 20.0  ;;  %vm11114_vm13 = vcmp.lt.f32.partialorder %v2872_v46, 0.0004427343  ;;  %7614 = vlog2.f32 %v2722_v57  ;;  %v2879_v12 = vadd.f32 1.0, %v2878_v58  ;;  %v11140_v58 = vpop.f32.mrf.mxu0  ;;  %v11146_v37 = vpop.f32.mrf.mxu2 }
 0x266   : > { %v7611_v23 = vpop.eup %7610  ;;  %v2433_v59 = vsel %vm2432_vm11, %v2430_v9, %v2427_v30  ;;  %v2731_v61 = vadd.f32 1.0, %v10817_v52  ;;  %v2734_v54 = vmul.f32 -0.5, %v10817_v52  ;;  %v2871_v21 = vmul.f32 %v10859_v63, %v2870_v60 }
 0x267   : > { %v2913_v45 = vsel %vm2145_vm10, %v10298_v25, %v2433_v59  ;;  %v2868_v56 = vmul.f32 0.6931472, %v7611_v23  ;;  %v2881_v11 = vand.u32 2147483647, %v10862_v5  ;;  %vm2195_vm14 = vcmp.gt.f32.partialorder %v10783_v38, 20.0  ;;  %6933 = vmatmul.msk.f32.gmra.mxu1 %vm1593_vm4, %v10948_v3 }
 0x268   : > { %3796 = vmatpush.msra.mxu3 %v2913_v45  ;;  %vm2178_vm15 = vcmp.gt.f32.partialorder %v10757_v36, 20.0  ;;  %v2726_v62 = vadd.f32 1.0, %v2725_v41  ;;  %7616 = vlog2.f32 %v2731_v61  ;;  %v2728_v2 = vand.u32 2147483647, %v10812_v39  ;;  %6929 = vmatmul.msk.f32.gmra.mxu0 %vm1593_vm4, %v10948_v3 }
 0x269   : > { %v7613_v35 = vpop.eup %7612  ;;  %v2874_v34 = vsel %vm11114_vm13, %v2871_v21, %v2868_v56  ;;  %v2735_v6 = vadd.f32 1.0, %v2734_v54  ;;  %v2578_v25 = vadd.f32 1.0, %v10634_v7  ;;  %v2880_v53 = vmul.f32 %v10862_v5, %v2879_v12  ;;  %6937 = vmatmul.msk.f32.gmra.mxu2 %vm1593_vm4, %v10948_v3  ;;  %6941 = vmatmul.msk.f32.gmra.mxu3 %vm1593_vm4, %v10948_v3 }
 0x26a   : > { %v2962_v63 = vsel %vm2194_vm12, %v10780_v50, %v2874_v34  ;;  %v2877_v46 = vmul.f32 0.6931472, %v7613_v35  ;;  %v2581_v47 = vmul.f32 -0.5, %v10634_v7  ;;  %vm2882_vm1 = vcmp.lt.f32.partialorder %v2881_v11, 0.0004427343  ;;  %v11148_v50 = vpop.f32.mrf.mxu3 }
 0x26b   : > { %v7615_v26 = vpop.eup %7614  ;;  %3822 = vmatpush.msrb.mxu0 %v2962_v63  ;;  %v2737_v60 = vand.u32 2147483647, %v10817_v52  ;;  %7618 = vlog2.f32 %v2578_v25  ;;  %v2587_v57 = vadd.f32 1.0, %v10665_v19  ;;  %v2727_v9 = vmul.f32 %v10812_v39, %v2726_v62  ;;  %v14435_v39 = vld [vmem:[#allocation5_spill] sm:$0xff] }
 0x26c   : > { %v2883_v5 = vsel %vm2882_vm1, %v2880_v53, %v2877_v46  ;;  %v2724_v30 = vmul.f32 0.6931472, %v7615_v26  ;;  %v2590_v41 = vmul.f32 -0.5, %v10665_v19  ;;  %vm2729_vm0 = vcmp.lt.f32.partialorder %v2728_v2, 0.0004427343  ;;  %v14437_v2 = vld [vmem:[#allocation31_spill] sm:$0xff] }
 0x26d   : > { %v2963_v24 = vsel %vm2195_vm14, %v10783_v38, %v2883_v5  ;;  %v2736_v23 = vmul.f32 %v10817_v52, %v2735_v6  ;;  %7620 = vlog2.f32 %v2587_v57  ;;  %v2582_v61 = vadd.f32 1.0, %v2581_v47  ;;  %v14436_v52 = vld [vmem:[#allocation8_spill] sm:$0xff] }
 0x26e   : > { %v7617_v59 = vpop.eup %7616  ;;  %3851 = vmatpush.msrb.mxu1 %v2963_v24  ;;  %v2730_v12 = vsel %vm2729_vm0, %v2727_v9, %v2724_v30  ;;  %v2584_v54 = vand.u32 2147483647, %v10634_v7  ;;  %v2434_v45 = vadd.f32 1.0, %v14435_v39  ;;  %v2591_v11 = vadd.f32 1.0, %v2590_v41  ;;  %v11188_v9 = vpop.f32.mrf.mxu0  ;;  %v14440_v24 = vld [vmem:[#allocation25_spill] sm:$0xff] }
 0x26f   : > { %v2946_v56 = vsel %vm2178_vm15, %v10757_v36, %v2730_v12  ;;  %v2733_v21 = vmul.f32 0.6931472, %v7617_v59  ;;  %v2437_v38 = vmul.f32 -0.5, %v14435_v39  ;;  %vm2179_vm2 = vcmp.gt.f32.partialorder %v10760_v14, 20.0  ;;  %6934 = vmatmul.msk.f32.gmra.mxu1 %vm1593_vm4, %v11001_v51  ;;  %v11190_v41 = vpop.f32.mrf.mxu1  ;;  %v11199_v59 = vpop.f32.mrf.mxu2 }
 0x270   : > { %3823 = vmatpush.msrb.mxu0 %v2946_v56  ;;  %vm2738_vm3 = vcmp.lt.f32.partialorder %v2737_v60, 0.0004427343  ;;  %vm2162_vm5 = vcmp.gt.f32.partialorder %v14436_v52, 20.0  ;;  %7622 = vlog2.f32 %v2434_v45  ;;  %v2593_v34 = vand.u32 2147483647, %v10665_v19  ;;  %v14441_v45 = vld [vmem:[#allocation38_spill] sm:$0xff] }
 0x271   : > { %v7619_v62 = vpop.eup %7618  ;;  %v2739_v35 = vsel %vm2738_vm3, %v2736_v23, %v2733_v21  ;;  %v2443_v6 = vadd.f32 1.0, %v14437_v2  ;;  %v2446_v25 = vmul.f32 -0.5, %v14437_v2  ;;  %6930 = vmatmul.msk.f32.gmra.mxu0 %vm1593_vm4, %v11001_v51  ;;  %v2583_v46 = vmul.f32 %v10634_v7, %v2582_v61  ;;  %6938 = vmatmul.msk.f32.gmra.mxu2 %vm1593_vm4, %v11001_v51 }
 0x272   : > { %v2947_v36 = vsel %vm2179_vm2, %v10760_v14, %v2739_v35  ;;  %v2580_v63 = vmul.f32 0.6931472, %v7619_v62  ;;  %vm11177_vm6 = vcmp.lt.f32.partialorder %v2584_v54, 0.0004427343  ;;  %v2592_v26 = vmul.f32 %v10665_v19, %v2591_v11  ;;  %6942 = vmatmul.msk.f32.gmra.mxu3 %vm1593_vm4, %v11001_v51  ;;  %v11201_v12 = vpop.f32.mrf.mxu3 }
 0x273   : > { %v7621_v47 = vpop.eup %7620  ;;  %3852 = vmatpush.msrb.mxu1 %v2947_v36  ;;  %v2438_v60 = vadd.f32 1.0, %v2437_v38  ;;  %v2440_v57 = vand.u32 2147483647, %v14435_v39  ;;  %7624 = vlog2.f32 %v2443_v6  ;;  %v2447_v7 = vadd.f32 1.0, %v2446_v25 }
 0x274   : > { %v2586_v14 = vsel %vm11177_vm6, %v2583_v46, %v2580_v63  ;;  %v2589_v5 = vmul.f32 0.6931472, %v7621_v47  ;;  %v2884_v30 = vadd.f32 1.0, %v10897_v32  ;;  %vm2163_vm7 = vcmp.gt.f32.partialorder %v14440_v24, 20.0 }
 0x275   : > { %v2930_v19 = vsel %vm2162_vm5, %v14436_v52, %v2586_v14  ;;  %vm2594_vm8 = vcmp.lt.f32.partialorder %v2593_v34, 0.0004427343  ;;  %v2887_v23 = vmul.f32 -0.5, %v10897_v32  ;;  %vm2146_vm9 = vcmp.gt.f32.partialorder %v14441_v45, 20.0 }
 0x276   : > { %v7623_v61 = vpop.eup %7622  ;;  %3824 = vmatpush.msrb.mxu0 %v2930_v19  ;;  %v2595_v54 = vsel %vm2594_vm8, %v2592_v26, %v2589_v5  ;;  %7626 = vlog2.f32 %v2884_v30  ;;  %v2893_v56 = vadd.f32 1.0, %v10928_v44  ;;  %v2439_v38 = vmul.f32 %v14435_v39, %v2438_v60  ;;  %v11215_v39 = vld [vmem:[%s13959_s1 + $0x40] sm:$0xff]  ;;  %v14442_v26 = vld [vmem:[#allocation39_spill] sm:$0xff]  ;;  %v11232_v30 = vpop.f32.mrf.mxu0 }
 0x277   : > { %v2931_v21 = vsel %vm2163_vm7, %v14440_v24, %v2595_v54  ;;  %v2436_v11 = vmul.f32 0.6931472, %v7623_v61  ;;  %v2449_v52 = vand.u32 2147483647, %v14437_v2  ;;  %vm2441_vm10 = vcmp.lt.f32.partialorder %v2440_v57, 0.0004427343  ;;  %6947 = vmatmul.msk.f32.vlgmr.msra.gmra.mxu1 %vm1593_vm4, %v11215_v39  ;;  %v11234_v19 = vpop.f32.mrf.mxu1 }
 0x278   : > { %3853 = vmatpush.msrb.mxu1 %v2931_v21  ;;  %v2448_v62 = vmul.f32 %v14437_v2, %v2447_v7  ;;  %7628 = vlog2.f32 %v2893_v56  ;;  %v2896_v35 = vmul.f32 -0.5, %v10928_v44  ;;  %v2888_v25 = vadd.f32 1.0, %v2887_v23 }
 0x279   : > { %v7625_v34 = vpop.eup %7624  ;;  %v2442_v6 = vsel %vm2441_vm10, %v2439_v38, %v2436_v11  ;;  %v2740_v36 = vadd.f32 1.0, %v10886_v4  ;;  %v2743_v63 = vmul.f32 -0.5, %v10886_v4  ;;  %6943 = vmatmul.msk.f32.vlgmr.msra.gmra.mxu0 %vm1593_vm4, %v11215_v39  ;;  %v2890_v53 = vand.u32 2147483647, %v10897_v32  ;;  %6951 = vmatmul.msk.f32.vlgmr.msra.gmra.mxu2 %vm1593_vm4, %v11215_v39 }
 0x27a   : > { %v2914_v2 = vsel %vm2146_vm9, %v14441_v45, %v2442_v6  ;;  %v2445_v46 = vmul.f32 0.6931472, %v7625_v34  ;;  %v2897_v47 = vadd.f32 1.0, %v2896_v35  ;;  %vm2147_vm11 = vcmp.gt.f32.partialorder %v14442_v26, 20.0  ;;  %6955 = vmatmul.msk.f32.vlgmr.msra.gmra.mxu3 %vm1593_vm4, %v11215_v39  ;;  %v11240_v45 = vpop.f32.mrf.mxu2  ;;  %v11242_v56 = vpop.f32.mrf.mxu3 }
 0x27b   : > { %3825 = vmatpush.msrb.mxu0 %v2914_v2  ;;  %vm2450_vm12 = vcmp.lt.f32.partialorder %v2449_v52, 0.0004427343  ;;  %vm2196_vm13 = vcmp.gt.f32.partialorder %v10821_v13, 20.0  ;;  %7630 = vlog2.f32 %v2740_v36  ;;  %v2899_v14 = vand.u32 2147483647, %v10928_v44 }
 0x27c   : > { %v7627_v60 = vpop.eup %7626  ;;  %v2451_v57 = vsel %vm2450_vm12, %v2448_v62, %v2445_v46  ;;  %v2749_v5 = vadd.f32 1.0, %v10890_v42  ;;  %v2752_v7 = vmul.f32 -0.5, %v10890_v42  ;;  %v2889_v61 = vmul.f32 %v10897_v32, %v2888_v25 }
 0x27d   : > { %v2915_v24 = vsel %vm2147_vm11, %v14442_v26, %v2451_v57  ;;  %v2886_v23 = vmul.f32 0.6931472, %v7627_v60  ;;  %v2744_v54 = vadd.f32 1.0, %v2743_v63  ;;  %vm2891_vm14 = vcmp.lt.f32.partialorder %v2890_v53, 0.0004427343  ;;  %v14443_v60 = vld [vmem:[#allocation16_spill] sm:$0xff] }
 0x27e   : > { %v7629_v21 = vpop.eup %7628  ;;  %3854 = vmatpush.msrb.mxu1 %v2915_v24  ;;  %v2898_v11 = vmul.f32 %v10928_v44, %v2897_v47  ;;  %v2746_v38 = vand.u32 2147483647, %v10886_v4  ;;  %7632 = vlog2.f32 %v2749_v5  ;;  %v2596_v35 = vadd.f32 1.0, %v10823_v22 }
 0x27f   : > { %v2892_v52 = vsel %vm2891_vm14, %v2889_v61, %v2886_v23  ;;  %v2895_v62 = vmul.f32 0.6931472, %v7629_v21  ;;  %v2599_v34 = vmul.f32 -0.5, %v10823_v22  ;;  %vm2900_vm15 = vcmp.lt.f32.partialorder %v2899_v14, 0.0004427343  ;;  %6948 = vmatmul.msk.f32.gmra.mxu1 %vm1593_vm4, %v10835_v0  ;;  %v11266_v14 = vpop.f32.mrf.mxu0  ;;  %v11268_v5 = vpop.f32.mrf.mxu1 }
 0x280   : > { %v2964_v32 = vsel %vm2196_vm13, %v10821_v13, %v2892_v52  ;;  %v2753_v6 = vadd.f32 1.0, %v2752_v7  ;;  %vm2197_vm1 = vcmp.gt.f32.partialorder %v10827_v29, 20.0  ;;  %v2745_v36 = vmul.f32 %v10886_v4, %v2744_v54 }
 0x281   : > { %v7631_v25 = vpop.eup %7630  ;;  %3880 = vmatpush.msrb.mxu2 %v2964_v32  ;;  %v2901_v44 = vsel %vm2900_vm15, %v2898_v11, %v2895_v62  ;;  %7634 = vlog2.f32 %v2596_v35  ;;  %6944 = vmatmul.msk.f32.gmra.mxu0 %vm1593_vm4, %v10835_v0  ;;  %v2755_v46 = vand.u32 2147483647, %v10890_v42  ;;  %v2605_v13 = vadd.f32 1.0, %v10837_v18 }
 0x282   : > { %v2965_v63 = vsel %vm2197_vm1, %v10827_v29, %v2901_v44  ;;  %v2742_v2 = vmul.f32 0.6931472, %v7631_v25  ;;  %vm2180_vm0 = vcmp.gt.f32.partialorder %v10796_v17, 20.0  ;;  %vm2747_vm2 = vcmp.lt.f32.partialorder %v2746_v38, 0.0004427343  ;;  %6952 = vmatmul.msk.f32.gmra.mxu2 %vm1593_vm4, %v10835_v0  ;;  %6956 = vmatmul.msk.f32.gmra.mxu3 %vm1593_vm4, %v10835_v0  ;;  %v11275_v54 = vpop.f32.mrf.mxu2  ;;  %v14445_v44 = vld [vmem:[#allocation19_spill] sm:$0xff] }
 0x283   : > { %3909 = vmatpush.msrb.mxu3 %v2965_v63  ;;  %v2600_v53 = vadd.f32 1.0, %v2599_v34  ;;  %v2608_v4 = vmul.f32 -0.5, %v10837_v18  ;;  %v2754_v26 = vmul.f32 %v10890_v42, %v2753_v6  ;;  %7636 = vlog2.f32 %v2605_v13  ;;  %v11277_v42 = vpop.f32.mrf.mxu3  ;;  %v14446_v13 = vld [vmem:[#allocation22_spill] sm:$0xff] }
 0x284   : > { %v7633_v47 = vpop.eup %7632  ;;  %v2748_v29 = vsel %vm2747_vm2, %v2745_v36, %v2742_v2  ;;  %v2452_v57 = vadd.f32 1.0, %v14443_v60  ;;  %v2602_v23 = vand.u32 2147483647, %v10823_v22  ;;  %v2455_v61 = vmul.f32 -0.5, %v14443_v60 }
 0x285   : > { %v2948_v7 = vsel %vm2180_vm0, %v10796_v17, %v2748_v29  ;;  %v2751_v24 = vmul.f32 0.6931472, %v7633_v47  ;;  %vm2181_vm3 = vcmp.gt.f32.partialorder %v10803_v33, 20.0  ;;  %vm2756_vm5 = vcmp.lt.f32.partialorder %v2755_v46, 0.0004427343  ;;  %v14444_v17 = vld [vmem:[#allocation12_spill] sm:$0xff] }
 0x286   : > { %3881 = vmatpush.msrb.mxu2 %v2948_v7  ;;  %7638 = vlog2.f32 %v2452_v57  ;;  %v2601_v0 = vmul.f32 %v10823_v22, %v2600_v53  ;;  %v2609_v38 = vadd.f32 1.0, %v2608_v4  ;;  %v2461_v52 = vadd.f32 1.0, %v14444_v17 }
 0x287   : > { %v7635_v21 = vpop.eup %7634  ;;  %v2757_v11 = vsel %vm2756_vm5, %v2754_v26, %v2751_v24  ;;  %v2611_v34 = vand.u32 2147483647, %v10837_v18  ;;  %v2464_v32 = vmul.f32 -0.5, %v14444_v17  ;;  %vm2603_vm6 = vcmp.lt.f32.partialorder %v2602_v23, 0.0004427343  ;;  %6949 = vmatmul.msk.f32.gmra.mxu1 %vm1593_vm4, %v10948_v3  ;;  %v11296_v4 = vpop.f32.mrf.mxu0 }
 0x288   : > { %v2949_v62 = vsel %vm2181_vm3, %v10803_v33, %v2757_v11  ;;  %v2598_v35 = vmul.f32 0.6931472, %v7635_v21  ;;  %v2456_v6 = vadd.f32 1.0, %v2455_v61  ;;  %7640 = vlog2.f32 %v2461_v52  ;;  %14447 = vst [vmem:[#allocation32_spill] sm:$0xff] %v11296_v4  ;;  %v11298_v47 = vpop.f32.mrf.mxu1  ;;  %v14451_v21 = vld [vmem:[#allocation27_spill] sm:$0xff] }
 0x289   : > { %3910 = vmatpush.msrb.mxu3 %v2949_v62  ;;  %6945 = vmatmul.msk.f32.gmra.mxu0 %vm1593_vm4, %v10948_v3  ;;  %v7637_v25 = vpop.eup %7636  ;;  %vm2164_vm7 = vcmp.gt.f32.partialorder %v14445_v44, 20.0  ;;  %v2458_v36 = vand.u32 2147483647, %v14443_v60  ;;  %v2610_v2 = vmul.f32 %v10837_v18, %v2609_v38  ;;  %vm2165_vm8 = vcmp.gt.f32.partialorder %v14446_v13, 20.0  ;;  %14448 = vst [vmem:[#allocation33_spill] sm:$0xff] %v11298_v47 }
 0x28a   : > { %v2604_v22 = vsel %vm2603_vm6, %v2601_v0, %v2598_v35  ;;  %v2607_v63 = vmul.f32 0.6931472, %v7637_v25  ;;  %6953 = vmatmul.msk.f32.gmra.mxu2 %vm1593_vm4, %v10948_v3  ;;  %vm2612_vm9 = vcmp.lt.f32.partialorder %v2611_v34, 0.0004427343  ;;  %v2465_v53 = vadd.f32 1.0, %v2464_v32  ;;  %6957 = vmatmul.msk.f32.gmra.mxu3 %vm1593_vm4, %v10948_v3  ;;  %v11304_v7 = vpop.f32.mrf.mxu2 }
 0x28b   : > { %v2932_v33 = vsel %vm2164_vm7, %v14445_v44, %v2604_v22  ;;  %v2457_v18 = vmul.f32 %v14443_v60, %v2456_v6  ;;  %v2467_v57 = vand.u32 2147483647, %v14444_v17  ;;  %14449 = vst [vmem:[#allocation34_spill] sm:$0xff] %v11304_v7  ;;  %v11306_v24 = vpop.f32.mrf.mxu3  ;;  %vm2459_vm10 = vcmp.lt.f32.partialorder %v2458_v36, 0.0004427343  ;;  %v14452_v60 = vld [vmem:[#allocation15_spill] sm:$0xff] }
 0x28c   : > { %v7639_v46 = vpop.eup %7638  ;;  %3882 = vmatpush.msrb.mxu2 %v2932_v33  ;;  %v2613_v29 = vsel %vm2612_vm9, %v2610_v2, %v2607_v63  ;;  %14450 = vst [vmem:[#allocation20_spill] sm:$0xff] %v11306_v24  ;;  %vm2148_vm11 = vcmp.gt.f32.partialorder %v14451_v21, 20.0  ;;  %v2466_v52 = vmul.f32 %v14444_v17, %v2465_v53  ;;  %vm2149_vm13 = vcmp.gt.f32.partialorder %v14452_v60, 20.0  ;;  %v8179_v33 = vld [vmem:[%s13959_s1 + $0x48] sm:$0xff] }
 0x28d   : > { %v2454_v26 = vmul.f32 0.6931472, %v7639_v46  ;;  %v2933_v23 = vsel %vm2165_vm8, %v14446_v13, %v2613_v29  ;;  %vm2468_vm12 = vcmp.lt.f32.partialorder %v2467_v57, 0.0004427343 }
 0x28e   : > { %v7641_v61 = vpop.eup %7640  ;;  %3911 = vmatpush.msrb.mxu3 %v2933_v23 }
 0x28f   : > { %v2460_v11 = vsel %vm2459_vm10, %v2457_v18, %v2454_v26  ;;  %v2463_v38 = vmul.f32 0.6931472, %v7641_v61  ;;  %6950 = vmatmul.msk.f32.gmra.mxu1 %vm1593_vm4, %v11001_v51  ;;  %v11320_v34 = vpop.f32.mrf.mxu0 }
 0x290   : > { %v2916_v0 = vsel %vm2148_vm11, %v14451_v21, %v2460_v11  ;;  %14453 = vst [vmem:[#allocation35_spill] sm:$0xff] %v11320_v34  ;;  %v11322_v17 = vpop.f32.mrf.mxu1 }
 0x291   : > { %3883 = vmatpush.msrb.mxu2 %v2916_v0  ;;  %6946 = vmatmul.msk.f32.gmra.mxu0 %vm1593_vm4, %v11001_v51  ;;  %v2469_v62 = vsel %vm2468_vm12, %v2466_v52, %v2463_v38  ;;  %14454 = vst [vmem:[#allocation28_spill] sm:$0xff] %v11322_v17 }
 0x292   : > { %v2917_v35 = vsel %vm2149_vm13, %v14452_v60, %v2469_v62  ;;  %6954 = vmatmul.msk.f32.gmra.mxu2 %vm1593_vm4, %v11001_v51  ;;  %v11324_v32 = vpop.f32.mrf.mxu2  ;;  %6958 = vmatmul.msk.f32.gmra.mxu3 %vm1593_vm4, %v11001_v51 }
 0x293   : > { %3912 = vmatpush.msrb.mxu3 %v2917_v35  ;;  %14455 = vst [vmem:[#allocation21_spill] sm:$0xff] %v11324_v32  ;;  %v11326_v6 = vpop.f32.mrf.mxu3 }
 0x294   : > { %14456 = vst [vmem:[#allocation29_spill] sm:$0xff] %v11326_v6 }
 0x297   : > { %6963 = vmatmul.msk.f32.vlgmr.msrb.gmra.mxu1 %vm1593_vm4, %v11215_v39  ;;  %v11336_v25 = vpop.f32.mrf.mxu0 }
 0x298   : > { %14457 = vst [vmem:[#allocation6_spill] sm:$0xff] %v11336_v25  ;;  %v11338_v44 = vpop.f32.mrf.mxu1 }
 0x299   : > { %6959 = vmatmul.msk.f32.vlgmr.msrb.gmra.mxu0 %vm1593_vm4, %v11215_v39  ;;  %14458 = vst [vmem:[#allocation23_spill] sm:$0xff] %v11338_v44 }
 0x29a   : > { %6967 = vmatmul.msk.f32.vlgmr.msrb.gmra.mxu2 %vm1593_vm4, %v11215_v39  ;;  %v11340_v22 = vpop.f32.mrf.mxu2  ;;  %6971 = vmatmul.msk.f32.vlgmr.msrb.gmra.mxu3 %vm1593_vm4, %v11215_v39 }
 0x29b   : > { %14459 = vst [vmem:[#allocation7_spill] sm:$0xff] %v11340_v22  ;;  %v11342_v36 = vpop.f32.mrf.mxu3 }
 0x29c   : > { %14460 = vst [vmem:[#allocation13_spill] sm:$0xff] %v11342_v36 }
 0x29f   : > { %6964 = vmatmul.msk.f32.gmra.mxu1 %vm1593_vm4, %v8179_v33  ;;  %v11352_v63 = vpop.f32.mrf.mxu0 }
 0x2a0   : > { %14461 = vst [vmem:[#allocation24_spill] sm:$0xff] %v11352_v63  ;;  %v11354_v2 = vpop.f32.mrf.mxu1 }
 0x2a1   : > { %6960 = vmatmul.msk.f32.gmra.mxu0 %vm1593_vm4, %v8179_v33  ;;  %14462 = vst [vmem:[#allocation14_spill] sm:$0xff] %v11354_v2 }
 0x2a2   : > { %6968 = vmatmul.msk.f32.gmra.mxu2 %vm1593_vm4, %v8179_v33  ;;  %v11356_v46 = vpop.f32.mrf.mxu2  ;;  %6972 = vmatmul.msk.f32.gmra.mxu3 %vm1593_vm4, %v8179_v33 }
 0x2a3   : > { %14463 = vst [vmem:[#allocation36_spill] sm:$0xff] %v11356_v46  ;;  %v11358_v13 = vpop.f32.mrf.mxu3 }
 0x2a4   : > { %14464 = vst [vmem:[#allocation37_spill] sm:$0xff] %v11358_v13 }
 0x2a7   : > { %6965 = vmatmul.msk.f32.gmra.mxu1 %vm1593_vm4, %v10948_v3  ;;  %v11367_v39 = vpop.f32.mrf.mxu0 }
 0x2a8   : > { %14465 = vst [vmem:[#allocation26_spill] sm:$0xff] %v11367_v39  ;;  %v11369_v53 = vpop.f32.mrf.mxu1 }
 0x2a9   : > { %6961 = vmatmul.msk.f32.gmra.mxu0 %vm1593_vm4, %v10948_v3  ;;  %14466 = vst [vmem:[#allocation30_spill] sm:$0xff] %v11369_v53 }
 0x2aa   : > { %6969 = vmatmul.msk.f32.gmra.mxu2 %vm1593_vm4, %v10948_v3  ;;  %v11371_v29 = vpop.f32.mrf.mxu2  ;;  %6973 = vmatmul.msk.f32.gmra.mxu3 %vm1593_vm4, %v10948_v3 }
 0x2ab   : > { %14467 = vst [vmem:[#allocation5_spill] sm:$0xff] %v11371_v29  ;;  %v11373_v26 = vpop.f32.mrf.mxu3  ;;  %v14482_v29 = vld [vmem:[#allocation10_spill] sm:$0xff] }
 0x2ac   : > { %14468 = vst [vmem:[#allocation8_spill] sm:$0xff] %v11373_v26 }
 0x2af   : > { %6966 = vmatmul.msk.f32.gmra.mxu1 %vm1593_vm4, %v11001_v51  ;;  %v11383_v18 = vpop.f32.mrf.mxu0 }
 0x2b0   : > { %14469 = vst [vmem:[#allocation31_spill] sm:$0xff] %v11383_v18  ;;  %v11385_v57 = vpop.f32.mrf.mxu1 }
 0x2b1   : > { %6962 = vmatmul.msk.f32.gmra.mxu0 %vm1593_vm4, %v11001_v51  ;;  %14470 = vst [vmem:[#allocation25_spill] sm:$0xff] %v11385_v57 }
 0x2b2   : > { %6970 = vmatmul.msk.f32.gmra.mxu2 %vm1593_vm4, %v11001_v51  ;;  %v11387_v23 = vpop.f32.mrf.mxu2  ;;  %6974 = vmatmul.msk.f32.gmra.mxu3 %vm1593_vm4, %v11001_v51 }
 0x2b3   : > { %14471 = vst [vmem:[#allocation38_spill] sm:$0xff] %v11387_v23  ;;  %v11389_v61 = vpop.f32.mrf.mxu3 }
 0x2b4   : > { %14472 = vst [vmem:[#allocation39_spill] sm:$0xff] %v11389_v61  ;;  %v14479_v61 = vld [vmem:[#allocation17_spill] sm:$0xff] }
 0x2b7   : > { %v11393_v3 = vpop.f32.mrf.mxu0 }
 0x2b8   : > { %14473 = vst [vmem:[#allocation16_spill] sm:$0xff] %v11393_v3  ;;  %v11395_v21 = vpop.f32.mrf.mxu1  ;;  %v14480_v3 = vld [vmem:[#allocation9_spill] sm:$0xff] }
 0x2b9   : > { %14474 = vst [vmem:[#allocation12_spill] sm:$0xff] %v11395_v21  ;;  %v14481_v21 = vld [vmem:[#allocation18_spill] sm:$0xff] }
 0x2ba   : > { %v11397_v11 = vpop.f32.mrf.mxu2 }
 0x2bb   : > { %14475 = vst [vmem:[#allocation19_spill] sm:$0xff] %v11397_v11  ;;  %v11399_v0 = vpop.f32.mrf.mxu3 }
 0x2bc   : > { %14476 = vst [vmem:[#allocation22_spill] sm:$0xff] %v11399_v0 }
 0x2bf   : > { %v3479_v38 = vpop.f32.mrf.mxu0 }
 0x2c0   : > { %v3508_v52 = vpop.f32.mrf.mxu1  ;;  %v11406_v23 = vadd.f32 %v3479_v38, %v14479_v61  ;;  %v14484_v38 = vld [vmem:[#allocation11_spill] sm:$0xff] }
 0x2c1   : > { %v11409_v18 = vadd.f32 %v3508_v52, %v14480_v3 }
 0x2c2   : > { %v11401_v60 = vpop.f32.mrf.mxu2  ;;  %v3926_v0 = vmin.f32 %v11406_v23, 20.0  ;;  %vm3990_vm10 = vcmp.gt.f32.partialorder %v11406_v23, 20.0 }
 0x2c3   : > { %14477 = vst [vmem:[#allocation27_spill] sm:$0xff] %v11401_v60  ;;  %v11403_v62 = vpop.f32.mrf.mxu3  ;;  %vm3991_vm13 = vcmp.gt.f32.partialorder %v11409_v18, 20.0 }
 0x2c4   : > { %14478 = vst [vmem:[#allocation15_spill] sm:$0xff] %v11403_v62  ;;  %v3927_v62 = vmin.f32 %v11409_v18, 20.0  ;;  %v4054_v39 = vmul.f32 1.442695, %v3926_v0 }
 0x2c6   : > { %v4056_v46 = vmul.f32 1.442695, %v3927_v62  ;;  %7642 = vpow2.f32 %v4054_v39 }
 0x2c7   : > { %v3482_v35 = vpop.f32.mrf.mxu0 }
 0x2c8   : > { %v3511_v33 = vpop.f32.mrf.mxu1  ;;  %v11412_v11 = vadd.f32 %v3482_v35, %v10902_v10  ;;  %7644 = vpow2.f32 %v4056_v46 }
 0x2c9   : > { %v11416_v26 = vadd.f32 %v3511_v33, %v14481_v21 }
 0x2ca   : > { %v3537_v51 = vpop.f32.mrf.mxu2  ;;  %v3942_v60 = vmin.f32 %v11412_v11, 20.0  ;;  %vm4006_vm7 = vcmp.gt.f32.partialorder %v11412_v11, 20.0 }
 0x2cb   : > { %v3566_v57 = vpop.f32.mrf.mxu3  ;;  %v11421_v61 = vadd.f32 %v3537_v51, %v14482_v29  ;;  %v3943_v10 = vmin.f32 %v11416_v26, 20.0  ;;  %vm4007_vm9 = vcmp.gt.f32.partialorder %v11416_v26, 20.0 }
 0x2cc   : > { %v11424_v53 = vadd.f32 %v3566_v57, %v14484_v38  ;;  %v4086_v51 = vmul.f32 1.442695, %v3942_v60 }
 0x2cd   : > { %14483 = vst [vmem:[#allocation17_spill] sm:$0xff] %v11421_v61  ;;  %v3928_v0 = vmin.f32 %v11421_v61, 20.0 }
 0x2ce   : > { %14485 = vst [vmem:[#allocation9_spill] sm:$0xff] %v11424_v53  ;;  %7646 = vpow2.f32 %v4086_v51 }
 0x2cf   : > { %v3485_v3 = vpop.f32.mrf.mxu0 }
 0x2d0   : > { %v3514_v52 = vpop.f32.mrf.mxu1  ;;  %v11428_v35 = vadd.f32 %v3485_v3, %v10978_v55  ;;  %v3929_v3 = vmin.f32 %v11424_v53, 20.0 }
 0x2d1   : > { %v11431_v21 = vadd.f32 %v3514_v52, %v10980_v43  ;;  %v4088_v43 = vmul.f32 1.442695, %v3943_v10 }
 0x2d2   : > { %v3540_v33 = vpop.f32.mrf.mxu2  ;;  %v3958_v38 = vmin.f32 %v11428_v35, 20.0  ;;  %vm4022_vm3 = vcmp.gt.f32.partialorder %v11428_v35, 20.0 }
 0x2d3   : > { %v3569_v13 = vpop.f32.mrf.mxu3  ;;  %v11434_v29 = vadd.f32 %v3540_v33, %v10990_v31  ;;  %v3959_v55 = vmin.f32 %v11431_v21, 20.0  ;;  %vm4023_vm6 = vcmp.gt.f32.partialorder %v11431_v21, 20.0 }
 0x2d4   : > { %v11437_v57 = vadd.f32 %v3569_v13, %v10992_v15  ;;  %v4118_v52 = vmul.f32 1.442695, %v3958_v38  ;;  %v4058_v15 = vmul.f32 1.442695, %v3928_v0  ;;  %v4060_v13 = vmul.f32 1.442695, %v3929_v3  ;;  %v11457_v0 = vpop.eup %7642 }
 0x2d5   : > { %v3944_v62 = vmin.f32 %v11434_v29, 20.0  ;;  %v4120_v31 = vmul.f32 1.442695, %v3959_v55 }
 0x2d6   : > { %14486 = vst [vmem:[#allocation18_spill] sm:$0xff] %v11437_v57  ;;  %v3945_v33 = vmin.f32 %v11437_v57, 20.0  ;;  %7648 = vpow2.f32 %v4118_v52 }
 0x2d7   : > { %v3488_v60 = vpop.f32.mrf.mxu0  ;;  %7650 = vpow2.f32 %v4088_v43  ;;  %v4090_v63 = vmul.f32 1.442695, %v3944_v62  ;;  %v11461_v43 = vpop.eup %7644 }
 0x2d8   : > { %v3517_v2 = vpop.f32.mrf.mxu1  ;;  %v11446_v36 = vadd.f32 %v3488_v60, %v11034_v28  ;;  %7652 = vpow2.f32 %v4120_v31  ;;  %v4092_v46 = vmul.f32 1.442695, %v3945_v33 }
 0x2d9   : > { %v11449_v39 = vadd.f32 %v3517_v2, %v11036_v48  ;;  %7654 = vpow2.f32 %v4058_v15  ;;  %v11464_v2 = vpop.eup %7646 }
 0x2da   : > { %v3543_v10 = vpop.f32.mrf.mxu2  ;;  %v3974_v3 = vmin.f32 %v11446_v36, 20.0  ;;  %7656 = vpow2.f32 %v4060_v13  ;;  %vm4038_vm15 = vcmp.gt.f32.partialorder %v11446_v36, 20.0 }
 0x2db   : > { %v3572_v38 = vpop.f32.mrf.mxu3  ;;  %v11452_v55 = vadd.f32 %v3543_v10, %v11040_v1  ;;  %v3975_v28 = vmin.f32 %v11449_v39, 20.0  ;;  %7658 = vpow2.f32 %v4090_v63  ;;  %vm4039_vm1 = vcmp.gt.f32.partialorder %v11449_v39, 20.0 }
 0x2dc   : > { %v11455_v51 = vadd.f32 %v3572_v38, %v11042_v40  ;;  %v4150_v1 = vmul.f32 1.442695, %v3974_v3  ;;  %v11467_v62 = vpop.eup %7648  ;;  %7660 = vpow2.f32 %v4092_v46 }
 0x2dd   : > { %v3960_v48 = vmin.f32 %v11452_v55, 20.0  ;;  %v4152_v52 = vmul.f32 1.442695, %v3975_v28  ;;  %v11469_v31 = vpop.eup %7650  ;;  %v4473_v22 = vmul.f32 -0.5, %v11467_v62 }
 0x2de   : > { %v3961_v40 = vmin.f32 %v11455_v51, 20.0  ;;  %7662 = vpow2.f32 %v4150_v1  ;;  %v11471_v33 = vpop.eup %7652 }
 0x2df   : > { %7664 = vpow2.f32 %v4152_v52  ;;  %v4122_v15 = vmul.f32 1.442695, %v3960_v48  ;;  %v3595_v13 = vpop.f32.mrf.mxu0  ;;  %v11473_v10 = vpop.eup %7654  ;;  %v4479_v44 = vadd.f32 1.0, %v11471_v33  ;;  %v4482_v25 = vmul.f32 -0.5, %v11471_v33 }
 0x2e0   : > { %v3624_v60 = vpop.f32.mrf.mxu1  ;;  %14487 = vst [vmem:[#allocation10_spill] sm:$0xff] %v11473_v10  ;;  %v4124_v38 = vmul.f32 1.442695, %v3961_v40  ;;  %v11476_v63 = vadd.f32 %v3595_v13, %v11082_v8  ;;  %v11482_v1 = vpop.eup %7656  ;;  %v4470_v40 = vadd.f32 1.0, %v11467_v62  ;;  %v4329_v8 = vmul.f32 -0.5, %v11464_v2 }
 0x2e1   : > { %v11479_v3 = vadd.f32 %v3624_v60, %v11084_v20  ;;  %14490 = vst [vmem:[#allocation41_spill] sm:$0xff] %v11482_v1  ;;  %v11492_v13 = vpop.eup %7658  ;;  %7666 = vpow2.f32 %v4122_v15  ;;  %v4474_v53 = vadd.f32 1.0, %v4473_v22  ;;  %v4485_v61 = vand.u32 2147483647, %v11471_v33 }
 0x2e2   : > { %14488 = vst [vmem:[#allocation11_spill] sm:$0xff] %v11476_v63  ;;  %v3546_v28 = vpop.f32.mrf.mxu2  ;;  %v3930_v20 = vmin.f32 %v11476_v63, 20.0  ;;  %v11498_v6 = vpop.eup %7660  ;;  %7668 = vpow2.f32 %v4124_v38  ;;  %v4330_v34 = vadd.f32 1.0, %v4329_v8  ;;  %v4483_v7 = vadd.f32 1.0, %v4482_v25 }
 0x2e3   : > { %14489 = vst [vmem:[#allocation40_spill] sm:$0xff] %v11479_v3  ;;  %v3575_v46 = vpop.f32.mrf.mxu3  ;;  %v11485_v52 = vadd.f32 %v3546_v28, %v11090_v49  ;;  %v3931_v60 = vmin.f32 %v11479_v3, 20.0  ;;  %v4326_v28 = vadd.f32 1.0, %v11464_v2  ;;  %7670 = vlog2.f32 %v4470_v40 }
 0x2e4   : > { %v11488_v48 = vadd.f32 %v3575_v46, %v11092_v27  ;;  %v4476_v27 = vand.u32 2147483647, %v11467_v62  ;;  %v7663_v46 = vpop.eup %7662  ;;  %v4062_v32 = vmul.f32 1.442695, %v3930_v20  ;;  %7672 = vlog2.f32 %v4479_v44 }
 0x2e5   : > { %v3976_v49 = vmin.f32 %v11485_v52, 20.0  ;;  %v7665_v3 = vpop.eup %7664  ;;  %v4617_v17 = vmul.f32 -0.5, %v7663_v46  ;;  %v4064_v24 = vmul.f32 1.442695, %v3931_v60  ;;  %v4614_v15 = vadd.f32 1.0, %v7663_v46 }
 0x2e6   : > { %v3977_v63 = vmin.f32 %v11488_v48, 20.0  ;;  %v4623_v57 = vadd.f32 1.0, %v7665_v3  ;;  %v4626_v10 = vmul.f32 -0.5, %v7665_v3  ;;  %7674 = vlog2.f32 %v4326_v28 }
 0x2e7   : > { %v4154_v47 = vmul.f32 1.442695, %v3976_v49  ;;  %v3598_v4 = vpop.f32.mrf.mxu0  ;;  %7676 = vpow2.f32 %v4062_v32  ;;  %v11511_v60 = vpop.eup %7666  ;;  %v4618_v49 = vadd.f32 1.0, %v4617_v17  ;;  %v4620_v28 = vand.u32 2147483647, %v7663_v46 }
 0x2e8   : > { %v3627_v1 = vpop.f32.mrf.mxu1  ;;  %v4156_v38 = vmul.f32 1.442695, %v3977_v63  ;;  %v11506_v22 = vadd.f32 %v3598_v4, %v11140_v58  ;;  %v11519_v32 = vpop.eup %7668  ;;  %7678 = vlog2.f32 %v4614_v15  ;;  %vm11523_vm14 = vcmp.lt.f32.partialorder %v4476_v27, 0.0004427343 }
 0x2e9   : > { %v11509_v40 = vadd.f32 %v3627_v1, %v11142_v16  ;;  %v4629_v16 = vand.u32 2147483647, %v7665_v3  ;;  %v7671_v1 = vpop.eup %7670  ;;  %7680 = vlog2.f32 %v4623_v57  ;;  %v11530_v17 = vmul.f32 %v11467_v62, %v4474_v53 }
 0x2ea   : > { %14491 = vst [vmem:[#allocation42_spill] sm:$0xff] %v11506_v22  ;;  %v3653_v20 = vpop.f32.mrf.mxu2  ;;  %v3946_v58 = vmin.f32 %v11506_v22, 20.0  ;;  %7682 = vpow2.f32 %v4064_v24  ;;  %v11535_v27 = vmul.f32 %v11471_v33, %v4483_v7  ;;  %vm11537_vm0 = vcmp.lt.f32.partialorder %v4485_v61, 0.0004427343 }
 0x2eb   : > { %14492 = vst [vmem:[#allocation43_spill] sm:$0xff] %v11509_v40  ;;  %v3682_v8 = vpop.f32.mrf.mxu3  ;;  %v11514_v25 = vadd.f32 %v3653_v20, %v11146_v37  ;;  %v3947_v4 = vmin.f32 %v11509_v40, 20.0  ;;  %v7673_v20 = vpop.eup %7672  ;;  %7684 = vpow2.f32 %v4154_v47  ;;  %vm11541_vm2 = vcmp.lt.f32.partialorder %v4620_v28, 0.0004427343 }
 0x2ec   : > { %v11517_v44 = vadd.f32 %v3682_v8, %v11148_v50  ;;  %v4627_v50 = vadd.f32 1.0, %v4626_v10  ;;  %v4094_v57 = vmul.f32 1.442695, %v3946_v58  ;;  %v11547_v24 = vmul.f32 %v11464_v2, %v4330_v34 }
 0x2ed   : > { %14493 = vst [vmem:[#allocation44_spill] sm:$0xff] %v11514_v25  ;;  %v3932_v37 = vmin.f32 %v11514_v25, 20.0  ;;  %v7675_v25 = vpop.eup %7674  ;;  %7686 = vpow2.f32 %v4156_v38  ;;  %v4096_v7 = vmul.f32 1.442695, %v3947_v4  ;;  %v4619_v61 = vmul.f32 %v7663_v46, %v4618_v49 }
 0x2ee   : > { %14494 = vst [vmem:[#allocation45_spill] sm:$0xff] %v11517_v44  ;;  %v3933_v8 = vmin.f32 %v11517_v44, 20.0  ;;  %v11549_v53 = vpop.eup %7676  ;;  %vm11551_vm5 = vcmp.lt.f32.partialorder %v4629_v16, 0.0004427343  ;;  %v4628_v58 = vmul.f32 %v7665_v3, %v4627_v50  ;;  %v4472_v44 = vmul.f32 0.6931472, %v7671_v1 }
 0x2ef   : > { %14501 = vst [vmem:[#allocation46_spill] sm:$0xff] %v11549_v53  ;;  %v4066_v47 = vmul.f32 1.442695, %v3932_v37  ;;  %v3601_v33 = vpop.f32.mrf.mxu0  ;;  %v4481_v40 = vmul.f32 0.6931472, %v7673_v20  ;;  %v7679_v34 = vpop.eup %7678  ;;  %7688 = vpow2.f32 %v4094_v57  ;;  %v4335_v15 = vadd.f32 1.0, %v11469_v31 }
 0x2f0   : > { %v3630_v28 = vpop.f32.mrf.mxu1  ;;  %v4068_v22 = vmul.f32 1.442695, %v3933_v8  ;;  %v11558_v38 = vadd.f32 %v3601_v33, %v11188_v9  ;;  %v4332_v16 = vand.u32 2147483647, %v11464_v2  ;;  %v7681_v37 = vpop.eup %7680  ;;  %v4616_v53 = vmul.f32 0.6931472, %v7679_v34 }
 0x2f1   : > { %v11561_v46 = vadd.f32 %v3630_v28, %v11190_v41  ;;  %v4328_v1 = vmul.f32 0.6931472, %v7675_v25  ;;  %v11567_v50 = vpop.eup %7682  ;;  %v4625_v8 = vmul.f32 0.6931472, %v7681_v37  ;;  %7690 = vpow2.f32 %v4096_v7 }
 0x2f2   : > { %v3656_v49 = vpop.f32.mrf.mxu2  ;;  %v3962_v20 = vmin.f32 %v11558_v38, 20.0  ;;  %v11574_v33 = vpop.eup %7684  ;;  %v4622_v2 = vsel %vm11541_vm2, %v4619_v61, %v4616_v53  ;;  %v4487_v25 = vsel %vm11537_vm0, %v11535_v27, %v4481_v40  ;;  %vm11591_vm8 = vcmp.lt.f32.partialorder %v4332_v16, 0.0004427343 }
 0x2f3   : > { %v3685_v4 = vpop.f32.mrf.mxu3  ;;  %v11565_v3 = vadd.f32 %v3656_v49, %v11199_v59  ;;  %v3963_v9 = vmin.f32 %v11561_v46, 20.0  ;;  %v4478_v59 = vsel %vm11523_vm14, %v11530_v17, %v4472_v44  ;;  %v11584_v57 = vpop.eup %7686  ;;  %v4631_v7 = vsel %vm11551_vm5, %v4628_v58, %v4625_v8 }
 0x2f4   : > { %v11572_v41 = vadd.f32 %v3685_v4, %v11201_v12  ;;  %v4126_v28 = vmul.f32 1.442695, %v3962_v20  ;;  %v4806_v12 = vsel %vm4038_vm15, %v11446_v36, %v4622_v2  ;;  %v4807_v40 = vsel %vm4039_vm1, %v11449_v39, %v4631_v7 }
 0x2f5   : > { %v4128_v63 = vmul.f32 1.442695, %v3963_v9  ;;  %4866 = vmatpush.msra.mxu0 %v4806_v12  ;;  %v3948_v44 = vmin.f32 %v11565_v3, 20.0  ;;  %v4334_v17 = vsel %vm11591_vm8, %v11547_v24, %v4328_v1  ;;  %7692 = vpow2.f32 %v4066_v47  ;;  %4895 = vmatpush.msra.mxu1 %v4807_v40  ;;  %v11607_v53 = vpop.eup %7688 }
 0x2f6   : > { %v3949_v36 = vmin.f32 %v11572_v41, 20.0  ;;  %v4790_v27 = vsel %vm4022_vm3, %v11428_v35, %v4478_v59  ;;  %7694 = vpow2.f32 %v4068_v22  ;;  %v4791_v39 = vsel %vm4023_vm6, %v11431_v21, %v4487_v25 }
 0x2f7   : > { %4867 = vmatpush.msra.mxu0 %v4790_v27  ;;  %v4338_v24 = vmul.f32 -0.5, %v11469_v31  ;;  %v3604_v61 = vpop.f32.mrf.mxu0  ;;  %v4182_v47 = vadd.f32 1.0, %v11457_v0  ;;  %7696 = vpow2.f32 %v4126_v28  ;;  %4896 = vmatpush.msra.mxu1 %v4791_v39  ;;  %v4774_v35 = vsel %vm4006_vm7, %v11412_v11, %v4334_v17  ;;  %v11621_v34 = vpop.eup %7690 }
 0x2f8   : > { %v3633_v62 = vpop.f32.mrf.mxu1  ;;  %v11618_v58 = vadd.f32 %v3604_v61, %v11232_v30  ;;  %v4185_v22 = vmul.f32 -0.5, %v11457_v0  ;;  %7698 = vpow2.f32 %v4128_v63  ;;  %v4098_v21 = vmul.f32 1.442695, %v3948_v44 }
 0x2f9   : > { %4868 = vmatpush.msra.mxu0 %v4774_v35  ;;  %v11624_v49 = vadd.f32 %v3633_v62, %v11234_v19  ;;  %v4100_v4 = vmul.f32 1.442695, %v3949_v36  ;;  %7700 = vlog2.f32 %v4335_v15  ;;  %v4341_v16 = vand.u32 2147483647, %v11469_v31 }
 0x2fa   : > { %v3978_v37 = vmin.f32 %v11618_v58, 20.0  ;;  %v3659_v11 = vpop.f32.mrf.mxu2  ;;  %v4339_v30 = vadd.f32 1.0, %v4338_v24  ;;  %7702 = vlog2.f32 %v4182_v47  ;;  %v4186_v8 = vadd.f32 1.0, %v4185_v22 }
 0x2fb   : > { %v3688_v1 = vpop.f32.mrf.mxu3  ;;  %v3979_v20 = vmin.f32 %v11624_v49, 20.0  ;;  %v11630_v9 = vpop.eup %7692  ;;  %v4188_v19 = vand.u32 2147483647, %v11457_v0  ;;  %v4191_v2 = vadd.f32 1.0, %v11461_v43  ;;  %v4194_v59 = vmul.f32 -0.5, %v11461_v43 }
 0x2fc   : > { %v11635_v25 = vpop.eup %7694  ;;  %7704 = vpow2.f32 %v4098_v21  ;;  %v11639_v28 = vadd.f32 %v3659_v11, %v11240_v45  ;;  %v11642_v12 = vadd.f32 %v3688_v1, %v11242_v56  ;;  %vm11646_vm11 = vcmp.lt.f32.partialorder %v4341_v16, 0.0004427343 }
 0x2fd   : > { %v11644_v7 = vpop.eup %7696  ;;  %7706 = vpow2.f32 %v4100_v4  ;;  %v4158_v63 = vmul.f32 1.442695, %v3978_v37  ;;  %v4632_v40 = vadd.f32 1.0, %v11574_v33  ;;  %v4340_v17 = vmul.f32 %v11469_v31, %v4339_v30 }
 0x2fe   : > { %v11651_v44 = vpop.eup %7698  ;;  %v4160_v36 = vmul.f32 1.442695, %v3979_v20  ;;  %v4197_v45 = vand.u32 2147483647, %v11461_v43  ;;  %v4635_v56 = vmul.f32 -0.5, %v11574_v33  ;;  %v4187_v15 = vmul.f32 %v11457_v0, %v4186_v8 }
 0x2ff   : > { %v7701_v27 = vpop.eup %7700  ;;  %vm11657_vm12 = vcmp.lt.f32.partialorder %v4188_v19, 0.0004427343  ;;  %7708 = vlog2.f32 %v4191_v2  ;;  %v4195_v24 = vadd.f32 1.0, %v4194_v59  ;;  %v3964_v31 = vmin.f32 %v11639_v28, 20.0  ;;  %v3711_v11 = vpop.f32.mrf.mxu0  ;;  %v11686_v2 = vld [vmem:[%s13959_s1 + $0x80] sm:$0xff] }
 0x300   : > { %v7703_v61 = vpop.eup %7702  ;;  %v4337_v62 = vmul.f32 0.6931472, %v7701_v27  ;;  %v3965_v47 = vmin.f32 %v11642_v12, 20.0  ;;  %7710 = vlog2.f32 %v4632_v40  ;;  %vm4040_vm14 = vcmp.gt.f32.partialorder %v11485_v52, 20.0  ;;  %v3740_v1 = vpop.f32.mrf.mxu1 }
 0x301   : > { %7712 = vpow2.f32 %v4158_v63  ;;  %v4184_v35 = vmul.f32 0.6931472, %v7703_v61  ;;  %v4638_v0 = vand.u32 2147483647, %v11574_v33  ;;  %v4641_v22 = vadd.f32 1.0, %v11584_v57 }
 0x302   : > { %v11667_v21 = vpop.eup %7704  ;;  %v4343_v4 = vsel %vm11646_vm11, %v4340_v17, %v4337_v62  ;;  %7714 = vpow2.f32 %v4160_v36  ;;  %vm11671_vm15 = vcmp.lt.f32.partialorder %v4197_v45, 0.0004427343  ;;  %v4636_v37 = vadd.f32 1.0, %v4635_v56 }
 0x303   : > { %v11675_v30 = vpop.eup %7706  ;;  %v4775_v20 = vsel %vm4007_vm9, %v11416_v26, %v4343_v4  ;;  %v4190_v8 = vsel %vm11657_vm12, %v4187_v15, %v4184_v35  ;;  %v4196_v19 = vmul.f32 %v11461_v43, %v4195_v24  ;;  %v4644_v59 = vmul.f32 -0.5, %v11584_v57 }
 0x304   : > { %4897 = vmatpush.msra.mxu1 %v4775_v20  ;;  %v4758_v10 = vsel %vm3990_vm10, %v11406_v23, %v4190_v8  ;;  %v4130_v63 = vmul.f32 1.442695, %v3964_v31  ;;  %v4132_v40 = vmul.f32 1.442695, %v3965_v47  ;;  %7716 = vlog2.f32 %v4641_v22 }
 0x305   : > { %v7709_v26 = vpop.eup %7708  ;;  %4869 = vmatpush.msra.mxu0 %v4758_v10  ;;  %vm11692_vm1 = vcmp.lt.f32.partialorder %v4638_v0, 0.0004427343  ;;  %vm4041_vm0 = vcmp.gt.f32.partialorder %v11488_v48, 20.0  ;;  %v11698_v43 = vadd.f32 %v3711_v11, %v11266_v14  ;;  %v11701_v36 = vadd.f32 %v3740_v1, %v11268_v5 }
 0x306   : > { %v4488_v45 = vadd.f32 1.0, %v11511_v60  ;;  %v7711_v23 = vpop.eup %7710  ;;  %v4193_v56 = vmul.f32 0.6931472, %v7709_v26  ;;  %6975 = vmatmul.msk.f32.vlgmr.msra.gmra.mxu0 %vm1593_vm4, %v11686_v2  ;;  %v4637_v27 = vmul.f32 %v11574_v33, %v4636_v37  ;;  %v4647_v15 = vand.u32 2147483647, %v11584_v57 }
 0x307   : > { %v4491_v39 = vmul.f32 -0.5, %v11511_v60  ;;  %v11709_v24 = vpop.eup %7712  ;;  %v4634_v14 = vmul.f32 0.6931472, %v7711_v23  ;;  %v4645_v61 = vadd.f32 1.0, %v4644_v59  ;;  %v3934_v5 = vmin.f32 %v11698_v43, 20.0  ;;  %v3691_v23 = vpop.f32.mrf.mxu3  ;;  %v14531_v59 = vld [vmem:[#allocation20_spill] sm:$0xff] }
 0x308   : > { %7718 = vlog2.f32 %v4488_v45  ;;  %v11712_v62 = vpop.eup %7714  ;;  %v4199_v31 = vsel %vm11671_vm15, %v4196_v19, %v4193_v56  ;;  %v3935_v47 = vmin.f32 %v11701_v36, 20.0  ;;  %v4494_v33 = vand.u32 2147483647, %v11511_v60 }
 0x309   : > { %7720 = vpow2.f32 %v4130_v63  ;;  %v4759_v35 = vsel %vm3991_vm13, %v11409_v18, %v4199_v31  ;;  %v4640_v0 = vsel %vm11692_vm1, %v4637_v27, %v4634_v14  ;;  %v4492_v22 = vadd.f32 1.0, %v4491_v39  ;;  %v3714_v14 = vpop.f32.mrf.mxu0 }
 0x30a   : > { %7722 = vpow2.f32 %v4132_v40  ;;  %v7717_v4 = vpop.eup %7716  ;;  %4898 = vmatpush.msra.mxu1 %v4759_v35  ;;  %v4808_v16 = vsel %vm4040_vm14, %v11485_v52, %v4640_v0  ;;  %vm11726_vm2 = vcmp.lt.f32.partialorder %v4647_v15, 0.0004427343  ;;  %v4497_v11 = vadd.f32 1.0, %v11519_v32  ;;  %v11739_v52 = vld [vmem:[%s13959_s1 + $0x88] sm:$0xff]  ;;  %v3662_v40 = vpop.f32.mrf.mxu2 }
 0x30b   : > { %v4500_v1 = vmul.f32 -0.5, %v11519_v32  ;;  %6979 = vmatmul.msk.f32.vlgmr.msra.gmra.mxu1 %vm1593_vm4, %v11686_v2  ;;  %4924 = vmatpush.msra.mxu2 %v4808_v16  ;;  %v4643_v18 = vmul.f32 0.6931472, %v7717_v4  ;;  %v4646_v20 = vmul.f32 %v11584_v57, %v4645_v61  ;;  %v4070_v8 = vmul.f32 1.442695, %v3934_v5  ;;  %v3743_v35 = vpop.f32.mrf.mxu1 }
 0x30c   : > { %vm4024_vm3 = vcmp.gt.f32.partialorder %v11452_v55, 20.0  ;;  %v4072_v19 = vmul.f32 1.442695, %v3935_v47  ;;  %vm11741_vm5 = vcmp.lt.f32.partialorder %v4494_v33, 0.0004427343  ;;  %v4344_v10 = vadd.f32 1.0, %v11492_v13 }
 0x30d   : > { %v4347_v63 = vmul.f32 -0.5, %v11492_v13  ;;  %v4649_v57 = vsel %vm11726_vm2, %v4646_v20, %v4643_v18  ;;  %v4493_v17 = vmul.f32 %v11511_v60, %v4492_v22  ;;  %7724 = vlog2.f32 %v4497_v11 }
 0x30e   : > { %v7719_v26 = vpop.eup %7718  ;;  %v4503_v45 = vand.u32 2147483647, %v11519_v32  ;;  %v4809_v27 = vsel %vm4041_vm0, %v11488_v48, %v4649_v57  ;;  %v4501_v39 = vadd.f32 1.0, %v4500_v1  ;;  %6976 = vmatmul.msk.f32.gmra.mxu0 %vm1593_vm4, %v11739_v52  ;;  %7726 = vlog2.f32 %v4344_v10  ;;  %v14520_v1 = vld [vmem:[#allocation10_spill] sm:$0xff] }
 0x30f   : > { %v11751_v56 = vpop.eup %7720  ;;  %v4490_v15 = vmul.f32 0.6931472, %v7719_v26  ;;  %4953 = vmatpush.msra.mxu3 %v4809_v27  ;;  %7728 = vpow2.f32 %v4070_v8  ;;  %vm4025_vm6 = vcmp.gt.f32.partialorder %v11455_v51, 20.0  ;;  %v4350_v60 = vand.u32 2147483647, %v11492_v13  ;;  %v14523_v10 = vld [vmem:[#allocation18_spill] sm:$0xff] }
 0x310   : > { %v11758_v61 = vpop.eup %7722  ;;  %v4353_v5 = vadd.f32 1.0, %v11498_v6  ;;  %v4348_v31 = vadd.f32 1.0, %v4347_v63  ;;  %v4356_v47 = vmul.f32 -0.5, %v11498_v6  ;;  %v11767_v33 = vadd.f32 %v3662_v40, %v11275_v54  ;;  %v14533_v26 = vld [vmem:[#allocation35_spill] sm:$0xff] }
 0x311   : > { %v4496_v48 = vsel %vm11741_vm5, %v4493_v17, %v4490_v15  ;;  %v4359_v22 = vand.u32 2147483647, %v11498_v6  ;;  %v11774_v4 = vadd.f32 %v3691_v23, %v11277_v42  ;;  %v4502_v16 = vmul.f32 %v11519_v32, %v4501_v39  ;;  %v11790_v32 = vld [vmem:[%s13959_s1 + $0x90] sm:$0xff]  ;;  %v14526_v23 = vld [vmem:[#allocation41_spill] sm:$0xff] }
 0x312   : > { %v4792_v0 = vsel %vm4024_vm3, %v11452_v55, %v4496_v48  ;;  %7730 = vlog2.f32 %v4353_v5  ;;  %vm11777_vm7 = vcmp.lt.f32.partialorder %v4503_v45, 0.0004427343  ;;  %vm4008_vm8 = vcmp.gt.f32.partialorder %v11434_v29, 20.0  ;;  %v3769_v15 = vpop.f32.mrf.mxu2 }
 0x313   : > { %7732 = vpow2.f32 %v4072_v19  ;;  %4925 = vmatpush.msra.mxu2 %v4792_v0  ;;  %v7725_v54 = vpop.eup %7724  ;;  %6980 = vmatmul.msk.f32.gmra.mxu1 %vm1593_vm4, %v11739_v52  ;;  %v4357_v55 = vadd.f32 1.0, %v4356_v47  ;;  %v3980_v11 = vmin.f32 %v11767_v33, 20.0  ;;  %v4200_v42 = vadd.f32 1.0, %v14520_v1  ;;  %v3798_v47 = vpop.f32.mrf.mxu3 }
 0x314   : > { %v4203_v18 = vmul.f32 -0.5, %v14520_v1  ;;  %v7727_v20 = vpop.eup %7726  ;;  %v4499_v8 = vmul.f32 0.6931472, %v7725_v54  ;;  %v4349_v19 = vmul.f32 %v11492_v13, %v4348_v31  ;;  %vm11793_vm9 = vcmp.lt.f32.partialorder %v4350_v60, 0.0004427343  ;;  %v3717_v54 = vpop.f32.mrf.mxu0 }
 0x315   : > { %vm4009_vm10 = vcmp.gt.f32.partialorder %v14523_v10, 20.0  ;;  %v11798_v63 = vpop.eup %7728  ;;  %v4346_v40 = vmul.f32 0.6931472, %v7727_v20  ;;  %vm11800_vm11 = vcmp.lt.f32.partialorder %v4359_v22, 0.0004427343  ;;  %v3981_v57 = vmin.f32 %v11774_v4, 20.0 }
 0x316   : > { %7734 = vlog2.f32 %v4200_v42  ;;  %v4505_v17 = vsel %vm11777_vm7, %v4502_v16, %v4499_v8  ;;  %v4204_v13 = vadd.f32 1.0, %v4203_v18  ;;  %v4206_v45 = vand.u32 2147483647, %v14520_v1  ;;  %6977 = vmatmul.msk.f32.gmra.mxu0 %vm1593_vm4, %v11790_v32  ;;  %v14527_v42 = vld [vmem:[#allocation32_spill] sm:$0xff] }
 0x317   : > { %v4209_v27 = vadd.f32 1.0, %v14526_v23  ;;  %v4793_v60 = vsel %vm4025_vm6, %v11455_v51, %v4505_v17  ;;  %v4352_v5 = vsel %vm11793_vm9, %v4349_v19, %v4346_v40  ;;  %v4358_v48 = vmul.f32 %v11498_v6, %v4357_v55  ;;  %v14528_v6 = vld [vmem:[#allocation33_spill] sm:$0xff]  ;;  %v3746_v17 = vpop.f32.mrf.mxu1 }
 0x318   : > { %v7731_v39 = vpop.eup %7730  ;;  %v4162_v31 = vmul.f32 1.442695, %v3980_v11  ;;  %4954 = vmatpush.msra.mxu3 %v4793_v60  ;;  %v4776_v22 = vsel %vm4008_vm8, %v11434_v29, %v4352_v5  ;;  %v4212_v37 = vmul.f32 -0.5, %v14526_v23  ;;  %v4164_v51 = vmul.f32 1.442695, %v3981_v57  ;;  %v14529_v11 = vld [vmem:[#allocation34_spill] sm:$0xff] }
 0x319   : > { %v11817_v0 = vpop.eup %7732  ;;  %v4355_v16 = vmul.f32 0.6931472, %v7731_v39  ;;  %7736 = vlog2.f32 %v4209_v27  ;;  %4926 = vmatpush.msra.mxu2 %v4776_v22  ;;  %v11824_v18 = vadd.f32 %v3714_v14, %v14527_v42  ;;  %v11827_v55 = vadd.f32 %v3743_v35, %v14528_v6  ;;  %v14534_v5 = vld [vmem:[#allocation17_spill] sm:$0xff] }
 0x31a   : > { %v11830_v20 = vadd.f32 %v3769_v15, %v14529_v11  ;;  %v4205_v29 = vmul.f32 %v14520_v1, %v4204_v13  ;;  %v4213_v19 = vadd.f32 1.0, %v4212_v37  ;;  %v11836_v40 = vadd.f32 %v3798_v47, %v14531_v59  ;;  %v11851_v1 = vld [vmem:[%s13959_s1 + $0x98] sm:$0xff] }
 0x31b   : > { %v4361_v8 = vsel %vm11800_vm11, %v4358_v48, %v4355_v16  ;;  %v3950_v35 = vmin.f32 %v11824_v18, 20.0  ;;  %v3951_v27 = vmin.f32 %v11827_v55, 20.0  ;;  %6981 = vmatmul.msk.f32.gmra.mxu1 %vm1593_vm4, %v11790_v32  ;;  %v11846_v15 = vadd.f32 %v3717_v54, %v14533_v26  ;;  %v14535_v47 = vld [vmem:[#allocation28_spill] sm:$0xff] }
 0x31c   : > { %14530 = vst [vmem:[#allocation10_spill] sm:$0xff] %v11830_v20  ;;  %v7735_v57 = vpop.eup %7734  ;;  %v4777_v14 = vsel %vm4009_vm10, %v14523_v10, %v4361_v8  ;;  %v4215_v39 = vand.u32 2147483647, %v14526_v23  ;;  %v3936_v10 = vmin.f32 %v11830_v20, 20.0  ;;  %v3937_v60 = vmin.f32 %v11836_v40, 20.0 }
 0x31d   : > { %14532 = vst [vmem:[#allocation18_spill] sm:$0xff] %v11836_v40  ;;  %4955 = vmatpush.msra.mxu3 %v4777_v14  ;;  %v4202_v13 = vmul.f32 0.6931472, %v7735_v57  ;;  %vm3992_vm12 = vcmp.gt.f32.partialorder %v14534_v5, 20.0  ;;  %vm4207_vm13 = vcmp.lt.f32.partialorder %v4206_v45, 0.0004427343  ;;  %v11858_v22 = vadd.f32 %v3746_v17, %v14535_v47  ;;  %v3801_v14 = vpop.f32.mrf.mxu3 }
 0x31e   : > { %v4102_v48 = vmul.f32 1.442695, %v3950_v35  ;;  %7738 = vpow2.f32 %v4162_v31  ;;  %v4214_v54 = vmul.f32 %v14526_v23, %v4213_v19  ;;  %v4104_v42 = vmul.f32 1.442695, %v3951_v27  ;;  %6978 = vmatmul.msk.f32.gmra.mxu0 %vm1593_vm4, %v11851_v1  ;;  %v14536_v31 = vld [vmem:[#allocation9_spill] sm:$0xff]  ;;  %v3772_v19 = vpop.f32.mrf.mxu2 }
 0x31f   : > { %v7737_v16 = vpop.eup %7736  ;;  %v4208_v37 = vsel %vm4207_vm13, %v4205_v29, %v4202_v13  ;;  %v4074_v8 = vmul.f32 1.442695, %v3936_v10  ;;  %v3966_v59 = vmin.f32 %v11846_v15, 20.0  ;;  %7740 = vpow2.f32 %v4164_v51  ;;  %v14537_v10 = vld [vmem:[#allocation21_spill] sm:$0xff] }
 0x320   : > { %v4760_v6 = vsel %vm3992_vm12, %v14534_v5, %v4208_v37  ;;  %v4211_v11 = vmul.f32 0.6931472, %v7737_v16  ;;  %vm4216_vm14 = vcmp.lt.f32.partialorder %v4215_v39, 0.0004427343  ;;  %v4076_v45 = vmul.f32 1.442695, %v3937_v60 }
 0x321   : > { %4927 = vmatpush.msra.mxu2 %v4760_v6  ;;  %v3967_v17 = vmin.f32 %v11858_v22, 20.0  ;;  %vm3993_vm15 = vcmp.gt.f32.partialorder %v14536_v31, 20.0  ;;  %7742 = vpow2.f32 %v4102_v48  ;;  %v4650_v23 = vadd.f32 1.0, %v11709_v24  ;;  %v14538_v48 = vld [vmem:[#allocation29_spill] sm:$0xff] }
 0x322   : > { %v4217_v29 = vsel %vm4216_vm14, %v4214_v54, %v4211_v11  ;;  %6983 = vmatmul.msk.f32.vlgmr.msra.gmra.mxu2 %vm1593_vm4, %v11686_v2  ;;  %7744 = vpow2.f32 %v4104_v42  ;;  %v4653_v51 = vmul.f32 -0.5, %v11709_v24  ;;  %v4134_v35 = vmul.f32 1.442695, %v3966_v59 }
 0x323   : > { %v4761_v57 = vsel %vm3993_vm15, %v14536_v31, %v4217_v29  ;;  %7746 = vpow2.f32 %v4074_v8  ;;  %6982 = vmatmul.msk.f32.gmra.mxu1 %vm1593_vm4, %v11851_v1  ;;  %v4659_v27 = vadd.f32 1.0, %v11712_v62  ;;  %v4662_v26 = vmul.f32 -0.5, %v11712_v62  ;;  %v8181_v31 = vld [vmem:[%s13960_s2 + $0x8] sm:$0xff] }
 0x324   : > { %4956 = vmatpush.msra.mxu3 %v4761_v57  ;;  %v11876_v13 = vpop.eup %7738  ;;  %7748 = vpow2.f32 %v4076_v45  ;;  %v4136_v39 = vmul.f32 1.442695, %v3967_v17  ;;  %v11881_v60 = vadd.f32 %v3772_v19, %v14537_v10  ;;  %v4656_v5 = vand.u32 2147483647, %v11709_v24  ;;  %v8180_v17 = vld [vmem:[%s13960_s2] sm:$0xff] }
 0x325   : > { %6987 = vmatmul.msk.f32.vlgmr.msra.gmra.mxu3 %vm1593_vm4, %v11686_v2  ;;  %7750 = vlog2.f32 %v4650_v23  ;;  %v11885_v47 = vadd.f32 %v3801_v14, %v14538_v48  ;;  %v11887_v16 = vpop.eup %7740  ;;  %vm4042_vm1 = vcmp.gt.f32.partialorder %v11618_v58, 20.0  ;;  %v4654_v37 = vadd.f32 1.0, %v4653_v51 }
 0x326   : > { %7752 = vlog2.f32 %v4659_v27  ;;  %v4665_v54 = vand.u32 2147483647, %v11712_v62  ;;  %v3952_v42 = vmin.f32 %v11881_v60, 20.0  ;;  %v8254_v6 = vmov 3   ;;  %v8182_v27 = vld [vmem:[%s13960_s2 + $0x18] sm:$0xff] }
 0x327   : > { %14539 = vst [vmem:[#allocation41_spill] sm:$0xff] %v11885_v47  ;;  %7126 = vset.pattern.permute.xlu1 %v8254_v6  ;;  %7125 = vset.pattern.permute.xlu0 %v8254_v6  ;;  %v11892_v11 = vpop.eup %7742  ;;  %7754 = vpow2.f32 %v4134_v35  ;;  %v4663_v8 = vadd.f32 1.0, %v4662_v26  ;;  %v4506_v59 = vadd.f32 1.0, %v11644_v7  ;;  %v4509_v45 = vmul.f32 -0.5, %v11644_v7 }
 0x328   : > { %4827 = vperm.xlu1 %7126, %v8180_v17   ;;  %4831 = vperm.xlu0 %7125, %v8181_v31   ;;  %v11902_v29 = vpop.eup %7744  ;;  %7756 = vpow2.f32 %v4136_v39  ;;  %v4106_v23 = vmul.f32 1.442695, %v3952_v42  ;;  %v3953_v19 = vmin.f32 %v11885_v47, 20.0  ;;  %v4515_v57 = vadd.f32 1.0, %v11651_v44 }
 0x329   : > { %7124 = vset.pattern.permute.xlu2 %v8254_v6  ;;  %v11906_v51 = vpop.eup %7746  ;;  %vm11910_vm0 = vcmp.lt.f32.partialorder %v4656_v5, 0.0004427343  ;;  %vm4043_vm2 = vcmp.gt.f32.partialorder %v11624_v49, 20.0  ;;  %7758 = vlog2.f32 %v4506_v59  ;;  %v4512_v35 = vand.u32 2147483647, %v11644_v7 }
 0x32a   : > { %6984 = vmatmul.msk.f32.gmra.mxu2 %vm1593_vm4, %v11739_v52  ;;  %4839 = vperm.xlu2 %7124, %v8182_v27   ;;  %v11919_v26 = vpop.eup %7748  ;;  %v4655_v39 = vmul.f32 %v11709_v24, %v4654_v37  ;;  %vm11922_vm3 = vcmp.lt.f32.partialorder %v4665_v54, 0.0004427343  ;;  %vm4026_vm5 = vcmp.gt.f32.partialorder %v11558_v38, 20.0  ;;  %v4518_v5 = vmul.f32 -0.5, %v11651_v44 }
 0x32b   : > { %14542 = vst [vmem:[#allocation32_spill] sm:$0xff] %v11919_v26  ;;  %v7751_v48 = vpop.eup %7750  ;;  %v4664_v42 = vmul.f32 %v11712_v62, %v4663_v8  ;;  %7760 = vpow2.f32 %v4106_v23  ;;  %v4510_v6 = vadd.f32 1.0, %v4509_v45  ;;  %v4362_v59 = vadd.f32 1.0, %v11607_v53 }
 0x32c   : > { %v7753_v17 = vpop.eup %7752  ;;  %v4652_v24 = vmul.f32 0.6931472, %v7751_v48  ;;  %v4108_v37 = vmul.f32 1.442695, %v3953_v19  ;;  %7762 = vlog2.f32 %v4515_v57  ;;  %v4365_v54 = vmul.f32 -0.5, %v11607_v53  ;;  %v14547_v19 = vld [vmem:[#allocation42_spill] sm:$0xff]  ;;  %v3720_v48 = vpop.f32.mrf.mxu0 }
 0x32d   : > { %6988 = vmatmul.msk.f32.gmra.mxu3 %vm1593_vm4, %v11739_v52  ;;  %v11933_v31 = vpop.eup %7754  ;;  %v4661_v27 = vmul.f32 0.6931472, %v7753_v17  ;;  %vm11935_vm6 = vcmp.lt.f32.partialorder %v4512_v35, 0.0004427343  ;;  %vm4027_vm7 = vcmp.gt.f32.partialorder %v11561_v46, 20.0  ;;  %7764 = vlog2.f32 %v4362_v59  ;;  %v3749_v35 = vpop.f32.mrf.mxu1 }
 0x32e   : > { %v4521_v62 = vand.u32 2147483647, %v11651_v44  ;;  %v11941_v8 = vpop.eup %7756  ;;  %v4658_v45 = vsel %vm11910_vm0, %v4655_v39, %v4652_v24  ;;  %v4519_v23 = vadd.f32 1.0, %v4518_v5  ;;  %vm4010_vm8 = vcmp.gt.f32.partialorder %v14547_v19, 20.0 }
 0x32f   : > { %v4371_v57 = vadd.f32 1.0, %v11621_v34  ;;  %v7759_v17 = vpop.eup %7758  ;;  %v4810_v20 = vsel %vm4042_vm1, %v11618_v58, %v4658_v45  ;;  %v4667_v59 = vsel %vm11922_vm3, %v4664_v42, %v4661_v27  ;;  %v4511_v26 = vmul.f32 %v11644_v7, %v4510_v6  ;;  %v14551_v42 = vld [vmem:[#allocation23_spill] sm:$0xff]  ;;  %v14552_v45 = vld [vmem:[#allocation46_spill] sm:$0xff] }
 0x330   : > { %v4374_v14 = vmul.f32 -0.5, %v11621_v34  ;;  %4982 = vmatpush.msrb.mxu0 %v4810_v20  ;;  %v4811_v39 = vsel %vm4043_vm2, %v11624_v49, %v4667_v59  ;;  %v4508_v5 = vmul.f32 0.6931472, %v7759_v17  ;;  %v4366_v24 = vadd.f32 1.0, %v4365_v54  ;;  %v14550_v20 = vld [vmem:[#allocation6_spill] sm:$0xff]  ;;  %v8183_v17 = vld [vmem:[%s13960_s2 + $0x10] sm:$0xff] }
 0x331   : > { %7766 = vlog2.f32 %v4371_v57  ;;  %v11957_v47 = vpop.eup %7760  ;;  %5011 = vmatpush.msrb.mxu1 %v4811_v39  ;;  %vm11959_vm9 = vcmp.lt.f32.partialorder %v4521_v62, 0.0004427343  ;;  %v4368_v7 = vand.u32 2147483647, %v11607_v53  ;;  %v11967_v10 = vadd.f32 %v3720_v48, %v14550_v20 }
 0x332   : > { %6985 = vmatmul.msk.f32.gmra.mxu2 %vm1593_vm4, %v11790_v32  ;;  %v11970_v49 = vadd.f32 %v3749_v35, %v14551_v42  ;;  %v7763_v6 = vpop.eup %7762  ;;  %v4514_v54 = vsel %vm11935_vm6, %v4511_v26, %v4508_v5  ;;  %v4520_v27 = vmul.f32 %v11651_v44, %v4519_v23  ;;  %v4375_v62 = vadd.f32 1.0, %v4374_v14  ;;  %4835 = vperm.xlu2 %7124, %v8183_v17  }
 0x333   : > { %v4218_v57 = vadd.f32 1.0, %v14552_v45  ;;  %v7765_v59 = vpop.eup %7764  ;;  %v4794_v48 = vsel %vm4026_vm5, %v11558_v38, %v4514_v54  ;;  %v4517_v35 = vmul.f32 0.6931472, %v7763_v6  ;;  %v4377_v39 = vand.u32 2147483647, %v11621_v34  ;;  %v14553_v6 = vld [vmem:[#allocation43_spill] sm:$0xff]  ;;  %v3804_v54 = vpop.f32.mrf.mxu3 }
 0x334   : > { %v4221_v40 = vmul.f32 -0.5, %v14552_v45  ;;  %4983 = vmatpush.msrb.mxu0 %v4794_v48  ;;  %v4364_v44 = vmul.f32 0.6931472, %v7765_v59  ;;  %v4367_v26 = vmul.f32 %v11607_v53, %v4366_v24  ;;  %v3982_v23 = vmin.f32 %v11967_v10, 20.0  ;;  %v3775_v24 = vpop.f32.mrf.mxu2 }
 0x335   : > { %6989 = vmatmul.msk.f32.gmra.mxu3 %vm1593_vm4, %v11790_v32  ;;  %7768 = vlog2.f32 %v4218_v57  ;;  %v4523_v14 = vsel %vm11959_vm9, %v4520_v27, %v4517_v35  ;;  %vm4369_vm10 = vcmp.lt.f32.partialorder %v4368_v7, 0.0004427343  ;;  %v3983_v38 = vmin.f32 %v11970_v49, 20.0  ;;  %v14555_v35 = vld [vmem:[#allocation13_spill] sm:$0xff] }
 0x336   : > { %7770 = vpow2.f32 %v4108_v37  ;;  %v4795_v20 = vsel %vm4027_vm7, %v11561_v46, %v4523_v14  ;;  %v4370_v42 = vsel %vm4369_vm10, %v4367_v26, %v4364_v44  ;;  %vm4011_vm11 = vcmp.gt.f32.partialorder %v14553_v6, 20.0 }
 0x337   : > { %v7767_v5 = vpop.eup %7766  ;;  %v4376_v53 = vmul.f32 %v11621_v34, %v4375_v62  ;;  %5012 = vmatpush.msrb.mxu1 %v4795_v20  ;;  %v4778_v37 = vsel %vm4010_vm8, %v14547_v19, %v4370_v42  ;;  %vm4378_vm12 = vcmp.lt.f32.partialorder %v4377_v39, 0.0004427343  ;;  %v4222_v7 = vadd.f32 1.0, %v4221_v40  ;;  %v14554_v62 = vld [vmem:[#allocation7_spill] sm:$0xff] }
 0x338   : > { %v4373_v58 = vmul.f32 0.6931472, %v7767_v5  ;;  %4984 = vmatpush.msrb.mxu0 %v4778_v37  ;;  %v4166_v27 = vmul.f32 1.442695, %v3982_v23  ;;  %v4224_v57 = vand.u32 2147483647, %v14552_v45  ;;  %v12003_v48 = vadd.f32 %v3775_v24, %v14554_v62  ;;  %v3856_v37 = vpop.f32.mrf.mxu1 }
 0x339   : > { %v4227_v46 = vadd.f32 1.0, %v11567_v50  ;;  %v4230_v17 = vmul.f32 -0.5, %v11567_v50  ;;  %v4168_v34 = vmul.f32 1.442695, %v3983_v38  ;;  %v12006_v44 = vadd.f32 %v3804_v54, %v14555_v35  ;;  %v14556_v23 = vld [vmem:[#allocation11_spill] sm:$0xff]  ;;  %v3827_v54 = vpop.f32.mrf.mxu0  ;;  %v14560_v62 = vld [vmem:[#allocation24_spill] sm:$0xff] }
 0x33a   : > { %v4379_v59 = vsel %vm4378_vm12, %v4376_v53, %v4373_v58  ;;  %6986 = vmatmul.msk.f32.gmra.mxu2 %vm1593_vm4, %v11851_v1  ;;  %v4233_v40 = vand.u32 2147483647, %v11567_v50  ;;  %vm3994_vm13 = vcmp.gt.f32.partialorder %v14556_v23, 20.0  ;;  %v4223_v38 = vmul.f32 %v14552_v45, %v4222_v7  ;;  %v14557_v58 = vld [vmem:[#allocation40_spill] sm:$0xff] }
 0x33b   : > { %v7769_v19 = vpop.eup %7768  ;;  %v4779_v39 = vsel %vm4011_vm11, %v14553_v6, %v4379_v59  ;;  %7772 = vlog2.f32 %v4227_v46  ;;  %v3968_v5 = vmin.f32 %v12003_v48, 20.0  ;;  %vm4225_vm14 = vcmp.lt.f32.partialorder %v4224_v57, 0.0004427343 }
 0x33c   : > { %v12014_v26 = vpop.eup %7770  ;;  %5013 = vmatpush.msrb.mxu1 %v4779_v39  ;;  %v4220_v14 = vmul.f32 0.6931472, %v7769_v19  ;;  %7774 = vpow2.f32 %v4166_v27  ;;  %v4231_v20 = vadd.f32 1.0, %v4230_v17  ;;  %v4668_v42 = vadd.f32 1.0, %v11876_v13  ;;  %v14562_v19 = vld [vmem:[#allocation14_spill] sm:$0xff] }
 0x33d   : > { %6990 = vmatmul.msk.f32.gmra.mxu3 %vm1593_vm4, %v11851_v1  ;;  %7776 = vpow2.f32 %v4168_v34  ;;  %v3969_v53 = vmin.f32 %v12006_v44, 20.0  ;;  %v4671_v24 = vmul.f32 -0.5, %v11876_v13  ;;  %vm3995_vm15 = vcmp.gt.f32.partialorder %v14557_v58, 20.0 }
 0x33e   : > { %v4226_v6 = vsel %vm4225_vm14, %v4223_v38, %v4220_v14  ;;  %vm12026_vm1 = vcmp.lt.f32.partialorder %v4233_v40, 0.0004427343  ;;  %7778 = vlog2.f32 %v4668_v42  ;;  %v4138_v27 = vmul.f32 1.442695, %v3968_v5 }
 0x33f   : > { %v4762_v45 = vsel %vm3994_vm13, %v14556_v23, %v4226_v6  ;;  %vm4044_vm0 = vcmp.gt.f32.partialorder %v11767_v33, 20.0  ;;  %v4677_v57 = vadd.f32 1.0, %v11887_v16  ;;  %v4680_v46 = vmul.f32 -0.5, %v11887_v16 }
 0x340   : > { %4985 = vmatpush.msrb.mxu0 %v4762_v45  ;;  %v4232_v59 = vmul.f32 %v11567_v50, %v4231_v20  ;;  %v4674_v34 = vand.u32 2147483647, %v11876_v13  ;;  %v12038_v35 = vadd.f32 %v3827_v54, %v14560_v62  ;;  %v12041_v39 = vadd.f32 %v3856_v37, %v14562_v19 }
 0x341   : > { %v7773_v17 = vpop.eup %7772  ;;  %6991 = vmatmul.msk.f32.vlgmr.msrb.gmra.mxu0 %vm1593_vm4, %v11686_v2  ;;  %v4140_v23 = vmul.f32 1.442695, %v3969_v53  ;;  %v4672_v14 = vadd.f32 1.0, %v4671_v24  ;;  %7780 = vlog2.f32 %v4677_v57  ;;  %vm4045_vm2 = vcmp.gt.f32.partialorder %v11774_v4, 20.0  ;;  %v3807_v57 = vpop.f32.mrf.mxu3 }
 0x342   : > { %14561 = vst [vmem:[#allocation33_spill] sm:$0xff] %v12038_v35  ;;  %v4229_v40 = vmul.f32 0.6931472, %v7773_v17  ;;  %v12043_v38 = vpop.eup %7774  ;;  %v4683_v50 = vand.u32 2147483647, %v11887_v16  ;;  %v3938_v5 = vmin.f32 %v12038_v35, 20.0  ;;  %7782 = vpow2.f32 %v4138_v27 }
 0x343   : > { %14563 = vst [vmem:[#allocation34_spill] sm:$0xff] %v12041_v39  ;;  %v3939_v20 = vmin.f32 %v12041_v39, 20.0  ;;  %v4524_v42 = vadd.f32 1.0, %v11751_v56  ;;  %v12050_v6 = vpop.eup %7776  ;;  %v4681_v53 = vadd.f32 1.0, %v4680_v46  ;;  %v4527_v24 = vmul.f32 -0.5, %v11751_v56  ;;  %v14578_v39 = vld [vmem:[#allocation44_spill] sm:$0xff] }
 0x344   : > { %v4235_v54 = vsel %vm12026_vm1, %v4232_v59, %v4229_v40  ;;  %v7779_v37 = vpop.eup %7778  ;;  %vm12058_vm3 = vcmp.lt.f32.partialorder %v4674_v34, 0.0004427343  ;;  %v4530_v17 = vand.u32 2147483647, %v11751_v56  ;;  %v4673_v27 = vmul.f32 %v11876_v13, %v4672_v14 }
 0x345   : > { %v4763_v45 = vsel %vm3995_vm15, %v14557_v58, %v4235_v54  ;;  %7784 = vlog2.f32 %v4524_v42  ;;  %v4670_v7 = vmul.f32 0.6931472, %v7779_v37  ;;  %v4078_v46 = vmul.f32 1.442695, %v3938_v5  ;;  %v3778_v54 = vpop.f32.mrf.mxu2 }
 0x346   : > { %5014 = vmatpush.msrb.mxu1 %v4763_v45  ;;  %7786 = vpow2.f32 %v4140_v23  ;;  %vm12066_vm5 = vcmp.lt.f32.partialorder %v4683_v50, 0.0004427343  ;;  %v4080_v58 = vmul.f32 1.442695, %v3939_v20  ;;  %v4533_v34 = vadd.f32 1.0, %v11758_v61 }
 0x347   : > { %6995 = vmatmul.msk.f32.vlgmr.msrb.gmra.mxu1 %vm1593_vm4, %v11686_v2  ;;  %v4536_v62 = vmul.f32 -0.5, %v11758_v61  ;;  %v7781_v19 = vpop.eup %7780  ;;  %v4676_v40 = vsel %vm12058_vm3, %v4673_v27, %v4670_v7  ;;  %v4682_v23 = vmul.f32 %v11887_v16, %v4681_v53  ;;  %vm4028_vm6 = vcmp.gt.f32.partialorder %v11639_v28, 20.0 }
 0x348   : > { %v4528_v13 = vadd.f32 1.0, %v4527_v24  ;;  %v4812_v14 = vsel %vm4044_vm0, %v11767_v33, %v4676_v40  ;;  %v4679_v50 = vmul.f32 0.6931472, %v7781_v19  ;;  %vm12079_vm7 = vcmp.lt.f32.partialorder %v4530_v17, 0.0004427343  ;;  %v12085_v20 = vpop.eup %7782  ;;  %v12094_v17 = vpop.f32.mrf.mxu0 }
 0x349   : > { %7788 = vlog2.f32 %v4533_v34  ;;  %6992 = vmatmul.msk.f32.gmra.mxu0 %vm1593_vm4, %v11739_v52  ;;  %5040 = vmatpush.msrb.mxu2 %v4812_v14  ;;  %vm4029_vm8 = vcmp.gt.f32.partialorder %v11642_v12, 20.0  ;;  %v4539_v16 = vand.u32 2147483647, %v11758_v61  ;;  %v4380_v42 = vadd.f32 1.0, %v11667_v21  ;;  %v3859_v19 = vpop.f32.mrf.mxu1  ;;  %v14570_v14 = vld [vmem:[#allocation36_spill] sm:$0xff] }
 0x34a   : > { %7790 = vpow2.f32 %v4078_v46  ;;  %v4383_v33 = vmul.f32 -0.5, %v11667_v21  ;;  %v4685_v24 = vsel %vm12066_vm5, %v4682_v23, %v4679_v50  ;;  %v4537_v37 = vadd.f32 1.0, %v4536_v62 }
 0x34b   : > { %v7785_v53 = vpop.eup %7784  ;;  %7792 = vpow2.f32 %v4080_v58  ;;  %v4389_v45 = vadd.f32 1.0, %v11675_v30  ;;  %v4813_v27 = vsel %vm4045_vm2, %v11774_v4, %v4685_v24  ;;  %v4529_v34 = vmul.f32 %v11751_v56, %v4528_v13  ;;  %v14571_v4 = vld [vmem:[#allocation37_spill] sm:$0xff] }
 0x34c   : > { %v12096_v7 = vpop.eup %7786  ;;  %v4526_v46 = vmul.f32 0.6931472, %v7785_v53  ;;  %7794 = vlog2.f32 %v4380_v42  ;;  %5069 = vmatpush.msrb.mxu3 %v4813_v27  ;;  %v4384_v59 = vadd.f32 1.0, %v4383_v33  ;;  %v4386_v58 = vand.u32 2147483647, %v11667_v21 }
 0x34d   : > { %7796 = vlog2.f32 %v4389_v45  ;;  %v4392_v62 = vmul.f32 -0.5, %v11675_v30  ;;  %v4395_v23 = vand.u32 2147483647, %v11675_v30  ;;  %v12108_v50 = vadd.f32 %v3778_v54, %v14570_v14 }
 0x34e   : > { %v4532_v40 = vsel %vm12079_vm7, %v4529_v34, %v4526_v46  ;;  %v12111_v53 = vadd.f32 %v3807_v57, %v14571_v4  ;;  %v4538_v42 = vmul.f32 %v11758_v61, %v4537_v37  ;;  %vm12117_vm9 = vcmp.lt.f32.partialorder %v4539_v16, 0.0004427343 }
 0x34f   : > { %v7789_v56 = vpop.eup %7788  ;;  %v4796_v13 = vsel %vm4028_vm6, %v11639_v28, %v4532_v40  ;;  %6996 = vmatmul.msk.f32.gmra.mxu1 %vm1593_vm4, %v11739_v52  ;;  %vm4012_vm10 = vcmp.gt.f32.partialorder %v11565_v3, 20.0  ;;  %vm4013_vm11 = vcmp.gt.f32.partialorder %v11572_v41, 20.0  ;;  %v4393_v24 = vadd.f32 1.0, %v4392_v62 }
 0x350   : > { %v12124_v5 = vpop.eup %7790  ;;  %5041 = vmatpush.msrb.mxu2 %v4796_v13  ;;  %v4535_v54 = vmul.f32 0.6931472, %v7789_v56  ;;  %v4236_v28 = vadd.f32 1.0, %v11630_v9  ;;  %vm12130_vm12 = vcmp.lt.f32.partialorder %v4386_v58, 0.0004427343  ;;  %v3984_v16 = vmin.f32 %v12108_v50, 20.0 }
 0x351   : > { %v12128_v45 = vpop.eup %7792  ;;  %v3985_v37 = vmin.f32 %v12111_v53, 20.0  ;;  %v4239_v57 = vmul.f32 -0.5, %v11630_v9  ;;  %6993 = vmatmul.msk.f32.gmra.mxu0 %vm1593_vm4, %v11790_v32  ;;  %v4385_v34 = vmul.f32 %v11667_v21, %v4384_v59  ;;  %vm12142_vm13 = vcmp.lt.f32.partialorder %v4395_v23, 0.0004427343  ;;  %v3885_v23 = vpop.f32.mrf.mxu2 }
 0x352   : > { %v7795_v27 = vpop.eup %7794  ;;  %v4541_v46 = vsel %vm12117_vm9, %v4538_v42, %v4535_v54  ;;  %7798 = vlog2.f32 %v4236_v28  ;;  %v4242_v56 = vand.u32 2147483647, %v11630_v9  ;;  %v4394_v42 = vmul.f32 %v11675_v30, %v4393_v24 }
 0x353   : > { %v7797_v62 = vpop.eup %7796  ;;  %v4797_v40 = vsel %vm4029_vm8, %v11642_v12, %v4541_v46  ;;  %v4382_v14 = vmul.f32 0.6931472, %v7795_v27  ;;  %v4240_v4 = vadd.f32 1.0, %v4239_v57  ;;  %v4245_v21 = vadd.f32 1.0, %v11635_v25  ;;  %v3914_v12 = vpop.f32.mrf.mxu3 }
 0x354   : > { %5070 = vmatpush.msrb.mxu3 %v4797_v40  ;;  %v4391_v13 = vmul.f32 0.6931472, %v7797_v62  ;;  %v4248_v59 = vmul.f32 -0.5, %v11635_v25  ;;  %v4170_v54 = vmul.f32 1.442695, %v3984_v16  ;;  %vm3996_vm14 = vcmp.gt.f32.partialorder %v14578_v39, 20.0  ;;  %v3833_v57 = vpop.f32.mrf.mxu0  ;;  %v3862_v46 = vpop.f32.mrf.mxu1 }
 0x355   : > { %v4388_v33 = vsel %vm12130_vm12, %v4385_v34, %v4382_v14  ;;  %v4172_v28 = vmul.f32 1.442695, %v3985_v37  ;;  %v4241_v24 = vmul.f32 %v11630_v9, %v4240_v4  ;;  %7800 = vlog2.f32 %v4245_v21  ;;  %v14581_v37 = vld [vmem:[#allocation26_spill] sm:$0xff]  ;;  %v14583_v40 = vld [vmem:[#allocation5_spill] sm:$0xff] }
 0x356   : > { %v4780_v27 = vsel %vm4012_vm10, %v11565_v3, %v4388_v33  ;;  %v4397_v30 = vsel %vm12142_vm13, %v4394_v42, %v4391_v13  ;;  %vm12165_vm15 = vcmp.lt.f32.partialorder %v4242_v56, 0.0004427343  ;;  %v12171_v34 = vadd.f32 %v12094_v17, %v14581_v37  ;;  %v14582_v3 = vld [vmem:[#allocation30_spill] sm:$0xff]  ;;  %v14587_v56 = vld [vmem:[#allocation31_spill] sm:$0xff]  ;;  %v14588_v21 = vld [vmem:[#allocation25_spill] sm:$0xff] }
 0x357   : > { %5042 = vmatpush.msrb.mxu2 %v4780_v27  ;;  %v4781_v61 = vsel %vm4013_vm11, %v11572_v41, %v4397_v30  ;;  %v12174_v58 = vadd.f32 %v3859_v19, %v14582_v3  ;;  %6997 = vmatmul.msk.f32.gmra.mxu1 %vm1593_vm4, %v11790_v32  ;;  %v4249_v62 = vadd.f32 1.0, %v4248_v59  ;;  %v12179_v14 = vadd.f32 %v3885_v23, %v14583_v40  ;;  %v14585_v41 = vld [vmem:[#allocation8_spill] sm:$0xff]  ;;  %v14589_v3 = vld [vmem:[#allocation45_spill] sm:$0xff] }
 0x358   : > { %v7799_v9 = vpop.eup %7798  ;;  %5071 = vmatpush.msrb.mxu3 %v4781_v61  ;;  %v12182_v4 = vadd.f32 %v3914_v12, %v14585_v41  ;;  %v12185_v13 = vadd.f32 %v3833_v57, %v14587_v56  ;;  %v3954_v42 = vmin.f32 %v12171_v34, 20.0  ;;  %v12190_v33 = vadd.f32 %v3862_v46, %v14588_v21 }
 0x359   : > { %14584 = vst [vmem:[#allocation20_spill] sm:$0xff] %v12179_v14  ;;  %v4238_v17 = vmul.f32 0.6931472, %v7799_v9  ;;  %v3955_v19 = vmin.f32 %v12174_v58, 20.0  ;;  %6994 = vmatmul.msk.f32.gmra.mxu0 %vm1593_vm4, %v11851_v1  ;;  %v4251_v59 = vand.u32 2147483647, %v11635_v25  ;;  %7802 = vpow2.f32 %v4170_v54  ;;  %v3888_v16 = vpop.f32.mrf.mxu2 }
 0x35a   : > { %14586 = vst [vmem:[#allocation35_spill] sm:$0xff] %v12182_v4  ;;  %v3940_v23 = vmin.f32 %v12179_v14, 20.0  ;;  %v3941_v12 = vmin.f32 %v12182_v4, 20.0  ;;  %v3970_v57 = vmin.f32 %v12185_v13, 20.0  ;;  %v4110_v30 = vmul.f32 1.442695, %v3954_v42 }
 0x35b   : > { %v4244_v27 = vsel %vm12165_vm15, %v4241_v24, %v4238_v17  ;;  %v4112_v61 = vmul.f32 1.442695, %v3955_v19  ;;  %v7801_v37 = vpop.eup %7800  ;;  %7804 = vpow2.f32 %v4172_v28  ;;  %vm3997_vm1 = vcmp.gt.f32.partialorder %v14589_v3, 20.0 }
 0x35c   : > { %v4764_v46 = vsel %vm3996_vm14, %v14578_v39, %v4244_v27  ;;  %v4082_v9 = vmul.f32 1.442695, %v3940_v23  ;;  %v4247_v40 = vmul.f32 0.6931472, %v7801_v37  ;;  %v4250_v41 = vmul.f32 %v11635_v25, %v4249_v62  ;;  %v3917_v27 = vpop.f32.mrf.mxu3 }
 0x35d   : > { %5043 = vmatpush.msrb.mxu2 %v4764_v46  ;;  %v4084_v56 = vmul.f32 1.442695, %v3941_v12  ;;  %v3971_v54 = vmin.f32 %v12190_v33, 20.0  ;;  %vm4252_vm0 = vcmp.lt.f32.partialorder %v4251_v59, 0.0004427343  ;;  %7806 = vpow2.f32 %v4110_v30  ;;  %v14590_v59 = vld [vmem:[#allocation38_spill] sm:$0xff] }
 0x35e   : > { %6999 = vmatmul.msk.f32.vlgmr.msrb.gmra.mxu2 %vm1593_vm4, %v11686_v2  ;;  %v4142_v28 = vmul.f32 1.442695, %v3970_v57  ;;  %v4686_v24 = vadd.f32 1.0, %v12043_v38  ;;  %v4253_v39 = vsel %vm4252_vm0, %v4250_v41, %v4247_v40  ;;  %7808 = vpow2.f32 %v4112_v61 }
 0x35f   : > { %6998 = vmatmul.msk.f32.gmra.mxu1 %vm1593_vm4, %v11851_v1  ;;  %v4689_v17 = vmul.f32 -0.5, %v12043_v38  ;;  %v4698_v25 = vmul.f32 -0.5, %v12050_v6  ;;  %v4765_v62 = vsel %vm3997_vm1, %v14589_v3, %v4253_v39  ;;  %7810 = vpow2.f32 %v4082_v9  ;;  %v12217_v19 = vpop.eup %7802 }
 0x360   : > { %v4695_v42 = vadd.f32 1.0, %v12050_v6  ;;  %5072 = vmatpush.msrb.mxu3 %v4765_v62  ;;  %7812 = vpow2.f32 %v4084_v56  ;;  %v4144_v21 = vmul.f32 1.442695, %v3971_v54  ;;  %v12220_v23 = vadd.f32 %v3888_v16, %v14590_v59  ;;  %v14592_v56 = vld [vmem:[#allocation39_spill] sm:$0xff] }
 0x361   : > { %v12222_v12 = vpop.eup %7804  ;;  %7003 = vmatmul.msk.f32.vlgmr.msrb.gmra.mxu3 %vm1593_vm4, %v11686_v2  ;;  %7814 = vpow2.f32 %v4142_v28  ;;  %v4692_v57 = vand.u32 2147483647, %v12043_v38  ;;  %v4690_v30 = vadd.f32 1.0, %v4689_v17  ;;  %v4699_v61 = vadd.f32 1.0, %v4698_v25 }
 0x362   : > { %14591 = vst [vmem:[#allocation17_spill] sm:$0xff] %v12220_v23  ;;  %7816 = vlog2.f32 %v4686_v24  ;;  %v3956_v37 = vmin.f32 %v12220_v23, 20.0  ;;  %v4701_v3 = vand.u32 2147483647, %v12050_v6  ;;  %v4542_v9 = vadd.f32 1.0, %v11933_v31  ;;  %v14602_v23 = vld [vmem:[#allocation16_spill] sm:$0xff] }
 0x363   : > { %v12228_v46 = vpop.eup %7806  ;;  %7818 = vlog2.f32 %v4695_v42  ;;  %v4545_v40 = vmul.f32 -0.5, %v11933_v31  ;;  %v12236_v54 = vadd.f32 %v3917_v27, %v14592_v56  ;;  %v4551_v28 = vadd.f32 1.0, %v11941_v8 }
 0x364   : > { %v12233_v41 = vpop.eup %7808  ;;  %7820 = vpow2.f32 %v4144_v21  ;;  %v4114_v2 = vmul.f32 1.442695, %v3956_v37  ;;  %vm4046_vm2 = vcmp.gt.f32.partialorder %v11967_v10, 20.0  ;;  %vm12244_vm3 = vcmp.lt.f32.partialorder %v4692_v57, 0.0004427343 }
 0x365   : > { %14593 = vst [vmem:[#allocation28_spill] sm:$0xff] %v12236_v54  ;;  %v12239_v24 = vpop.eup %7810  ;;  %vm4047_vm5 = vcmp.gt.f32.partialorder %v11970_v49, 20.0  ;;  %7822 = vlog2.f32 %v4542_v9  ;;  %v4691_v17 = vmul.f32 %v12043_v38, %v4690_v30  ;;  %vm4030_vm6 = vcmp.gt.f32.partialorder %v11846_v15, 20.0  ;;  %v3836_v9 = vpop.f32.mrf.mxu0 }
 0x366   : > { %14594 = vst [vmem:[#allocation9_spill] sm:$0xff] %v12239_v24  ;;  %7000 = vmatmul.msk.f32.gmra.mxu2 %vm1593_vm4, %v11739_v52  ;;  %v12249_v39 = vpop.eup %7812  ;;  %v4548_v25 = vand.u32 2147483647, %v11933_v31  ;;  %v4554_v62 = vmul.f32 -0.5, %v11941_v8  ;;  %v4700_v21 = vmul.f32 %v12050_v6, %v4699_v61  ;;  %7824 = vpow2.f32 %v4114_v2 }
 0x367   : > { %14597 = vst [vmem:[#allocation21_spill] sm:$0xff] %v12249_v39  ;;  %v12255_v42 = vpop.eup %7814  ;;  %v4546_v59 = vadd.f32 1.0, %v4545_v40  ;;  %v4398_v57 = vadd.f32 1.0, %v11892_v11  ;;  %vm12259_vm7 = vcmp.lt.f32.partialorder %v4701_v3, 0.0004427343  ;;  %v3957_v38 = vmin.f32 %v12236_v54, 20.0 }
 0x368   : > { %v7817_v27 = vpop.eup %7816  ;;  %7826 = vlog2.f32 %v4551_v28  ;;  %v4401_v30 = vmul.f32 -0.5, %v11892_v11  ;;  %vm4031_vm8 = vcmp.gt.f32.partialorder %v11858_v22, 20.0  ;;  %v4557_v61 = vand.u32 2147483647, %v11941_v8 }
 0x369   : > { %v7819_v56 = vpop.eup %7818  ;;  %7004 = vmatmul.msk.f32.gmra.mxu3 %vm1593_vm4, %v11739_v52  ;;  %v4688_v6 = vmul.f32 0.6931472, %v7817_v27  ;;  %7828 = vlog2.f32 %v4398_v57  ;;  %vm12271_vm9 = vcmp.lt.f32.partialorder %v4548_v25, 0.0004427343  ;;  %v4555_v28 = vadd.f32 1.0, %v4554_v62  ;;  %v3865_v57 = vpop.f32.mrf.mxu1 }
 0x36a   : > { %v12269_v3 = vpop.eup %7820  ;;  %v4697_v40 = vmul.f32 0.6931472, %v7819_v56  ;;  %v4407_v4 = vadd.f32 1.0, %v11902_v29  ;;  %v4547_v27 = vmul.f32 %v11933_v31, %v4546_v59  ;;  %v4402_v54 = vadd.f32 1.0, %v4401_v30 }
 0x36b   : > { %v7823_v14 = vpop.eup %7822  ;;  %v4694_v52 = vsel %vm12244_vm3, %v4691_v17, %v4688_v6  ;;  %v12280_v39 = vadd.f32 %v3836_v9, %v14602_v23  ;;  %v4410_v24 = vmul.f32 -0.5, %v11902_v29  ;;  %vm12293_vm10 = vcmp.lt.f32.partialorder %v4557_v61, 0.0004427343 }
 0x36c   : > { %v4814_v25 = vsel %vm4046_vm2, %v11967_v10, %v4694_v52  ;;  %v4703_v62 = vsel %vm12259_vm7, %v4700_v21, %v4697_v40  ;;  %v4544_v56 = vmul.f32 0.6931472, %v7823_v14  ;;  %v12288_v35 = vpop.eup %7824  ;;  %v4404_v10 = vand.u32 2147483647, %v11892_v11 }
 0x36d   : > { %5098 = vmatpush.msra.mxu0 %v4814_v25  ;;  %v4815_v31 = vsel %vm4047_vm5, %v11970_v49, %v4703_v62  ;;  %7830 = vlog2.f32 %v4407_v4  ;;  %v4556_v17 = vmul.f32 %v11941_v8, %v4555_v28  ;;  %v4413_v21 = vand.u32 2147483647, %v11902_v29  ;;  %v14605_v49 = vld [vmem:[#allocation12_spill] sm:$0xff] }
 0x36e   : > { %7001 = vmatmul.msk.f32.gmra.mxu2 %vm1593_vm4, %v11790_v32  ;;  %v7827_v14 = vpop.eup %7826  ;;  %5127 = vmatpush.msra.mxu1 %v4815_v31  ;;  %v4550_v16 = vsel %vm12271_vm9, %v4547_v27, %v4544_v56  ;;  %v12305_v59 = vadd.f32 %v3865_v57, %v14605_v49  ;;  %v3986_v4 = vmin.f32 %v12280_v39, 20.0  ;;  %v4254_v6 = vadd.f32 1.0, %v11798_v63 }
 0x36f   : > { %v7829_v37 = vpop.eup %7828  ;;  %v4798_v30 = vsel %vm4030_vm6, %v11846_v15, %v4550_v16  ;;  %v4553_v9 = vmul.f32 0.6931472, %v7827_v14  ;;  %v4403_v40 = vmul.f32 %v11892_v11, %v4402_v54  ;;  %v4411_v8 = vadd.f32 1.0, %v4410_v24  ;;  %v3891_v24 = vpop.f32.mrf.mxu2  ;;  %v14608_v14 = vld [vmem:[#allocation19_spill] sm:$0xff] }
 0x370   : > { %5099 = vmatpush.msra.mxu0 %v4798_v30  ;;  %v4400_v61 = vmul.f32 0.6931472, %v7829_v37  ;;  %v4257_v2 = vmul.f32 -0.5, %v11798_v63  ;;  %v12314_v28 = vmul.f32 1.442695, %v3957_v38  ;;  %7832 = vlog2.f32 %v4254_v6  ;;  %v3920_v38 = vpop.f32.mrf.mxu3 }
 0x371   : > { %v4559_v52 = vsel %vm12293_vm10, %v4556_v17, %v4553_v9  ;;  %7005 = vmatmul.msk.f32.gmra.mxu3 %vm1593_vm4, %v11790_v32  ;;  %vm4405_vm11 = vcmp.lt.f32.partialorder %v4404_v10, 0.0004427343  ;;  %vm4014_vm12 = vcmp.gt.f32.partialorder %v11824_v18, 20.0  ;;  %v3987_v54 = vmin.f32 %v12305_v59, 20.0 }
 0x372   : > { %v4799_v15 = vsel %vm4031_vm8, %v11858_v22, %v4559_v52  ;;  %v4406_v11 = vsel %vm4405_vm11, %v4403_v40, %v4400_v61  ;;  %vm12326_vm13 = vcmp.lt.f32.partialorder %v4413_v21, 0.0004427343  ;;  %v4174_v32 = vmul.f32 1.442695, %v3986_v4 }
 0x373   : > { %v7831_v27 = vpop.eup %7830  ;;  %5128 = vmatpush.msra.mxu1 %v4799_v15  ;;  %v4782_v57 = vsel %vm4014_vm12, %v11824_v18, %v4406_v11  ;;  %v4263_v62 = vadd.f32 1.0, %v11817_v0  ;;  %v4412_v56 = vmul.f32 %v11902_v29, %v4411_v8  ;;  %v4258_v31 = vadd.f32 1.0, %v4257_v2  ;;  %v14609_v18 = vld [vmem:[#allocation22_spill] sm:$0xff] }
 0x374   : > { %5100 = vmatpush.msra.mxu0 %v4782_v57  ;;  %v4409_v22 = vmul.f32 0.6931472, %v7831_v27  ;;  %v4266_v23 = vmul.f32 -0.5, %v11817_v0  ;;  %v4260_v10 = vand.u32 2147483647, %v11798_v63  ;;  %v12335_v16 = vadd.f32 %v3891_v24, %v14608_v14 }
 0x375   : > { %7834 = vlog2.f32 %v4263_v62  ;;  %v12338_v17 = vadd.f32 %v3920_v38, %v14609_v18  ;;  %vm4015_vm14 = vcmp.gt.f32.partialorder %v11827_v55, 20.0  ;;  %v4176_v21 = vmul.f32 1.442695, %v3987_v54 }
 0x376   : > { %7002 = vmatmul.msk.f32.gmra.mxu2 %vm1593_vm4, %v11851_v1  ;;  %v4415_v29 = vsel %vm12326_vm13, %v4412_v56, %v4409_v22  ;;  %vm3998_vm15 = vcmp.gt.f32.partialorder %v11698_v43, 20.0  ;;  %v7833_v49 = vpop.eup %7832  ;;  %7836 = vpow2.f32 %v4174_v32  ;;  %v4269_v30 = vand.u32 2147483647, %v11817_v0 }
 0x377   : > { %v4783_v37 = vsel %vm4015_vm14, %v11827_v55, %v4415_v29  ;;  %v4704_v9 = vadd.f32 1.0, %v12217_v19  ;;  %v4256_v4 = vmul.f32 0.6931472, %v7833_v49  ;;  %v4259_v6 = vmul.f32 %v11798_v63, %v4258_v31 }
 0x378   : > { %5129 = vmatpush.msra.mxu1 %v4783_v37  ;;  %v4267_v61 = vadd.f32 1.0, %v4266_v23  ;;  %v4707_v40 = vmul.f32 -0.5, %v12217_v19  ;;  %vm4261_vm1 = vcmp.lt.f32.partialorder %v4260_v10, 0.0004427343  ;;  %v3972_v8 = vmin.f32 %v12335_v16, 20.0 }
 0x379   : > { %v3973_v2 = vmin.f32 %v12338_v17, 20.0  ;;  %7006 = vmatmul.msk.f32.gmra.mxu3 %vm1593_vm4, %v11851_v1  ;;  %7838 = vlog2.f32 %v4704_v9  ;;  %v4262_v55 = vsel %vm4261_vm1, %v4259_v6, %v4256_v4  ;;  %vm3999_vm0 = vcmp.gt.f32.partialorder %v11701_v36, 20.0 }
 0x37a   : > { %7840 = vpow2.f32 %v4176_v21  ;;  %v4713_v52 = vadd.f32 1.0, %v12222_v12  ;;  %v4766_v63 = vsel %vm3998_vm15, %v11698_v43, %v4262_v55  ;;  %vm12360_vm2 = vcmp.lt.f32.partialorder %v4269_v30, 0.0004427343  ;;  %v12373_v43 = vld [vmem:[%s13959_s1 + $0x80] sm:$0xff] }
 0x37b   : > { %v7835_v15 = vpop.eup %7834  ;;  %vm4048_vm3 = vcmp.gt.f32.partialorder %v12108_v50, 20.0  ;;  %v4708_v54 = vadd.f32 1.0, %v4707_v40  ;;  %5101 = vmatpush.msra.mxu0 %v4766_v63  ;;  %v4268_v24 = vmul.f32 %v11817_v0, %v4267_v61  ;;  %v4710_v38 = vand.u32 2147483647, %v12217_v19 }
 0x37c   : > { %v4265_v1 = vmul.f32 0.6931472, %v7835_v15  ;;  %v4716_v27 = vmul.f32 -0.5, %v12222_v12  ;;  %v12368_v57 = vpop.eup %7836  ;;  %7007 = vmatmul.msk.f32.vlgmr.msra.gmra.mxu0 %vm1593_vm4, %v12373_v43  ;;  %v12377_v25 = vmul.f32 1.442695, %v3972_v8  ;;  %7842 = vlog2.f32 %v4713_v52  ;;  %v14625_v15 = vld [vmem:[#allocation32_spill] sm:$0xff] }
 0x37d   : > { %v12379_v32 = vmul.f32 1.442695, %v3973_v2  ;;  %v4560_v0 = vadd.f32 1.0, %v12085_v20  ;;  %vm4049_vm5 = vcmp.gt.f32.partialorder %v12111_v53, 20.0  ;;  %v4719_v22 = vand.u32 2147483647, %v12222_v12  ;;  %v3894_v2 = vpop.f32.mrf.mxu2 }
 0x37e   : > { %v4271_v62 = vsel %vm12360_vm2, %v4268_v24, %v4265_v1  ;;  %v4563_v56 = vmul.f32 -0.5, %v12085_v20  ;;  %v4709_v10 = vmul.f32 %v12217_v19, %v4708_v54  ;;  %v4569_v14 = vadd.f32 1.0, %v12096_v7  ;;  %v3923_v24 = vpop.f32.mrf.mxu3 }
 0x37f   : > { %v7839_v31 = vpop.eup %7838  ;;  %v4767_v23 = vsel %vm3999_vm0, %v11701_v36, %v4271_v62  ;;  %7844 = vlog2.f32 %v4560_v0  ;;  %v4717_v21 = vadd.f32 1.0, %v4716_v27  ;;  %v4566_v49 = vand.u32 2147483647, %v12085_v20  ;;  %v14616_v0 = vld [vmem:[#allocation27_spill] sm:$0xff] }
 0x380   : > { %v12392_v18 = vpop.eup %7840  ;;  %5130 = vmatpush.msra.mxu1 %v4767_v23  ;;  %v4706_v29 = vmul.f32 0.6931472, %v7839_v31  ;;  %v4572_v37 = vmul.f32 -0.5, %v12096_v7  ;;  %vm4711_vm6 = vcmp.lt.f32.partialorder %v4710_v38, 0.0004427343  ;;  %v4564_v30 = vadd.f32 1.0, %v4563_v56 }
 0x381   : > { %7011 = vmatmul.msk.f32.vlgmr.msra.gmra.mxu1 %vm1593_vm4, %v12373_v43  ;;  %7846 = vlog2.f32 %v4569_v14  ;;  %v4416_v36 = vadd.f32 1.0, %v11957_v47  ;;  %vm12399_vm7 = vcmp.lt.f32.partialorder %v4719_v22, 0.0004427343  ;;  %vm4032_vm8 = vcmp.gt.f32.partialorder %v12003_v48, 20.0 }
 0x382   : > { %v4712_v19 = vsel %vm4711_vm6, %v4709_v10, %v4706_v29  ;;  %v4419_v4 = vmul.f32 -0.5, %v11957_v47  ;;  %v7843_v6 = vpop.eup %7842  ;;  %v4573_v40 = vadd.f32 1.0, %v4572_v37  ;;  %v4575_v8 = vand.u32 2147483647, %v12096_v7 }
 0x383   : > { %v4816_v61 = vsel %vm4048_vm3, %v12108_v50, %v4712_v19  ;;  %7848 = vlog2.f32 %v4416_v36  ;;  %v4715_v55 = vmul.f32 0.6931472, %v7843_v6  ;;  %v4718_v52 = vmul.f32 %v12222_v12, %v4717_v21  ;;  %v12419_v50 = vld [vmem:[%s13959_s1 + $0x88] sm:$0xff]  ;;  %v14619_v21 = vld [vmem:[#allocation15_spill] sm:$0xff] }
 0x384   : > { %5156 = vmatpush.msra.mxu2 %v4816_v61  ;;  %vm12410_vm9 = vcmp.lt.f32.partialorder %v4566_v49, 0.0004427343  ;;  %vm4033_vm10 = vcmp.gt.f32.partialorder %v12006_v44, 20.0  ;;  %v4565_v11 = vmul.f32 %v12085_v20, %v4564_v30  ;;  %7008 = vmatmul.msk.f32.gmra.mxu0 %vm1593_vm4, %v12419_v50  ;;  %v4420_v54 = vadd.f32 1.0, %v4419_v4 }
 0x385   : > { %v7845_v63 = vpop.eup %7844  ;;  %v4422_v12 = vand.u32 2147483647, %v11957_v47  ;;  %v4425_v1 = vadd.f32 1.0, %v12014_v26  ;;  %v4721_v38 = vsel %vm12399_vm7, %v4718_v52, %v4715_v55  ;;  %v4428_v20 = vmul.f32 -0.5, %v12014_v26  ;;  %v14622_v52 = vld [vmem:[#allocation41_spill] sm:$0xff] }
 0x386   : > { %v4562_v27 = vmul.f32 0.6931472, %v7845_v63  ;;  %v12429_v62 = vadd.f32 %v3894_v2, %v14616_v0  ;;  %v4817_v56 = vsel %vm4049_vm5, %v12111_v53, %v4721_v38  ;;  %v4574_v31 = vmul.f32 %v12096_v7, %v4573_v40 }
 0x387   : > { %v7847_v22 = vpop.eup %7846  ;;  %vm12435_vm11 = vcmp.lt.f32.partialorder %v4575_v8, 0.0004427343  ;;  %7850 = vlog2.f32 %v4425_v1  ;;  %5185 = vmatpush.msra.mxu3 %v4817_v56  ;;  %v12443_v49 = vadd.f32 %v3923_v24, %v14619_v21  ;;  %vm12450_vm12 = vcmp.lt.f32.partialorder %v4422_v12, 0.0004427343  ;;  %v14627_v56 = vld [vmem:[#allocation18_spill] sm:$0xff] }
 0x388   : > { %v4568_v10 = vsel %vm12410_vm9, %v4565_v11, %v4562_v27  ;;  %v4571_v14 = vmul.f32 0.6931472, %v7847_v22  ;;  %v3988_v29 = vmin.f32 %v12429_v62, 20.0  ;;  %v4431_v30 = vand.u32 2147483647, %v12014_v26 }
 0x389   : > { %v7849_v37 = vpop.eup %7848  ;;  %v4800_v7 = vsel %vm4032_vm8, %v12003_v48, %v4568_v10  ;;  %7012 = vmatmul.msk.f32.gmra.mxu1 %vm1593_vm4, %v12419_v50  ;;  %v4272_v36 = vadd.f32 1.0, %v11906_v51  ;;  %v4421_v4 = vmul.f32 %v11957_v47, %v4420_v54  ;;  %v4429_v6 = vadd.f32 1.0, %v4428_v20  ;;  %v14626_v20 = vld [vmem:[#allocation10_spill] sm:$0xff] }
 0x38a   : > { %5157 = vmatpush.msra.mxu2 %v4800_v7  ;;  %v4577_v19 = vsel %vm12435_vm11, %v4574_v31, %v4571_v14  ;;  %v4418_v9 = vmul.f32 0.6931472, %v7849_v37  ;;  %v3989_v61 = vmin.f32 %v12443_v49, 20.0  ;;  %v4275_v40 = vmul.f32 -0.5, %v11906_v51 }
 0x38b   : > { %v4801_v48 = vsel %vm4033_vm10, %v12006_v44, %v4577_v19  ;;  %7852 = vlog2.f32 %v4272_v36  ;;  %vm4016_vm13 = vcmp.gt.f32.partialorder %v11881_v60, 20.0  ;;  %v4178_v2 = vmul.f32 1.442695, %v3988_v29 }
 0x38c   : > { %7854 = vpow2.f32 %v12377_v25  ;;  %5186 = vmatpush.msra.mxu3 %v4801_v48  ;;  %v4424_v8 = vsel %vm12450_vm12, %v4421_v4, %v4418_v9  ;;  %vm4017_vm14 = vcmp.gt.f32.partialorder %v14622_v52, 20.0  ;;  %vm12470_vm15 = vcmp.lt.f32.partialorder %v4431_v30, 0.0004427343  ;;  %v12478_v25 = vld [vmem:[%s13959_s1 + $0x90] sm:$0xff]  ;;  %v12514_v4 = vld [vmem:[%s13959_s1 + $0x98] sm:$0xff] }
 0x38d   : > { %v7851_v47 = vpop.eup %7850  ;;  %v4784_v55 = vsel %vm4016_vm13, %v11881_v60, %v4424_v8  ;;  %v4281_v63 = vadd.f32 1.0, %v14625_v15  ;;  %7009 = vmatmul.msk.f32.gmra.mxu0 %vm1593_vm4, %v12478_v25  ;;  %v4430_v60 = vmul.f32 %v12014_v26, %v4429_v6  ;;  %v4276_v54 = vadd.f32 1.0, %v4275_v40 }
 0x38e   : > { %5158 = vmatpush.msra.mxu2 %v4784_v55  ;;  %v4427_v11 = vmul.f32 0.6931472, %v7851_v47  ;;  %v4284_v12 = vmul.f32 -0.5, %v14625_v15  ;;  %v4180_v1 = vmul.f32 1.442695, %v3989_v61  ;;  %v4722_v38 = vadd.f32 1.0, %v12368_v57 }
 0x38f   : > { %v4278_v24 = vand.u32 2147483647, %v11906_v51  ;;  %7856 = vlog2.f32 %v4281_v63  ;;  %vm4000_vm1 = vcmp.gt.f32.partialorder %v14626_v20, 20.0  ;;  %v4725_v0 = vmul.f32 -0.5, %v12368_v57 }
 0x390   : > { %v4433_v27 = vsel %vm12470_vm15, %v4430_v60, %v4427_v11  ;;  %7858 = vpow2.f32 %v4178_v2  ;;  %vm4001_vm0 = vcmp.gt.f32.partialorder %v14627_v56, 20.0  ;;  %v4287_v31 = vand.u32 2147483647, %v14625_v15 }
 0x391   : > { %v7853_v22 = vpop.eup %7852  ;;  %v4785_v26 = vsel %vm4017_vm14, %v14622_v52, %v4433_v27  ;;  %7013 = vmatmul.msk.f32.gmra.mxu1 %vm1593_vm4, %v12478_v25  ;;  %7860 = vlog2.f32 %v4722_v38  ;;  %v4277_v14 = vmul.f32 %v11906_v51, %v4276_v54  ;;  %v4285_v29 = vadd.f32 1.0, %v4284_v12 }
 0x392   : > { %v12497_v23 = vpop.eup %7854  ;;  %5187 = vmatpush.msra.mxu3 %v4785_v26  ;;  %v4274_v10 = vmul.f32 0.6931472, %v7853_v22  ;;  %v4731_v21 = vadd.f32 1.0, %v12392_v18  ;;  %7862 = vpow2.f32 %v4180_v1  ;;  %vm4279_vm2 = vcmp.lt.f32.partialorder %v4278_v24, 0.0004427343 }
 0x393   : > { %v4728_v37 = vand.u32 2147483647, %v12368_v57  ;;  %v4734_v7 = vmul.f32 -0.5, %v12392_v18  ;;  %v4726_v30 = vadd.f32 1.0, %v4725_v0  ;;  %v4578_v36 = vadd.f32 1.0, %v12255_v42 }
 0x394   : > { %v4280_v53 = vsel %vm4279_vm2, %v4277_v14, %v4274_v10  ;;  %7864 = vlog2.f32 %v4731_v21  ;;  %vm12507_vm3 = vcmp.lt.f32.partialorder %v4287_v31, 0.0004427343  ;;  %vm4050_vm5 = vcmp.gt.f32.partialorder %v12280_v39, 20.0 }
 0x395   : > { %v7857_v19 = vpop.eup %7856  ;;  %v4768_v9 = vsel %vm4000_vm1, %v14626_v20, %v4280_v53  ;;  %7010 = vmatmul.msk.f32.gmra.mxu0 %vm1593_vm4, %v12514_v4  ;;  %v4581_v6 = vmul.f32 -0.5, %v12255_v42  ;;  %v4286_v40 = vmul.f32 %v14625_v15, %v4285_v29  ;;  %vm4051_vm6 = vcmp.gt.f32.partialorder %v12305_v59, 20.0 }
 0x396   : > { %v12520_v48 = vpop.eup %7858  ;;  %5159 = vmatpush.msra.mxu2 %v4768_v9  ;;  %v4283_v61 = vmul.f32 0.6931472, %v7857_v19  ;;  %7866 = vlog2.f32 %v4578_v36  ;;  %vm12526_vm7 = vcmp.lt.f32.partialorder %v4728_v37, 0.0004427343  ;;  %v4735_v47 = vadd.f32 1.0, %v4734_v7 }
 0x397   : > { %v7861_v8 = vpop.eup %7860  ;;  %7015 = vmatmul.msk.f32.vlgmr.msra.gmra.mxu2 %vm1593_vm4, %v12373_v43  ;;  %v4587_v55 = vadd.f32 1.0, %v12269_v3  ;;  %v4590_v52 = vmul.f32 -0.5, %v12269_v3  ;;  %v4727_v63 = vmul.f32 %v12368_v57, %v4726_v30  ;;  %v4737_v11 = vand.u32 2147483647, %v12392_v18 }
 0x398   : > { %v4289_v44 = vsel %vm12507_vm3, %v4286_v40, %v4283_v61  ;;  %v4724_v15 = vmul.f32 0.6931472, %v7861_v8  ;;  %v12536_v60 = vpop.eup %7862  ;;  %vm4034_vm8 = vcmp.gt.f32.partialorder %v12185_v13, 20.0  ;;  %v4582_v12 = vadd.f32 1.0, %v4581_v6 }
 0x399   : > { %v4769_v54 = vsel %vm4001_vm0, %v14627_v56, %v4289_v44  ;;  %7014 = vmatmul.msk.f32.gmra.mxu1 %vm1593_vm4, %v12514_v4  ;;  %7868 = vlog2.f32 %v4587_v55  ;;  %v4584_v24 = vand.u32 2147483647, %v12255_v42  ;;  %v4591_v38 = vadd.f32 1.0, %v4590_v52 }
 0x39a   : > { %v7865_v1 = vpop.eup %7864  ;;  %5188 = vmatpush.msra.mxu3 %v4769_v54  ;;  %v4730_v57 = vsel %vm12526_vm7, %v4727_v63, %v4724_v15  ;;  %v4434_v27 = vadd.f32 1.0, %v12228_v46  ;;  %v4736_v22 = vmul.f32 %v12392_v18, %v4735_v47  ;;  %v4437_v26 = vmul.f32 -0.5, %v12228_v46 }
 0x39b   : > { %7019 = vmatmul.msk.f32.vlgmr.msra.gmra.mxu3 %vm1593_vm4, %v12373_v43  ;;  %v4818_v20 = vsel %vm4050_vm5, %v12280_v39, %v4730_v57  ;;  %v4733_v0 = vmul.f32 0.6931472, %v7865_v1  ;;  %vm4738_vm9 = vcmp.lt.f32.partialorder %v4737_v11, 0.0004427343  ;;  %v4593_v31 = vand.u32 2147483647, %v12269_v3 }
 0x39c   : > { %v7867_v56 = vpop.eup %7866  ;;  %5214 = vmatpush.msrb.mxu0 %v4818_v20  ;;  %7870 = vlog2.f32 %v4434_v27  ;;  %v4443_v10 = vadd.f32 1.0, %v12233_v41  ;;  %v4583_v21 = vmul.f32 %v12255_v42, %v4582_v12  ;;  %v4446_v37 = vmul.f32 -0.5, %v12233_v41  ;;  %v14634_v27 = vld [vmem:[#allocation33_spill] sm:$0xff] }
 0x39d   : > { %v4739_v14 = vsel %vm4738_vm9, %v4736_v22, %v4733_v0  ;;  %v4580_v29 = vmul.f32 0.6931472, %v7867_v56  ;;  %vm4585_vm10 = vcmp.lt.f32.partialorder %v4584_v24, 0.0004427343  ;;  %v4592_v18 = vmul.f32 %v12269_v3, %v4591_v38 }
 0x39e   : > { %v4819_v39 = vsel %vm4051_vm6, %v12305_v59, %v4739_v14  ;;  %7872 = vlog2.f32 %v4443_v10  ;;  %v4438_v30 = vadd.f32 1.0, %v4437_v26  ;;  %v4440_v36 = vand.u32 2147483647, %v12228_v46 }
 0x39f   : > { %v7869_v7 = vpop.eup %7868  ;;  %7016 = vmatmul.msk.f32.gmra.mxu2 %vm1593_vm4, %v12419_v50  ;;  %5243 = vmatpush.msrb.mxu1 %v4819_v39  ;;  %v4586_v53 = vsel %vm4585_vm10, %v4583_v21, %v4580_v29  ;;  %v4449_v42 = vand.u32 2147483647, %v12233_v41  ;;  %v4447_v9 = vadd.f32 1.0, %v4446_v37  ;;  %v4290_v3 = vadd.f32 1.0, %v12124_v5 }
 0x3a0   : > { %v4802_v19 = vsel %vm4034_vm8, %v12185_v13, %v4586_v53  ;;  %v4589_v59 = vmul.f32 0.6931472, %v7869_v7  ;;  %7874 = vpow2.f32 %v12379_v32  ;;  %vm4035_vm11 = vcmp.gt.f32.partialorder %v12190_v33, 20.0 }
 0x3a1   : > { %5215 = vmatpush.msrb.mxu0 %v4802_v19  ;;  %vm4594_vm12 = vcmp.lt.f32.partialorder %v4593_v31, 0.0004427343  ;;  %v4293_v51 = vmul.f32 -0.5, %v12124_v5  ;;  %7876 = vlog2.f32 %v4290_v3  ;;  %v4299_v40 = vadd.f32 1.0, %v12128_v45 }
 0x3a2   : > { %v7871_v6 = vpop.eup %7870  ;;  %v4595_v61 = vsel %vm4594_vm12, %v4592_v18, %v4589_v59  ;;  %v4302_v8 = vmul.f32 -0.5, %v12128_v45  ;;  %vm4018_vm13 = vcmp.gt.f32.partialorder %v12171_v34, 20.0  ;;  %v4439_v2 = vmul.f32 %v12228_v46, %v4438_v30 }
 0x3a3   : > { %7020 = vmatmul.msk.f32.gmra.mxu3 %vm1593_vm4, %v12419_v50  ;;  %v4803_v13 = vsel %vm4035_vm11, %v12190_v33, %v4595_v61  ;;  %v4436_v32 = vmul.f32 0.6931472, %v7871_v6  ;;  %vm4441_vm14 = vcmp.lt.f32.partialorder %v4440_v36, 0.0004427343  ;;  %v4448_v55 = vmul.f32 %v12233_v41, %v4447_v9 }
 0x3a4   : > { %v7873_v47 = vpop.eup %7872  ;;  %5244 = vmatpush.msrb.mxu1 %v4803_v13  ;;  %vm12582_vm15 = vcmp.lt.f32.partialorder %v4449_v42, 0.0004427343  ;;  %7878 = vlog2.f32 %v4299_v40  ;;  %v4294_v63 = vadd.f32 1.0, %v4293_v51  ;;  %v4740_v33 = vadd.f32 1.0, %v12520_v48 }
 0x3a5   : > { %v4442_v44 = vsel %vm4441_vm14, %v4439_v2, %v4436_v32  ;;  %v4445_v15 = vmul.f32 0.6931472, %v7873_v47  ;;  %v4296_v54 = vand.u32 2147483647, %v12124_v5  ;;  %v4303_v46 = vadd.f32 1.0, %v4302_v8 }
 0x3a6   : > { %v4786_v11 = vsel %vm4018_vm13, %v12171_v34, %v4442_v44  ;;  %v4743_v12 = vmul.f32 -0.5, %v12520_v48  ;;  %v12590_v1 = vpop.eup %7874  ;;  %vm4019_vm1 = vcmp.gt.f32.partialorder %v12174_v58, 20.0  ;;  %7880 = vlog2.f32 %v4740_v33 }
 0x3a7   : > { %7017 = vmatmul.msk.f32.gmra.mxu2 %vm1593_vm4, %v12478_v25  ;;  %5216 = vmatpush.msrb.mxu0 %v4786_v11  ;;  %v4451_v41 = vsel %vm12582_vm15, %v4448_v55, %v4445_v15  ;;  %v7877_v57 = vpop.eup %7876  ;;  %7882 = vpow2.f32 %v12314_v28  ;;  %v4305_v24 = vand.u32 2147483647, %v12128_v45  ;;  %v4749_v38 = vadd.f32 1.0, %v12536_v60 }
 0x3a8   : > { %v4787_v34 = vsel %vm4019_vm1, %v12174_v58, %v4451_v41  ;;  %vm4002_vm0 = vcmp.gt.f32.partialorder %v14634_v27, 20.0  ;;  %v4292_v20 = vmul.f32 0.6931472, %v7877_v57  ;;  %v4295_v0 = vmul.f32 %v12124_v5, %v4294_v63  ;;  %v14635_v5 = vld [vmem:[#allocation34_spill] sm:$0xff]  ;;  %v12648_v57 = vpop.f32.mrf.mxu0 }
 0x3a9   : > { %5245 = vmatpush.msrb.mxu1 %v4787_v34  ;;  %v4752_v22 = vmul.f32 -0.5, %v12536_v60  ;;  %vm4297_vm2 = vcmp.lt.f32.partialorder %v4296_v54, 0.0004427343  ;;  %v4304_v56 = vmul.f32 %v12128_v45, %v4303_v46  ;;  %v4744_v31 = vadd.f32 1.0, %v4743_v12  ;;  %v12650_v34 = vpop.f32.mrf.mxu1 }
 0x3aa   : > { %v7879_v26 = vpop.eup %7878  ;;  %7884 = vlog2.f32 %v4749_v38  ;;  %v4298_v58 = vsel %vm4297_vm2, %v4295_v0, %v4292_v20  ;;  %v4746_v10 = vand.u32 2147483647, %v12520_v48  ;;  %v4596_v14 = vadd.f32 1.0, %v12497_v23 }
 0x3ab   : > { %7021 = vmatmul.msk.f32.gmra.mxu3 %vm1593_vm4, %v12478_v25  ;;  %v4301_v28 = vmul.f32 0.6931472, %v7879_v26  ;;  %v4770_v29 = vsel %vm4002_vm0, %v14634_v27, %v4298_v58  ;;  %vm4003_vm3 = vcmp.gt.f32.partialorder %v14635_v5, 20.0  ;;  %vm4306_vm5 = vcmp.lt.f32.partialorder %v4305_v24, 0.0004427343  ;;  %v14638_v58 = vld [vmem:[#allocation17_spill] sm:$0xff] }
 0x3ac   : > { %v4599_v21 = vmul.f32 -0.5, %v12497_v23  ;;  %v7881_v37 = vpop.eup %7880  ;;  %5217 = vmatpush.msrb.mxu0 %v4770_v29  ;;  %v4753_v39 = vadd.f32 1.0, %v4752_v22  ;;  %7886 = vlog2.f32 %v4596_v14  ;;  %v4605_v18 = vadd.f32 1.0, %v12590_v1  ;;  %v14637_v22 = vld [vmem:[#allocation21_spill] sm:$0xff] }
 0x3ad   : > { %v4307_v45 = vsel %vm4306_vm5, %v4304_v56, %v4301_v28  ;;  %v12613_v7 = vpop.eup %7882  ;;  %7023 = vmatmul.msk.f32.vlgmr.msrb.gmra.mxu0 %vm1593_vm4, %v12373_v43  ;;  %v4742_v30 = vmul.f32 0.6931472, %v7881_v37  ;;  %v4745_v36 = vmul.f32 %v12520_v48, %v4744_v31  ;;  %v4755_v42 = vand.u32 2147483647, %v12536_v60 }
 0x3ae   : > { %v4771_v53 = vsel %vm4003_vm3, %v14635_v5, %v4307_v45  ;;  %vm4747_vm6 = vcmp.lt.f32.partialorder %v4746_v10, 0.0004427343  ;;  %v4600_v19 = vadd.f32 1.0, %v4599_v21  ;;  %7888 = vlog2.f32 %v4605_v18  ;;  %v14639_v21 = vld [vmem:[#allocation28_spill] sm:$0xff] }
 0x3af   : > { %5246 = vmatpush.msrb.mxu1 %v4771_v53  ;;  %7018 = vmatmul.msk.f32.gmra.mxu2 %vm1593_vm4, %v12514_v4  ;;  %v4608_v59 = vmul.f32 -0.5, %v12590_v1  ;;  %vm4052_vm7 = vcmp.gt.f32.partialorder %v12429_v62, 20.0  ;;  %v4748_v3 = vsel %vm4747_vm6, %v4745_v36, %v4742_v30  ;;  %v4452_v48 = vadd.f32 1.0, %v12288_v35 }
 0x3b0   : > { %v7885_v9 = vpop.eup %7884  ;;  %7027 = vmatmul.msk.f32.vlgmr.msrb.gmra.mxu1 %vm1593_vm4, %v12373_v43  ;;  %v4455_v51 = vmul.f32 -0.5, %v12288_v35  ;;  %v4820_v6 = vsel %vm4052_vm7, %v12429_v62, %v4748_v3  ;;  %v4754_v40 = vmul.f32 %v12536_v60, %v4753_v39  ;;  %v4602_v8 = vand.u32 2147483647, %v12497_v23  ;;  %v4958_v3 = vpop.f32.mrf.mxu3 }
 0x3b1   : > { %v4751_v61 = vmul.f32 0.6931472, %v7885_v9  ;;  %5272 = vmatpush.msrb.mxu2 %v4820_v6  ;;  %vm4053_vm8 = vcmp.gt.f32.partialorder %v12443_v49, 20.0  ;;  %vm4756_vm9 = vcmp.lt.f32.partialorder %v4755_v42, 0.0004427343  ;;  %v4609_v13 = vadd.f32 1.0, %v4608_v59  ;;  %v12671_v36 = vpop.f32.mrf.mxu1  ;;  %v4929_v9 = vpop.f32.mrf.mxu2 }
 0x3b2   : > { %7890 = vlog2.f32 %v4452_v48  ;;  %v7887_v32 = vpop.eup %7886  ;;  %v4601_v47 = vmul.f32 %v12497_v23, %v4600_v19  ;;  %v4611_v62 = vand.u32 2147483647, %v12590_v1  ;;  %v4461_v55 = vadd.f32 1.0, %v12613_v7  ;;  %v14640_v19 = vld [vmem:[#allocation20_spill] sm:$0xff] }
 0x3b3   : > { %7022 = vmatmul.msk.f32.gmra.mxu3 %vm1593_vm4, %v12514_v4  ;;  %v4757_v2 = vsel %vm4756_vm9, %v4754_v40, %v4751_v61  ;;  %v4598_v52 = vmul.f32 0.6931472, %v7887_v32  ;;  %v4456_v44 = vadd.f32 1.0, %v4455_v51  ;;  %v4464_v15 = vmul.f32 -0.5, %v12613_v7  ;;  %v12678_v61 = vpop.permute.xlu2 %4839  ;;  %v14641_v40 = vld [vmem:[#allocation35_spill] sm:$0xff] }
 0x3b4   : > { %v4821_v60 = vsel %vm4053_vm8, %v12443_v49, %v4757_v2  ;;  %v7889_v63 = vpop.eup %7888  ;;  %vm4036_vm10 = vcmp.gt.f32.partialorder %v12335_v16, 20.0  ;;  %vm4603_vm11 = vcmp.lt.f32.partialorder %v4602_v8, 0.0004427343  ;;  %v4458_v33 = vand.u32 2147483647, %v12288_v35  ;;  %v14636_v49 = vld [vmem:[#allocation9_spill] sm:$0xff] }
 0x3b5   : > { %5301 = vmatpush.msrb.mxu3 %v4821_v60  ;;  %7892 = vlog2.f32 %v4461_v55  ;;  %v4604_v11 = vsel %vm4603_vm11, %v4601_v47, %v4598_v52  ;;  %v4607_v23 = vmul.f32 0.6931472, %v7889_v63  ;;  %v4610_v54 = vmul.f32 %v12590_v1, %v4609_v13  ;;  %7024 = vmatmul.msk.f32.gmra.mxu0 %vm1593_vm4, %v12419_v50  ;;  %v12683_v13 = vpop.permute.xlu1 %4827  ;;  %v12698_v60 = vpop.permute.xlu0 %4831 }
 0x3b6   : > { %v4308_v46 = vadd.f32 1.0, %v14636_v49  ;;  %v4804_v12 = vsel %vm4036_vm10, %v12335_v16, %v4604_v11  ;;  %vm4037_vm12 = vcmp.gt.f32.partialorder %v12338_v17, 20.0  ;;  %vm4612_vm13 = vcmp.lt.f32.partialorder %v4611_v62, 0.0004427343 }
 0x3b7   : > { %v4311_v41 = vmul.f32 -0.5, %v14636_v49  ;;  %5273 = vmatpush.msrb.mxu2 %v4804_v12  ;;  %v4613_v38 = vsel %vm4612_vm13, %v4610_v54, %v4607_v23  ;;  %v4457_v1 = vmul.f32 %v12288_v35, %v4456_v44  ;;  %v4465_v27 = vadd.f32 1.0, %v4464_v15 }
 0x3b8   : > { %v7891_v24 = vpop.eup %7890  ;;  %7028 = vmatmul.msk.f32.gmra.mxu1 %vm1593_vm4, %v12419_v50  ;;  %7894 = vlog2.f32 %v4308_v46  ;;  %v4805_v16 = vsel %vm4037_vm12, %v12338_v17, %v4613_v38  ;;  %v4467_v0 = vand.u32 2147483647, %v12613_v7  ;;  %v4317_v26 = vadd.f32 1.0, %v14637_v22  ;;  %v4961_v15 = vpop.f32.mrf.mxu3 }
 0x3b9   : > { %v4454_v20 = vmul.f32 0.6931472, %v7891_v24  ;;  %5302 = vmatpush.msrb.mxu3 %v4805_v16  ;;  %vm4459_vm14 = vcmp.lt.f32.partialorder %v4458_v33, 0.0004427343  ;;  %v4320_v56 = vmul.f32 -0.5, %v14637_v22  ;;  %vm4020_vm15 = vcmp.gt.f32.partialorder %v14638_v58, 20.0  ;;  %v4906_v55 = vpop.f32.mrf.mxu1  ;;  %v4932_v44 = vpop.f32.mrf.mxu2 }
 0x3ba   : > { %v4312_v10 = vadd.f32 1.0, %v4311_v41  ;;  %7896 = vlog2.f32 %v4317_v26  ;;  %v4466_v17 = vmul.f32 %v12613_v7, %v4465_v27  ;;  %v4314_v29 = vand.u32 2147483647, %v14636_v49  ;;  %v12669_v7 = vpop.f32.mrf.mxu0 }
 0x3bb   : > { %v7893_v31 = vpop.eup %7892  ;;  %v4460_v28 = vsel %vm4459_vm14, %v4457_v1, %v4454_v20  ;;  %vm4468_vm1 = vcmp.lt.f32.partialorder %v4467_v0, 0.0004427343  ;;  %vm4021_vm0 = vcmp.gt.f32.partialorder %v14639_v21, 20.0  ;;  %v4321_v45 = vadd.f32 1.0, %v4320_v56 }
 0x3bc   : > { %v4788_v35 = vsel %vm4020_vm15, %v14638_v58, %v4460_v28  ;;  %v4463_v14 = vmul.f32 0.6931472, %v7893_v31  ;;  %v4313_v53 = vmul.f32 %v14636_v49, %v4312_v10  ;;  %v4323_v30 = vand.u32 2147483647, %v14637_v22 }
 0x3bd   : > { %5274 = vmatpush.msrb.mxu2 %v4788_v35  ;;  %7025 = vmatmul.msk.f32.gmra.mxu0 %vm1593_vm4, %v12478_v25  ;;  %vm4315_vm2 = vcmp.lt.f32.partialorder %v4314_v29, 0.0004427343  ;;  %vm4004_vm3 = vcmp.gt.f32.partialorder %v14640_v19, 20.0  ;;  %v4322_v6 = vmul.f32 %v14637_v22, %v4321_v45  ;;  %vm4005_vm6 = vcmp.gt.f32.partialorder %v14641_v40, 20.0 }
 0x3be   : > { %v7895_v5 = vpop.eup %7894  ;;  %v4469_v37 = vsel %vm4468_vm1, %v4466_v17, %v4463_v14  ;;  %vm4324_vm5 = vcmp.lt.f32.partialorder %v4323_v30, 0.0004427343  ;;  %v12687_v2 = vadd.f32 %v4929_v9, %v12683_v13  ;;  %v12692_v47 = vadd.f32 %v4958_v3, %v12683_v13 }
 0x3bf   : > { %v4789_v39 = vsel %vm4021_vm0, %v14639_v21, %v4469_v37  ;;  %v4310_v18 = vmul.f32 0.6931472, %v7895_v5  ;;  %v12703_v33 = vadd.f32 %v4932_v44, %v12698_v60  ;;  %v12706_v11 = vadd.f32 %v4961_v15, %v12698_v60 }
 0x3c0   : > { %5303 = vmatpush.msrb.mxu3 %v4789_v39  ;;  %7029 = vmatmul.msk.f32.gmra.mxu1 %vm1593_vm4, %v12478_v25  ;;  %v7897_v42 = vpop.eup %7896  ;;  %v5320_v52 = vmin.f32 %v12687_v2, 20.0  ;;  %v5321_v63 = vmin.f32 %v12692_v47, 20.0  ;;  %v4964_v0 = vpop.f32.mrf.mxu3  ;;  %v12742_v17 = vadd.f32 %v12669_v7, %v12698_v60  ;;  %v12778_v44 = vadd.f32 %v12671_v36, %v12698_v60 }
 0x3c1   : > { %v4316_v59 = vsel %vm4315_vm2, %v4313_v53, %v4310_v18  ;;  %v4319_v51 = vmul.f32 0.6931472, %v7897_v42  ;;  %v5336_v23 = vmin.f32 %v12703_v33, 20.0  ;;  %v5337_v49 = vmin.f32 %v12706_v11, 20.0  ;;  %v4909_v41 = vpop.f32.mrf.mxu1  ;;  %v4935_v20 = vpop.f32.mrf.mxu2 }
 0x3c2   : > { %v4772_v48 = vsel %vm4004_vm3, %v14640_v19, %v4316_v59  ;;  %v4877_v62 = vpop.f32.mrf.mxu0  ;;  %v5450_v54 = vmul.f32 1.442695, %v5320_v52  ;;  %v5452_v46 = vmul.f32 1.442695, %v5321_v63  ;;  %v12723_v27 = vadd.f32 %v4909_v41, %v12678_v61 }
 0x3c3   : > { %5275 = vmatpush.msrb.mxu2 %v4772_v48  ;;  %v4325_v8 = vsel %vm4324_vm5, %v4322_v6, %v4319_v51  ;;  %v5482_v24 = vmul.f32 1.442695, %v5336_v23  ;;  %v5484_v16 = vmul.f32 1.442695, %v5337_v49  ;;  %v5334_v37 = vmin.f32 %v12742_v17, 20.0 }
 0x3c4   : > { %7031 = vmatmul.msk.f32.vlgmr.msrb.gmra.mxu2 %vm1593_vm4, %v12373_v43  ;;  %v4773_v32 = vsel %vm4005_vm6, %v14641_v40, %v4325_v8  ;;  %7898 = vpow2.f32 %v5450_v54  ;;  %v5367_v56 = vmin.f32 %v12723_v27, 20.0  ;;  %vm5431_vm8 = vcmp.gt.f32.partialorder %v12723_v27, 20.0 }
 0x3c5   : > { %5304 = vmatpush.msrb.mxu3 %v4773_v32  ;;  %7026 = vmatmul.msk.f32.gmra.mxu0 %vm1593_vm4, %v12514_v4  ;;  %7900 = vpow2.f32 %v5452_v46  ;;  %v5478_v6 = vmul.f32 1.442695, %v5334_v37  ;;  %vm5398_vm15 = vcmp.gt.f32.partialorder %v12742_v17, 20.0  ;;  %vm5399_vm0 = vcmp.gt.f32.partialorder %v12778_v44, 20.0 }
 0x3c6   : > { %7035 = vmatmul.msk.f32.vlgmr.msrb.gmra.mxu3 %vm1593_vm4, %v12373_v43  ;;  %v12710_v43 = vpop.permute.xlu2 %4835  ;;  %7902 = vpow2.f32 %v5482_v24  ;;  %v5544_v35 = vmul.f32 1.442695, %v5367_v56 }
 0x3c7   : > { %v12717_v38 = vadd.f32 %v4877_v62, %v12710_v43  ;;  %v12732_v31 = vadd.f32 %v4935_v20, %v12710_v43  ;;  %v12735_v58 = vadd.f32 %v4964_v0, %v12710_v43  ;;  %7904 = vpow2.f32 %v5484_v16 }
 0x3c8   : > { %7030 = vmatmul.msk.f32.gmra.mxu1 %vm1593_vm4, %v12514_v4  ;;  %v4967_v3 = vpop.f32.mrf.mxu3 }
 0x3c9   : > { %v5350_v22 = vmin.f32 %v12717_v38, 20.0  ;;  %v5352_v29 = vmin.f32 %v12732_v31, 20.0  ;;  %v5353_v5 = vmin.f32 %v12735_v58, 20.0  ;;  %v5016_v18 = vpop.f32.mrf.mxu1  ;;  %v4938_v9 = vpop.f32.mrf.mxu2  ;;  %v12769_v8 = vadd.f32 %v4967_v3, %v12678_v61 }
 0x3ca   : > { %v4880_v12 = vpop.f32.mrf.mxu0  ;;  %v12747_v45 = vpop.eup %7898  ;;  %v12757_v42 = vadd.f32 %v5016_v18, %v12683_v13  ;;  %v12764_v51 = vadd.f32 %v4938_v9, %v12678_v61  ;;  %vm5414_vm9 = vcmp.gt.f32.partialorder %v12717_v38, 20.0 }
 0x3cb   : > { %v12720_v1 = vadd.f32 %v4880_v12, %v12678_v61  ;;  %v5510_v14 = vmul.f32 1.442695, %v5350_v22  ;;  %v5514_v53 = vmul.f32 1.442695, %v5352_v29  ;;  %v12751_v30 = vpop.eup %7900  ;;  %v5516_v59 = vmul.f32 1.442695, %v5353_v5 }
 0x3cc   : > { %7032 = vmatmul.msk.f32.gmra.mxu2 %vm1593_vm4, %v12419_v50  ;;  %v12759_v19 = vpop.eup %7902  ;;  %v5323_v48 = vmin.f32 %v12757_v42, 20.0  ;;  %v5368_v52 = vmin.f32 %v12764_v51, 20.0  ;;  %v5369_v63 = vmin.f32 %v12769_v8, 20.0  ;;  %v5335_v22 = vmin.f32 %v12778_v44, 20.0 }
 0x3cd   : > { %v5366_v26 = vmin.f32 %v12720_v1, 20.0  ;;  %v12766_v40 = vpop.eup %7904  ;;  %vm5430_vm7 = vcmp.gt.f32.partialorder %v12720_v1, 20.0  ;;  %vm5432_vm2 = vcmp.gt.f32.partialorder %v12764_v51, 20.0 }
 0x3ce   : > { %7036 = vmatmul.msk.f32.gmra.mxu3 %vm1593_vm4, %v12419_v50  ;;  %v12727_v50 = vadd.f32 %v4906_v55, %v12710_v43  ;;  %v5456_v55 = vmul.f32 1.442695, %v5323_v48  ;;  %v5546_v49 = vmul.f32 1.442695, %v5368_v52 }
 0x3cf   : > { %v5542_v10 = vmul.f32 1.442695, %v5366_v26 }
 0x3d0   : > { %v5351_v28 = vmin.f32 %v12727_v50, 20.0  ;;  %vm5415_vm11 = vcmp.gt.f32.partialorder %v12727_v50, 20.0 }
 0x3d1   : > { %7906 = vpow2.f32 %v5542_v10  ;;  %v5019_v41 = vpop.f32.mrf.mxu1 }
 0x3d2   : > { %v5512_v21 = vmul.f32 1.442695, %v5351_v28  ;;  %7908 = vpow2.f32 %v5544_v35  ;;  %v4987_v39 = vpop.f32.mrf.mxu0  ;;  %v12797_v0 = vadd.f32 %v5019_v41, %v12698_v60 }
 0x3d3   : > { %v12754_v7 = vadd.f32 %v4987_v39, %v12683_v13  ;;  %7910 = vpow2.f32 %v5510_v14 }
 0x3d4   : > { %7033 = vmatmul.msk.f32.gmra.mxu2 %vm1593_vm4, %v12478_v25  ;;  %7912 = vpow2.f32 %v5512_v21  ;;  %v5339_v14 = vmin.f32 %v12797_v0, 20.0 }
 0x3d5   : > { %7914 = vpow2.f32 %v5514_v53 }
 0x3d6   : > { %7037 = vmatmul.msk.f32.gmra.mxu3 %vm1593_vm4, %v12478_v25  ;;  %v5322_v25 = vmin.f32 %v12754_v7, 20.0  ;;  %7916 = vpow2.f32 %v5516_v59  ;;  %v5488_v59 = vmul.f32 1.442695, %v5339_v14 }
 0x3d7   : > { %v12771_v32 = vpop.eup %7906  ;;  %7918 = vpow2.f32 %v5478_v6 }
 0x3d8   : > { %v5454_v62 = vmul.f32 1.442695, %v5322_v25  ;;  %v12780_v15 = vpop.eup %7908  ;;  %v6009_v23 = vmul.f32 -0.5, %v12771_v32  ;;  %v6006_v46 = vadd.f32 1.0, %v12771_v32  ;;  %v6012_v10 = vand.u32 2147483647, %v12771_v32 }
 0x3d9   : > { %v12784_v54 = vpop.eup %7910  ;;  %v6015_v24 = vadd.f32 1.0, %v12780_v15  ;;  %v6018_v16 = vmul.f32 -0.5, %v12780_v15  ;;  %v6021_v37 = vand.u32 2147483647, %v12780_v15  ;;  %v5022_v41 = vpop.f32.mrf.mxu1 }
 0x3da   : > { %v12787_v12 = vpop.eup %7912  ;;  %7920 = vpow2.f32 %v5454_v62  ;;  %v4990_v36 = vpop.f32.mrf.mxu0  ;;  %v6010_v28 = vadd.f32 1.0, %v6009_v23  ;;  %v5862_v39 = vadd.f32 1.0, %v12784_v54  ;;  %v5865_v25 = vmul.f32 -0.5, %v12784_v54 }
 0x3db   : > { %7922 = vpow2.f32 %v5456_v55  ;;  %v12794_v20 = vadd.f32 %v4990_v36, %v12698_v60  ;;  %v12800_v26 = vpop.eup %7914  ;;  %v6019_v21 = vadd.f32 1.0, %v6018_v16  ;;  %v5868_v62 = vand.u32 2147483647, %v12784_v54 }
 0x3dc   : > { %7034 = vmatmul.msk.f32.gmra.mxu2 %vm1593_vm4, %v12514_v4  ;;  %7924 = vpow2.f32 %v5546_v49  ;;  %v12810_v5 = vpop.eup %7916  ;;  %v5871_v55 = vadd.f32 1.0, %v12787_v12  ;;  %vm12828_vm10 = vcmp.lt.f32.partialorder %v6012_v10, 0.0004427343  ;;  %v5874_v49 = vmul.f32 -0.5, %v12787_v12 }
 0x3dd   : > { %v5338_v35 = vmin.f32 %v12794_v20, 20.0  ;;  %7926 = vlog2.f32 %v6006_v46  ;;  %v12814_v18 = vpop.eup %7918  ;;  %v6011_v16 = vmul.f32 %v12771_v32, %v6010_v28  ;;  %v12841_v10 = vadd.f32 %v5022_v41, %v12710_v43 }
 0x3de   : > { %7038 = vmatmul.msk.f32.gmra.mxu3 %vm1593_vm4, %v12514_v4  ;;  %v5548_v4 = vmul.f32 1.442695, %v5369_v63  ;;  %7928 = vlog2.f32 %v6015_v24  ;;  %v6020_v14 = vmul.f32 %v12780_v15, %v6019_v21  ;;  %vm12845_vm12 = vcmp.lt.f32.partialorder %v6021_v37, 0.0004427343 }
 0x3df   : > { %v5486_v53 = vmul.f32 1.442695, %v5338_v35  ;;  %7930 = vlog2.f32 %v5862_v39  ;;  %vm12849_vm13 = vcmp.lt.f32.partialorder %v5868_v62, 0.0004427343 }
 0x3e0   : > { %v12818_v48 = vpop.eup %7920  ;;  %7932 = vpow2.f32 %v5548_v4 }
 0x3e1   : > { %v5045_v56 = vpop.f32.mrf.mxu2  ;;  %v12826_v52 = vpop.eup %7922  ;;  %7934 = vpow2.f32 %v5486_v53 }
 0x3e2   : > { %v12808_v29 = vadd.f32 %v5045_v56, %v12683_v13  ;;  %v12833_v46 = vpop.eup %7924  ;;  %v4993_v36 = vpop.f32.mrf.mxu0  ;;  %v5866_v56 = vadd.f32 1.0, %v5865_v25  ;;  %7936 = vpow2.f32 %v5488_v59  ;;  %v5875_v59 = vadd.f32 1.0, %v5874_v49 }
 0x3e3   : > { %v7927_v35 = vpop.eup %7926  ;;  %v12838_v4 = vadd.f32 %v4993_v36, %v12710_v43  ;;  %7938 = vlog2.f32 %v5871_v55  ;;  %v5718_v36 = vadd.f32 1.0, %v12814_v18  ;;  %v5355_v55 = vmin.f32 %v12841_v10, 20.0 }
 0x3e4   : > { %14642 = vst [vmem:[#allocation29_spill] sm:$0xff] %v12808_v29  ;;  %v5324_v9 = vmin.f32 %v12808_v29, 20.0  ;;  %v5074_v3 = vpop.f32.mrf.mxu3  ;;  %v7929_v39 = vpop.eup %7928  ;;  %v6008_v53 = vmul.f32 0.6931472, %v7927_v35  ;;  %v5867_v37 = vmul.f32 %v12784_v54, %v5866_v56  ;;  %v5876_v35 = vmul.f32 %v12787_v12, %v5875_v59 }
 0x3e5   : > { %v12821_v6 = vadd.f32 %v5074_v3, %v12683_v13  ;;  %v6017_v28 = vmul.f32 0.6931472, %v7929_v39  ;;  %v5877_v3 = vand.u32 2147483647, %v12787_v12  ;;  %v7931_v25 = vpop.eup %7930  ;;  %v5354_v62 = vmin.f32 %v12838_v4, 20.0  ;;  %v5025_v12 = vpop.f32.mrf.mxu1 }
 0x3e6   : > { %v5458_v63 = vmul.f32 1.442695, %v5324_v9  ;;  %v6014_v21 = vsel %vm12828_vm10, %v6011_v16, %v6008_v53  ;;  %v12858_v41 = vpop.eup %7932  ;;  %v5864_v23 = vmul.f32 0.6931472, %v7931_v25  ;;  %v5721_v16 = vmul.f32 -0.5, %v12814_v18 }
 0x3e7   : > { %14643 = vst [vmem:[#allocation42_spill] sm:$0xff] %v12821_v6  ;;  %v5325_v24 = vmin.f32 %v12821_v6, 20.0  ;;  %v6023_v49 = vsel %vm12845_vm12, %v6020_v14, %v6017_v28  ;;  %vm12876_vm14 = vcmp.lt.f32.partialorder %v5877_v3, 0.0004427343  ;;  %v5480_v14 = vmul.f32 1.442695, %v5335_v22 }
 0x3e8   : > { %7940 = vpow2.f32 %v5458_v63  ;;  %v6198_v63 = vsel %vm5430_vm7, %v12720_v1, %v6014_v21  ;;  %v6199_v54 = vsel %vm5431_vm8, %v12723_v27, %v6023_v49  ;;  %v12884_v39 = vadd.f32 %v12648_v57, %v12683_v13 }
 0x3e9   : > { %v5460_v15 = vmul.f32 1.442695, %v5325_v24  ;;  %v12867_v24 = vpop.eup %7934  ;;  %6246 = vmatpush.msra.mxu0 %v6198_v63  ;;  %7942 = vlog2.f32 %v5718_v36  ;;  %6269 = vmatpush.msra.mxu1 %v6199_v54  ;;  %v5870_v53 = vsel %vm12849_vm13, %v5867_v37, %v5864_v23  ;;  %v5722_v9 = vadd.f32 1.0, %v5721_v16  ;;  %v5048_v32 = vpop.f32.mrf.mxu2 }
 0x3ea   : > { %v12873_v56 = vpop.eup %7936  ;;  %v5724_v28 = vand.u32 2147483647, %v12814_v18  ;;  %v4996_v25 = vpop.f32.mrf.mxu0  ;;  %v12891_v59 = vadd.f32 %v12650_v34, %v12683_v13  ;;  %v6182_v57 = vsel %vm5414_vm9, %v12717_v38, %v5870_v53  ;;  %7944 = vpow2.f32 %v5480_v14 }
 0x3eb   : > { %v7939_v27 = vpop.eup %7938  ;;  %v5518_v37 = vmul.f32 1.442695, %v5354_v62  ;;  %6247 = vmatpush.msra.mxu0 %v6182_v57  ;;  %v12900_v36 = vadd.f32 %v4996_v25, %v12678_v61  ;;  %v12903_v34 = vadd.f32 %v5025_v12, %v12678_v61  ;;  %v5318_v63 = vmin.f32 %v12884_v39, 20.0 }
 0x3ec   : > { %v5873_v22 = vmul.f32 0.6931472, %v7939_v27  ;;  %v5077_v21 = vpop.f32.mrf.mxu3  ;;  %7946 = vpow2.f32 %v5460_v15  ;;  %v5723_v49 = vmul.f32 %v12814_v18, %v5722_v9  ;;  %v5319_v54 = vmin.f32 %v12891_v59, 20.0 }
 0x3ed   : > { %v5520_v16 = vmul.f32 1.442695, %v5355_v55  ;;  %vm5725_vm1 = vcmp.lt.f32.partialorder %v5724_v28, 0.0004427343  ;;  %v5370_v14 = vmin.f32 %v12900_v36, 20.0  ;;  %v5371_v15 = vmin.f32 %v12903_v34, 20.0 }
 0x3ee   : > { %v12893_v3 = vpop.eup %7940  ;;  %v5879_v38 = vsel %vm12876_vm14, %v5876_v35, %v5873_v22  ;;  %v5446_v53 = vmul.f32 1.442695, %v5318_v63  ;;  %v12916_v35 = vadd.f32 %v5048_v32, %v12698_v60  ;;  %7948 = vpow2.f32 %v5518_v37 }
 0x3ef   : > { %14652 = vst [vmem:[#allocation6_spill] sm:$0xff] %v12893_v3  ;;  %v7943_v23 = vpop.eup %7942  ;;  %v6183_v62 = vsel %vm5415_vm11, %v12727_v50, %v5879_v38  ;;  %v5550_v18 = vmul.f32 1.442695, %v5370_v14  ;;  %v5448_v55 = vmul.f32 1.442695, %v5319_v54  ;;  %v12923_v57 = vadd.f32 %v5077_v21, %v12698_v60 }
 0x3f0   : > { %6270 = vmatpush.msra.mxu1 %v6183_v62  ;;  %v5720_v27 = vmul.f32 0.6931472, %v7943_v23  ;;  %14653 = vst [vmem:[#allocation23_spill] sm:$0xff] %v12916_v35  ;;  %v7945_v1 = vpop.eup %7944  ;;  %7950 = vpow2.f32 %v5446_v53  ;;  %v5340_v25 = vmin.f32 %v12916_v35, 20.0  ;;  %v5552_v32 = vmul.f32 1.442695, %v5371_v15 }
 0x3f1   : > { %v5727_v28 = vadd.f32 1.0, %v7945_v1  ;;  %v5730_v12 = vmul.f32 -0.5, %v7945_v1  ;;  %14654 = vst [vmem:[#allocation46_spill] sm:$0xff] %v12923_v57  ;;  %7952 = vpow2.f32 %v5520_v16  ;;  %v5051_v37 = vpop.f32.mrf.mxu2  ;;  %v6027_v63 = vmul.f32 -0.5, %v12833_v46 }
 0x3f2   : > { %v5726_v9 = vsel %vm5725_vm1, %v5723_v49, %v5720_v27  ;;  %v12925_v22 = vpop.eup %7946  ;;  %v5490_v38 = vmul.f32 1.442695, %v5340_v25  ;;  %v12929_v49 = vadd.f32 %v5051_v37, %v12710_v43  ;;  %v6024_v21 = vadd.f32 1.0, %v12833_v46 }
 0x3f3   : > { %v6166_v50 = vsel %vm5398_vm15, %v12742_v17, %v5726_v9  ;;  %14655 = vst [vmem:[#allocation43_spill] sm:$0xff] %v12925_v22  ;;  %7954 = vlog2.f32 %v5727_v28  ;;  %v5731_v17 = vadd.f32 1.0, %v5730_v12  ;;  %v5733_v14 = vand.u32 2147483647, %v7945_v1 }
 0x3f4   : > { %6248 = vmatpush.msra.mxu0 %v6166_v50  ;;  %v5080_v54 = vpop.f32.mrf.mxu3  ;;  %7956 = vpow2.f32 %v5550_v18  ;;  %v12932_v62 = vpop.eup %7948  ;;  %v5341_v16 = vmin.f32 %v12923_v57, 20.0  ;;  %v6028_v9 = vadd.f32 1.0, %v6027_v63  ;;  %v5356_v50 = vmin.f32 %v12929_v49, 20.0 }
 0x3f5   : > { %7958 = vpow2.f32 %v5448_v55  ;;  %v12939_v53 = vadd.f32 %v5080_v54, %v12710_v43  ;;  %v5732_v55 = vmul.f32 %v7945_v1, %v5731_v17  ;;  %vm12946_vm3 = vcmp.lt.f32.partialorder %v5733_v14, 0.0004427343 }
 0x3f6   : > { %v7951_v27 = vpop.eup %7950  ;;  %7960 = vpow2.f32 %v5552_v32  ;;  %vm5382_vm5 = vcmp.gt.f32.partialorder %v12884_v39, 20.0  ;;  %v5492_v37 = vmul.f32 1.442695, %v5341_v16  ;;  %v5522_v29 = vmul.f32 1.442695, %v5356_v50 }
 0x3f7   : > { %14657 = vst [vmem:[#allocation13_spill] sm:$0xff] %v12939_v53  ;;  %v5574_v25 = vadd.f32 1.0, %v7951_v27  ;;  %v5577_v18 = vmul.f32 -0.5, %v7951_v27  ;;  %7962 = vpow2.f32 %v5490_v38  ;;  %v12942_v28 = vpop.eup %7952  ;;  %v5580_v6 = vand.u32 2147483647, %v7951_v27 }
 0x3f8   : > { %7964 = vlog2.f32 %v6024_v21  ;;  %v5357_v1 = vmin.f32 %v12939_v53, 20.0  ;;  %v6029_v14 = vmul.f32 %v12833_v46, %v6028_v9  ;;  %v6030_v57 = vand.u32 2147483647, %v12833_v46 }
 0x3f9   : > { %v5103_v23 = vpop.f32.mrf.mxu0  ;;  %v7955_v12 = vpop.eup %7954  ;;  %7966 = vlog2.f32 %v5574_v25  ;;  %vm5383_vm6 = vcmp.gt.f32.partialorder %v12891_v59, 20.0  ;;  %v6036_v9 = vmul.f32 -0.5, %v12858_v41  ;;  %vm12972_vm7 = vcmp.lt.f32.partialorder %v5580_v6, 0.0004427343 }
 0x3fa   : > { %v12936_v15 = vadd.f32 %v5103_v23, %v12683_v13  ;;  %v12951_v38 = vpop.eup %7956  ;;  %v5729_v54 = vmul.f32 0.6931472, %v7955_v12  ;;  %v5578_v23 = vadd.f32 1.0, %v5577_v18  ;;  %v6033_v18 = vadd.f32 1.0, %v12858_v41 }
 0x3fb   : > { %v7959_v17 = vpop.eup %7958  ;;  %7968 = vpow2.f32 %v5492_v37  ;;  %vm6031_vm8 = vcmp.lt.f32.partialorder %v6030_v57, 0.0004427343  ;;  %vm5433_vm9 = vcmp.gt.f32.partialorder %v12769_v8, 20.0  ;;  %vm5416_vm12 = vcmp.gt.f32.partialorder %v12732_v31, 20.0 }
 0x3fc   : > { %14656 = vst [vmem:[#allocation7_spill] sm:$0xff] %v12936_v15  ;;  %v5326_v21 = vmin.f32 %v12936_v15, 20.0  ;;  %v12957_v22 = vpop.eup %7960  ;;  %v5735_v16 = vsel %vm12946_vm3, %v5732_v55, %v5729_v54  ;;  %v5583_v25 = vadd.f32 1.0, %v7959_v17  ;;  %v5586_v35 = vmul.f32 -0.5, %v7959_v17 }
 0x3fd   : > { %v12962_v12 = vpop.eup %7962  ;;  %v6167_v15 = vsel %vm5399_vm0, %v12778_v44, %v5735_v16  ;;  %v5579_v55 = vmul.f32 %v7951_v27, %v5578_v23  ;;  %v5524_v54 = vmul.f32 1.442695, %v5357_v1  ;;  %v5880_v23 = vadd.f32 1.0, %v12800_v26 }
 0x3fe   : > { %v5132_v63 = vpop.f32.mrf.mxu1  ;;  %v7965_v50 = vpop.eup %7964  ;;  %6271 = vmatpush.msra.mxu1 %v6167_v15  ;;  %7970 = vlog2.f32 %v5583_v25  ;;  %v5587_v53 = vadd.f32 1.0, %v5586_v35  ;;  %v12976_v44 = vmul.f32 1.442695, %v5326_v21  ;;  %v6037_v15 = vadd.f32 1.0, %v6036_v9 }
 0x3ff   : > { %v12969_v46 = vadd.f32 %v5132_v63, %v12683_v13  ;;  %v7967_v3 = vpop.eup %7966  ;;  %7972 = vpow2.f32 %v5522_v29  ;;  %v6026_v37 = vmul.f32 0.6931472, %v7965_v50  ;;  %v5589_v63 = vand.u32 2147483647, %v7959_v17 }
 0x400   : > { %v5576_v16 = vmul.f32 0.6931472, %v7967_v3  ;;  %7974 = vlog2.f32 %v6033_v18  ;;  %v5883_v3 = vmul.f32 -0.5, %v12800_v26  ;;  %v5588_v21 = vmul.f32 %v7959_v17, %v5587_v53 }
 0x401   : > { %v5327_v27 = vmin.f32 %v12969_v46, 20.0  ;;  %v6032_v6 = vsel %vm6031_vm8, %v6029_v14, %v6026_v37  ;;  %v5106_v25 = vpop.f32.mrf.mxu0  ;;  %7976 = vpow2.f32 %v5524_v54  ;;  %v12987_v57 = vpop.eup %7968  ;;  %v5889_v14 = vadd.f32 1.0, %v12810_v5 }
 0x402   : > { %v5582_v35 = vsel %vm12972_vm7, %v5579_v55, %v5576_v16  ;;  %v6200_v29 = vsel %vm5432_vm2, %v12764_v51, %v6032_v6  ;;  %7978 = vlog2.f32 %v5880_v23  ;;  %vm12993_vm10 = vcmp.lt.f32.partialorder %v5589_v63, 0.0004427343 }
 0x403   : > { %v6150_v1 = vsel %vm5382_vm5, %v12884_v39, %v5582_v35  ;;  %6292 = vmatpush.msra.mxu2 %v6200_v29  ;;  %v6039_v51 = vand.u32 2147483647, %v12858_v41  ;;  %v5892_v55 = vmul.f32 -0.5, %v12810_v5  ;;  %v13000_v32 = vadd.f32 %v5106_v25, %v12698_v60 }
 0x404   : > { %v7971_v9 = vpop.eup %7970  ;;  %6249 = vmatpush.msra.mxu0 %v6150_v1  ;;  %v6038_v17 = vmul.f32 %v12858_v41, %v6037_v15  ;;  %v5886_v54 = vand.u32 2147483647, %v12800_v26  ;;  %7980 = vlog2.f32 %v5889_v14  ;;  %v5884_v16 = vadd.f32 1.0, %v5883_v3 }
 0x405   : > { %v13002_v39 = vpop.eup %7972  ;;  %v5585_v53 = vmul.f32 0.6931472, %v7971_v9  ;;  %v5893_v63 = vadd.f32 1.0, %v5892_v55  ;;  %v5895_v6 = vand.u32 2147483647, %v12810_v5  ;;  %v5342_v29 = vmin.f32 %v13000_v32, 20.0 }
 0x406   : > { %v5135_v18 = vpop.f32.mrf.mxu1  ;;  %v7975_v37 = vpop.eup %7974  ;;  %v5736_v1 = vadd.f32 1.0, %v12759_v19  ;;  %v5464_v3 = vmul.f32 1.442695, %v5327_v27  ;;  %vm6040_vm11 = vcmp.lt.f32.partialorder %v6039_v51, 0.0004427343  ;;  %v5739_v14 = vmul.f32 -0.5, %v12759_v19 }
 0x407   : > { %v13008_v23 = vadd.f32 %v5135_v18, %v12698_v60  ;;  %v5591_v25 = vsel %vm12993_vm10, %v5588_v21, %v5585_v53  ;;  %v6035_v35 = vmul.f32 0.6931472, %v7975_v37  ;;  %v13014_v41 = vpop.eup %7976  ;;  %vm13021_vm13 = vcmp.lt.f32.partialorder %v5886_v54, 0.0004427343  ;;  %v5054_v51 = vpop.f32.mrf.mxu2 }
 0x408   : > { %v6151_v15 = vsel %vm5383_vm6, %v12891_v59, %v5591_v25  ;;  %v7979_v18 = vpop.eup %7978  ;;  %7982 = vlog2.f32 %v5736_v1  ;;  %v5885_v59 = vmul.f32 %v12800_v26, %v5884_v16  ;;  %vm13031_vm14 = vcmp.lt.f32.partialorder %v5895_v6, 0.0004427343  ;;  %v5083_v16 = vpop.f32.mrf.mxu3 }
 0x409   : > { %6272 = vmatpush.msra.mxu1 %v6151_v15  ;;  %v6041_v9 = vsel %vm6040_vm11, %v6038_v17, %v6035_v35  ;;  %v5882_v55 = vmul.f32 0.6931472, %v7979_v18  ;;  %v5343_v27 = vmin.f32 %v13008_v23, 20.0  ;;  %v5894_v17 = vmul.f32 %v12810_v5, %v5893_v63 }
 0x40a   : > { %v6201_v50 = vsel %vm5433_vm9, %v12769_v8, %v6041_v9  ;;  %v7981_v53 = vpop.eup %7980  ;;  %v5494_v37 = vmul.f32 1.442695, %v5342_v29  ;;  %v5745_v25 = vadd.f32 1.0, %v12766_v40  ;;  %v5740_v1 = vadd.f32 1.0, %v5739_v14 }
 0x40b   : > { %6315 = vmatpush.msra.mxu3 %v6201_v50  ;;  %v5888_v8 = vsel %vm13021_vm13, %v5885_v59, %v5882_v55  ;;  %v5891_v35 = vmul.f32 0.6931472, %v7981_v53  ;;  %v5748_v26 = vmul.f32 -0.5, %v12766_v40  ;;  %v5742_v5 = vand.u32 2147483647, %v12759_v19 }
 0x40c   : > { %v6184_v15 = vsel %vm5416_vm12, %v12732_v31, %v5888_v8  ;;  %7984 = vlog2.f32 %v5745_v25  ;;  %v13044_v63 = vadd.f32 %v5054_v51, %v12678_v61  ;;  %vm5417_vm15 = vcmp.gt.f32.partialorder %v12735_v58, 20.0 }
 0x40d   : > { %7986 = vpow2.f32 %v12976_v44  ;;  %6293 = vmatpush.msra.mxu2 %v6184_v15  ;;  %v5897_v6 = vsel %vm13031_vm14, %v5894_v17, %v5891_v35  ;;  %v5496_v29 = vmul.f32 1.442695, %v5343_v27  ;;  %v13052_v31 = vadd.f32 %v5083_v16, %v12678_v61  ;;  %v5109_v27 = vpop.f32.mrf.mxu0 }
 0x40e   : > { %v7983_v14 = vpop.eup %7982  ;;  %7988 = vpow2.f32 %v5464_v3  ;;  %v6185_v18 = vsel %vm5417_vm15, %v12735_v58, %v5897_v6  ;;  %v5741_v21 = vmul.f32 %v12759_v19, %v5740_v1  ;;  %v5749_v50 = vadd.f32 1.0, %v5748_v26  ;;  %v5138_v51 = vpop.f32.mrf.mxu1 }
 0x40f   : > { %6316 = vmatpush.msra.mxu3 %v6185_v18  ;;  %v5738_v9 = vmul.f32 0.6931472, %v7983_v14  ;;  %v5751_v44 = vand.u32 2147483647, %v12766_v40  ;;  %7990 = vpow2.f32 %v5494_v37  ;;  %vm5743_vm1 = vcmp.lt.f32.partialorder %v5742_v5, 0.0004427343 }
 0x410   : > { %v5372_v55 = vmin.f32 %v13044_v63, 20.0  ;;  %v5592_v59 = vadd.f32 1.0, %v12747_v45  ;;  %7992 = vpow2.f32 %v5496_v29  ;;  %vm5400_vm0 = vcmp.gt.f32.partialorder %v12703_v33, 20.0 }
 0x411   : > { %v5744_v58 = vsel %vm5743_vm1, %v5741_v21, %v5738_v9  ;;  %v5601_v3 = vadd.f32 1.0, %v12751_v30  ;;  %vm5401_vm2 = vcmp.gt.f32.partialorder %v12706_v11, 20.0  ;;  %v5373_v17 = vmin.f32 %v13052_v31, 20.0 }
 0x412   : > { %v7985_v53 = vpop.eup %7984  ;;  %v6168_v19 = vsel %vm5400_vm0, %v12703_v33, %v5744_v58  ;;  %v5595_v54 = vmul.f32 -0.5, %v12747_v45  ;;  %v5750_v8 = vmul.f32 %v12766_v40, %v5749_v50  ;;  %vm5752_vm3 = vcmp.lt.f32.partialorder %v5751_v44, 0.0004427343 }
 0x413   : > { %v13064_v37 = vpop.eup %7986  ;;  %6294 = vmatpush.msra.mxu2 %v6168_v19  ;;  %v5747_v25 = vmul.f32 0.6931472, %v7985_v53  ;;  %v5604_v35 = vmul.f32 -0.5, %v12751_v30  ;;  %v5554_v26 = vmul.f32 1.442695, %v5372_v55  ;;  %7994 = vlog2.f32 %v5592_v59 }
 0x414   : > { %v13068_v1 = vpop.eup %7988  ;;  %v13071_v33 = vadd.f32 %v5109_v27, %v12710_v43  ;;  %v13074_v16 = vadd.f32 %v5138_v51, %v12710_v43  ;;  %vm5384_vm5 = vcmp.gt.f32.partialorder %v12687_v2, 20.0  ;;  %v5598_v5 = vand.u32 2147483647, %v12747_v45 }
 0x415   : > { %v5753_v15 = vsel %vm5752_vm3, %v5750_v8, %v5747_v25  ;;  %7996 = vlog2.f32 %v5601_v3  ;;  %v13078_v6 = vpop.eup %7990  ;;  %v5556_v14 = vmul.f32 1.442695, %v5373_v17  ;;  %v5596_v18 = vadd.f32 1.0, %v5595_v54 }
 0x416   : > { %v6169_v29 = vsel %vm5401_vm2, %v12706_v11, %v5753_v15  ;;  %v5358_v9 = vmin.f32 %v13071_v33, 20.0  ;;  %v13084_v21 = vpop.eup %7992  ;;  %v5605_v50 = vadd.f32 1.0, %v5604_v35  ;;  %v5607_v44 = vand.u32 2147483647, %v12751_v30 }
 0x417   : > { %6317 = vmatpush.msra.mxu3 %v6169_v29  ;;  %v6042_v55 = vadd.f32 1.0, %v12951_v38  ;;  %v6045_v59 = vmul.f32 -0.5, %v12951_v38  ;;  %vm5434_vm6 = vcmp.gt.f32.partialorder %v12900_v36, 20.0  ;;  %7998 = vpow2.f32 %v5554_v26 }
 0x418   : > { %vm5385_vm7 = vcmp.gt.f32.partialorder %v12692_v47, 20.0  ;;  %v5359_v11 = vmin.f32 %v13074_v16, 20.0  ;;  %vm13095_vm8 = vcmp.lt.f32.partialorder %v5598_v5, 0.0004427343  ;;  %v6048_v51 = vand.u32 2147483647, %v12951_v38 }
 0x419   : > { %8000 = vlog2.f32 %v6042_v55  ;;  %v6051_v53 = vadd.f32 1.0, %v12957_v22  ;;  %v7995_v19 = vpop.eup %7994  ;;  %v5526_v17 = vmul.f32 1.442695, %v5358_v9  ;;  %v6046_v54 = vadd.f32 1.0, %v6045_v59 }
 0x41a   : > { %v5161_v40 = vpop.f32.mrf.mxu2  ;;  %8002 = vpow2.f32 %v5556_v14  ;;  %v6054_v25 = vmul.f32 -0.5, %v12957_v22  ;;  %v5594_v35 = vmul.f32 0.6931472, %v7995_v19  ;;  %v5597_v26 = vmul.f32 %v12747_v45, %v5596_v18 }
 0x41b   : > { %v13093_v58 = vadd.f32 %v5161_v40, %v12683_v13  ;;  %v7997_v8 = vpop.eup %7996  ;;  %v5606_v15 = vmul.f32 %v12751_v30, %v5605_v50  ;;  %vm13104_vm9 = vcmp.lt.f32.partialorder %v5607_v44, 0.0004427343  ;;  %vm5435_vm10 = vcmp.gt.f32.partialorder %v12903_v34, 20.0 }
 0x41c   : > { %v5603_v40 = vmul.f32 0.6931472, %v7997_v8  ;;  %v5528_v29 = vmul.f32 1.442695, %v5359_v11  ;;  %v5600_v55 = vsel %vm13095_vm8, %v5597_v26, %v5594_v35  ;;  %vm13115_vm11 = vcmp.lt.f32.partialorder %v6048_v51, 0.0004427343 }
 0x41d   : > { %v5328_v14 = vmin.f32 %v13093_v58, 20.0  ;;  %8004 = vlog2.f32 %v6051_v53  ;;  %v6055_v30 = vadd.f32 1.0, %v6054_v25  ;;  %v13119_v18 = vpop.eup %7998  ;;  %v6152_v50 = vsel %vm5384_vm5, %v12687_v2, %v5600_v55 }
 0x41e   : > { %v5190_v27 = vpop.f32.mrf.mxu3  ;;  %v5609_v44 = vsel %vm13104_vm9, %v5606_v15, %v5603_v40  ;;  %8006 = vpow2.f32 %v5526_v17  ;;  %v6047_v59 = vmul.f32 %v12951_v38, %v6046_v54  ;;  %6295 = vmatpush.msra.mxu2 %v6152_v50  ;;  %v5898_v51 = vadd.f32 1.0, %v12932_v62 }
 0x41f   : > { %v13111_v9 = vadd.f32 %v5190_v27, %v12683_v13  ;;  %v8001_v11 = vpop.eup %8000  ;;  %v6153_v3 = vsel %vm5385_vm7, %v12692_v47, %v5609_v44  ;;  %v6057_v27 = vand.u32 2147483647, %v12957_v22  ;;  %v5901_v53 = vmul.f32 -0.5, %v12932_v62 }
 0x420   : > { %v13133_v19 = vpop.eup %8002  ;;  %6318 = vmatpush.msra.mxu3 %v6153_v3  ;;  %v5466_v2 = vmul.f32 1.442695, %v5328_v14  ;;  %v6044_v25 = vmul.f32 0.6931472, %v8001_v11  ;;  %v5907_v17 = vadd.f32 1.0, %v12942_v28  ;;  %v5910_v38 = vmul.f32 -0.5, %v12942_v28 }
 0x421   : > { %v5329_v54 = vmin.f32 %v13111_v9, 20.0  ;;  %v6056_v8 = vmul.f32 %v12957_v22, %v6055_v30  ;;  %8008 = vlog2.f32 %v5898_v51  ;;  %v5904_v47 = vand.u32 2147483647, %v12932_v62 }
 0x422   : > { %v6050_v35 = vsel %vm13115_vm11, %v6047_v59, %v6044_v25  ;;  %v5902_v26 = vadd.f32 1.0, %v5901_v53  ;;  %8010 = vlog2.f32 %v5907_v17  ;;  %v5911_v15 = vadd.f32 1.0, %v5910_v38  ;;  %v5141_v38 = vpop.f32.mrf.mxu1 }
 0x423   : > { %v8005_v5 = vpop.eup %8004  ;;  %8012 = vpow2.f32 %v5528_v29  ;;  %v6202_v40 = vsel %vm5434_vm6, %v12900_v36, %v6050_v35  ;;  %vm13145_vm12 = vcmp.lt.f32.partialorder %v6057_v27, 0.0004427343  ;;  %v5754_v22 = vadd.f32 1.0, %v12867_v24  ;;  %v5112_v29 = vpop.f32.mrf.mxu0 }
 0x424   : > { %v13150_v55 = vpop.eup %8006  ;;  %8014 = vpow2.f32 %v5466_v2  ;;  %6338 = vmatpush.msrb.mxu0 %v6202_v40  ;;  %v6053_v45 = vmul.f32 0.6931472, %v8005_v5  ;;  %v5913_v30 = vand.u32 2147483647, %v12942_v28  ;;  %v5757_v50 = vmul.f32 -0.5, %v12867_v24 }
 0x425   : > { %vm13154_vm13 = vcmp.lt.f32.partialorder %v5904_v47, 0.0004427343  ;;  %8016 = vlog2.f32 %v5754_v22  ;;  %v5763_v36 = vadd.f32 1.0, %v12873_v56  ;;  %v5766_v59 = vmul.f32 -0.5, %v12873_v56  ;;  %v5164_v47 = vpop.f32.mrf.mxu2 }
 0x426   : > { %v6059_v11 = vsel %vm13145_vm12, %v6056_v8, %v6053_v45  ;;  %v5903_v3 = vmul.f32 %v12932_v62, %v5902_v26  ;;  %v5912_v27 = vmul.f32 %v12942_v28, %v5911_v15  ;;  %v5758_v51 = vadd.f32 1.0, %v5757_v50  ;;  %v5193_v5 = vpop.f32.mrf.mxu3 }
 0x427   : > { %v8009_v53 = vpop.eup %8008  ;;  %v6203_v2 = vsel %vm5435_vm10, %v12903_v34, %v6059_v11  ;;  %v5760_v25 = vand.u32 2147483647, %v12867_v24  ;;  %8018 = vlog2.f32 %v5763_v36  ;;  %v13169_v17 = vadd.f32 %v5112_v29, %v12678_v61 }
 0x428   : > { %v8011_v35 = vpop.eup %8010  ;;  %6361 = vmatpush.msrb.mxu1 %v6203_v2  ;;  %vm5418_vm14 = vcmp.gt.f32.partialorder %v12838_v4, 20.0  ;;  %v5900_v62 = vmul.f32 0.6931472, %v8009_v53  ;;  %vm13172_vm15 = vcmp.lt.f32.partialorder %v5913_v30, 0.0004427343  ;;  %v5767_v8 = vadd.f32 1.0, %v5766_v59 }
 0x429   : > { %v13176_v26 = vpop.eup %8012  ;;  %vm5419_vm1 = vcmp.gt.f32.partialorder %v12841_v10, 20.0  ;;  %v5909_v34 = vmul.f32 0.6931472, %v8011_v35  ;;  %vm5402_vm0 = vcmp.gt.f32.partialorder %v12794_v20, 20.0  ;;  %v5769_v15 = vand.u32 2147483647, %v12873_v56 }
 0x42a   : > { %v13181_v40 = vpop.eup %8014  ;;  %v5906_v14 = vsel %vm13154_vm13, %v5903_v3, %v5900_v62  ;;  %v5759_v22 = vmul.f32 %v12867_v24, %v5758_v51  ;;  %v5374_v45 = vmin.f32 %v13169_v17, 20.0  ;;  %v13188_v30 = vadd.f32 %v5141_v38, %v12678_v61 }
 0x42b   : > { %v8017_v50 = vpop.eup %8016  ;;  %v6186_v29 = vsel %vm5418_vm14, %v12838_v4, %v5906_v14  ;;  %v5915_v36 = vsel %vm13172_vm15, %v5912_v27, %v5909_v34  ;;  %vm13195_vm2 = vcmp.lt.f32.partialorder %v5760_v25, 0.0004427343  ;;  %v5610_v44 = vadd.f32 1.0, %v12818_v48  ;;  %v5219_v28 = vpop.f32.mrf.mxu0 }
 0x42c   : > { %6339 = vmatpush.msrb.mxu0 %v6186_v29  ;;  %v6187_v24 = vsel %vm5419_vm1, %v12841_v10, %v5915_v36  ;;  %v5756_v11 = vmul.f32 0.6931472, %v8017_v50  ;;  %v5768_v3 = vmul.f32 %v12873_v56, %v5767_v8  ;;  %v5613_v51 = vmul.f32 -0.5, %v12818_v48 }
 0x42d   : > { %v8019_v4 = vpop.eup %8018  ;;  %v5468_v53 = vmul.f32 1.442695, %v5329_v54  ;;  %6362 = vmatpush.msrb.mxu1 %v6187_v24  ;;  %vm5403_vm3 = vcmp.gt.f32.partialorder %v12797_v0, 20.0  ;;  %vm13206_vm5 = vcmp.lt.f32.partialorder %v5769_v15, 0.0004427343  ;;  %v5619_v2 = vadd.f32 1.0, %v12826_v52  ;;  %v5248_v50 = vpop.f32.mrf.mxu1 }
 0x42e   : > { %v5762_v25 = vsel %vm13195_vm2, %v5759_v22, %v5756_v11  ;;  %v5765_v10 = vmul.f32 0.6931472, %v8019_v4  ;;  %v5558_v38 = vmul.f32 1.442695, %v5374_v45  ;;  %v5375_v56 = vmin.f32 %v13188_v30, 20.0  ;;  %v5167_v29 = vpop.f32.mrf.mxu2  ;;  %v5196_v24 = vpop.f32.mrf.mxu3 }
 0x42f   : > { %v6170_v54 = vsel %vm5402_vm0, %v12794_v20, %v5762_v25  ;;  %8020 = vlog2.f32 %v5610_v44  ;;  %v5614_v35 = vadd.f32 1.0, %v5613_v51  ;;  %v5622_v62 = vmul.f32 -0.5, %v12826_v52 }
 0x430   : > { %6340 = vmatpush.msrb.mxu0 %v6170_v54  ;;  %v5771_v8 = vsel %vm13206_vm5, %v5768_v3, %v5765_v10  ;;  %v5616_v34 = vand.u32 2147483647, %v12818_v48  ;;  %8022 = vlog2.f32 %v5619_v2  ;;  %v5625_v15 = vand.u32 2147483647, %v12826_v52 }
 0x431   : > { %v6171_v14 = vsel %vm5403_vm3, %v12797_v0, %v5771_v8  ;;  %v5623_v22 = vadd.f32 1.0, %v5622_v62  ;;  %v13226_v20 = vadd.f32 %v5164_v47, %v12698_v60  ;;  %v13229_v45 = vadd.f32 %v5193_v5, %v12698_v60 }
 0x432   : > { %8024 = vpow2.f32 %v5468_v53  ;;  %6363 = vmatpush.msrb.mxu1 %v6171_v14  ;;  %v5560_v36 = vmul.f32 1.442695, %v5375_v56  ;;  %vm5386_vm6 = vcmp.gt.f32.partialorder %v12754_v7, 20.0  ;;  %v13233_v59 = vadd.f32 %v5219_v28, %v12683_v13 }
 0x433   : > { %8026 = vpow2.f32 %v5558_v38  ;;  %v5615_v0 = vmul.f32 %v12818_v48, %v5614_v35  ;;  %v5344_v44 = vmin.f32 %v13226_v20, 20.0  ;;  %v5345_v47 = vmin.f32 %v13229_v45, 20.0 }
 0x434   : > { %14684 = vst [vmem:[#allocation11_spill] sm:$0xff] %v13233_v59  ;;  %v5330_v5 = vmin.f32 %v13233_v59, 20.0  ;;  %v13240_v11 = vadd.f32 %v5248_v50, %v12683_v13  ;;  %v13243_v3 = vadd.f32 %v5167_v29, %v12710_v43  ;;  %v6060_v51 = vadd.f32 1.0, %v13119_v18 }
 0x435   : > { %v8021_v4 = vpop.eup %8020  ;;  %vm13246_vm7 = vcmp.lt.f32.partialorder %v5616_v34, 0.0004427343  ;;  %v5624_v48 = vmul.f32 %v12826_v52, %v5623_v22  ;;  %vm13251_vm8 = vcmp.lt.f32.partialorder %v5625_v15, 0.0004427343  ;;  %v6063_v2 = vmul.f32 -0.5, %v13119_v18 }
 0x436   : > { %14685 = vst [vmem:[#allocation40_spill] sm:$0xff] %v13240_v11  ;;  %v8023_v25 = vpop.eup %8022  ;;  %v5612_v10 = vmul.f32 0.6931472, %v8021_v4  ;;  %v5498_v38 = vmul.f32 1.442695, %v5344_v44  ;;  %v13257_v56 = vadd.f32 %v5196_v24, %v12710_v43  ;;  %8028 = vlog2.f32 %v6060_v51 }
 0x437   : > { %8030 = vpow2.f32 %v5560_v36  ;;  %vm5387_vm9 = vcmp.gt.f32.partialorder %v12757_v42, 20.0  ;;  %v5621_v54 = vmul.f32 0.6931472, %v8023_v25  ;;  %v5500_v35 = vmul.f32 1.442695, %v5345_v47 }
 0x438   : > { %v13260_v62 = vpop.eup %8024  ;;  %v5618_v52 = vsel %vm13246_vm7, %v5615_v0, %v5612_v10  ;;  %v5470_v28 = vmul.f32 1.442695, %v5330_v5  ;;  %v5331_v8 = vmin.f32 %v13240_v11, 20.0  ;;  %v5360_v34 = vmin.f32 %v13243_v3, 20.0 }
 0x439   : > { %v13266_v15 = vpop.eup %8026  ;;  %v6154_v14 = vsel %vm5386_vm6, %v12754_v7, %v5618_v52  ;;  %v5627_v22 = vsel %vm13251_vm8, %v5624_v48, %v5621_v54  ;;  %v6064_v50 = vadd.f32 1.0, %v6063_v2  ;;  %v6069_v29 = vadd.f32 1.0, %v13133_v19  ;;  %v5222_v54 = vpop.f32.mrf.mxu0 }
 0x43a   : > { %6341 = vmatpush.msrb.mxu0 %v6154_v14  ;;  %v6155_v36 = vsel %vm5387_vm9, %v12757_v42, %v5627_v22  ;;  %8032 = vpow2.f32 %v5498_v38  ;;  %v5361_v0 = vmin.f32 %v13257_v56, 20.0  ;;  %v6066_v44 = vand.u32 2147483647, %v13119_v18  ;;  %v13283_v42 = vld [vmem:[%s13959_s1 + $0xa0] sm:$0xff] }
 0x43b   : > { %vm5436_vm10 = vcmp.gt.f32.partialorder %v13044_v63, 20.0  ;;  %6364 = vmatpush.msrb.mxu1 %v6155_v36  ;;  %8034 = vpow2.f32 %v5500_v35  ;;  %v5472_v7 = vmul.f32 1.442695, %v5331_v8  ;;  %v6072_v24 = vmul.f32 -0.5, %v13133_v19  ;;  %7039 = vmatmul.msk.f32.vlgmr.msra.gmra.mxu0 %vm1593_vm4, %v13283_v42  ;;  %v5251_v36 = vpop.f32.mrf.mxu1 }
 0x43c   : > { %v8029_v47 = vpop.eup %8028  ;;  %8036 = vpow2.f32 %v5470_v28  ;;  %v5916_v5 = vadd.f32 1.0, %v13002_v39  ;;  %v6065_v53 = vmul.f32 %v13119_v18, %v6064_v50  ;;  %v5919_v48 = vmul.f32 -0.5, %v13002_v39  ;;  %7041 = vmatmul.msk.f32.vlgmr.msra.gmra.mxu1 %vm1593_vm4, %v13283_v42  ;;  %7043 = vmatmul.msk.f32.vlgmr.msra.gmra.mxu2 %vm1593_vm4, %v13283_v42 }
 0x43d   : > { %v13285_v51 = vpop.eup %8030  ;;  %v6062_v4 = vmul.f32 0.6931472, %v8029_v47  ;;  %8038 = vlog2.f32 %v6069_v29  ;;  %v5530_v27 = vmul.f32 1.442695, %v5360_v34  ;;  %v5532_v2 = vmul.f32 1.442695, %v5361_v0  ;;  %7045 = vmatmul.msk.f32.vlgmr.msra.gmra.mxu3 %vm1593_vm4, %v13283_v42 }
 0x43e   : > { %vm6067_vm11 = vcmp.lt.f32.partialorder %v6066_v44, 0.0004427343  ;;  %8040 = vlog2.f32 %v5916_v5  ;;  %v6075_v25 = vand.u32 2147483647, %v13133_v19  ;;  %v5925_v10 = vadd.f32 1.0, %v13014_v41 }
 0x43f   : > { %v6068_v18 = vsel %vm6067_vm11, %v6065_v53, %v6062_v4  ;;  %v5928_v38 = vmul.f32 -0.5, %v13014_v41  ;;  %8042 = vpow2.f32 %v5472_v7  ;;  %v6073_v28 = vadd.f32 1.0, %v6072_v24 }
 0x440   : > { %v13300_v35 = vpop.eup %8032  ;;  %v6204_v52 = vsel %vm5436_vm10, %v13044_v63, %v6068_v18  ;;  %v5922_v8 = vand.u32 2147483647, %v13002_v39  ;;  %vm5437_vm12 = vcmp.gt.f32.partialorder %v13052_v31, 20.0  ;;  %v5920_v14 = vadd.f32 1.0, %v5919_v48 }
 0x441   : > { %v13306_v34 = vpop.eup %8034  ;;  %6384 = vmatpush.msrb.mxu2 %v6204_v52  ;;  %8044 = vlog2.f32 %v5925_v10  ;;  %v5929_v50 = vadd.f32 1.0, %v5928_v38  ;;  %v13312_v29 = vadd.f32 %v5222_v54, %v12698_v60  ;;  %v5772_v63 = vadd.f32 1.0, %v12962_v12  ;;  %v5170_v54 = vpop.f32.mrf.mxu2 }
 0x442   : > { %v13309_v22 = vpop.eup %8036  ;;  %8046 = vpow2.f32 %v5530_v27  ;;  %vm13315_vm13 = vcmp.lt.f32.partialorder %v6075_v25, 0.0004427343  ;;  %vm5420_vm14 = vcmp.gt.f32.partialorder %v12929_v49, 20.0  ;;  %v5775_v47 = vmul.f32 -0.5, %v12962_v12 }
 0x443   : > { %14690 = vst [vmem:[#allocation24_spill] sm:$0xff] %v13309_v22  ;;  %v8039_v0 = vpop.eup %8038  ;;  %8048 = vpow2.f32 %v5532_v2  ;;  %v6074_v5 = vmul.f32 %v13133_v19, %v6073_v28  ;;  %vm13322_vm15 = vcmp.lt.f32.partialorder %v5922_v8, 0.0004427343  ;;  %v5921_v48 = vmul.f32 %v13002_v39, %v5920_v14 }
 0x444   : > { %14691 = vst [vmem:[#allocation14_spill] sm:$0xff] %v13312_v29  ;;  %v8041_v7 = vpop.eup %8040  ;;  %v6071_v24 = vmul.f32 0.6931472, %v8039_v0  ;;  %8050 = vlog2.f32 %v5772_v63  ;;  %v5931_v27 = vand.u32 2147483647, %v13014_v41  ;;  %v13329_v2 = vadd.f32 %v5251_v36, %v12698_v60  ;;  %v5199_v36 = vpop.f32.mrf.mxu3 }
 0x445   : > { %v5918_v53 = vmul.f32 0.6931472, %v8041_v7  ;;  %v13331_v18 = vpop.eup %8042  ;;  %v5930_v19 = vmul.f32 %v13014_v41, %v5929_v50  ;;  %v5346_v10 = vmin.f32 %v13312_v29, 20.0  ;;  %v5781_v38 = vadd.f32 1.0, %v12987_v57 }
 0x446   : > { %14696 = vst [vmem:[#allocation36_spill] sm:$0xff] %v13329_v2  ;;  %v6077_v25 = vsel %vm13315_vm13, %v6074_v5, %v6071_v24  ;;  %v5776_v8 = vadd.f32 1.0, %v5775_v47  ;;  %v5784_v14 = vmul.f32 -0.5, %v12987_v57  ;;  %v5778_v0 = vand.u32 2147483647, %v12962_v12 }
 0x447   : > { %14697 = vst [vmem:[#allocation37_spill] sm:$0xff] %v13331_v18  ;;  %v8045_v52 = vpop.eup %8044  ;;  %v6205_v39 = vsel %vm5437_vm12, %v13052_v31, %v6077_v25  ;;  %v5924_v28 = vsel %vm13322_vm15, %v5921_v48, %v5918_v53  ;;  %8052 = vlog2.f32 %v5781_v38  ;;  %v14698_v31 = vld [vmem:[#allocation13_spill] sm:$0xff]  ;;  %vm5932_vm0 = vcmp.lt.f32.partialorder %v5931_v27, 0.0004427343  ;;  %v14699_v53 = vld [vmem:[#allocation6_spill] sm:$0xff] }
 0x448   : > { %v13344_v63 = vpop.eup %8046  ;;  %6407 = vmatpush.msrb.mxu3 %v6205_v39  ;;  %v6188_v41 = vsel %vm5420_vm14, %v12929_v49, %v5924_v28  ;;  %v5927_v50 = vmul.f32 0.6931472, %v8045_v52  ;;  %vm5421_vm1 = vcmp.gt.f32.partialorder %v14698_v31, 20.0  ;;  %v5347_v47 = vmin.f32 %v13329_v2, 20.0 }
 0x449   : > { %v13350_v44 = vpop.eup %8048  ;;  %6385 = vmatpush.msrb.mxu2 %v6188_v41  ;;  %v13355_v7 = vadd.f32 %v5170_v54, %v12678_v61  ;;  %v5785_v4 = vadd.f32 1.0, %v5784_v14  ;;  %v13358_v49 = vadd.f32 %v5199_v36, %v12678_v61  ;;  %v5628_v48 = vadd.f32 1.0, %v14699_v53  ;;  %v14700_v14 = vld [vmem:[#allocation23_spill] sm:$0xff] }
 0x44a   : > { %v8051_v24 = vpop.eup %8050  ;;  %v5933_v5 = vsel %vm5932_vm0, %v5930_v19, %v5927_v50  ;;  %v5502_v38 = vmul.f32 1.442695, %v5346_v10  ;;  %v5777_v39 = vmul.f32 %v12962_v12, %v5776_v8  ;;  %vm5779_vm2 = vcmp.lt.f32.partialorder %v5778_v0, 0.0004427343  ;;  %v5225_v19 = vpop.f32.mrf.mxu0  ;;  %v14701_v8 = vld [vmem:[#allocation43_spill] sm:$0xff] }
 0x44b   : > { %v6189_v25 = vsel %vm5421_vm1, %v14698_v31, %v5933_v5  ;;  %v5774_v52 = vmul.f32 0.6931472, %v8051_v24  ;;  %v5787_v27 = vand.u32 2147483647, %v12987_v57  ;;  %8054 = vlog2.f32 %v5628_v48 }
 0x44c   : > { %6408 = vmatpush.msrb.mxu3 %v6189_v25  ;;  %v5631_v54 = vmul.f32 -0.5, %v14699_v53  ;;  %v5504_v28 = vmul.f32 1.442695, %v5347_v47  ;;  %vm5404_vm3 = vcmp.gt.f32.partialorder %v14700_v14, 20.0  ;;  %v5376_v41 = vmin.f32 %v13355_v7, 20.0  ;;  %v14702_v25 = vld [vmem:[#allocation46_spill] sm:$0xff] }
 0x44d   : > { %v5780_v36 = vsel %vm5779_vm2, %v5777_v39, %v5774_v52  ;;  %v8053_v50 = vpop.eup %8052  ;;  %v5786_v31 = vmul.f32 %v12987_v57, %v5785_v4  ;;  %v5377_v12 = vmin.f32 %v13358_v49, 20.0  ;;  %v5637_v0 = vadd.f32 1.0, %v14701_v8  ;;  %v5254_v39 = vpop.f32.mrf.mxu1 }
 0x44e   : > { %v6172_v10 = vsel %vm5404_vm3, %v14700_v14, %v5780_v36  ;;  %v5783_v24 = vmul.f32 0.6931472, %v8053_v50  ;;  %v5632_v5 = vadd.f32 1.0, %v5631_v54  ;;  %v5640_v48 = vmul.f32 -0.5, %v14701_v8  ;;  %v5277_v36 = vpop.f32.mrf.mxu2 }
 0x44f   : > { %6386 = vmatpush.msrb.mxu2 %v6172_v10  ;;  %v13373_v47 = vadd.f32 %v5225_v19, %v12710_v43  ;;  %8056 = vpow2.f32 %v5502_v38  ;;  %vm5405_vm5 = vcmp.gt.f32.partialorder %v14702_v25, 20.0  ;;  %vm5788_vm6 = vcmp.lt.f32.partialorder %v5787_v27, 0.0004427343 }
 0x450   : > { %v5634_v52 = vand.u32 2147483647, %v14699_v53  ;;  %v5789_v57 = vsel %vm5788_vm6, %v5786_v31, %v5783_v24  ;;  %v5562_v4 = vmul.f32 1.442695, %v5376_v41  ;;  %8058 = vlog2.f32 %v5637_v0  ;;  %v14704_v41 = vld [vmem:[#allocation29_spill] sm:$0xff]  ;;  %v5306_v24 = vpop.f32.mrf.mxu3 }
 0x451   : > { %v5362_v14 = vmin.f32 %v13373_v47, 20.0  ;;  %v8055_v50 = vpop.eup %8054  ;;  %8060 = vpow2.f32 %v5504_v28  ;;  %v6173_v54 = vsel %vm5405_vm5, %v14702_v25, %v5789_v57  ;;  %v5564_v10 = vmul.f32 1.442695, %v5377_v12 }
 0x452   : > { %v5643_v19 = vand.u32 2147483647, %v14701_v8  ;;  %6409 = vmatpush.msrb.mxu3 %v6173_v54  ;;  %v5630_v38 = vmul.f32 0.6931472, %v8055_v50  ;;  %v5633_v27 = vmul.f32 %v14699_v53, %v5632_v5  ;;  %v5641_v11 = vadd.f32 1.0, %v5640_v48  ;;  %v14706_v5 = vld [vmem:[#allocation42_spill] sm:$0xff]  ;;  %v5228_v48 = vpop.f32.mrf.mxu0 }
 0x453   : > { %v13382_v59 = vadd.f32 %v5254_v39, %v12710_v43  ;;  %vm5388_vm7 = vcmp.gt.f32.partialorder %v14704_v41, 20.0  ;;  %vm5635_vm8 = vcmp.lt.f32.partialorder %v5634_v52, 0.0004427343  ;;  %v13386_v31 = vadd.f32 %v5277_v36, %v12683_v13 }
 0x454   : > { %v6078_v28 = vadd.f32 1.0, %v13266_v15  ;;  %8062 = vpow2.f32 %v5562_v4  ;;  %v5636_v12 = vsel %vm5635_vm8, %v5633_v27, %v5630_v38  ;;  %v5534_v0 = vmul.f32 1.442695, %v5362_v14 }
 0x455   : > { %14703 = vst [vmem:[#allocation44_spill] sm:$0xff] %v13382_v59  ;;  %v6081_v25 = vmul.f32 -0.5, %v13266_v15  ;;  %v13390_v57 = vpop.eup %8056  ;;  %8064 = vpow2.f32 %v5564_v10  ;;  %v6156_v53 = vsel %vm5388_vm7, %v14704_v41, %v5636_v12  ;;  %vm5389_vm9 = vcmp.gt.f32.partialorder %v14706_v5, 20.0 }
 0x456   : > { %14705 = vst [vmem:[#allocation26_spill] sm:$0xff] %v13386_v31  ;;  %vm13394_vm10 = vcmp.lt.f32.partialorder %v5643_v19, 0.0004427343  ;;  %v8059_v52 = vpop.eup %8058  ;;  %6387 = vmatpush.msrb.mxu2 %v6156_v53  ;;  %v5642_v39 = vmul.f32 %v14701_v8, %v5641_v11  ;;  %v5363_v4 = vmin.f32 %v13382_v59, 20.0  ;;  %8066 = vlog2.f32 %v6078_v28 }
 0x457   : > { %v6087_v14 = vadd.f32 1.0, %v13285_v51  ;;  %v13401_v36 = vpop.eup %8060  ;;  %vm5438_vm11 = vcmp.gt.f32.partialorder %v13169_v17, 20.0  ;;  %v5639_v50 = vmul.f32 0.6931472, %v8059_v52  ;;  %v5332_v54 = vmin.f32 %v13386_v31, 20.0 }
 0x458   : > { %v13406_v10 = vadd.f32 %v5306_v24, %v12683_v13  ;;  %v6090_v19 = vmul.f32 -0.5, %v13285_v51  ;;  %8068 = vpow2.f32 %v5534_v0  ;;  %v6082_v38 = vadd.f32 1.0, %v6081_v25 }
 0x459   : > { %v6084_v11 = vand.u32 2147483647, %v13266_v15  ;;  %v5934_v8 = vadd.f32 1.0, %v13150_v55  ;;  %v5645_v27 = vsel %vm13394_vm10, %v5642_v39, %v5639_v50  ;;  %8070 = vlog2.f32 %v6087_v14 }
 0x45a   : > { %v6093_v41 = vand.u32 2147483647, %v13285_v51  ;;  %v5937_v28 = vmul.f32 -0.5, %v13150_v55  ;;  %v13415_v12 = vpop.eup %8062  ;;  %vm5439_vm12 = vcmp.gt.f32.partialorder %v13188_v30, 20.0  ;;  %v6157_v13 = vsel %vm5389_vm9, %v14706_v5, %v5645_v27 }
 0x45b   : > { %v13421_v0 = vmul.f32 1.442695, %v5363_v4  ;;  %v6091_v24 = vadd.f32 1.0, %v6090_v19  ;;  %8072 = vlog2.f32 %v5934_v8  ;;  %v13423_v25 = vpop.eup %8064  ;;  %6410 = vmatpush.msrb.mxu3 %v6157_v13  ;;  %v13425_v53 = vmul.f32 1.442695, %v5332_v54  ;;  %v13441_v8 = vpop.f32.mrf.mxu2 }
 0x45c   : > { %v5938_v52 = vadd.f32 1.0, %v5937_v28  ;;  %v5943_v39 = vadd.f32 1.0, %v13176_v26  ;;  %v8067_v14 = vpop.eup %8066  ;;  %v6083_v50 = vmul.f32 %v13266_v15, %v6082_v38  ;;  %vm13430_vm13 = vcmp.lt.f32.partialorder %v6084_v11, 0.0004427343 }
 0x45d   : > { %vm5422_vm14 = vcmp.gt.f32.partialorder %v13071_v33, 20.0  ;;  %v5946_v5 = vmul.f32 -0.5, %v13176_v26  ;;  %v6080_v4 = vmul.f32 0.6931472, %v8067_v14  ;;  %vm13436_vm15 = vcmp.lt.f32.partialorder %v6093_v41, 0.0004427343 }
 0x45e   : > { %8074 = vlog2.f32 %v5943_v39  ;;  %v5790_v19 = vadd.f32 1.0, %v13078_v6  ;;  %v13443_v27 = vpop.eup %8068  ;;  %v6092_v15 = vmul.f32 %v13285_v51, %v6091_v24  ;;  %v5940_v38 = vand.u32 2147483647, %v13150_v55 }
 0x45f   : > { %v5949_v11 = vand.u32 2147483647, %v13176_v26  ;;  %v5793_v28 = vmul.f32 -0.5, %v13078_v6  ;;  %v8071_v13 = vpop.eup %8070  ;;  %v6086_v41 = vsel %vm13430_vm13, %v6083_v50, %v6080_v4  ;;  %v5939_v39 = vmul.f32 %v13150_v55, %v5938_v52  ;;  %v5309_v55 = vpop.f32.mrf.mxu3 }
 0x460   : > { %8076 = vlog2.f32 %v5790_v19  ;;  %v5799_v14 = vadd.f32 1.0, %v13084_v21  ;;  %v6206_v51 = vsel %vm5438_vm11, %v13169_v17, %v6086_v41  ;;  %v6089_v24 = vmul.f32 0.6931472, %v8071_v13  ;;  %v5257_v17 = vpop.f32.mrf.mxu1 }
 0x461   : > { %v8073_v2 = vpop.eup %8072  ;;  %v5947_v18 = vadd.f32 1.0, %v5946_v5  ;;  %v5794_v29 = vadd.f32 1.0, %v5793_v28  ;;  %6430 = vmatpush.msra.mxu0 %v6206_v51  ;;  %v5796_v59 = vand.u32 2147483647, %v13078_v6  ;;  %v5802_v31 = vmul.f32 -0.5, %v13084_v21 }
 0x462   : > { %v5936_v22 = vmul.f32 0.6931472, %v8073_v2  ;;  %8078 = vlog2.f32 %v5799_v14  ;;  %v6095_v52 = vsel %vm13436_vm15, %v6092_v15, %v6089_v24  ;;  %vm5941_vm1 = vcmp.lt.f32.partialorder %v5940_v38, 0.0004427343 }
 0x463   : > { %vm5423_vm0 = vcmp.gt.f32.partialorder %v13074_v16, 20.0  ;;  %v13462_v50 = vadd.f32 %v5228_v48, %v12678_v61  ;;  %v6207_v2 = vsel %vm5439_vm12, %v13188_v30, %v6095_v52  ;;  %v5803_v19 = vadd.f32 1.0, %v5802_v31  ;;  %v5283_v14 = vpop.f32.mrf.mxu2 }
 0x464   : > { %v8075_v5 = vpop.eup %8074  ;;  %v5942_v4 = vsel %vm5941_vm1, %v5939_v39, %v5936_v22  ;;  %v5805_v28 = vand.u32 2147483647, %v13084_v21  ;;  %6453 = vmatpush.msra.mxu1 %v6207_v2  ;;  %v5948_v38 = vmul.f32 %v13176_v26, %v5947_v18  ;;  %v5795_v48 = vmul.f32 %v13078_v6, %v5794_v29 }
 0x465   : > { %v6190_v54 = vsel %vm5422_vm14, %v13071_v33, %v5942_v4  ;;  %v5945_v15 = vmul.f32 0.6931472, %v8075_v5  ;;  %vm5950_vm2 = vcmp.lt.f32.partialorder %v5949_v11, 0.0004427343  ;;  %vm5406_vm3 = vcmp.gt.f32.partialorder %v13000_v32, 20.0 }
 0x466   : > { %v8077_v13 = vpop.eup %8076  ;;  %6431 = vmatpush.msra.mxu0 %v6190_v54  ;;  %vm13474_vm5 = vcmp.lt.f32.partialorder %v5796_v59, 0.0004427343  ;;  %v13479_v22 = vadd.f32 %v5257_v17, %v12678_v61  ;;  %v5804_v33 = vmul.f32 %v13084_v21, %v5803_v19  ;;  %v5378_v26 = vmin.f32 %v13462_v50, 20.0 }
 0x467   : > { %v5951_v41 = vsel %vm5950_vm2, %v5948_v38, %v5945_v15  ;;  %v5792_v39 = vmul.f32 0.6931472, %v8077_v13  ;;  %vm13486_vm6 = vcmp.lt.f32.partialorder %v5805_v28, 0.0004427343  ;;  %v5646_v59 = vadd.f32 1.0, %v13064_v37  ;;  %v5312_v28 = vpop.f32.mrf.mxu3 }
 0x468   : > { %v8079_v18 = vpop.eup %8078  ;;  %v6191_v6 = vsel %vm5423_vm0, %v13074_v16, %v5951_v41  ;;  %v5649_v11 = vmul.f32 -0.5, %v13064_v37  ;;  %8080 = vpow2.f32 %v13421_v0  ;;  %vm5407_vm7 = vcmp.gt.f32.partialorder %v13008_v23, 20.0  ;;  %v13506_v0 = vld [vmem:[%s13959_s1 + $0xa8] sm:$0xff] }
 0x469   : > { %6454 = vmatpush.msra.mxu1 %v6191_v6  ;;  %v5798_v21 = vsel %vm13474_vm5, %v5795_v48, %v5792_v39  ;;  %v5801_v51 = vmul.f32 0.6931472, %v8079_v18  ;;  %8082 = vpow2.f32 %v13425_v53  ;;  %v14717_v16 = vmin.f32 %v13406_v10, 20.0  ;;  %7040 = vmatmul.msk.f32.gmra.mxu0 %vm1593_vm4, %v13506_v0 }
 0x46a   : > { %v6174_v31 = vsel %vm5406_vm3, %v13000_v32, %v5798_v21  ;;  %v5379_v52 = vmin.f32 %v13479_v22, 20.0  ;;  %v5566_v5 = vmul.f32 1.442695, %v5378_v26  ;;  %8084 = vlog2.f32 %v5646_v59  ;;  %7042 = vmatmul.msk.f32.gmra.mxu1 %vm1593_vm4, %v13506_v0  ;;  %7044 = vmatmul.msk.f32.gmra.mxu2 %vm1593_vm4, %v13506_v0 }
 0x46b   : > { %v5476_v24 = vmul.f32 1.442695, %v14717_v16  ;;  %6432 = vmatpush.msra.mxu0 %v6174_v31  ;;  %v5807_v17 = vsel %vm13486_vm6, %v5804_v33, %v5801_v51  ;;  %v5655_v53 = vadd.f32 1.0, %v13068_v1  ;;  %v5650_v2 = vadd.f32 1.0, %v5649_v11  ;;  %7046 = vmatmul.msk.f32.gmra.mxu3 %vm1593_vm4, %v13506_v0  ;;  %v14718_v33 = vld [vmem:[#allocation7_spill] sm:$0xff] }
 0x46c   : > { %v6175_v32 = vsel %vm5407_vm7, %v13008_v23, %v5807_v17  ;;  %v5652_v4 = vand.u32 2147483647, %v13064_v37  ;;  %v5658_v19 = vmul.f32 -0.5, %v13068_v1  ;;  %v13522_v54 = vadd.f32 %v13441_v8, %v12698_v60 }
 0x46d   : > { %6455 = vmatpush.msra.mxu1 %v6175_v32  ;;  %8086 = vlog2.f32 %v5655_v53  ;;  %v13525_v23 = vadd.f32 %v5309_v55, %v12698_v60  ;;  %v13528_v15 = vadd.f32 %v5283_v14, %v12710_v43  ;;  %v5568_v38 = vmul.f32 1.442695, %v5379_v52  ;;  %v5286_v14 = vpop.f32.mrf.mxu2 }
 0x46e   : > { %8088 = vpow2.f32 %v5476_v24  ;;  %v5659_v48 = vadd.f32 1.0, %v5658_v19  ;;  %v6096_v13 = vadd.f32 1.0, %v13415_v12  ;;  %v13533_v30 = vpop.eup %8080  ;;  %v5661_v41 = vand.u32 2147483647, %v13068_v1 }
 0x46f   : > { %v5348_v8 = vmin.f32 %v13522_v54, 20.0  ;;  %v13538_v60 = vadd.f32 %v5312_v28, %v12710_v43  ;;  %v6099_v55 = vmul.f32 -0.5, %v13415_v12  ;;  %v13541_v39 = vpop.eup %8082  ;;  %vm5390_vm8 = vcmp.gt.f32.partialorder %v14718_v33, 20.0 }
 0x470   : > { %v5651_v26 = vmul.f32 %v13064_v37, %v5650_v2  ;;  %v5349_v18 = vmin.f32 %v13525_v23, 20.0  ;;  %8090 = vlog2.f32 %v6096_v13  ;;  %v8085_v6 = vpop.eup %8084  ;;  %vm5440_vm9 = vcmp.gt.f32.partialorder %v13355_v7, 20.0 }
 0x471   : > { %8092 = vpow2.f32 %v5566_v5  ;;  %vm13547_vm10 = vcmp.lt.f32.partialorder %v5652_v4, 0.0004427343  ;;  %v5506_v43 = vmul.f32 1.442695, %v5348_v8  ;;  %v5364_v59 = vmin.f32 %v13528_v15, 20.0  ;;  %7047 = vmatmul.msk.f32.vlgmr.msrb.gmra.mxu0 %vm1593_vm4, %v13283_v42 }
 0x472   : > { %8094 = vpow2.f32 %v5568_v38  ;;  %v5648_v11 = vmul.f32 0.6931472, %v8085_v6  ;;  %vm5391_vm11 = vcmp.gt.f32.partialorder %v12969_v46, 20.0  ;;  %v5660_v37 = vmul.f32 %v13068_v1, %v5659_v48  ;;  %7049 = vmatmul.msk.f32.vlgmr.msrb.gmra.mxu1 %vm1593_vm4, %v13283_v42  ;;  %7051 = vmatmul.msk.f32.vlgmr.msrb.gmra.mxu2 %vm1593_vm4, %v13283_v42 }
 0x473   : > { %v8087_v21 = vpop.eup %8086  ;;  %vm13554_vm12 = vcmp.lt.f32.partialorder %v5661_v41, 0.0004427343  ;;  %v5365_v16 = vmin.f32 %v13538_v60, 20.0  ;;  %v6100_v24 = vadd.f32 1.0, %v6099_v55  ;;  %v6105_v31 = vadd.f32 1.0, %v13423_v25  ;;  %7053 = vmatmul.msk.f32.vlgmr.msrb.gmra.mxu3 %vm1593_vm4, %v13283_v42 }
 0x474   : > { %v13562_v52 = vpop.eup %8088  ;;  %v5654_v17 = vsel %vm13547_vm10, %v5651_v26, %v5648_v11  ;;  %v5657_v1 = vmul.f32 0.6931472, %v8087_v21  ;;  %v5508_v5 = vmul.f32 1.442695, %v5349_v18  ;;  %v6102_v53 = vand.u32 2147483647, %v13415_v12 }
 0x475   : > { %v6158_v32 = vsel %vm5390_vm8, %v14718_v33, %v5654_v17  ;;  %8096 = vpow2.f32 %v5506_v43  ;;  %v5538_v2 = vmul.f32 1.442695, %v5364_v59  ;;  %v13575_v4 = vadd.f32 %v5286_v14, %v12678_v61 }
 0x476   : > { %v8091_v19 = vpop.eup %8090  ;;  %6433 = vmatpush.msra.mxu0 %v6158_v32  ;;  %v5663_v28 = vsel %vm13554_vm12, %v5660_v37, %v5657_v1  ;;  %v6108_v38 = vmul.f32 -0.5, %v13423_v25  ;;  %v6111_v48 = vand.u32 2147483647, %v13423_v25  ;;  %v5952_v13 = vadd.f32 1.0, %v13344_v63 }
 0x477   : > { %v13584_v41 = vpop.eup %8092  ;;  %v6159_v8 = vsel %vm5391_vm11, %v12969_v46, %v5663_v28  ;;  %v6098_v55 = vmul.f32 0.6931472, %v8091_v19  ;;  %v6101_v33 = vmul.f32 %v13415_v12, %v6100_v24  ;;  %8098 = vlog2.f32 %v6105_v31 }
 0x478   : > { %v13590_v26 = vpop.eup %8094  ;;  %vm5441_vm13 = vcmp.gt.f32.partialorder %v13358_v49, 20.0  ;;  %6456 = vmatpush.msra.mxu1 %v6159_v8  ;;  %v5540_v18 = vmul.f32 1.442695, %v5365_v16  ;;  %vm6103_vm14 = vcmp.lt.f32.partialorder %v6102_v53, 0.0004427343  ;;  %8100 = vlog2.f32 %v5952_v13 }
 0x479   : > { %v5955_v6 = vmul.f32 -0.5, %v13344_v63  ;;  %8102 = vpow2.f32 %v5508_v5  ;;  %v6104_v29 = vsel %vm6103_vm14, %v6101_v33, %v6098_v55  ;;  %v5961_v43 = vadd.f32 1.0, %v13350_v44  ;;  %7048 = vmatmul.msk.f32.gmra.mxu0 %vm1593_vm4, %v13506_v0 }
 0x47a   : > { %v5964_v46 = vmul.f32 -0.5, %v13350_v44  ;;  %8104 = vpow2.f32 %v5538_v2  ;;  %v6208_v12 = vsel %vm5440_vm9, %v13355_v7, %v6104_v29  ;;  %v6109_v59 = vadd.f32 1.0, %v6108_v38  ;;  %7050 = vmatmul.msk.f32.gmra.mxu1 %vm1593_vm4, %v13506_v0  ;;  %7052 = vmatmul.msk.f32.gmra.mxu2 %vm1593_vm4, %v13506_v0 }
 0x47b   : > { %v5958_v11 = vand.u32 2147483647, %v13344_v63  ;;  %v13600_v37 = vpop.eup %8096  ;;  %6476 = vmatpush.msra.mxu2 %v6208_v12  ;;  %vm13602_vm15 = vcmp.lt.f32.partialorder %v6111_v48, 0.0004427343  ;;  %v5956_v21 = vadd.f32 1.0, %v5955_v6  ;;  %8106 = vlog2.f32 %v5961_v43  ;;  %7054 = vmatmul.msk.f32.gmra.mxu3 %vm1593_vm4, %v13506_v0  ;;  %v5315_v48 = vpop.f32.mrf.mxu3 }
 0x47c   : > { %v5808_v51 = vadd.f32 1.0, %v13300_v35  ;;  %8108 = vpow2.f32 %v5540_v18  ;;  %vm5424_vm1 = vcmp.gt.f32.partialorder %v13243_v3, 20.0  ;;  %vm5425_vm0 = vcmp.gt.f32.partialorder %v13257_v56, 20.0 }
 0x47d   : > { %v5811_v7 = vmul.f32 -0.5, %v13300_v35  ;;  %v8099_v16 = vpop.eup %8098  ;;  %v5965_v24 = vadd.f32 1.0, %v5964_v46  ;;  %v5817_v31 = vadd.f32 1.0, %v13306_v34  ;;  %v5820_v17 = vmul.f32 -0.5, %v13306_v34 }
 0x47e   : > { %8110 = vlog2.f32 %v5808_v51  ;;  %v8101_v1 = vpop.eup %8100  ;;  %v6107_v5 = vmul.f32 0.6931472, %v8099_v16  ;;  %v6110_v53 = vmul.f32 %v13423_v25, %v6109_v59  ;;  %vm13621_vm2 = vcmp.lt.f32.partialorder %v5958_v11, 0.0004427343 }
 0x47f   : > { %v5967_v2 = vand.u32 2147483647, %v13350_v44  ;;  %v13626_v19 = vpop.eup %8102  ;;  %v5954_v28 = vmul.f32 0.6931472, %v8101_v1  ;;  %v5957_v38 = vmul.f32 %v13344_v63, %v5956_v21  ;;  %vm5408_vm3 = vcmp.gt.f32.partialorder %v13226_v20, 20.0 }
 0x480   : > { %8112 = vlog2.f32 %v5817_v31  ;;  %v13630_v13 = vpop.eup %8104  ;;  %v6113_v25 = vsel %vm13602_vm15, %v6110_v53, %v6107_v5  ;;  %v5812_v8 = vadd.f32 1.0, %v5811_v7  ;;  %v5814_v55 = vand.u32 2147483647, %v13300_v35 }
 0x481   : > { %v5380_v33 = vmin.f32 %v13575_v4, 20.0  ;;  %v8107_v18 = vpop.eup %8106  ;;  %v6209_v6 = vsel %vm5441_vm13, %v13358_v49, %v6113_v25  ;;  %v5960_v63 = vsel %vm13621_vm2, %v5957_v38, %v5954_v28  ;;  %v5966_v29 = vmul.f32 %v13350_v44, %v5965_v24  ;;  %7055 = vmatmul.msk.f32.vlgmr.msra.gmra.mxu0 %vm1593_vm4, %v13283_v42 }
 0x482   : > { %v5821_v43 = vadd.f32 1.0, %v5820_v17  ;;  %v13642_v46 = vpop.eup %8108  ;;  %6499 = vmatpush.msra.mxu3 %v6209_v6  ;;  %v6192_v12 = vsel %vm5424_vm1, %v13243_v3, %v5960_v63  ;;  %v5963_v59 = vmul.f32 0.6931472, %v8107_v18  ;;  %v5823_v11 = vand.u32 2147483647, %v13306_v34  ;;  %7057 = vmatmul.msk.f32.vlgmr.msra.gmra.mxu1 %vm1593_vm4, %v13283_v42 }
 0x483   : > { %v13649_v14 = vadd.f32 %v5315_v48, %v12678_v61  ;;  %6477 = vmatpush.msra.mxu2 %v6192_v12  ;;  %vm5968_vm5 = vcmp.lt.f32.partialorder %v5967_v2, 0.0004427343  ;;  %vm5409_vm6 = vcmp.gt.f32.partialorder %v13229_v45, 20.0  ;;  %v5664_v44 = vadd.f32 1.0, %v13181_v40 }
 0x484   : > { %v8111_v49 = vpop.eup %8110  ;;  %v5667_v21 = vmul.f32 -0.5, %v13181_v40  ;;  %v5969_v51 = vsel %vm5968_vm5, %v5966_v29, %v5963_v59  ;;  %v5813_v7 = vmul.f32 %v13300_v35, %v5812_v8  ;;  %v5570_v16 = vmul.f32 1.442695, %v5380_v33 }
 0x485   : > { %v5810_v3 = vmul.f32 0.6931472, %v8111_v49  ;;  %v6193_v24 = vsel %vm5425_vm0, %v13257_v56, %v5969_v51  ;;  %vm5815_vm7 = vcmp.lt.f32.partialorder %v5814_v55, 0.0004427343  ;;  %v5381_v31 = vmin.f32 %v13649_v14, 20.0 }
 0x486   : > { %v8113_v61 = vpop.eup %8112  ;;  %8114 = vlog2.f32 %v5664_v44  ;;  %6500 = vmatpush.msra.mxu3 %v6193_v24  ;;  %v5822_v5 = vmul.f32 %v13306_v34, %v5821_v43  ;;  %vm5824_vm8 = vcmp.lt.f32.partialorder %v5823_v11, 0.0004427343  ;;  %v5668_v53 = vadd.f32 1.0, %v5667_v21 }
 0x487   : > { %v5816_v17 = vsel %vm5815_vm7, %v5813_v7, %v5810_v3  ;;  %v5819_v1 = vmul.f32 0.6931472, %v8113_v61  ;;  %v5670_v32 = vand.u32 2147483647, %v13181_v40  ;;  %v5673_v2 = vadd.f32 1.0, %v13260_v62 }
 0x488   : > { %v6176_v35 = vsel %vm5408_vm3, %v13226_v20, %v5816_v17  ;;  %8116 = vpow2.f32 %v5570_v16  ;;  %v5676_v28 = vmul.f32 -0.5, %v13260_v62  ;;  %v6114_v38 = vadd.f32 1.0, %v13584_v41 }
 0x489   : > { %6478 = vmatpush.msra.mxu2 %v6176_v35  ;;  %v5825_v56 = vsel %vm5824_vm8, %v5822_v5, %v5819_v1  ;;  %v5572_v48 = vmul.f32 1.442695, %v5381_v31  ;;  %8118 = vlog2.f32 %v5673_v2  ;;  %v6117_v20 = vmul.f32 -0.5, %v13584_v41  ;;  %7056 = vmatmul.msk.f32.gmra.mxu0 %vm1593_vm4, %v13506_v0 }
 0x48a   : > { %v6177_v34 = vsel %vm5409_vm6, %v13229_v45, %v5825_v56  ;;  %v5679_v25 = vand.u32 2147483647, %v13260_v62  ;;  %8120 = vlog2.f32 %v6114_v38  ;;  %v6123_v8 = vadd.f32 1.0, %v13590_v26  ;;  %7058 = vmatmul.msk.f32.gmra.mxu1 %vm1593_vm4, %v13506_v0 }
 0x48b   : > { %6501 = vmatpush.msra.mxu3 %v6177_v34  ;;  %vm5442_vm9 = vcmp.gt.f32.partialorder %v13462_v50, 20.0  ;;  %vm5392_vm10 = vcmp.gt.f32.partialorder %v13093_v58, 20.0  ;;  %v5669_v33 = vmul.f32 %v13181_v40, %v5668_v53  ;;  %vm13680_vm11 = vcmp.lt.f32.partialorder %v5670_v32, 0.0004427343 }
 0x48c   : > { %v8115_v55 = vpop.eup %8114  ;;  %v6126_v45 = vmul.f32 -0.5, %v13590_v26  ;;  %v5677_v63 = vadd.f32 1.0, %v5676_v28  ;;  %v6120_v29 = vand.u32 2147483647, %v13584_v41  ;;  %8122 = vlog2.f32 %v6123_v8 }
 0x48d   : > { %v5666_v6 = vmul.f32 0.6931472, %v8115_v55  ;;  %vm5443_vm12 = vcmp.gt.f32.partialorder %v13479_v22, 20.0  ;;  %8124 = vpow2.f32 %v5572_v48  ;;  %vm5393_vm13 = vcmp.gt.f32.partialorder %v13111_v9, 20.0 }
 0x48e   : > { %v6118_v40 = vadd.f32 1.0, %v6117_v20  ;;  %v5970_v43 = vadd.f32 1.0, %v13443_v27  ;;  %v13693_v12 = vpop.eup %8116  ;;  %vm13697_vm14 = vcmp.lt.f32.partialorder %v5679_v25, 0.0004427343  ;;  %v6127_v49 = vadd.f32 1.0, %v6126_v45 }
 0x48f   : > { %v5672_v59 = vsel %vm13680_vm11, %v5669_v33, %v5666_v6  ;;  %v5973_v44 = vmul.f32 -0.5, %v13443_v27  ;;  %v8119_v21 = vpop.eup %8118  ;;  %v6129_v3 = vand.u32 2147483647, %v13590_v26  ;;  %v5979_v7 = vadd.f32 1.0, %v13533_v30 }
 0x490   : > { %v6160_v51 = vsel %vm5392_vm10, %v13093_v58, %v5672_v59  ;;  %8126 = vlog2.f32 %v5970_v43  ;;  %v8121_v16 = vpop.eup %8120  ;;  %v5675_v61 = vmul.f32 0.6931472, %v8119_v21  ;;  %v5678_v24 = vmul.f32 %v13260_v62, %v5677_v63  ;;  %v14733_v59 = vld [vmem:[#allocation44_spill] sm:$0xff] }
 0x491   : > { %6479 = vmatpush.msra.mxu2 %v6160_v51  ;;  %vm13708_vm15 = vcmp.lt.f32.partialorder %v6120_v29, 0.0004427343  ;;  %v5982_v17 = vmul.f32 -0.5, %v13533_v30  ;;  %v6116_v1 = vmul.f32 0.6931472, %v8121_v16  ;;  %v6119_v5 = vmul.f32 %v13584_v41, %v6118_v40 }
 0x492   : > { %v5976_v58 = vand.u32 2147483647, %v13443_v27  ;;  %8128 = vlog2.f32 %v5979_v7  ;;  %7059 = vmatmul.msk.f32.vlgmr.msra.gmra.mxu2 %vm1593_vm4, %v13283_v42  ;;  %v8123_v35 = vpop.eup %8122  ;;  %v5681_v53 = vsel %vm13697_vm14, %v5678_v24, %v5675_v61  ;;  %v6128_v62 = vmul.f32 %v13590_v26, %v6127_v49  ;;  %v14736_v61 = vld [vmem:[#allocation37_spill] sm:$0xff] }
 0x493   : > { %v5974_v32 = vadd.f32 1.0, %v5973_v44  ;;  %v5826_v2 = vadd.f32 1.0, %v13390_v57  ;;  %v13721_v56 = vpop.eup %8124  ;;  %v6161_v41 = vsel %vm5393_vm13, %v13111_v9, %v5681_v53  ;;  %v6122_v28 = vsel %vm13708_vm15, %v6119_v5, %v6116_v1  ;;  %v14735_v44 = vld [vmem:[#allocation14_spill] sm:$0xff] }
 0x494   : > { %v6125_v38 = vmul.f32 0.6931472, %v8123_v35  ;;  %v5983_v34 = vadd.f32 1.0, %v5982_v17  ;;  %6502 = vmatpush.msra.mxu3 %v6161_v41  ;;  %v6210_v48 = vsel %vm5442_vm9, %v13462_v50, %v6122_v28  ;;  %vm6130_vm1 = vcmp.lt.f32.partialorder %v6129_v3, 0.0004427343 }
 0x495   : > { %8130 = vlog2.f32 %v5826_v2  ;;  %v5829_v26 = vmul.f32 -0.5, %v13390_v57  ;;  %6522 = vmatpush.msrb.mxu0 %v6210_v48  ;;  %vm5426_vm0 = vcmp.gt.f32.partialorder %v13373_v47, 20.0  ;;  %v5985_v9 = vand.u32 2147483647, %v13533_v30  ;;  %7061 = vmatmul.msk.f32.vlgmr.msra.gmra.mxu3 %vm1593_vm4, %v13283_v42 }
 0x496   : > { %v8127_v20 = vpop.eup %8126  ;;  %v6131_v25 = vsel %vm6130_vm1, %v6128_v62, %v6125_v38  ;;  %v5835_v8 = vadd.f32 1.0, %v13401_v36  ;;  %v5975_v33 = vmul.f32 %v13443_v27, %v5974_v32  ;;  %v5838_v18 = vmul.f32 -0.5, %v13401_v36  ;;  %v14734_v27 = vld [vmem:[#allocation24_spill] sm:$0xff] }
 0x497   : > { %v6211_v50 = vsel %vm5443_vm12, %v13479_v22, %v6131_v25  ;;  %v5972_v55 = vmul.f32 0.6931472, %v8127_v20  ;;  %vm5977_vm2 = vcmp.lt.f32.partialorder %v5976_v58, 0.0004427343  ;;  %v5984_v6 = vmul.f32 %v13533_v30, %v5983_v34  ;;  %v14737_v62 = vld [vmem:[#allocation36_spill] sm:$0xff] }
 0x498   : > { %v8129_v45 = vpop.eup %8128  ;;  %6545 = vmatpush.msrb.mxu1 %v6211_v50  ;;  %v5830_v63 = vadd.f32 1.0, %v5829_v26  ;;  %8132 = vlog2.f32 %v5835_v8  ;;  %v5832_v42 = vand.u32 2147483647, %v13390_v57  ;;  %v5839_v43 = vadd.f32 1.0, %v5838_v18  ;;  %v14738_v26 = vld [vmem:[#allocation11_spill] sm:$0xff]  ;;  %v14739_v20 = vld [vmem:[#allocation40_spill] sm:$0xff] }
 0x499   : > { %v5978_v29 = vsel %vm5977_vm2, %v5975_v33, %v5972_v55  ;;  %v5981_v40 = vmul.f32 0.6931472, %v8129_v45  ;;  %vm5427_vm3 = vcmp.gt.f32.partialorder %v14733_v59, 20.0  ;;  %vm5986_vm5 = vcmp.lt.f32.partialorder %v5985_v9, 0.0004427343 }
 0x49a   : > { %v6194_v22 = vsel %vm5426_vm0, %v13373_v47, %v5978_v29  ;;  %v5682_v11 = vadd.f32 1.0, %v14734_v27  ;;  %7060 = vmatmul.msk.f32.gmra.mxu2 %vm1593_vm4, %v13506_v0  ;;  %vm5410_vm6 = vcmp.gt.f32.partialorder %v14735_v44, 20.0  ;;  %v5841_v21 = vand.u32 2147483647, %v13401_v36 }
 0x49b   : > { %v8131_v30 = vpop.eup %8130  ;;  %6523 = vmatpush.msrb.mxu0 %v6194_v22  ;;  %v5987_v49 = vsel %vm5986_vm5, %v5984_v6, %v5981_v40  ;;  %v5685_v51 = vmul.f32 -0.5, %v14734_v27  ;;  %v5831_v7 = vmul.f32 %v13390_v57, %v5830_v63  ;;  %vm5833_vm7 = vcmp.lt.f32.partialorder %v5832_v42, 0.0004427343 }
 0x49c   : > { %v6195_v3 = vsel %vm5427_vm3, %v14733_v59, %v5987_v49  ;;  %v5828_v47 = vmul.f32 0.6931472, %v8131_v30  ;;  %8134 = vlog2.f32 %v5682_v11  ;;  %v5840_v16 = vmul.f32 %v13401_v36, %v5839_v43 }
 0x49d   : > { %6546 = vmatpush.msrb.mxu1 %v6195_v3  ;;  %v5691_v24 = vadd.f32 1.0, %v14736_v61  ;;  %v5694_v31 = vmul.f32 -0.5, %v14736_v61  ;;  %v5688_v5 = vand.u32 2147483647, %v14734_v27  ;;  %v6132_v58 = vadd.f32 1.0, %v13693_v12  ;;  %7062 = vmatmul.msk.f32.gmra.mxu3 %vm1593_vm4, %v13506_v0 }
 0x49e   : > { %v8133_v17 = vpop.eup %8132  ;;  %v5834_v1 = vsel %vm5833_vm7, %v5831_v7, %v5828_v47  ;;  %v6135_v35 = vmul.f32 -0.5, %v13693_v12  ;;  %v5686_v53 = vadd.f32 1.0, %v5685_v51  ;;  %vm5411_vm8 = vcmp.gt.f32.partialorder %v14737_v62, 20.0 }
 0x49f   : > { %v6178_v57 = vsel %vm5410_vm6, %v14735_v44, %v5834_v1  ;;  %v5837_v36 = vmul.f32 0.6931472, %v8133_v17  ;;  %8136 = vlog2.f32 %v5691_v24  ;;  %vm5842_vm9 = vcmp.lt.f32.partialorder %v5841_v21, 0.0004427343 }
 0x4a0   : > { %6524 = vmatpush.msrb.mxu0 %v6178_v57  ;;  %v5697_v32 = vand.u32 2147483647, %v14736_v61  ;;  %8138 = vlog2.f32 %v6132_v58  ;;  %vm5444_vm10 = vcmp.gt.f32.partialorder %v13575_v4, 20.0  ;;  %v5695_v41 = vadd.f32 1.0, %v5694_v31 }
 0x4a1   : > { %v5843_v2 = vsel %vm5842_vm9, %v5840_v16, %v5837_v36  ;;  %v6141_v28 = vadd.f32 1.0, %v13721_v56  ;;  %v6144_v38 = vmul.f32 -0.5, %v13721_v56  ;;  %vm5394_vm11 = vcmp.gt.f32.partialorder %v14738_v26, 20.0 }
 0x4a2   : > { %v8135_v34 = vpop.eup %8134  ;;  %v6179_v48 = vsel %vm5411_vm8, %v14737_v62, %v5843_v2  ;;  %vm5395_vm12 = vcmp.gt.f32.partialorder %v14739_v20, 20.0  ;;  %v6136_v25 = vadd.f32 1.0, %v6135_v35  ;;  %v5687_v8 = vmul.f32 %v14734_v27, %v5686_v53 }
 0x4a3   : > { %6547 = vmatpush.msrb.mxu1 %v6179_v48  ;;  %v5684_v9 = vmul.f32 0.6931472, %v8135_v34  ;;  %vm5689_vm13 = vcmp.lt.f32.partialorder %v5688_v5, 0.0004427343  ;;  %8140 = vlog2.f32 %v6141_v28  ;;  %vm13776_vm14 = vcmp.lt.f32.partialorder %v5697_v32, 0.0004427343 }
 0x4a4   : > { %v6138_v55 = vand.u32 2147483647, %v13693_v12  ;;  %v6145_v33 = vadd.f32 1.0, %v6144_v38  ;;  %v5988_v18 = vadd.f32 1.0, %v13630_v13  ;;  %v5696_v63 = vmul.f32 %v14736_v61, %v5695_v41 }
 0x4a5   : > { %v8137_v45 = vpop.eup %8136  ;;  %v5690_v6 = vsel %vm5689_vm13, %v5687_v8, %v5684_v9  ;;  %v5991_v29 = vmul.f32 -0.5, %v13630_v13  ;;  %v5997_v40 = vadd.f32 1.0, %v13642_v46  ;;  %v6137_v59 = vmul.f32 %v13693_v12, %v6136_v25  ;;  %v13798_v12 = vld [vmem:[%s13959_s1 + $0xa0] sm:$0xff]  ;;  %v6217_v25 = vld [vmem:[%s13960_s2 + $0x8] sm:$0xff] }
 0x4a6   : > { %v8139_v42 = vpop.eup %8138  ;;  %v6162_v43 = vsel %vm5394_vm11, %v14738_v26, %v5690_v6  ;;  %v5693_v22 = vmul.f32 0.6931472, %v8137_v45  ;;  %8142 = vlog2.f32 %v5988_v18  ;;  %v6147_v11 = vand.u32 2147483647, %v13721_v56 }
 0x4a7   : > { %6525 = vmatpush.msrb.mxu0 %v6162_v43  ;;  %v6134_v27 = vmul.f32 0.6931472, %v8139_v42  ;;  %8144 = vlog2.f32 %v5997_v40  ;;  %v6000_v30 = vmul.f32 -0.5, %v13642_v46  ;;  %vm6139_vm15 = vcmp.lt.f32.partialorder %v6138_v55, 0.0004427343  ;;  %v6216_v55 = vld [vmem:[%s13960_s2] sm:$0xff] }
 0x4a8   : > { %v5699_v49 = vsel %vm13776_vm14, %v5696_v63, %v5693_v22  ;;  %v6146_v44 = vmul.f32 %v13721_v56, %v6145_v33  ;;  %v5994_v21 = vand.u32 2147483647, %v13630_v13  ;;  %7063 = vmatmul.msk.f32.vlgmr.msrb.gmra.mxu0 %vm1593_vm4, %v13798_v12  ;;  %v5992_v7 = vadd.f32 1.0, %v5991_v29 }
 0x4a9   : > { %v8141_v51 = vpop.eup %8140  ;;  %v6163_v3 = vsel %vm5395_vm12, %v14739_v20, %v5699_v49  ;;  %v6140_v47 = vsel %vm6139_vm15, %v6137_v59, %v6134_v27  ;;  %v5844_v16 = vadd.f32 1.0, %v13600_v37  ;;  %v6001_v24 = vadd.f32 1.0, %v6000_v30  ;;  %v14744_v30 = vld [vmem:[#allocation26_spill] sm:$0xff] }
 0x4aa   : > { %6548 = vmatpush.msrb.mxu1 %v6163_v3  ;;  %v6212_v56 = vsel %vm5444_vm10, %v13575_v4, %v6140_v47  ;;  %v6143_v61 = vmul.f32 0.6931472, %v8141_v51  ;;  %v5847_v31 = vmul.f32 -0.5, %v13600_v37  ;;  %vm5445_vm1 = vcmp.gt.f32.partialorder %v13649_v14, 20.0 }
 0x4ab   : > { %6568 = vmatpush.msrb.mxu2 %v6212_v56  ;;  %vm6148_vm0 = vcmp.lt.f32.partialorder %v6147_v11, 0.0004427343  ;;  %v6003_v17 = vand.u32 2147483647, %v13642_v46  ;;  %8146 = vlog2.f32 %v5844_v16  ;;  %7065 = vmatmul.msk.f32.vlgmr.msrb.gmra.mxu1 %vm1593_vm4, %v13798_v12  ;;  %vm5428_vm2 = vcmp.gt.f32.partialorder %v13528_v15, 20.0 }
 0x4ac   : > { %v8143_v1 = vpop.eup %8142  ;;  %v6149_v5 = vsel %vm6148_vm0, %v6146_v44, %v6143_v61  ;;  %vm13815_vm3 = vcmp.lt.f32.partialorder %v5994_v21, 0.0004427343  ;;  %v5853_v58 = vadd.f32 1.0, %v13626_v19  ;;  %v5993_v53 = vmul.f32 %v13630_v13, %v5992_v7 }
 0x4ad   : > { %v8145_v35 = vpop.eup %8144  ;;  %v6213_v57 = vsel %vm5445_vm1, %v13649_v14, %v6149_v5  ;;  %v5990_v36 = vmul.f32 0.6931472, %v8143_v1  ;;  %v5856_v62 = vmul.f32 -0.5, %v13626_v19  ;;  %v6002_v2 = vmul.f32 %v13642_v46, %v6001_v24 }
 0x4ae   : > { %6591 = vmatpush.msrb.mxu3 %v6213_v57  ;;  %v5999_v32 = vmul.f32 0.6931472, %v8145_v35  ;;  %v5848_v41 = vadd.f32 1.0, %v5847_v31  ;;  %8148 = vlog2.f32 %v5853_v58  ;;  %vm6004_vm5 = vcmp.lt.f32.partialorder %v6003_v17, 0.0004427343 }
 0x4af   : > { %v5996_v28 = vsel %vm13815_vm3, %v5993_v53, %v5990_v36  ;;  %v5850_v38 = vand.u32 2147483647, %v13600_v37  ;;  %v5700_v34 = vadd.f32 1.0, %v13541_v39  ;;  %vm5429_vm6 = vcmp.gt.f32.partialorder %v13538_v60, 20.0 }
 0x4b0   : > { %v6196_v13 = vsel %vm5428_vm2, %v13528_v15, %v5996_v28  ;;  %v6005_v14 = vsel %vm6004_vm5, %v6002_v2, %v5999_v32  ;;  %v5703_v48 = vmul.f32 -0.5, %v13541_v39  ;;  %7064 = vmatmul.msk.f32.gmra.mxu0 %vm1593_vm4, %v13506_v0  ;;  %v5857_v20 = vadd.f32 1.0, %v5856_v62 }
 0x4b1   : > { %v8147_v46 = vpop.eup %8146  ;;  %6569 = vmatpush.msrb.mxu2 %v6196_v13  ;;  %v6197_v26 = vsel %vm5429_vm6, %v13538_v60, %v6005_v14  ;;  %8150 = vlog2.f32 %v5700_v34  ;;  %v5849_v9 = vmul.f32 %v13600_v37, %v5848_v41  ;;  %v5859_v8 = vand.u32 2147483647, %v13626_v19 }
 0x4b2   : > { %6592 = vmatpush.msrb.mxu3 %v6197_v26  ;;  %v5846_v15 = vmul.f32 0.6931472, %v8147_v46  ;;  %v5709_v50 = vadd.f32 1.0, %v13562_v52  ;;  %vm5851_vm7 = vcmp.lt.f32.partialorder %v5850_v38, 0.0004427343  ;;  %v5712_v60 = vmul.f32 -0.5, %v13562_v52 }
 0x4b3   : > { %7066 = vmatmul.msk.f32.gmra.mxu1 %vm1593_vm4, %v13506_v0  ;;  %vm5412_vm8 = vcmp.gt.f32.partialorder %v13522_v54, 20.0  ;;  %v5704_v45 = vadd.f32 1.0, %v5703_v48  ;;  %v8255_v37 = vmov 4   ;;  %v5858_v29 = vmul.f32 %v13626_v19, %v5857_v20 }
 0x4b4   : > { %v8149_v33 = vpop.eup %8148  ;;  %v5852_v18 = vsel %vm5851_vm7, %v5849_v9, %v5846_v15  ;;  %8152 = vlog2.f32 %v5709_v50  ;;  %7128 = vset.pattern.permute.xlu1 %v8255_v37  ;;  %7127 = vset.pattern.permute.xlu2 %v8255_v37  ;;  %v5706_v40 = vand.u32 2147483647, %v13541_v39  ;;  %vm5860_vm9 = vcmp.lt.f32.partialorder %v5859_v8, 0.0004427343 }
 0x4b5   : > { %v6180_v6 = vsel %vm5412_vm8, %v13522_v54, %v5852_v18  ;;  %v5855_v63 = vmul.f32 0.6931472, %v8149_v33  ;;  %6225 = vperm.xlu1 %7128, %v6217_v25   ;;  %6220 = vperm.xlu2 %7127, %v6216_v55   ;;  %vm5413_vm10 = vcmp.gt.f32.partialorder %v13525_v23, 20.0  ;;  %v5713_v22 = vadd.f32 1.0, %v5712_v60 }
 0x4b6   : > { %6570 = vmatpush.msrb.mxu2 %v6180_v6  ;;  %7129 = vset.pattern.permute.xlu0 %v8255_v37  ;;  %v5705_v54 = vmul.f32 %v13541_v39, %v5704_v45  ;;  %v5715_v11 = vand.u32 2147483647, %v13562_v52  ;;  %vm5707_vm11 = vcmp.lt.f32.partialorder %v5706_v40, 0.0004427343  ;;  %vm5396_vm12 = vcmp.gt.f32.partialorder %v14744_v30, 20.0 }
 0x4b7   : > { %v8151_v42 = vpop.eup %8150  ;;  %v5861_v43 = vsel %vm5860_vm9, %v5858_v29, %v5855_v63  ;;  %v5714_v51 = vmul.f32 %v13562_v52, %v5713_v22  ;;  %vm5397_vm14 = vcmp.gt.f32.partialorder %v13406_v10, 20.0 }
 0x4b8   : > { %v6181_v59 = vsel %vm5413_vm10, %v13525_v23, %v5861_v43  ;;  %v5702_v27 = vmul.f32 0.6931472, %v8151_v42  ;;  %vm5716_vm13 = vcmp.lt.f32.partialorder %v5715_v11, 0.0004427343  ;;  %v6251_v52 = vpop.f32.mrf.mxu0 }
 0x4b9   : > { %6593 = vmatpush.msrb.mxu3 %v6181_v59  ;;  %v6274_v3 = vpop.f32.mrf.mxu1 }
 0x4ba   : > { %v8153_v19 = vpop.eup %8152  ;;  %v5708_v49 = vsel %vm5707_vm11, %v5705_v54, %v5702_v27 }
 0x4bb   : > { %v6164_v44 = vsel %vm5396_vm12, %v14744_v30, %v5708_v49  ;;  %v5711_v21 = vmul.f32 0.6931472, %v8153_v19 }
 0x4bc   : > { %6571 = vmatpush.msrb.mxu2 %v6164_v44 }
 0x4bd   : > { %v5717_v23 = vsel %vm5716_vm13, %v5714_v51, %v5711_v21  ;;  %7067 = vmatmul.msk.f32.vlgmr.msrb.gmra.mxu2 %vm1593_vm4, %v13798_v12 }
 0x4be   : > { %v6165_v39 = vsel %vm5397_vm14, %v13406_v10, %v5717_v23 }
 0x4bf   : > { %6594 = vmatpush.msrb.mxu3 %v6165_v39  ;;  %v6297_v47 = vpop.f32.mrf.mxu2 }
 0x4c0   : > { %7069 = vmatmul.msk.f32.vlgmr.msrb.gmra.mxu3 %vm1593_vm4, %v13798_v12  ;;  %v6320_v7 = vpop.f32.mrf.mxu3 }
 0x4c5   : > { %7068 = vmatmul.msk.f32.gmra.mxu2 %vm1593_vm4, %v13506_v0 }
 0x4c8   : > { %7070 = vmatmul.msk.f32.gmra.mxu3 %vm1593_vm4, %v13506_v0 }
 0x4e6   : > { %v6254_v16 = vpop.f32.mrf.mxu0 }
 0x4e7   : > { %v6277_v56 = vpop.f32.mrf.mxu1 }
 0x4ed   : > { %v6300_v61 = vpop.f32.mrf.mxu2 }
 0x4ee   : > { %v6323_v10 = vpop.f32.mrf.mxu3  ;;  %v6343_v12 = vpop.f32.mrf.mxu0 }
 0x4ef   : > { %v6366_v4 = vpop.f32.mrf.mxu1 }
 0x4f5   : > { %v6389_v35 = vpop.f32.mrf.mxu2 }
 0x4f6   : > { %v6412_v36 = vpop.f32.mrf.mxu3  ;;  %v6346_v62 = vpop.f32.mrf.mxu0 }
 0x4f7   : > { %v6369_v32 = vpop.f32.mrf.mxu1 }
 0x4fd   : > { %v6392_v2 = vpop.f32.mrf.mxu2 }
 0x4fe   : > { %v6415_v41 = vpop.f32.mrf.mxu3  ;;  %v6435_v28 = vpop.f32.mrf.mxu0 }
 0x4ff   : > { %v6458_v34 = vpop.f32.mrf.mxu1 }
 0x506   : > { %v6438_v25 = vpop.f32.mrf.mxu0 }
 0x507   : > { %v6461_v60 = vpop.f32.mrf.mxu1 }
 0x50f   : > { %v13872_v24 = vpop.permute.xlu2 %6220 }
 0x510   : > { %v6252_v31 = vadd.f32 %v6251_v52, %v13872_v24  ;;  %v6275_v17 = vadd.f32 %v6274_v3, %v13872_v24  ;;  %v6298_v0 = vadd.f32 %v6297_v47, %v13872_v24  ;;  %v6321_v1 = vadd.f32 %v6320_v7, %v13872_v24 }
 0x511   : > { %v6344_v5 = vadd.f32 %v6343_v12, %v13872_v24  ;;  %v6367_v58 = vadd.f32 %v6366_v4, %v13872_v24  ;;  %v6390_v57 = vadd.f32 %v6389_v35, %v13872_v24  ;;  %v6413_v53 = vadd.f32 %v6412_v36, %v13872_v24 }
 0x512   : > { %6602 = vst [vmem:[%s13878_s9] sm:$0xff] %v6252_v31  ;;  %v6436_v38 = vadd.f32 %v6435_v28, %v13872_v24  ;;  %v6459_v13 = vadd.f32 %v6458_v34, %v13872_v24 }
 0x513   : > { %6603 = vst [vmem:[%s13878_s9 + $0x8] sm:$0xff] %v6275_v17 }
 0x514   : > { %6604 = vst [vmem:[%s13878_s9 + $0x10] sm:$0xff] %v6298_v0 }
 0x515   : > { %6605 = vst [vmem:[%s13878_s9 + $0x18] sm:$0xff] %v6321_v1  ;;  %v6481_v14 = vpop.f32.mrf.mxu2 }
 0x516   : > { %6606 = vst [vmem:[%s13878_s9 + $0x20] sm:$0xff] %v6344_v5  ;;  %v6482_v48 = vadd.f32 %v6481_v14, %v13872_v24 }
 0x517   : > { %6607 = vst [vmem:[%s13878_s9 + $0x28] sm:$0xff] %v6367_v58 }
 0x518   : > { %6608 = vst [vmem:[%s13878_s9 + $0x30] sm:$0xff] %v6390_v57  ;;  %v6504_v46 = vpop.f32.mrf.mxu3 }
 0x519   : > { %6609 = vst [vmem:[%s13878_s9 + $0x38] sm:$0xff] %v6413_v53  ;;  %v6505_v26 = vadd.f32 %v6504_v46, %v13872_v24 }
 0x51a   : > { %6610 = vst [vmem:[%s13878_s9 + $0x40] sm:$0xff] %v6436_v38 }
 0x51b   : > { %6611 = vst [vmem:[%s13878_s9 + $0x48] sm:$0xff] %v6459_v13 }
 0x51c   : > { %6612 = vst [vmem:[%s13878_s9 + $0x50] sm:$0xff] %v6482_v48 }
 0x51d   : > { %6613 = vst [vmem:[%s13878_s9 + $0x58] sm:$0xff] %v6505_v26  ;;  %v6484_v37 = vpop.f32.mrf.mxu2 }
 0x520   : > { %v6507_v63 = vpop.f32.mrf.mxu3 }
 0x525   : > { %v6527_v40 = vpop.f32.mrf.mxu0 }
 0x526   : > { %v6528_v22 = vadd.f32 %v6527_v40, %v13872_v24 }
 0x527   : > { %v6226_v20 = vpop.permute.xlu1 %6225 }
 0x528   : > { %v6255_v15 = vadd.f32 %v6254_v16, %v6226_v20  ;;  %v6278_v9 = vadd.f32 %v6277_v56, %v6226_v20  ;;  %v6301_v8 = vadd.f32 %v6300_v61, %v6226_v20  ;;  %v6324_v50 = vadd.f32 %v6323_v10, %v6226_v20  ;;  %v6550_v59 = vpop.f32.mrf.mxu1  ;;  %6614 = vst [vmem:[%s13878_s9 + $0x60] sm:$0xff] %v6528_v22 }
 0x529   : > { %v6347_v55 = vadd.f32 %v6346_v62, %v6226_v20  ;;  %v6370_v33 = vadd.f32 %v6369_v32, %v6226_v20  ;;  %v6393_v18 = vadd.f32 %v6392_v2, %v6226_v20  ;;  %v6416_v45 = vadd.f32 %v6415_v41, %v6226_v20 }
 0x52a   : > { %6618 = vst [vmem:[%s13878_s9 + $0x80] sm:$0xff] %v6255_v15  ;;  %v6439_v6 = vadd.f32 %v6438_v25, %v6226_v20  ;;  %v6462_v29 = vadd.f32 %v6461_v60, %v6226_v20  ;;  %v6485_v42 = vadd.f32 %v6484_v37, %v6226_v20  ;;  %v6508_v43 = vadd.f32 %v6507_v63, %v6226_v20 }
 0x52b   : > { %6619 = vst [vmem:[%s13878_s9 + $0x88] sm:$0xff] %v6278_v9  ;;  %v6551_v27 = vadd.f32 %v6550_v59, %v13872_v24 }
 0x52c   : > { %6620 = vst [vmem:[%s13878_s9 + $0x90] sm:$0xff] %v6301_v8 }
 0x52d   : > { %6621 = vst [vmem:[%s13878_s9 + $0x98] sm:$0xff] %v6324_v50  ;;  %v6530_v54 = vpop.f32.mrf.mxu0 }
 0x52e   : > { %6622 = vst [vmem:[%s13878_s9 + $0xa0] sm:$0xff] %v6347_v55  ;;  %v6531_v11 = vadd.f32 %v6530_v54, %v6226_v20 }
 0x52f   : > { %6623 = vst [vmem:[%s13878_s9 + $0xa8] sm:$0xff] %v6370_v33 }
 0x530   : > { %6624 = vst [vmem:[%s13878_s9 + $0xb0] sm:$0xff] %v6393_v18  ;;  %v6553_v19 = vpop.f32.mrf.mxu1 }
 0x531   : > { %6625 = vst [vmem:[%s13878_s9 + $0xb8] sm:$0xff] %v6416_v45  ;;  %v6554_v30 = vadd.f32 %v6553_v19, %v6226_v20 }
 0x532   : > { %6626 = vst [vmem:[%s13878_s9 + $0xc0] sm:$0xff] %v6439_v6 }
 0x533   : > { %6627 = vst [vmem:[%s13878_s9 + $0xc8] sm:$0xff] %v6462_v29 }
 0x534   : > { %6628 = vst [vmem:[%s13878_s9 + $0xd0] sm:$0xff] %v6485_v42 }
 0x535   : > { %6629 = vst [vmem:[%s13878_s9 + $0xd8] sm:$0xff] %v6508_v43 }
 0x536   : > { %6615 = vst [vmem:[%s13878_s9 + $0x68] sm:$0xff] %v6551_v27 }
 0x537   : > { %6630 = vst [vmem:[%s13878_s9 + $0xe0] sm:$0xff] %v6531_v11 }
 0x538   : > { %6631 = vst [vmem:[%s13878_s9 + $0xe8] sm:$0xff] %v6554_v30 }
 0x540   : > { %v6573_v49 = vpop.f32.mrf.mxu2 }
 0x541   : > { %v6574_v44 = vadd.f32 %v6573_v49, %v13872_v24 }
 0x543   : > { %6616 = vst [vmem:[%s13878_s9 + $0x70] sm:$0xff] %v6574_v44  ;;  %v6596_v21 = vpop.f32.mrf.mxu3 }
 0x544   : > { %v6597_v51 = vadd.f32 %v6596_v21, %v13872_v24 }
 0x546   : > { %6617 = vst [vmem:[%s13878_s9 + $0x78] sm:$0xff] %v6597_v51 }
 0x548   : > { %v6576_v23 = vpop.f32.mrf.mxu2 }
 0x549   : > { %v6577_v39 = vadd.f32 %v6576_v23, %v6226_v20 }
 0x54b   : > { %6632 = vst [vmem:[%s13878_s9 + $0xf0] sm:$0xff] %v6577_v39  ;;  %v6599_v52 = vpop.f32.mrf.mxu3 }
 0x54c   : > { %v6600_v3 = vadd.f32 %v6599_v52, %v6226_v20 }
 0x54e   : > { %6633 = vst [vmem:[%s13878_s9 + $0xf8] sm:$0xff] %v6600_v3 }
 0x54f   : > { %8216 = shalt.err (!%p8213_p3)
}
 0x550   : > { %s8256_s6 = smov 2048   ;;  %s8257_s7 = smov 4096  }
 0x551   : > { %s8258_s28 = smov 128  }
 0x552   : > { %7077 = dma.vmem_to_hbm [thread:$0]  (%p8317_p5), %s6648_s20, 4096, %s6650_s24, %s6635_s16, %s8256_s6, %s8257_s7, %s8258_s28  }
 0x553 PF: > { %p7083_p4 = scmp.ge.s32.totalorder %s8251_s15, 2  ;;  %s6664_s8 = sand.u32 1, %s8239_s12  }
 0x554   : > { %s6665_s9 = scalar_lea.sflag [#allocation3], %s6664_s8 }
 0x555   : > { %p7080_p7 = pnand %p7083_p4, %p8321_p6 }
 0x557   : > { %p7081_p8 = pneg %p7080_p7 }
 0x559   : > { %8234 = dma.done.wait (%p7081_p8), %s6665_s9, 4096  }
 0x55a   : > { %8236 = vsyncadd (%p7081_p8), %s6665_s9, 4294963200  ;;  %p13_p9 = scmp.ge.s32.totalorder %s8304_s18, 4   ;;  %s14745_s12 = smov %s8243_s13 }
 0x55b   : > { %s14746_s13 = smov %s8247_s14  ;;  %s14747_s14 = smov %s8315_s21 }
 0x55c   : > { %s14748_s15 = smov %s8304_s18  ;;  %15 = sbr.rel (!%p13_p9) target bundleno = 3 (0x3), region = 67 }
 0x561   :  { %6671 = vsyncpa [#allocation3], 1 }
 0x562   :  { %6673 = vsyncpa [#allocation3 + $0x1], 1 }

</bundles_post_ra>
